<compile_context>
chip_gen: v7x
topology: tpu7x:2x2x1
jax: 0.10.0
libtpu: 0.0.40
codegen_flags: <defaults>
</compile_context>

<pallas_src>
import functools

import jax
import jax.numpy as jnp
from jax import lax
from jax.experimental import pallas as pl
from jax.experimental.pallas import tpu as pltpu


def _attention_kernel(x_ref, wqkv_ref, wout_ref, bout_ref, o_ref, ho_ref,
                      *, heads, dim_head, n_valid):
    # x_ref:    (B_blk, N_pad, dim)      compute dtype (f32 or bf16)
    # wqkv_ref: (dim, 3*inner)           Q third pre-scaled by dim_head**-0.5
    # wout_ref: (inner, dim_pad)         output projection, lane-padded columns
    # bout_ref: (1, dim_pad)             f32 bias, lane-padded
    # o_ref:    (B_blk, N_pad, dim_pad)  output block
    # ho_ref:   (B_blk, N_pad, inner)    f32 VMEM scratch: head outputs, heads-major
    b_blk, n_pad, dim = x_ref.shape
    inner = heads * dim_head
    dim_pad = o_ref.shape[-1]
    cdt = x_ref.dtype

    # ---- Full-width QKV projection: one lane-dense MXU matmul for all heads.
    x2 = x_ref[...].reshape(b_blk * n_pad, dim)
    qkv = jnp.dot(x2, wqkv_ref[...], preferred_element_type=jnp.float32)
    qkv = qkv.astype(cdt).reshape(b_blk, n_pad, 3 * inner)

    # Key-padding mask (n_valid is a Python int -> compile-time constant mask).
    need_mask = n_pad != n_valid
    if need_mask:
        key_idx = lax.broadcasted_iota(jnp.int32, (b_blk, n_pad, n_pad), 2)
        key_ok = key_idx < n_valid

    # ---- Per-head attention (static unrolled loop; heads stay off the grid).
    for h in range(heads):
        q_h = qkv[:, :, h * dim_head:(h + 1) * dim_head]                  # (B,N,dh)
        k_h = qkv[:, :, inner + h * dim_head: inner + (h + 1) * dim_head]
        v_h = qkv[:, :, 2 * inner + h * dim_head: 2 * inner + (h + 1) * dim_head]

        # Scores: contract last dims directly (no explicit K transpose).
        s = jnp.einsum('bnd,bmd->bnm', q_h, k_h,
                       preferred_element_type=jnp.float32)                # (B,N,N) f32
        if need_mask:
            s = jnp.where(key_ok, s, -1e30)

        # Numerically-stable softmax, all f32 on the VPU/EUP.
        s = s - jnp.max(s, axis=-1, keepdims=True)
        p = jnp.exp(s)
        denom = jnp.sum(p, axis=-1, keepdims=True)
        p = p * pl.reciprocal(denom, approx=True)

        head_out = jnp.einsum('bnm,bmd->bnd', p.astype(cdt), v_h,
                              preferred_element_type=jnp.float32)          # (B,N,dh) f32
        ho_ref[:, :, h * dim_head:(h + 1) * dim_head] = head_out

    # ---- Deferred output projection: one deep matmul + bias, lane-dense store.
    ho = ho_ref[...].astype(cdt).reshape(b_blk * n_pad, inner)
    out = jnp.dot(ho, wout_ref[...], preferred_element_type=jnp.float32)
    out = out + bout_ref[...]                                              # (B*N, dim_pad)
    o_ref[...] = out.reshape(b_blk, n_pad, dim_pad).astype(o_ref.dtype)


def attention_forward(x, w_qkv, w_out, b_out, *, heads, dim_head,
                      block_b=None, compute_dtype=None):
    """Forward pass of the ViT Attention module (dropout = 0)."""
    B, N, dim = x.shape
    inner = heads * dim_head
    assert w_qkv.shape == (dim, 3 * inner)
    assert w_out.shape == (inner, dim)
    assert b_out.shape == (dim,)
    # TODO(synk): the module's project_out=False branch (heads==1 and
    # dim_head==dim -> nn.Identity) is not handled; this path always projects.

    out_dtype = x.dtype
    cdt = jnp.dtype(compute_dtype) if compute_dtype is not None else x.dtype
    scale = dim_head ** -0.5

    if block_b is None:
        block_b = max(1, min(B, 4))
    b_pad = pl.cdiv(B, block_b) * block_b
    n_pad = pl.cdiv(N, 128) * 128          # lane-dense scores / softmax
    dim_pad = pl.cdiv(dim, 128) * 128      # lane-dense output store

    # ---- Host-side one-time prep: fold scale into W_q, pad, cast.
    w_qkv_p = jnp.concatenate(
        [w_qkv[:, :inner] * scale, w_qkv[:, inner:]], axis=1).astype(cdt)
    w_out_p = w_out
    b_out_p = b_out.reshape(1, dim).astype(jnp.float32)
    if dim_pad != dim:
        w_out_p = jnp.pad(w_out_p, ((0, 0), (0, dim_pad - dim)))
        b_out_p = jnp.pad(b_out_p, ((0, 0), (0, dim_pad - dim)))
    w_out_p = w_out_p.astype(cdt)

    x_p = x.astype(cdt)
    if b_pad != B or n_pad != N:
        x_p = jnp.pad(x_p, ((0, b_pad - B), (0, n_pad - N), (0, 0)))

    kernel = functools.partial(_attention_kernel, heads=heads,
                               dim_head=dim_head, n_valid=N)

    out = pl.pallas_call(
        kernel,
        out_shape=jax.ShapeDtypeStruct((b_pad, n_pad, dim_pad), out_dtype),
        grid_spec=pltpu.PrefetchScalarGridSpec(
            num_scalar_prefetch=0,
            grid=(b_pad // block_b,),       # batch blocks only; heads in-kernel
            in_specs=[
                pl.BlockSpec((block_b, n_pad, dim), lambda b: (b, 0, 0)),
                # Weight / bias blocks are grid-constant -> DMA'd once, reused.
                pl.BlockSpec((dim, 3 * inner), lambda b: (0, 0)),
                pl.BlockSpec((inner, dim_pad), lambda b: (0, 0)),
                pl.BlockSpec((1, dim_pad), lambda b: (0, 0)),
            ],
            out_specs=pl.BlockSpec((block_b, n_pad, dim_pad),
                                   lambda b: (b, 0, 0)),
            scratch_shapes=[pltpu.VMEM((block_b, n_pad, inner), jnp.float32)],
        ),
        compiler_params=pltpu.CompilerParams(
            dimension_semantics=("parallel",)),
        # TODO(synk): at ViT-Base scale (N=197->256, dim=768) compute the VMEM
        # footprint (qkv activations + (N,N) scores + scratch, x2 for double
        # buffering) and set vmem_limit_bytes explicitly for v7x's 64 MiB VMEM.
    )(x_p, w_qkv_p, w_out_p, b_out_p)

    return out[:B, :N, :dim]


def attention_reference(x, w_qkv, w_out, b_out, *, heads, dim_head):
    """Pure-JAX reference matching the PyTorch module semantics (dropout=0)."""
    B, N, dim = x.shape
    inner = heads * dim_head
    scale = dim_head ** -0.5
    qkv = jnp.einsum("bnd,de->bne", x, w_qkv)
    q, k, v = jnp.split(qkv, 3, axis=-1)

    def split_heads(t):
        return t.reshape(B, N, heads, dim_head).transpose(0, 2, 1, 3)

    q, k, v = map(split_heads, (q, k, v))
    dots = jnp.einsum("bhnd,bhmd->bhnm", q, k) * scale
    attn = jax.nn.softmax(dots, axis=-1)
    out = jnp.einsum("bhnm,bhmd->bhnd", attn, v)
    out = out.transpose(0, 2, 1, 3).reshape(B, N, inner)
    return jnp.einsum("bni,id->bnd", out, w_out) + b_out


if __name__ == "__main__":
    # Small shapes consistent with the module: dim=32, heads=4, dim_head=8.
    B, N, dim = 4, 8, 32
    heads, dim_head = 4, 8
    inner = heads * dim_head

    key = jax.random.PRNGKey(0)
    kx, kqkv, kout, kb = jax.random.split(key, 4)
    x = jax.random.normal(kx, (B, N, dim), dtype=jnp.float32)
    w_qkv = jax.random.normal(kqkv, (dim, 3 * inner), dtype=jnp.float32) * 0.05
    w_out = jax.random.normal(kout, (inner, dim), dtype=jnp.float32) * 0.05
    b_out = jax.random.normal(kb, (dim,), dtype=jnp.float32) * 0.05

    y_ref = attention_reference(x, w_qkv, w_out, b_out,
                                heads=heads, dim_head=dim_head)

    # f32 path (tight tolerance); block_b=2 -> grid=(2,) exercises batch
    # blocking and the parallel grid axis.
    y = attention_forward(x, w_qkv, w_out, b_out, heads=heads,
                          dim_head=dim_head, block_b=2)
    y = jax.block_until_ready(y)
    assert y.shape == (B, N, dim)
    assert jnp.allclose(y, y_ref, atol=1e-3, rtol=1e-3), "f32 mismatch vs reference"

    # bf16 MXU path (softmax / accumulators stay f32); loose tolerance.
    y_bf16 = attention_forward(x, w_qkv, w_out, b_out, heads=heads,
                               dim_head=dim_head, block_b=2,
                               compute_dtype=jnp.bfloat16)
    y_bf16 = jax.block_until_ready(y_bf16)
    max_err = float(jnp.max(jnp.abs(y_bf16 - y_ref)))
    assert max_err < 5e-2, f"bf16 mismatch vs reference (max abs err {max_err})"

    print("KERNEL_OK")
</pallas_src>

<mosaic_0001>
module attributes {stable_mosaic.version = 11 : i64} {
  func.func @_attention_kernel(%arg0: i32, %arg1: memref<2x128x32xf32, #tpu.memory_space<vmem>>, %arg2: memref<32x96xf32, #tpu.memory_space<vmem>>, %arg3: memref<32x128xf32, #tpu.memory_space<vmem>>, %arg4: memref<1x128xf32, #tpu.memory_space<vmem>>, %arg5: memref<2x128x128xf32, #tpu.memory_space<vmem>>, %arg6: memref<2x128x32xf32, #tpu.memory_space<vmem>>) attributes {dimension_semantics = [#tpu.dimension_semantics<parallel>], iteration_bounds = array<i64: 2>, scalar_prefetch = 0 : i64, scratch_operands = 1 : i64, tpu.core_type = #tpu.core_type<tc>, window_params = [{transform_indices = @transform_0, window_bounds = array<i64: 2, 128, 32>}, {pipeline_mode = #tpu.pipeline_mode<synchronous>, transform_indices = @transform_1, window_bounds = array<i64: 32, 96>}, {pipeline_mode = #tpu.pipeline_mode<synchronous>, transform_indices = @transform_2, window_bounds = array<i64: 32, 128>}, {pipeline_mode = #tpu.pipeline_mode<synchronous>, transform_indices = @transform_3, window_bounds = array<i64: 1, 128>}, {transform_indices = @transform_4, window_bounds = array<i64: 2, 128, 128>}]} {
    %c0 = arith.constant 0 : index
    %c0_0 = arith.constant 0 : index
    %c0_1 = arith.constant 0 : index
    %0 = vector.load %arg1[%c0, %c0_0, %c0_1] : memref<2x128x32xf32, #tpu.memory_space<vmem>>, vector<2x128x32xf32>
    %1 = vector.shape_cast %0 : vector<2x128x32xf32> to vector<256x32xf32>
    %c0_2 = arith.constant 0 : index
    %c0_3 = arith.constant 0 : index
    %2 = vector.load %arg2[%c0_2, %c0_3] : memref<32x96xf32, #tpu.memory_space<vmem>>, vector<32x96xf32>
    %cst = arith.constant dense<0.000000e+00> : vector<256x96xf32>
    %3 = tpu.matmul %1, %2, %cst {dimension_numbers = #tpu.dot_dimension_numbers<[1], [0], [0], [1], [0, 0, 1, 1], [], []>} : vector<256x32xf32>, vector<32x96xf32>, vector<256x96xf32> -> vector<256x96xf32>
    %4 = vector.shape_cast %3 : vector<256x96xf32> to vector<2x128x96xf32>
    %5 = tpu.iota {dimensions = array<i32: 2>} : vector<2x128x128xi32>
    %c8_i32 = arith.constant 8 : i32
    %6 = vector.broadcast %c8_i32 : i32 to vector<2x128x128xi32>
    %7 = arith.cmpi slt, %5, %6 : vector<2x128x128xi32>
    %8 = vector.extract_strided_slice %4 {offsets = [0, 0, 0], sizes = [2, 128, 8], strides = [1, 1, 1]} : vector<2x128x96xf32> to vector<2x128x8xf32>
    %9 = vector.extract_strided_slice %4 {offsets = [0, 0, 32], sizes = [2, 128, 8], strides = [1, 1, 1]} : vector<2x128x96xf32> to vector<2x128x8xf32>
    %10 = vector.extract_strided_slice %4 {offsets = [0, 0, 64], sizes = [2, 128, 8], strides = [1, 1, 1]} : vector<2x128x96xf32> to vector<2x128x8xf32>
    "tpu.trace_start"() <{level = 10 : i32, message = "bnd,bmd->bnm"}> : () -> ()
    %cst_4 = arith.constant dense<0.000000e+00> : vector<2x128x128xf32>
    %11 = tpu.matmul %8, %9, %cst_4 {dimension_numbers = #tpu.dot_dimension_numbers<[2], [2], [1], [1], [0, 0, 0, 1, 1, 1], [0], [0]>} : vector<2x128x8xf32>, vector<2x128x8xf32>, vector<2x128x128xf32> -> vector<2x128x128xf32>
    %cst_5 = arith.constant -1.000000e+30 : f32
    "tpu.trace_stop"() : () -> ()
    %12 = vector.broadcast %cst_5 : f32 to vector<2x128x128xf32>
    %13 = arith.select %7, %11, %12 : vector<2x128x128xi1>, vector<2x128x128xf32>
    %cst_6 = arith.constant dense<0xFF800000> : vector<2x128xf32>
    %14 = vector.multi_reduction <maximumf>, %13, %cst_6 [2] : vector<2x128x128xf32> to vector<2x128xf32>
    %15 = vector.shape_cast %14 : vector<2x128xf32> to vector<2x128x1xf32>
    %16 = vector.broadcast %15 : vector<2x128x1xf32> to vector<2x128x128xf32>
    %17 = arith.subf %13, %16 : vector<2x128x128xf32>
    %18 = math.exp %17 : vector<2x128x128xf32>
    %cst_7 = arith.constant dense<0.000000e+00> : vector<2x128xf32>
    %19 = vector.multi_reduction <add>, %18, %cst_7 [2] : vector<2x128x128xf32> to vector<2x128xf32>
    %20 = vector.shape_cast %19 : vector<2x128xf32> to vector<2x128x1xf32>
    %21 = tpu.reciprocal %20 {approx = true} : vector<2x128x1xf32> -> vector<2x128x1xf32>
    %22 = vector.broadcast %21 : vector<2x128x1xf32> to vector<2x128x128xf32>
    %23 = arith.mulf %18, %22 : vector<2x128x128xf32>
    "tpu.trace_start"() <{level = 10 : i32, message = "bnm,bmd->bnd"}> : () -> ()
    %cst_8 = arith.constant dense<0.000000e+00> : vector<2x128x8xf32>
    %24 = tpu.matmul %23, %10, %cst_8 {dimension_numbers = #tpu.dot_dimension_numbers<[2], [1], [1], [2], [0, 0, 0, 1, 1, 2], [0], [0]>} : vector<2x128x128xf32>, vector<2x128x8xf32>, vector<2x128x8xf32> -> vector<2x128x8xf32>
    "tpu.trace_stop"() : () -> ()
    %c0_9 = arith.constant 0 : index
    %c0_10 = arith.constant 0 : index
    %c0_11 = arith.constant 0 : index
    %25 = vector.load %arg6[%c0_9, %c0_10, %c0_11] : memref<2x128x32xf32, #tpu.memory_space<vmem>>, vector<2x128x8xf32>
    tpu.vector_store %arg6[%c0_9, %c0_10, %c0_11], %24 {strides = array<i32>} : memref<2x128x32xf32, #tpu.memory_space<vmem>>, vector<2x128x8xf32>,
    %26 = vector.extract_strided_slice %4 {offsets = [0, 0, 8], sizes = [2, 128, 8], strides = [1, 1, 1]} : vector<2x128x96xf32> to vector<2x128x8xf32>
    %27 = vector.extract_strided_slice %4 {offsets = [0, 0, 40], sizes = [2, 128, 8], strides = [1, 1, 1]} : vector<2x128x96xf32> to vector<2x128x8xf32>
    %28 = vector.extract_strided_slice %4 {offsets = [0, 0, 72], sizes = [2, 128, 8], strides = [1, 1, 1]} : vector<2x128x96xf32> to vector<2x128x8xf32>
    "tpu.trace_start"() <{level = 10 : i32, message = "bnd,bmd->bnm"}> : () -> ()
    %cst_12 = arith.constant dense<0.000000e+00> : vector<2x128x128xf32>
    %29 = tpu.matmul %26, %27, %cst_12 {dimension_numbers = #tpu.dot_dimension_numbers<[2], [2], [1], [1], [0, 0, 0, 1, 1, 1], [0], [0]>} : vector<2x128x8xf32>, vector<2x128x8xf32>, vector<2x128x128xf32> -> vector<2x128x128xf32>
    %cst_13 = arith.constant -1.000000e+30 : f32
    "tpu.trace_stop"() : () -> ()
    %30 = vector.broadcast %cst_13 : f32 to vector<2x128x128xf32>
    %31 = arith.select %7, %29, %30 : vector<2x128x128xi1>, vector<2x128x128xf32>
    %cst_14 = arith.constant dense<0xFF800000> : vector<2x128xf32>
    %32 = vector.multi_reduction <maximumf>, %31, %cst_14 [2] : vector<2x128x128xf32> to vector<2x128xf32>
    %33 = vector.shape_cast %32 : vector<2x128xf32> to vector<2x128x1xf32>
    %34 = vector.broadcast %33 : vector<2x128x1xf32> to vector<2x128x128xf32>
    %35 = arith.subf %31, %34 : vector<2x128x128xf32>
    %36 = math.exp %35 : vector<2x128x128xf32>
    %cst_15 = arith.constant dense<0.000000e+00> : vector<2x128xf32>
    %37 = vector.multi_reduction <add>, %36, %cst_15 [2] : vector<2x128x128xf32> to vector<2x128xf32>
    %38 = vector.shape_cast %37 : vector<2x128xf32> to vector<2x128x1xf32>
    %39 = tpu.reciprocal %38 {approx = true} : vector<2x128x1xf32> -> vector<2x128x1xf32>
    %40 = vector.broadcast %39 : vector<2x128x1xf32> to vector<2x128x128xf32>
    %41 = arith.mulf %36, %40 : vector<2x128x128xf32>
    "tpu.trace_start"() <{level = 10 : i32, message = "bnm,bmd->bnd"}> : () -> ()
    %cst_16 = arith.constant dense<0.000000e+00> : vector<2x128x8xf32>
    %42 = tpu.matmul %41, %28, %cst_16 {dimension_numbers = #tpu.dot_dimension_numbers<[2], [1], [1], [2], [0, 0, 0, 1, 1, 2], [0], [0]>} : vector<2x128x128xf32>, vector<2x128x8xf32>, vector<2x128x8xf32> -> vector<2x128x8xf32>
    "tpu.trace_stop"() : () -> ()
    %c0_17 = arith.constant 0 : index
    %c0_18 = arith.constant 0 : index
    %c8 = arith.constant 8 : index
    %43 = vector.load %arg6[%c0_17, %c0_18, %c8] : memref<2x128x32xf32, #tpu.memory_space<vmem>>, vector<2x128x8xf32>
    tpu.vector_store %arg6[%c0_17, %c0_18, %c8], %42 {strides = array<i32>} : memref<2x128x32xf32, #tpu.memory_space<vmem>>, vector<2x128x8xf32>,
    %44 = vector.extract_strided_slice %4 {offsets = [0, 0, 16], sizes = [2, 128, 8], strides = [1, 1, 1]} : vector<2x128x96xf32> to vector<2x128x8xf32>
    %45 = vector.extract_strided_slice %4 {offsets = [0, 0, 48], sizes = [2, 128, 8], strides = [1, 1, 1]} : vector<2x128x96xf32> to vector<2x128x8xf32>
    %46 = vector.extract_strided_slice %4 {offsets = [0, 0, 80], sizes = [2, 128, 8], strides = [1, 1, 1]} : vector<2x128x96xf32> to vector<2x128x8xf32>
    "tpu.trace_start"() <{level = 10 : i32, message = "bnd,bmd->bnm"}> : () -> ()
    %cst_19 = arith.constant dense<0.000000e+00> : vector<2x128x128xf32>
    %47 = tpu.matmul %44, %45, %cst_19 {dimension_numbers = #tpu.dot_dimension_numbers<[2], [2], [1], [1], [0, 0, 0, 1, 1, 1], [0], [0]>} : vector<2x128x8xf32>, vector<2x128x8xf32>, vector<2x128x128xf32> -> vector<2x128x128xf32>
    %cst_20 = arith.constant -1.000000e+30 : f32
    "tpu.trace_stop"() : () -> ()
    %48 = vector.broadcast %cst_20 : f32 to vector<2x128x128xf32>
    %49 = arith.select %7, %47, %48 : vector<2x128x128xi1>, vector<2x128x128xf32>
    %cst_21 = arith.constant dense<0xFF800000> : vector<2x128xf32>
    %50 = vector.multi_reduction <maximumf>, %49, %cst_21 [2] : vector<2x128x128xf32> to vector<2x128xf32>
    %51 = vector.shape_cast %50 : vector<2x128xf32> to vector<2x128x1xf32>
    %52 = vector.broadcast %51 : vector<2x128x1xf32> to vector<2x128x128xf32>
    %53 = arith.subf %49, %52 : vector<2x128x128xf32>
    %54 = math.exp %53 : vector<2x128x128xf32>
    %cst_22 = arith.constant dense<0.000000e+00> : vector<2x128xf32>
    %55 = vector.multi_reduction <add>, %54, %cst_22 [2] : vector<2x128x128xf32> to vector<2x128xf32>
    %56 = vector.shape_cast %55 : vector<2x128xf32> to vector<2x128x1xf32>
    %57 = tpu.reciprocal %56 {approx = true} : vector<2x128x1xf32> -> vector<2x128x1xf32>
    %58 = vector.broadcast %57 : vector<2x128x1xf32> to vector<2x128x128xf32>
    %59 = arith.mulf %54, %58 : vector<2x128x128xf32>
    "tpu.trace_start"() <{level = 10 : i32, message = "bnm,bmd->bnd"}> : () -> ()
    %cst_23 = arith.constant dense<0.000000e+00> : vector<2x128x8xf32>
    %60 = tpu.matmul %59, %46, %cst_23 {dimension_numbers = #tpu.dot_dimension_numbers<[2], [1], [1], [2], [0, 0, 0, 1, 1, 2], [0], [0]>} : vector<2x128x128xf32>, vector<2x128x8xf32>, vector<2x128x8xf32> -> vector<2x128x8xf32>
    "tpu.trace_stop"() : () -> ()
    %c0_24 = arith.constant 0 : index
    %c0_25 = arith.constant 0 : index
    %c16 = arith.constant 16 : index
    %61 = vector.load %arg6[%c0_24, %c0_25, %c16] : memref<2x128x32xf32, #tpu.memory_space<vmem>>, vector<2x128x8xf32>
    tpu.vector_store %arg6[%c0_24, %c0_25, %c16], %60 {strides = array<i32>} : memref<2x128x32xf32, #tpu.memory_space<vmem>>, vector<2x128x8xf32>,
    %62 = vector.extract_strided_slice %4 {offsets = [0, 0, 24], sizes = [2, 128, 8], strides = [1, 1, 1]} : vector<2x128x96xf32> to vector<2x128x8xf32>
    %63 = vector.extract_strided_slice %4 {offsets = [0, 0, 56], sizes = [2, 128, 8], strides = [1, 1, 1]} : vector<2x128x96xf32> to vector<2x128x8xf32>
    %64 = vector.extract_strided_slice %4 {offsets = [0, 0, 88], sizes = [2, 128, 8], strides = [1, 1, 1]} : vector<2x128x96xf32> to vector<2x128x8xf32>
    "tpu.trace_start"() <{level = 10 : i32, message = "bnd,bmd->bnm"}> : () -> ()
    %cst_26 = arith.constant dense<0.000000e+00> : vector<2x128x128xf32>
    %65 = tpu.matmul %62, %63, %cst_26 {dimension_numbers = #tpu.dot_dimension_numbers<[2], [2], [1], [1], [0, 0, 0, 1, 1, 1], [0], [0]>} : vector<2x128x8xf32>, vector<2x128x8xf32>, vector<2x128x128xf32> -> vector<2x128x128xf32>
    %cst_27 = arith.constant -1.000000e+30 : f32
    "tpu.trace_stop"() : () -> ()
    %66 = vector.broadcast %cst_27 : f32 to vector<2x128x128xf32>
    %67 = arith.select %7, %65, %66 : vector<2x128x128xi1>, vector<2x128x128xf32>
    %cst_28 = arith.constant dense<0xFF800000> : vector<2x128xf32>
    %68 = vector.multi_reduction <maximumf>, %67, %cst_28 [2] : vector<2x128x128xf32> to vector<2x128xf32>
    %69 = vector.shape_cast %68 : vector<2x128xf32> to vector<2x128x1xf32>
    %70 = vector.broadcast %69 : vector<2x128x1xf32> to vector<2x128x128xf32>
    %71 = arith.subf %67, %70 : vector<2x128x128xf32>
    %72 = math.exp %71 : vector<2x128x128xf32>
    %cst_29 = arith.constant dense<0.000000e+00> : vector<2x128xf32>
    %73 = vector.multi_reduction <add>, %72, %cst_29 [2] : vector<2x128x128xf32> to vector<2x128xf32>
    %74 = vector.shape_cast %73 : vector<2x128xf32> to vector<2x128x1xf32>
    %75 = tpu.reciprocal %74 {approx = true} : vector<2x128x1xf32> -> vector<2x128x1xf32>
    %76 = vector.broadcast %75 : vector<2x128x1xf32> to vector<2x128x128xf32>
    %77 = arith.mulf %72, %76 : vector<2x128x128xf32>
    "tpu.trace_start"() <{level = 10 : i32, message = "bnm,bmd->bnd"}> : () -> ()
    %cst_30 = arith.constant dense<0.000000e+00> : vector<2x128x8xf32>
    %78 = tpu.matmul %77, %64, %cst_30 {dimension_numbers = #tpu.dot_dimension_numbers<[2], [1], [1], [2], [0, 0, 0, 1, 1, 2], [0], [0]>} : vector<2x128x128xf32>, vector<2x128x8xf32>, vector<2x128x8xf32> -> vector<2x128x8xf32>
    "tpu.trace_stop"() : () -> ()
    %c0_31 = arith.constant 0 : index
    %c0_32 = arith.constant 0 : index
    %c24 = arith.constant 24 : index
    %79 = vector.load %arg6[%c0_31, %c0_32, %c24] : memref<2x128x32xf32, #tpu.memory_space<vmem>>, vector<2x128x8xf32>
    tpu.vector_store %arg6[%c0_31, %c0_32, %c24], %78 {strides = array<i32>} : memref<2x128x32xf32, #tpu.memory_space<vmem>>, vector<2x128x8xf32>,
    %c0_33 = arith.constant 0 : index
    %c0_34 = arith.constant 0 : index
    %c0_35 = arith.constant 0 : index
    %80 = vector.load %arg6[%c0_33, %c0_34, %c0_35] : memref<2x128x32xf32, #tpu.memory_space<vmem>>, vector<2x128x32xf32>
    %81 = vector.shape_cast %80 : vector<2x128x32xf32> to vector<256x32xf32>
    %c0_36 = arith.constant 0 : index
    %c0_37 = arith.constant 0 : index
    %82 = vector.load %arg3[%c0_36, %c0_37] : memref<32x128xf32, #tpu.memory_space<vmem>>, vector<32x128xf32>
    %cst_38 = arith.constant dense<0.000000e+00> : vector<256x128xf32>
    %83 = tpu.matmul %81, %82, %cst_38 {dimension_numbers = #tpu.dot_dimension_numbers<[1], [0], [0], [1], [0, 0, 1, 1], [], []>} : vector<256x32xf32>, vector<32x128xf32>, vector<256x128xf32> -> vector<256x128xf32>
    %c0_39 = arith.constant 0 : index
    %c0_40 = arith.constant 0 : index
    %84 = vector.load %arg4[%c0_39, %c0_40] : memref<1x128xf32, #tpu.memory_space<vmem>>, vector<1x128xf32>
    %85 = vector.broadcast %84 : vector<1x128xf32> to vector<256x128xf32>
    %86 = arith.addf %83, %85 : vector<256x128xf32>
    %87 = vector.shape_cast %86 : vector<256x128xf32> to vector<2x128x128xf32>
    %c0_41 = arith.constant 0 : index
    %c0_42 = arith.constant 0 : index
    %c0_43 = arith.constant 0 : index
    %88 = vector.load %arg5[%c0_41, %c0_42, %c0_43] : memref<2x128x128xf32, #tpu.memory_space<vmem>>, vector<2x128x128xf32>
    tpu.vector_store %arg5[%c0_41, %c0_42, %c0_43], %87 {strides = array<i32>} : memref<2x128x128xf32, #tpu.memory_space<vmem>>, vector<2x128x128xf32>,
    return
  }
  func.func @transform_0(%arg0: i32) -> (i32, i32, i32) {
    %c0_i32 = arith.constant 0 : i32
    %c0_i32_0 = arith.constant 0 : i32
    %c0_i32_1 = arith.constant 0 : i32
    return %arg0, %c0_i32, %c0_i32_0 : i32, i32, i32
  }
  func.func @transform_1(%arg0: i32) -> (i32, i32) {
    %c0_i32 = arith.constant 0 : i32
    %c0_i32_0 = arith.constant 0 : i32
    %c0_i32_1 = arith.constant 0 : i32
    return %c0_i32, %c0_i32_0 : i32, i32
  }
  func.func @transform_2(%arg0: i32) -> (i32, i32) {
    %c0_i32 = arith.constant 0 : i32
    %c0_i32_0 = arith.constant 0 : i32
    %c0_i32_1 = arith.constant 0 : i32
    return %c0_i32, %c0_i32_0 : i32, i32
  }
  func.func @transform_3(%arg0: i32) -> (i32, i32) {
    %c0_i32 = arith.constant 0 : i32
    %c0_i32_0 = arith.constant 0 : i32
    %c0_i32_1 = arith.constant 0 : i32
    return %c0_i32, %c0_i32_0 : i32, i32
  }
  func.func @transform_4(%arg0: i32) -> (i32, i32, i32) {
    %c0_i32 = arith.constant 0 : i32
    %c0_i32_0 = arith.constant 0 : i32
    %c0_i32_1 = arith.constant 0 : i32
    return %arg0, %c0_i32, %c0_i32_0 : i32, i32, i32
  }
}

</mosaic_0001>

<bundles_post_ra>
// kernel: tpu_custom_call.1
= control target key start
LH: loop header
LB: loop body
LE: loop exit
PB: predicated region body
PF: predicated region fallthrough
CT: control target
= control target key end

     0   :  { %9 = vsyncpa [#allocation4], 0  ;;  %s13865_s0 = inlined_call_operand.vmem [shape: f32[4,128,32], index: 0, kind: input, shape index: {}]   ;;  %s13866_s1 = inlined_call_operand.vmem [shape: f32[32,96], index: 1, kind: input, shape index: {}]   ;;  %s13867_s2 = inlined_call_operand.vmem [shape: f32[32,128], index: 2, kind: input, shape index: {}]   ;;  %s13868_s3 = inlined_call_operand.vmem [shape: f32[1,128], index: 3, kind: input, shape index: {}]   ;;  %s13869_s4 = inlined_call_operand.hbm [shape: f32[4,128,128], index: 4, kind: output, shape index: {}]  }
   0x1   :  { %11 = vsyncpa [#allocation4 + $0x1], 0  ;;  %s10429_s15 = smov 0   ;;  %s10431_s16 = smov 0  }
   0x2   :  { %s10433_s17 = smov 0   ;;  %s10435_s18 = smov 0  }
   0x3 LB: > { %s10450_s19 = sadd.s32 4294967295, %s10386_s18   ;;  %s6528_s20 = sadd.s32 4294967294, %s10386_s18   ;;  %s10386_s18 = sphi %s10435_s18, %s14407_s18   ;;  %s10382_s17 = sphi %s10433_s17, %s14406_s17   ;;  %s10378_s16 = sphi %s10431_s16, %s14405_s16   ;;  %s10374_s15 = sphi %s10429_s15, %s14404_s15  }
   0x4   : > { %s10454_s21 = sadd.s32 1, %s10386_s18   ;;  %s113_s22 = sadd.s32 1, %s10382_s17 }
   0x5   : > { %s110_s23 = ssub.s32 %s10386_s18, %s10454_s21  ;;  %p123_p0 = scmp.ne.s32.totalorder %s10382_s17, %s10378_s16 }
   0x6   : > { %p111_p1 = scmp.eq.s32.totalorder %s110_s23, 0  ;;  %p124_p2 = scmp.eq.s32.totalorder %s10450_s19, 1 }
   0x7   : > { %p129_p3 = scmp.ne.s32.totalorder %s10378_s16, %s10374_s15  ;;  %p130_p4 = scmp.eq.s32.totalorder %s6528_s20, 1 }
   0x8   : > { %s10465_s24 = scalar_select %p111_p1, %s10382_s17, %s113_s22  }
   0x9   : > { %p10467_p5 = por %p124_p2, %p123_p0  ;;  %p10471_p6 = por %p130_p4, %p129_p3 }
   0xa   : > { %p6531_p7 = scmp.ge.s32.totalorder %s10386_s18, 1  ;;  %p167_p8 = scmp.lt.s32.totalorder %s10386_s18, 3 }
   0xc   : > { %p168_p9 = pnand %p6531_p7, %p167_p8 }
   0xe   : > { %171 = sbr.rel (%p168_p9) target bundleno = 4190 (0x105e), region = 36 }
  0x15   : > { %v234_v0 = vld [vmem:[%s13866_s1] sm:$0xff]  ;;  %v235_v1 = vld [vmem:[%s13866_s1 + $0x8] sm:$0xff]  ;;  %v236_v2 = vld [vmem:[%s13866_s1 + $0x10] sm:$0xff]  ;;  %s6533_s7 = sshll.u32 %s10450_s19, 1  ;;  %vm238_vm0 = vcmask 261120   ;;  %vm611_vm1 = vcmask 64512  }
  0x16   : > { %v8458_v3 = vpack.c.bf16 %v235_v1, %v234_v0  ;;  %v237_v4 = vld [vmem:[%s13866_s1 + $0x18] sm:$0xff]  ;;  %p195_p10 = scmp.lt.s32.totalorder %s6533_s7, 3  ;;  %s10388_s14 = smov 96   ;;  %vm10811_vm2 = vmpackc.low %vm611_vm1, %vm611_vm1  ;;  %vm3196_vm4 = vcmask 130112   ;;  %vm4609_vm5 = vcmask 195712   ;;  %vm6022_vm6 = vcmask 261312  }
  0x17   : > { %v8462_v5 = vpack.c.bf16 %v237_v4, %v236_v2  ;;  %s10389_s20 = smov 64   ;;  %s10390_s22 = smov 88  }
  0x18   : > { %8459 = vmatprep.subr.bf16.mxu0 %v8458_v3  ;;  %s14409_s7 = smov (!%p195_p10, %s6533_s7), 3  ;;  %s10391_s23 = smov 120  }
  0x19   : > { %8461 = vmatpush3.bf16.msra.mxu0 %v8458_v3  ;;  %s6863_s10 = sshll.u32 %s14409_s7, 7  ;;  %s10392_s27 = smov 56  }
  0x1a   : > { %8463 = vmatprep.subr.bf16.mxu0 %v8462_v5  ;;  %s10493_s13 = scalar_lea.vmem %s13865_s0, %s6863_s10  ;;  %s10393_s28 = smov 80  }
  0x1b   : > { %v202_v6 = vld [vmem:[%s10493_s13] sm:$0xff]  ;;  %v203_v7 = vld [vmem:[%s10493_s13 + $0x8] sm:$0xff]  ;;  %v204_v8 = vld [vmem:[%s10493_s13 + $0x10] sm:$0xff]  ;;  %s10394_s29 = smov 112   ;;  %s10395_s30 = smov 48  }
  0x1c   : > { %7458 = vmatprep.mubr.msk.f32.mxu0 %vm238_vm0, %v202_v6  ;;  %v205_v9 = vld [vmem:[%s10493_s13 + $0x18] sm:$0xff]  ;;  %v206_v10 = vld [vmem:[%s10493_s13 + $0x20] sm:$0xff]  ;;  %v207_v11 = vld [vmem:[%s10493_s13 + $0x28] sm:$0xff]  ;;  %s10396_s5 = smov 72   ;;  %s10397_s6 = smov 104  }
  0x1d   : > { %8465 = vmatpush3.bf16.msra.mxu0 %v8462_v5  ;;  %v208_v12 = vld [vmem:[%s10493_s13 + $0x30] sm:$0xff]  ;;  %v209_v13 = vld [vmem:[%s10493_s13 + $0x38] sm:$0xff]  ;;  %v210_v14 = vld [vmem:[%s10493_s13 + $0x40] sm:$0xff]  ;;  %s10398_s7 = smov 40   ;;  %s10399_s8 = smov 16  }
  0x1e   : > { %v211_v15 = vld [vmem:[%s10493_s13 + $0x48] sm:$0xff]  ;;  %v212_v16 = vld [vmem:[%s10493_s13 + $0x50] sm:$0xff]  ;;  %v213_v17 = vld [vmem:[%s10493_s13 + $0x58] sm:$0xff]  ;;  %s10400_s9 = smov 8  }
  0x1f   : > { %v214_v18 = vld [vmem:[%s10493_s13 + $0x60] sm:$0xff]  ;;  %v215_v19 = vld [vmem:[%s10493_s13 + $0x68] sm:$0xff]  ;;  %v216_v20 = vld [vmem:[%s10493_s13 + $0x70] sm:$0xff] }
  0x20   : > { %7459 = vmatmul.mubr.msk.f32.vlgmr.msra.gmra.mrb[0].mxu0 %vm238_vm0, %v203_v7  ;;  %v217_v21 = vld [vmem:[%s10493_s13 + $0x78] sm:$0xff]  ;;  %v218_v22 = vld [vmem:[%s10493_s13 + $0x80] sm:$0xff]  ;;  %v219_v23 = vld [vmem:[%s10493_s13 + $0x88] sm:$0xff] }
  0x21   : > { %7461 = vmatprep.mubr.msk.f32.mxu0 %vm238_vm0, %v204_v8  ;;  %v220_v24 = vld [vmem:[%s10493_s13 + $0x90] sm:$0xff]  ;;  %v221_v25 = vld [vmem:[%s10493_s13 + $0x98] sm:$0xff]  ;;  %v222_v26 = vld [vmem:[%s10493_s13 + $0xa0] sm:$0xff] }
  0x22   : > { %v223_v27 = vld [vmem:[%s10493_s13 + $0xa8] sm:$0xff]  ;;  %v224_v28 = vld [vmem:[%s10493_s13 + $0xb0] sm:$0xff]  ;;  %v225_v29 = vld [vmem:[%s10493_s13 + $0xb8] sm:$0xff] }
  0x23   : > { %v226_v30 = vld [vmem:[%s10493_s13 + $0xc0] sm:$0xff]  ;;  %v227_v31 = vld [vmem:[%s10493_s13 + $0xc8] sm:$0xff]  ;;  %v228_v32 = vld [vmem:[%s10493_s13 + $0xd0] sm:$0xff] }
  0x24   : > { %7462 = vmatmul.mubr.msk.f32.gmra.mrb[2].mxu0 %vm238_vm0, %v205_v9  ;;  %v229_v33 = vld [vmem:[%s10493_s13 + $0xd8] sm:$0xff]  ;;  %v230_v34 = vld [vmem:[%s10493_s13 + $0xe0] sm:$0xff]  ;;  %v231_v35 = vld [vmem:[%s10493_s13 + $0xe8] sm:$0xff] }
  0x25   : > { %7464 = vmatprep.mubr.msk.f32.mxu0 %vm238_vm0, %v206_v10  ;;  %v232_v36 = vld [vmem:[%s10493_s13 + $0xf0] sm:$0xff]  ;;  %v233_v37 = vld [vmem:[%s10493_s13 + $0xf8] sm:$0xff] }
  0x28   : > { %7465 = vmatmul.mubr.msk.f32.gmra.mrb[4].mxu0 %vm238_vm0, %v207_v11 }
  0x29   : > { %7467 = vmatprep.mubr.msk.f32.mxu0 %vm238_vm0, %v208_v12 }
  0x2c   : > { %7468 = vmatmul.mubr.msk.f32.gmra.mrb[6].mxu0 %vm238_vm0, %v209_v13 }
  0x2d   : > { %7470 = vmatprep.mubr.msk.f32.mxu0 %vm238_vm0, %v210_v14 }
  0x30   : > { %7471 = vmatmul.mubr.msk.f32.gmra.mrb[8].mxu0 %vm238_vm0, %v211_v15 }
  0x31   : > { %7473 = vmatprep.mubr.msk.f32.mxu0 %vm238_vm0, %v212_v16 }
  0x34   : > { %7474 = vmatmul.mubr.msk.f32.gmra.mrb[10].mxu0 %vm238_vm0, %v213_v17 }
  0x35   : > { %7476 = vmatprep.mubr.msk.f32.mxu0 %vm238_vm0, %v214_v18 }
  0x38   : > { %7477 = vmatmul.mubr.msk.f32.gmra.mrb[12].mxu0 %vm238_vm0, %v215_v19 }
  0x39   : > { %7479 = vmatprep.mubr.msk.f32.mxu0 %vm238_vm0, %v216_v20 }
  0x3c   : > { %7480 = vmatmul.mubr.msk.f32.gmra.mrb[14].mxu0 %vm238_vm0, %v217_v21 }
  0x3d   : > { %7482 = vmatprep.mubr.msk.f32.mxu0 %vm238_vm0, %v218_v22 }
  0x40   : > { %7483 = vmatmul.mubr.msk.f32.gmra.mrb[16].mxu0 %vm238_vm0, %v219_v23 }
  0x41   : > { %7485 = vmatprep.mubr.msk.f32.mxu0 %vm238_vm0, %v220_v24 }
  0x44   : > { %7486 = vmatmul.mubr.msk.f32.gmra.mrb[18].mxu0 %vm238_vm0, %v221_v25 }
  0x45   : > { %7488 = vmatprep.mubr.msk.f32.mxu0 %vm238_vm0, %v222_v26 }
  0x48   : > { %7489 = vmatmul.mubr.msk.f32.gmra.mrb[20].mxu0 %vm238_vm0, %v223_v27 }
  0x49   : > { %7491 = vmatprep.mubr.msk.f32.mxu0 %vm238_vm0, %v224_v28 }
  0x4c   : > { %7492 = vmatmul.mubr.msk.f32.gmra.mrb[22].mxu0 %vm238_vm0, %v225_v29 }
  0x4d   : > { %7494 = vmatprep.mubr.msk.f32.mxu0 %vm238_vm0, %v226_v30 }
  0x50   : > { %7495 = vmatmul.mubr.msk.f32.gmra.mrb[24].mxu0 %vm238_vm0, %v227_v31 }
  0x51   : > { %7497 = vmatprep.mubr.msk.f32.mxu0 %vm238_vm0, %v228_v32 }
  0x54   : > { %7498 = vmatmul.mubr.msk.f32.gmra.mrb[26].mxu0 %vm238_vm0, %v229_v33 }
  0x55   : > { %7500 = vmatprep.mubr.msk.f32.mxu0 %vm238_vm0, %v230_v34 }
  0x58   : > { %7501 = vmatmul.mubr.msk.f32.gmra.mrb[28].mxu0 %vm238_vm0, %v231_v35 }
  0x59   : > { %7503 = vmatprep.mubr.msk.f32.mxu0 %vm238_vm0, %v232_v36 }
  0x5c   : > { %7504 = vmatmul.mubr.msk.f32.gmra.mrb[30].mxu0 %vm238_vm0, %v233_v37 }
  0xf3   : > { %v10559_v38 = vpop.f32.mrb[0].mxu0 }
  0xf4   : > { %14007 = vst [vmem:[#allocation6_spill] sm:$0xff] %v10559_v38  ;;  %v10561_v39 = vpop.f32.mrb[1].mxu0 }
  0xf5   : > { %14008 = vst [vmem:[#allocation7_spill] sm:$0xff] %v10561_v39  ;;  %7538 = vmatprep.mubr.msk.f32.mxu1 %vm611_vm1, %v10561_v39  ;;  %v10567_v40 = vpack.i.bf16 %v10559_v38, %v10561_v39 }
  0xf7   : > { %14009 = vst [vmem:[#allocation8_spill] sm:$0xff] %v10567_v40  ;;  %9173 = vrot.lane.b32.xlu0 %v10567_v40, %s10388_s14  ;;  %v10571_v41 = vpop.f32.mrb[2].mxu0 }
  0xf8   : > { %14010 = vst [vmem:[#allocation9_spill] sm:$0xff] %v10571_v41  ;;  %v10573_v42 = vpop.f32.mrb[3].mxu0 }
  0xf9   : > { %14011 = vst [vmem:[#allocation10_spill] sm:$0xff] %v10573_v42  ;;  %v10577_v43 = vpack.i.bf16 %v10571_v41, %v10573_v42 }
  0xfb   : > { %14012 = vst [vmem:[#allocation11_spill] sm:$0xff] %v10577_v43  ;;  %9178 = vrot.lane.b32.xlu0 %v10567_v40, %s10389_s20  ;;  %9193 = vrot.lane.b32.xlu1 %v10577_v43, %s10389_s20  ;;  %v10583_v44 = vpop.f32.mrb[4].mxu0 }
  0xfc   : > { %14013 = vst [vmem:[#allocation12_spill] sm:$0xff] %v10583_v44  ;;  %v10585_v45 = vpop.f32.mrb[5].mxu0 }
  0xfd   : > { %14014 = vst [vmem:[#allocation13_spill] sm:$0xff] %v10585_v45  ;;  %v10589_v46 = vpack.i.bf16 %v10583_v44, %v10585_v45 }
  0xff   : > { %14015 = vst [vmem:[#allocation14_spill] sm:$0xff] %v10589_v46  ;;  %9183 = vrot.lane.b32.xlu0 %v10567_v40, %s10390_s22  ;;  %9203 = vrot.lane.b32.xlu1 %v10589_v46, %s10388_s14  ;;  %v10595_v47 = vpop.f32.mrb[6].mxu0 }
 0x100   : > { %14016 = vst [vmem:[#allocation15_spill] sm:$0xff] %v10595_v47  ;;  %v10597_v48 = vpop.f32.mrb[7].mxu0 }
 0x101   : > { %14017 = vst [vmem:[#allocation16_spill] sm:$0xff] %v10597_v48  ;;  %v10601_v49 = vpack.i.bf16 %v10595_v47, %v10597_v48 }
 0x103   : > { %14018 = vst [vmem:[#allocation17_spill] sm:$0xff] %v10601_v49  ;;  %9188 = vrot.lane.b32.xlu0 %v10577_v43, %s10388_s14  ;;  %9213 = vrot.lane.b32.xlu1 %v10589_v46, %s10390_s22  ;;  %v10607_v50 = vpop.f32.mrb[8].mxu0 }
 0x104   : > { %14019 = vst [vmem:[#allocation18_spill] sm:$0xff] %v10607_v50  ;;  %v10609_v51 = vpop.f32.mrb[9].mxu0 }
 0x105   : > { %14020 = vst [vmem:[#allocation19_spill] sm:$0xff] %v10609_v51  ;;  %v10613_v52 = vpack.i.bf16 %v10607_v50, %v10609_v51 }
 0x107   : > { %14021 = vst [vmem:[#allocation20_spill] sm:$0xff] %v10613_v52  ;;  %9198 = vrot.lane.b32.xlu0 %v10577_v43, %s10390_s22  ;;  %9218 = vrot.lane.b32.xlu1 %v10601_v49, %s10388_s14  ;;  %v10619_v53 = vpop.f32.mrb[10].mxu0 }
 0x108   : > { %14022 = vst [vmem:[#allocation21_spill] sm:$0xff] %v10619_v53  ;;  %v10621_v54 = vpop.f32.mrb[11].mxu0 }
 0x109   : > { %14023 = vst [vmem:[#allocation22_spill] sm:$0xff] %v10621_v54  ;;  %v10625_v55 = vpack.i.bf16 %v10619_v53, %v10621_v54 }
 0x10b   : > { %14024 = vst [vmem:[#allocation23_spill] sm:$0xff] %v10625_v55  ;;  %9208 = vrot.lane.b32.xlu0 %v10589_v46, %s10389_s20  ;;  %9223 = vrot.lane.b32.xlu1 %v10601_v49, %s10389_s20  ;;  %v10631_v56 = vpop.f32.mrb[12].mxu0 }
 0x10c   : > { %14025 = vst [vmem:[#allocation24_spill] sm:$0xff] %v10631_v56  ;;  %v10633_v57 = vpop.f32.mrb[13].mxu0 }
 0x10d   : > { %14026 = vst [vmem:[#allocation25_spill] sm:$0xff] %v10633_v57  ;;  %v10637_v58 = vpack.i.bf16 %v10631_v56, %v10633_v57 }
 0x10f   : > { %14027 = vst [vmem:[#allocation26_spill] sm:$0xff] %v10637_v58  ;;  %9228 = vrot.lane.b32.xlu1 %v10601_v49, %s10390_s22  ;;  %9233 = vrot.lane.b32.xlu0 %v10613_v52, %s10388_s14  ;;  %v10643_v59 = vpop.f32.mrb[14].mxu0 }
 0x110   : > { %14028 = vst [vmem:[#allocation27_spill] sm:$0xff] %v10643_v59  ;;  %v10645_v60 = vpop.f32.mrb[15].mxu0 }
 0x111   : > { %14029 = vst [vmem:[#allocation28_spill] sm:$0xff] %v10645_v60  ;;  %v10649_v61 = vpack.i.bf16 %v10643_v59, %v10645_v60 }
 0x113   : > { %14030 = vst [vmem:[#allocation29_spill] sm:$0xff] %v10649_v61  ;;  %9238 = vrot.lane.b32.xlu0 %v10613_v52, %s10389_s20  ;;  %9253 = vrot.lane.b32.xlu1 %v10625_v55, %s10389_s20  ;;  %v10655_v62 = vpop.f32.mrb[16].mxu0 }
 0x114   : > { %14031 = vst [vmem:[#allocation30_spill] sm:$0xff] %v10655_v62  ;;  %v10657_v63 = vpop.f32.mrb[17].mxu0 }
 0x115   : > { %14032 = vst [vmem:[#allocation31_spill] sm:$0xff] %v10657_v63  ;;  %7594 = vmatprep.mubr.msk.f32.mxu0 %vm611_vm1, %v10657_v63  ;;  %v10663_v0 = vpack.i.bf16 %v10655_v62, %v10657_v63 }
 0x117   : > { %14033 = vst [vmem:[#allocation32_spill] sm:$0xff] %v10663_v0  ;;  %9243 = vrot.lane.b32.xlu0 %v10613_v52, %s10390_s22  ;;  %9283 = vrot.lane.b32.xlu1 %v10663_v0, %s10388_s14  ;;  %v10669_v1 = vpop.f32.mrb[18].mxu0 }
 0x118   : > { %14034 = vst [vmem:[#allocation33_spill] sm:$0xff] %v10669_v1  ;;  %v10671_v2 = vpop.f32.mrb[19].mxu0 }
 0x119   : > { %14035 = vst [vmem:[#allocation34_spill] sm:$0xff] %v10671_v2  ;;  %v10675_v3 = vpack.i.bf16 %v10669_v1, %v10671_v2 }
 0x11b   : > { %14036 = vst [vmem:[#allocation35_spill] sm:$0xff] %v10675_v3  ;;  %9248 = vrot.lane.b32.xlu0 %v10625_v55, %s10388_s14  ;;  %9293 = vrot.lane.b32.xlu1 %v10663_v0, %s10390_s22  ;;  %v10681_v4 = vpop.f32.mrb[20].mxu0 }
 0x11c   : > { %14037 = vst [vmem:[#allocation36_spill] sm:$0xff] %v10681_v4  ;;  %v10683_v5 = vpop.f32.mrb[21].mxu0 }
 0x11d   : > { %14038 = vst [vmem:[#allocation37_spill] sm:$0xff] %v10683_v5  ;;  %v10687_v6 = vpack.i.bf16 %v10681_v4, %v10683_v5 }
 0x11f   : > { %14039 = vst [vmem:[#allocation38_spill] sm:$0xff] %v10687_v6  ;;  %9258 = vrot.lane.b32.xlu0 %v10625_v55, %s10390_s22  ;;  %9298 = vrot.lane.b32.xlu1 %v10675_v3, %s10388_s14  ;;  %v10693_v7 = vpop.f32.mrb[22].mxu0 }
 0x120   : > { %14040 = vst [vmem:[#allocation39_spill] sm:$0xff] %v10693_v7  ;;  %v10695_v8 = vpop.f32.mrb[23].mxu0 }
 0x121   : > { %14041 = vst [vmem:[#allocation40_spill] sm:$0xff] %v10695_v8  ;;  %v10699_v9 = vpack.i.bf16 %v10693_v7, %v10695_v8 }
 0x123   : > { %14042 = vst [vmem:[#allocation41_spill] sm:$0xff] %v10699_v9  ;;  %9263 = vrot.lane.b32.xlu0 %v10637_v58, %s10388_s14  ;;  %9308 = vrot.lane.b32.xlu1 %v10675_v3, %s10390_s22  ;;  %v10705_v10 = vpop.f32.mrb[24].mxu0 }
 0x124   : > { %14043 = vst [vmem:[#allocation42_spill] sm:$0xff] %v10705_v10  ;;  %v10707_v11 = vpop.f32.mrb[25].mxu0 }
 0x125   : > { %14044 = vst [vmem:[#allocation43_spill] sm:$0xff] %v10707_v11  ;;  %v10711_v12 = vpack.i.bf16 %v10705_v10, %v10707_v11 }
 0x127   : > { %14045 = vst [vmem:[#allocation44_spill] sm:$0xff] %v10711_v12  ;;  %9268 = vrot.lane.b32.xlu0 %v10637_v58, %s10389_s20  ;;  %9313 = vrot.lane.b32.xlu1 %v10687_v6, %s10388_s14  ;;  %v10717_v13 = vpop.f32.mrb[26].mxu0 }
 0x128   : > { %14046 = vst [vmem:[#allocation45_spill] sm:$0xff] %v10717_v13  ;;  %v10719_v14 = vpop.f32.mrb[27].mxu0 }
 0x129   : > { %14047 = vst [vmem:[#allocation46_spill] sm:$0xff] %v10719_v14  ;;  %v10723_v15 = vpack.i.bf16 %v10717_v13, %v10719_v14 }
 0x12b   : > { %14048 = vst [vmem:[#allocation47_spill] sm:$0xff] %v10723_v15  ;;  %9273 = vrot.lane.b32.xlu0 %v10649_v61, %s10388_s14  ;;  %9318 = vrot.lane.b32.xlu1 %v10687_v6, %s10389_s20  ;;  %v10729_v16 = vpop.f32.mrb[28].mxu0 }
 0x12c   : > { %14049 = vst [vmem:[#allocation48_spill] sm:$0xff] %v10729_v16  ;;  %v10731_v17 = vpop.f32.mrb[29].mxu0 }
 0x12d   : > { %14050 = vst [vmem:[#allocation49_spill] sm:$0xff] %v10731_v17  ;;  %v10735_v18 = vpack.i.bf16 %v10729_v16, %v10731_v17 }
 0x12f   : > { %14051 = vst [vmem:[#allocation50_spill] sm:$0xff] %v10735_v18  ;;  %9278 = vrot.lane.b32.xlu0 %v10649_v61, %s10389_s20  ;;  %9323 = vrot.lane.b32.xlu1 %v10699_v9, %s10388_s14  ;;  %v10741_v19 = vpop.f32.mrb[30].mxu0 }
 0x130   : > { %14052 = vst [vmem:[#allocation51_spill] sm:$0xff] %v10741_v19  ;;  %v10743_v20 = vpop.f32.mrb[31].mxu0 }
 0x131   : > { %14053 = vst [vmem:[#allocation52_spill] sm:$0xff] %v10743_v20  ;;  %v10747_v21 = vpack.i.bf16 %v10741_v19, %v10743_v20 }
 0x133   : > { %14054 = vst [vmem:[#allocation53_spill] sm:$0xff] %v10747_v21  ;;  %9288 = vrot.lane.b32.xlu0 %v10663_v0, %s10389_s20  ;;  %9328 = vrot.lane.b32.xlu1 %v10699_v9, %s10389_s20 }
 0x137   : > { %9303 = vrot.lane.b32.xlu0 %v10675_v3, %s10389_s20  ;;  %9343 = vrot.lane.b32.xlu1 %v10687_v6, %s10390_s22 }
 0x13b   : > { %9348 = vrot.lane.b32.xlu1 %v10649_v61, %s10390_s22  ;;  %9333 = vrot.lane.b32.xlu0 %v10711_v12, %s10388_s14 }
 0x13f   : > { %9358 = vrot.lane.b32.xlu1 %v10711_v12, %s10389_s20  ;;  %9338 = vrot.lane.b32.xlu0 %v10637_v58, %s10390_s22 }
 0x143   : > { %9363 = vrot.lane.b32.xlu1 %v10711_v12, %s10390_s22  ;;  %9353 = vrot.lane.b32.xlu0 %v10699_v9, %s10390_s22 }
 0x147   : > { %9373 = vrot.lane.b32.xlu0 %v10723_v15, %s10389_s20  ;;  %9368 = vrot.lane.b32.xlu1 %v10723_v15, %s10388_s14 }
 0x14b   : > { %9378 = vrot.lane.b32.xlu0 %v10735_v18, %s10388_s14  ;;  %9388 = vrot.lane.b32.xlu1 %v10747_v21, %s10388_s14  ;;  %s10402_s14 = smov [#allocation3]  }
 0x14f   : > { %9383 = vrot.lane.b32.xlu0 %v10735_v18, %s10389_s20  ;;  %9398 = vrot.lane.b32.xlu1 %v10723_v15, %s10390_s22 }
 0x153   : > { %9393 = vrot.lane.b32.xlu0 %v10747_v21, %s10389_s20  ;;  %2089 = vrot.lane.b32.xlu1 %v10657_v63, %s10391_s23  ;;  %s10328_s20 = sshll.u32 %s10402_s14, 4  ;;  %s10329_s20 = int_to_ptr.vmem [resolvable:$false] %s10328_s20 }
 0x157   : > { %1816 = vrot.lane.b32.xlu0 %v10561_v39, %s10391_s23  ;;  %2091 = vrot.lane.b32.xlu1 %v10655_v62, %s10391_s23 }
 0x15b   : > { %1818 = vrot.lane.b32.xlu0 %v10559_v38, %s10391_s23  ;;  %1822 = vrot.lane.b32.xlu1 %v10571_v41, %s10391_s23 }
 0x15f   : > { %9403 = vrot.lane.b32.xlu0 %v10735_v18, %s10390_s22  ;;  %1826 = vrot.lane.b32.xlu1 %v10583_v44, %s10391_s23 }
 0x163   : > { %1820 = vrot.lane.b32.xlu0 %v10573_v42, %s10391_s23  ;;  %1830 = vrot.lane.b32.xlu1 %v10595_v47, %s10391_s23 }
 0x167   : > { %1824 = vrot.lane.b32.xlu0 %v10585_v45, %s10391_s23  ;;  %1834 = vrot.lane.b32.xlu1 %v10607_v50, %s10391_s23 }
 0x169   : > { %v9174_v22 = vpop.permute.xlu0 %9173 }
 0x16a   : > { %v9176_v23 = vunpack.i.h.bf16 %v9174_v22  ;;  %v9175_v24 = vunpack.i.l.bf16 %v9174_v22 }
 0x16b   : > { %1828 = vrot.lane.b32.xlu0 %v10597_v48, %s10391_s23  ;;  %1838 = vrot.lane.b32.xlu1 %v10619_v53, %s10391_s23 }
 0x16c   : > { %v8466_v26 = vpack.c.bf16 %v9176_v23, %v9175_v24 }
 0x16d   : > { %v10815_v27 = vpop.permute.xlu0 %9178  ;;  %v10817_v28 = vpop.permute.xlu1 %9193 }
 0x16e   : > { %8468 = vmatprep.subr.msk.bf16.mxu1 %vm10811_vm2, %v8466_v26  ;;  %v9181_v61 = vunpack.i.h.bf16 %v10815_v27 }
 0x16f   : > { %8471 = vmatpush3.bf16.xpose.msk.msra.mxu1 %vm10811_vm2, %v8466_v26  ;;  %1832 = vrot.lane.b32.xlu0 %v10609_v51, %s10391_s23 }
 0x170   : > { %1842 = vrot.lane.b32.xlu1 %v10631_v56, %s10391_s23 }
 0x171   : > { %v10827_v29 = vpop.permute.xlu0 %9183  ;;  %v9204_v30 = vpop.permute.xlu1 %9203 }
 0x172   : > { %v9206_v33 = vunpack.i.h.bf16 %v9204_v30  ;;  %v9205_v34 = vunpack.i.l.bf16 %v9204_v30 }
 0x173   : > { %1836 = vrot.lane.b32.xlu0 %v10621_v54, %s10391_s23 }
 0x174   : > { %1846 = vrot.lane.b32.xlu1 %v10643_v59, %s10391_s23  ;;  %v8478_v24 = vpack.c.bf16 %v9206_v33, %v9205_v34 }
 0x175   : > { %v9189_v31 = vpop.permute.xlu0 %9188  ;;  %v10833_v32 = vpop.permute.xlu1 %9213 }
 0x176   : > { %14057 = vst [vmem:[#allocation54_spill] sm:$0xff] %v10833_v32  ;;  %v9191_v35 = vunpack.i.h.bf16 %v9189_v31  ;;  %v9190_v36 = vunpack.i.l.bf16 %v9189_v31 }
 0x177   : > { %1840 = vrot.lane.b32.xlu0 %v10633_v57, %s10391_s23 }
 0x178   : > { %v8472_v37 = vpack.c.bf16 %v9191_v35, %v9190_v36  ;;  %2095 = vrot.lane.b32.xlu1 %v10669_v1, %s10391_s23 }
 0x179   : > { %v10839_v22 = vpop.permute.xlu0 %9198  ;;  %v9219_v23 = vpop.permute.xlu1 %9218 }
 0x17a   : > { %14058 = vst [vmem:[#allocation55_spill] sm:$0xff] %v10839_v22  ;;  %8474 = vmatprep.subr.msk.bf16.mxu1 %vm10811_vm2, %v8472_v37  ;;  %v9221_v31 = vunpack.i.h.bf16 %v9219_v23  ;;  %v9220_v33 = vunpack.i.l.bf16 %v9219_v23 }
 0x17b   : > { %8477 = vmatpush3.bf16.xpose.msk.msra.mxu1 %vm10811_vm2, %v8472_v37  ;;  %1844 = vrot.lane.b32.xlu0 %v10645_v60, %s10391_s23 }
 0x17c   : > { %9408 = vrot.lane.b32.xlu1 %v10747_v21, %s10390_s22  ;;  %8480 = vmatprep.subr.msk.bf16.mxu1 %vm10811_vm2, %v8478_v24  ;;  %v8484_v36 = vpack.c.bf16 %v9221_v31, %v9220_v33  ;;  %s10330_s22 = scalar_lea.vmem %s10329_s20, 8192 }
 0x17d   : > { %v10851_v26 = vpop.permute.xlu0 %9208  ;;  %v10853_v30 = vpop.permute.xlu1 %9223 }
 0x17f   : > { %2093 = vrot.lane.b32.xlu0 %v10671_v2, %s10391_s23 }
 0x180   : > { %2099 = vrot.lane.b32.xlu1 %v10681_v4, %s10391_s23 }
 0x181   : > { %v10859_v34 = vpop.permute.xlu1 %9228  ;;  %v9234_v35 = vpop.permute.xlu0 %9233 }
 0x182   : > { %14059 = vst [vmem:[#allocation56_spill] sm:$0xff] %v10859_v34  ;;  %v9236_v63 = vunpack.i.h.bf16 %v9234_v35  ;;  %v9235_v39 = vunpack.i.l.bf16 %v9234_v35 }
 0x183   : > { %8483 = vmatpush3.bf16.xpose.msk.msra.mxu1 %vm10811_vm2, %v8478_v24  ;;  %2097 = vrot.lane.b32.xlu0 %v10683_v5, %s10391_s23 }
 0x184   : > { %2103 = vrot.lane.b32.xlu1 %v10693_v7, %s10391_s23  ;;  %8486 = vmatprep.subr.msk.bf16.mxu1 %vm10811_vm2, %v8484_v36  ;;  %v8490_v33 = vpack.c.bf16 %v9236_v63, %v9235_v39 }
 0x185   : > { %v10869_v37 = vpop.permute.xlu0 %9238  ;;  %v10871_v23 = vpop.permute.xlu1 %9253 }
 0x187   : > { %2101 = vrot.lane.b32.xlu0 %v10695_v8, %s10391_s23 }
 0x188   : > { %2107 = vrot.lane.b32.xlu1 %v10705_v10, %s10391_s23 }
 0x189   : > { %v10877_v24 = vpop.permute.xlu0 %9243  ;;  %v9284_v31 = vpop.permute.xlu1 %9283 }
 0x18a   : > { %14060 = vst [vmem:[#allocation57_spill] sm:$0xff] %v10877_v24  ;;  %v9286_v34 = vunpack.i.h.bf16 %v9284_v31  ;;  %v9285_v32 = vunpack.i.l.bf16 %v9284_v31 }
 0x18b   : > { %8489 = vmatpush3.bf16.xpose.msk.msra.mxu1 %vm10811_vm2, %v8484_v36  ;;  %2105 = vrot.lane.b32.xlu0 %v10707_v11, %s10391_s23 }
 0x18c   : > { %v8514_v22 = vpack.c.bf16 %v9286_v34, %v9285_v32  ;;  %2111 = vrot.lane.b32.xlu1 %v10717_v13, %s10391_s23  ;;  %8492 = vmatprep.subr.msk.bf16.mxu1 %vm10811_vm2, %v8490_v33 }
 0x18d   : > { %v9249_v35 = vpop.permute.xlu0 %9248  ;;  %v10887_v21 = vpop.permute.xlu1 %9293 }
 0x18e   : > { %v9251_v24 = vunpack.i.h.bf16 %v9249_v35  ;;  %v9250_v39 = vunpack.i.l.bf16 %v9249_v35  ;;  %8516 = vmatprep.subr.msk.bf16.mxu0 %vm10811_vm2, %v8514_v22 }
 0x18f   : > { %8519 = vmatpush3.bf16.xpose.msk.msra.mxu0 %vm10811_vm2, %v8514_v22  ;;  %2109 = vrot.lane.b32.xlu0 %v10719_v14, %s10391_s23 }
 0x190   : > { %2115 = vrot.lane.b32.xlu1 %v10729_v16, %s10391_s23  ;;  %v8496_v34 = vpack.c.bf16 %v9251_v24, %v9250_v39 }
 0x191   : > { %v10897_v63 = vpop.permute.xlu0 %9258  ;;  %v9299_v32 = vpop.permute.xlu1 %9298 }
 0x192   : > { %14061 = vst [vmem:[#allocation58_spill] sm:$0xff] %v10897_v63  ;;  %v9301_v36 = vunpack.i.h.bf16 %v9299_v32  ;;  %v9300_v31 = vunpack.i.l.bf16 %v9299_v32 }
 0x193   : > { %8495 = vmatpush3.bf16.xpose.msk.msra.mxu1 %vm10811_vm2, %v8490_v33  ;;  %2113 = vrot.lane.b32.xlu0 %v10731_v17, %s10391_s23 }
 0x194   : > { %v8520_v35 = vpack.c.bf16 %v9301_v36, %v9300_v31  ;;  %2119 = vrot.lane.b32.xlu1 %v10741_v19, %s10391_s23  ;;  %8498 = vmatprep.subr.msk.bf16.mxu1 %vm10811_vm2, %v8496_v34 }
 0x195   : > { %v9264_v22 = vpop.permute.xlu0 %9263  ;;  %v10907_v18 = vpop.permute.xlu1 %9308 }
 0x196   : > { %14062 = vst [vmem:[#allocation59_spill] sm:$0xff] %v10907_v18  ;;  %v9266_v63 = vunpack.i.h.bf16 %v9264_v22  ;;  %v9265_v24 = vunpack.i.l.bf16 %v9264_v22  ;;  %8522 = vmatprep.subr.msk.bf16.mxu0 %vm10811_vm2, %v8520_v35 }
 0x197   : > { %8525 = vmatpush3.bf16.xpose.msk.msra.mxu0 %vm10811_vm2, %v8520_v35  ;;  %2117 = vrot.lane.b32.xlu0 %v10743_v20, %s10391_s23 }
 0x198   : > { %v8502_v32 = vpack.c.bf16 %v9266_v63, %v9265_v24 }
 0x199   : > { %v10915_v33 = vpop.permute.xlu0 %9268  ;;  %v9314_v39 = vpop.permute.xlu1 %9313 }
 0x19a   : > { %v9316_v36 = vunpack.i.h.bf16 %v9314_v39  ;;  %v9315_v31 = vunpack.i.l.bf16 %v9314_v39 }
 0x19b   : > { %8501 = vmatpush3.bf16.xpose.msk.msra.mxu1 %vm10811_vm2, %v8496_v34 }
 0x19c   : > { %v8526_v18 = vpack.c.bf16 %v9316_v36, %v9315_v31  ;;  %8504 = vmatprep.subr.msk.bf16.mxu1 %vm10811_vm2, %v8502_v32 }
 0x19d   : > { %v9274_v22 = vpop.permute.xlu0 %9273  ;;  %v10921_v15 = vpop.permute.xlu1 %9318 }
 0x19e   : > { %v9276_v35 = vunpack.i.h.bf16 %v9274_v22  ;;  %v9275_v3 = vunpack.i.l.bf16 %v9274_v22  ;;  %8528 = vmatprep.subr.msk.bf16.mxu0 %vm10811_vm2, %v8526_v18 }
 0x19f   : > { %8531 = vmatpush3.bf16.xpose.msk.msra.mxu0 %vm10811_vm2, %v8526_v18  ;;  %v9180_v18 = vunpack.i.l.bf16 %v10815_v27  ;;  %v9196_v27 = vunpack.i.h.bf16 %v10817_v28 }
 0x1a0   : > { %v8508_v39 = vpack.c.bf16 %v9276_v35, %v9275_v3 }
 0x1a1   : > { %v10927_v63 = vpop.permute.xlu0 %9278  ;;  %v9324_v24 = vpop.permute.xlu1 %9323  ;;  %v8562_v35 = vpack.c.bf16 %v9181_v61, %v9180_v18  ;;  %v9211_v61 = vunpack.i.h.bf16 %v10851_v26  ;;  %v9210_v18 = vunpack.i.l.bf16 %v10851_v26  ;;  %v9225_v26 = vunpack.i.l.bf16 %v10853_v30 }
 0x1a2   : > { %v9326_v34 = vunpack.i.h.bf16 %v9324_v24  ;;  %v9325_v36 = vunpack.i.l.bf16 %v9324_v24 }
 0x1a3   : > { %8507 = vmatpush3.bf16.xpose.msk.msra.mxu1 %vm10811_vm2, %v8502_v32 }
 0x1a4   : > { %v8532_v31 = vpack.c.bf16 %v9326_v34, %v9325_v36  ;;  %8510 = vmatprep.subr.msk.bf16.mxu1 %vm10811_vm2, %v8508_v39  ;;  %v9195_v36 = vunpack.i.l.bf16 %v10817_v28  ;;  %v9226_v28 = vunpack.i.h.bf16 %v10853_v30  ;;  %v9241_v30 = vunpack.i.h.bf16 %v10869_v37 }
 0x1a5   : > { %v10933_v22 = vpop.permute.xlu0 %9288  ;;  %v10935_v0 = vpop.permute.xlu1 %9328 }
 0x1a6   : > { %8534 = vmatprep.subr.msk.bf16.mxu0 %vm10811_vm2, %v8532_v31 }
 0x1a7   : > { %8537 = vmatpush3.bf16.xpose.msk.msra.mxu0 %vm10811_vm2, %v8532_v31 }
 0x1a9   : > { %v10943_v3 = vpop.permute.xlu0 %9303  ;;  %v10945_v32 = vpop.permute.xlu1 %9343 }
 0x1ab   : > { %8513 = vmatpush3.bf16.xpose.msk.msra.mxu1 %vm10811_vm2, %v8508_v39  ;;  %v8566_v39 = vpack.c.bf16 %v9196_v27, %v9195_v36 }
 0x1ac   : > { %8563 = vmatprep.subr.bf16.mxu1 %v8562_v35 }
 0x1ad   : > { %v10949_v24 = vpop.permute.xlu1 %9348  ;;  %v9334_v34 = vpop.permute.xlu0 %9333 }
 0x1ae   : > { %v9336_v12 = vunpack.i.h.bf16 %v9334_v34  ;;  %v9335_v58 = vunpack.i.l.bf16 %v9334_v34  ;;  %v8570_v34 = vpack.c.bf16 %v9211_v61, %v9210_v18 }
 0x1b0   : > { %v8538_v9 = vpack.c.bf16 %v9336_v12, %v9335_v58 }
 0x1b1   : > { %v10953_v31 = vpop.permute.xlu1 %9358  ;;  %v10955_v52 = vpop.permute.xlu0 %9338 }
 0x1b2   : > { %7539 = vmatmul.mubr.msk.f32.vlgmr.msra.gmra.mrb[0].mxu1 %vm611_vm1, %v10559_v38  ;;  %8540 = vmatprep.subr.msk.bf16.mxu0 %vm10811_vm2, %v8538_v9  ;;  %v9240_v38 = vunpack.i.l.bf16 %v10869_v37 }
 0x1b3   : > { %7541 = vmatprep.mubr.msk.f32.mxu1 %vm611_vm1, %v10573_v42  ;;  %8565 = vmatpush3.bf16.msra.mxu1 %v8562_v35  ;;  %v8574_v42 = vpack.c.bf16 %v9226_v28, %v9225_v26  ;;  %v9256_v28 = vunpack.i.h.bf16 %v10871_v23  ;;  %v9255_v26 = vunpack.i.l.bf16 %v10871_v23  ;;  %v9271_v23 = vunpack.i.h.bf16 %v10915_v33 }
 0x1b4   : > { %8567 = vmatprep.subr.bf16.mxu1 %v8566_v39  ;;  %8543 = vmatpush3.bf16.xpose.msk.msra.mxu0 %vm10811_vm2, %v8538_v9 }
 0x1b5   : > { %v10967_v58 = vpop.permute.xlu1 %9363  ;;  %v10969_v12 = vpop.permute.xlu0 %9353 }
 0x1b6   : > { %7542 = vmatmul.mubr.msk.f32.gmra.mrb[2].mxu1 %vm611_vm1, %v10571_v41 }
 0x1b7   : > { %7544 = vmatprep.mubr.msk.f32.mxu1 %vm611_vm1, %v10585_v45  ;;  %8569 = vmatpush3.bf16.msra.mxu1 %v8566_v39 }
 0x1b8   : > { %8571 = vmatprep.subr.bf16.mxu1 %v8570_v34 }
 0x1b9   : > { %v10977_v35 = vpop.permute.xlu0 %9373  ;;  %v9369_v9 = vpop.permute.xlu1 %9368 }
 0x1ba   : > { %v9371_v27 = vunpack.i.h.bf16 %v9369_v9  ;;  %v9370_v36 = vunpack.i.l.bf16 %v9369_v9  ;;  %7545 = vmatmul.mubr.msk.f32.gmra.mrb[4].mxu1 %vm611_vm1, %v10583_v44 }
 0x1bb   : > { %7547 = vmatprep.mubr.msk.f32.mxu1 %vm611_vm1, %v10597_v48  ;;  %8573 = vmatpush3.bf16.msra.mxu1 %v8570_v34  ;;  %v8578_v34 = vpack.c.bf16 %v9241_v30, %v9240_v38  ;;  %v9291_v30 = vunpack.i.h.bf16 %v10933_v22 }
 0x1bc   : > { %v8544_v61 = vpack.c.bf16 %v9371_v27, %v9370_v36  ;;  %8575 = vmatprep.subr.bf16.mxu1 %v8574_v42 }
 0x1bd   : > { %v9379_v18 = vpop.permute.xlu0 %9378  ;;  %v9389_v37 = vpop.permute.xlu1 %9388 }
 0x1be   : > { %v9381_v39 = vunpack.i.h.bf16 %v9379_v18  ;;  %v9380_v45 = vunpack.i.l.bf16 %v9379_v18  ;;  %7548 = vmatmul.mubr.msk.f32.gmra.mrb[6].mxu1 %vm611_vm1, %v10595_v47  ;;  %8546 = vmatprep.subr.msk.bf16.mxu0 %vm10811_vm2, %v8544_v61  ;;  %v9391_v27 = vunpack.i.h.bf16 %v9389_v37  ;;  %v9390_v36 = vunpack.i.l.bf16 %v9389_v37 }
 0x1bf   : > { %7550 = vmatprep.mubr.msk.f32.mxu1 %vm611_vm1, %v10609_v51  ;;  %8549 = vmatpush3.bf16.xpose.msk.msra.mxu0 %vm10811_vm2, %v8544_v61  ;;  %v9270_v18 = vunpack.i.l.bf16 %v10915_v33  ;;  %v8582_v61 = vpack.c.bf16 %v9256_v28, %v9255_v26  ;;  %v9185_v28 = vunpack.i.l.bf16 %v10827_v29 }
 0x1c0   : > { %v8550_v9 = vpack.c.bf16 %v9381_v39, %v9380_v45  ;;  %8577 = vmatpush3.bf16.msra.mxu1 %v8574_v42  ;;  %v8556_v38 = vpack.c.bf16 %v9391_v27, %v9390_v36  ;;  %v9281_v42 = vunpack.i.h.bf16 %v10927_v63  ;;  %v9280_v45 = vunpack.i.l.bf16 %v10927_v63 }
 0x1c1   : > { %8579 = vmatprep.subr.bf16.mxu1 %v8578_v34  ;;  %v8586_v33 = vpack.c.bf16 %v9271_v23, %v9270_v18  ;;  %v9290_v39 = vunpack.i.l.bf16 %v10933_v22  ;;  %v9186_v63 = vunpack.i.h.bf16 %v10827_v29  ;;  %v9306_v29 = vunpack.i.h.bf16 %v10943_v3 }
 0x1c2   : > { %7551 = vmatmul.mubr.msk.f32.gmra.mrb[8].mxu1 %vm611_vm1, %v10607_v50  ;;  %8552 = vmatprep.subr.msk.bf16.mxu0 %vm10811_vm2, %v8550_v9  ;;  %v8590_v26 = vpack.c.bf16 %v9281_v42, %v9280_v45  ;;  %v9305_v22 = vunpack.i.l.bf16 %v10943_v3  ;;  %v9320_v27 = vunpack.i.l.bf16 %v10921_v15  ;;  %v9331_v23 = vunpack.i.h.bf16 %v10935_v0 }
 0x1c3   : > { %7553 = vmatprep.mubr.msk.f32.mxu1 %vm611_vm1, %v10621_v54  ;;  %v8594_v37 = vpack.c.bf16 %v9291_v30, %v9290_v39  ;;  %v9330_v18 = vunpack.i.l.bf16 %v10935_v0  ;;  %v9376_v0 = vunpack.i.h.bf16 %v10977_v35  ;;  %v9375_v42 = vunpack.i.l.bf16 %v10977_v35 }
 0x1c4   : > { %8581 = vmatpush3.bf16.msra.mxu1 %v8578_v34  ;;  %v11023_v34 = vpack.c.bf16 %v9186_v63, %v9185_v28  ;;  %v8598_v36 = vpack.c.bf16 %v9306_v29, %v9305_v22  ;;  %v9295_v29 = vunpack.i.l.bf16 %v10887_v21 }
 0x1c5   : > { %8583 = vmatprep.subr.bf16.mxu1 %v8582_v61  ;;  %v8614_v39 = vpack.c.bf16 %v9376_v0, %v9375_v42 }
 0x1c6   : > { %7554 = vmatmul.mubr.msk.f32.gmra.mrb[10].mxu1 %vm611_vm1, %v10619_v53 }
 0x1c7   : > { %7556 = vmatprep.mubr.msk.f32.mxu1 %vm611_vm1, %v10633_v57  ;;  %8555 = vmatpush3.bf16.xpose.msk.msra.mxu0 %vm10811_vm2, %v8550_v9  ;;  %v9321_v9 = vunpack.i.h.bf16 %v10921_v15  ;;  %v9361_v15 = vunpack.i.h.bf16 %v10953_v31 }
 0x1c8   : > { %8585 = vmatpush3.bf16.msra.mxu1 %v8582_v61  ;;  %8558 = vmatprep.subr.msk.bf16.mxu0 %vm10811_vm2, %v8556_v38  ;;  %v9360_v61 = vunpack.i.l.bf16 %v10953_v31 }
 0x1c9   : > { %8587 = vmatprep.subr.bf16.mxu1 %v8586_v33  ;;  %v8602_v3 = vpack.c.bf16 %v9321_v9, %v9320_v27 }
 0x1ca   : > { %7557 = vmatmul.mubr.msk.f32.gmra.mrb[12].mxu1 %vm611_vm1, %v10631_v56  ;;  %v8610_v45 = vpack.c.bf16 %v9361_v15, %v9360_v61 }
 0x1cb   : > { %7559 = vmatprep.mubr.msk.f32.mxu1 %vm611_vm1, %v10645_v60 }
 0x1cc   : > { %8589 = vmatpush3.bf16.msra.mxu1 %v8586_v33  ;;  %v9384_v33 = vpop.permute.xlu0 %9383 }
 0x1cd   : > { %8591 = vmatprep.subr.bf16.mxu1 %v8590_v26  ;;  %v9386_v31 = vunpack.i.h.bf16 %v9384_v33  ;;  %v9385_v30 = vunpack.i.l.bf16 %v9384_v33 }
 0x1ce   : > { %7560 = vmatmul.mubr.msk.f32.gmra.mrb[14].mxu1 %vm611_vm1, %v10643_v59 }
 0x1cf   : > { %8561 = vmatpush3.bf16.xpose.msk.msra.mxu0 %vm10811_vm2, %v8556_v38  ;;  %v8606_v38 = vpack.c.bf16 %v9331_v23, %v9330_v18 }
 0x1d0   : > { %8593 = vmatpush3.bf16.msra.mxu1 %v8590_v26  ;;  %8595 = vmatprep.subr.bf16.mxu0 %v8594_v37  ;;  %v9394_v35 = vpop.permute.xlu0 %9393  ;;  %v8618_v26 = vpack.c.bf16 %v9386_v31, %v9385_v30 }
 0x1d1   : > { %8628 = vmatprep.subr.msk.bf16.mxu1 %vm10811_vm2, %v11023_v34  ;;  %v9396_v63 = vunpack.i.h.bf16 %v9394_v35  ;;  %v9395_v28 = vunpack.i.l.bf16 %v9394_v35 }
 0x1d3   : > { %v8622_v22 = vpack.c.bf16 %v9396_v63, %v9395_v28 }
 0x1d6   : > { %7595 = vmatmul.mubr.msk.f32.vlgmr.msra.gmra.mrb[32].mxu0 %vm611_vm1, %v10655_v62 }
 0x1d7   : > { %7597 = vmatprep.mubr.msk.f32.mxu0 %vm611_vm1, %v10671_v2  ;;  %8597 = vmatpush3.bf16.msra.mxu0 %v8594_v37  ;;  %v9296_v37 = vunpack.i.h.bf16 %v10887_v21  ;;  %v560_v21 = vlaneseq }
 0x1d8   : > { %8599 = vmatprep.subr.bf16.mxu0 %v8598_v36 }
 0x1d9   : > { %v11070_v9 = vpack.c.bf16 %v9296_v37, %v9295_v29  ;;  %v11077_v27 = vand.u32 127, %v560_v21 }
 0x1da   : > { %7598 = vmatmul.mubr.msk.f32.gmra.mrb[34].mxu0 %vm611_vm1, %v10669_v1 }
 0x1db   : > { %7600 = vmatprep.mubr.msk.f32.mxu0 %vm611_vm1, %v10683_v5  ;;  %8601 = vmatpush3.bf16.msra.mxu0 %v8598_v36  ;;  %14063 = vst [vmem:[#allocation60_spill] sm:$0xff] %v11077_v27  ;;  %vm562_vm3 = vcmp.lt.s32.totalorder %v11077_v27, 8 }
 0x1dc   : > { %8603 = vmatprep.subr.bf16.mxu0 %v8602_v3 }
 0x1de   : > { %7601 = vmatmul.mubr.msk.f32.gmra.mrb[36].mxu0 %vm611_vm1, %v10681_v4 }
 0x1df   : > { %7603 = vmatprep.mubr.msk.f32.mxu0 %vm611_vm1, %v10695_v8  ;;  %8605 = vmatpush3.bf16.msra.mxu0 %v8602_v3 }
 0x1e0   : > { %8607 = vmatprep.subr.bf16.mxu0 %v8606_v38 }
 0x1e2   : > { %7604 = vmatmul.mubr.msk.f32.gmra.mrb[38].mxu0 %vm611_vm1, %v10693_v7 }
 0x1e3   : > { %7606 = vmatprep.mubr.msk.f32.mxu0 %vm611_vm1, %v10707_v11  ;;  %8609 = vmatpush3.bf16.msra.mxu0 %v8606_v38 }
 0x1e4   : > { %8611 = vmatprep.subr.bf16.mxu0 %v8610_v45 }
 0x1e6   : > { %7607 = vmatmul.mubr.msk.f32.gmra.mrb[40].mxu0 %vm611_vm1, %v10705_v10 }
 0x1e7   : > { %7609 = vmatprep.mubr.msk.f32.mxu0 %vm611_vm1, %v10719_v14  ;;  %8613 = vmatpush3.bf16.msra.mxu0 %v8610_v45 }
 0x1e8   : > { %8615 = vmatprep.subr.bf16.mxu0 %v8614_v39 }
 0x1ea   : > { %7610 = vmatmul.mubr.msk.f32.gmra.mrb[42].mxu0 %vm611_vm1, %v10717_v13 }
 0x1eb   : > { %7612 = vmatprep.mubr.msk.f32.mxu0 %vm611_vm1, %v10731_v17  ;;  %8617 = vmatpush3.bf16.msra.mxu0 %v8614_v39 }
 0x1ec   : > { %8619 = vmatprep.subr.bf16.mxu0 %v8618_v26 }
 0x1ee   : > { %7613 = vmatmul.mubr.msk.f32.gmra.mrb[44].mxu0 %vm611_vm1, %v10729_v16 }
 0x1ef   : > { %7615 = vmatprep.mubr.msk.f32.mxu0 %vm611_vm1, %v10743_v20  ;;  %8621 = vmatpush3.bf16.msra.mxu0 %v8618_v26 }
 0x1f0   : > { %8623 = vmatprep.subr.bf16.mxu0 %v8622_v22 }
 0x1f2   : > { %7616 = vmatmul.mubr.msk.f32.gmra.mrb[46].mxu0 %vm611_vm1, %v10741_v19 }
 0x1f3   : > { %8625 = vmatpush3.bf16.msra.mxu0 %v8622_v22 }
 0x1f4   : > { %8676 = vmatprep.subr.msk.bf16.mxu0 %vm10811_vm2, %v11070_v9 }
 0x285   : > { %v7540_v36 = vpop.f32.mrb[0].mxu1 }
 0x286   : > { %v742_v23 = vpop.f32.mrb[1].mxu1  ;;  %v11082_v18 = vsel %vm562_vm3, %v7540_v36, -1e+30 }
 0x287   : > { %1112 = vmax.xlane.f32.xlu1 %v11082_v18  ;;  %v11087_v3 = vsel %vm562_vm3, %v742_v23, -1e+30 }
 0x288   : > { %1110 = vmax.xlane.f32.xlu0 %v11087_v3 }
 0x289   : > { %v7543_v15 = vpop.f32.mrb[2].mxu1 }
 0x28a   : > { %v752_v61 = vpop.f32.mrb[3].mxu1  ;;  %v11092_v38 = vsel %vm562_vm3, %v7543_v15, -1e+30 }
 0x28b   : > { %v11096_v0 = vsel %vm562_vm3, %v752_v61, -1e+30 }
 0x28c   : > { %1116 = vmax.xlane.f32.xlu0 %v11092_v38  ;;  %1114 = vmax.xlane.f32.xlu1 %v11096_v0 }
 0x28d   : > { %v7546_v42 = vpop.f32.mrb[4].mxu1 }
 0x28e   : > { %v762_v45 = vpop.f32.mrb[5].mxu1  ;;  %v11102_v33 = vsel %vm562_vm3, %v7546_v42, -1e+30 }
 0x28f   : > { %v11106_v31 = vsel %vm562_vm3, %v762_v45, -1e+30 }
 0x290   : > { %1120 = vmax.xlane.f32.xlu0 %v11102_v33  ;;  %1118 = vmax.xlane.f32.xlu1 %v11106_v31 }
 0x291   : > { %v7549_v30 = vpop.f32.mrb[6].mxu1 }
 0x292   : > { %v772_v39 = vpop.f32.mrb[7].mxu1  ;;  %v11112_v35 = vsel %vm562_vm3, %v7549_v30, -1e+30 }
 0x293   : > { %v11116_v63 = vsel %vm562_vm3, %v772_v39, -1e+30 }
 0x294   : > { %1124 = vmax.xlane.f32.xlu0 %v11112_v35  ;;  %1122 = vmax.xlane.f32.xlu1 %v11116_v63 }
 0x295   : > { %v7552_v28 = vpop.f32.mrb[8].mxu1 }
 0x296   : > { %v782_v26 = vpop.f32.mrb[9].mxu1  ;;  %v11122_v37 = vsel %vm562_vm3, %v7552_v28, -1e+30 }
 0x297   : > { %v11126_v29 = vsel %vm562_vm3, %v782_v26, -1e+30 }
 0x298   : > { %1128 = vmax.xlane.f32.xlu0 %v11122_v37  ;;  %1126 = vmax.xlane.f32.xlu1 %v11126_v29 }
 0x299   : > { %v7555_v22 = vpop.f32.mrb[10].mxu1 }
 0x29a   : > { %v792_v21 = vpop.f32.mrb[11].mxu1  ;;  %v11132_v36 = vsel %vm562_vm3, %v7555_v22, -1e+30 }
 0x29b   : > { %v11136_v23 = vsel %vm562_vm3, %v792_v21, -1e+30  ;;  %v11160_v21 = vpop.permute.xlu1 %9398 }
 0x29c   : > { %1132 = vmax.xlane.f32.xlu0 %v11132_v36  ;;  %1130 = vmax.xlane.f32.xlu1 %v11136_v23 }
 0x29d   : > { %v7558_v15 = vpop.f32.mrb[12].mxu1 }
 0x29e   : > { %v802_v61 = vpop.f32.mrb[13].mxu1  ;;  %v11142_v42 = vsel %vm562_vm3, %v7558_v15, -1e+30 }
 0x29f   : > { %v11146_v45 = vsel %vm562_vm3, %v802_v61, -1e+30  ;;  %v11176_v14 = vpop.permute.xlu1 %2089 }
 0x2a0   : > { %1136 = vmax.xlane.f32.xlu0 %v11142_v42  ;;  %1134 = vmax.xlane.f32.xlu1 %v11146_v45  ;;  %14064 = vst [vmem:[#allocation61_spill] sm:$0xff] %v11176_v14 }
 0x2a1   : > { %v7561_v30 = vpop.f32.mrb[14].mxu1 }
 0x2a2   : > { %v812_v39 = vpop.f32.mrb[15].mxu1  ;;  %v11152_v28 = vsel %vm562_vm3, %v7561_v30, -1e+30 }
 0x2a3   : > { %v11156_v26 = vsel %vm562_vm3, %v812_v39, -1e+30  ;;  %v11191_v8 = vpop.permute.xlu1 %2091 }
 0x2a4   : > { %1140 = vmax.xlane.f32.xlu0 %v11152_v28  ;;  %1138 = vmax.xlane.f32.xlu1 %v11156_v26  ;;  %14065 = vst [vmem:[#allocation62_spill] sm:$0xff] %v11191_v8 }
 0x2a9   : > { %v7596_v22 = vpop.f32.mrb[32].mxu0 }
 0x2aa   : > { %v11164_v15 = vsel %vm562_vm3, %v7596_v22, -1e+30  ;;  %v999_v61 = vpop.f32.mrb[33].mxu0  ;;  %v11179_v22 = vpop.permute.xlu0 %1816 }
 0x2ab   : > { %1144 = vmax.xlane.f32.xlu0 %v11164_v15  ;;  %v11169_v20 = vsel %vm562_vm3, %v999_v61, -1e+30 }
 0x2ad   : > { %v7599_v30 = vpop.f32.mrb[34].mxu0 }
 0x2ae   : > { %v1009_v39 = vpop.f32.mrb[35].mxu0  ;;  %v11183_v11 = vsel %vm562_vm3, %v7599_v30, -1e+30  ;;  %v11201_v10 = vpop.permute.xlu0 %1818 }
 0x2af   : > { %1142 = vmax.xlane.f32.xlu0 %v11169_v20  ;;  %v11174_v17 = vsel %vm562_vm3, %v1009_v39, -1e+30 }
 0x2b0   : > { %1146 = vmax.xlane.f32.xlu1 %v11174_v17 }
 0x2b1   : > { %v7602_v19 = vpop.f32.mrb[36].mxu0 }
 0x2b2   : > { %v1019_v61 = vpop.f32.mrb[37].mxu0  ;;  %v11195_v13 = vsel %vm562_vm3, %v7602_v19, -1e+30  ;;  %v11217_v60 = vpop.permute.xlu0 %9403 }
 0x2b3   : > { %1148 = vmax.xlane.f32.xlu0 %v11183_v11  ;;  %v11188_v16 = vsel %vm562_vm3, %v1019_v61, -1e+30  ;;  %14067 = vst [vmem:[#allocation64_spill] sm:$0xff] %v11217_v60 }
 0x2b4   : > { %1150 = vmax.xlane.f32.xlu1 %v11188_v16 }
 0x2b5   : > { %v7605_v39 = vpop.f32.mrb[38].mxu0 }
 0x2b6   : > { %v11199_v30 = vsel %vm562_vm3, %v7605_v39, -1e+30  ;;  %v1029_v5 = vpop.f32.mrb[39].mxu0  ;;  %v11214_v39 = vpop.permute.xlu1 %1822 }
 0x2b7   : > { %1152 = vmax.xlane.f32.xlu0 %v11195_v13  ;;  %v11211_v19 = vsel %vm562_vm3, %v1029_v5, -1e+30  ;;  %14066 = vst [vmem:[#allocation63_spill] sm:$0xff] %v11214_v39  ;;  %v11230_v51 = vpop.permute.xlu0 %1820 }
 0x2b8   : > { %1156 = vmax.xlane.f32.xlu1 %v11199_v30  ;;  %14069 = vst [vmem:[#allocation66_spill] sm:$0xff] %v11230_v51 }
 0x2b9   : > { %v7608_v61 = vpop.f32.mrb[40].mxu0 }
 0x2ba   : > { %v11207_v2 = vsel %vm562_vm3, %v7608_v61, -1e+30  ;;  %v1039_v7 = vpop.f32.mrb[41].mxu0  ;;  %v11224_v54 = vpop.permute.xlu1 %1826 }
 0x2bb   : > { %1160 = vmax.xlane.f32.xlu0 %v11207_v2  ;;  %v11221_v1 = vsel %vm562_vm3, %v1039_v7, -1e+30  ;;  %14068 = vst [vmem:[#allocation65_spill] sm:$0xff] %v11224_v54 }
 0x2bc   : > { %1154 = vmax.xlane.f32.xlu1 %v11211_v19 }
 0x2bd   : > { %v7611_v4 = vpop.f32.mrb[42].mxu0 }
 0x2be   : > { %v1049_v57 = vpop.f32.mrb[43].mxu0  ;;  %v11234_v56 = vsel %vm562_vm3, %v7611_v4, -1e+30  ;;  %v11246_v50 = vpop.permute.xlu1 %1830 }
 0x2bf   : > { %v11240_v53 = vsel %vm562_vm3, %v1049_v57, -1e+30  ;;  %14070 = vst [vmem:[#allocation67_spill] sm:$0xff] %v11246_v50  ;;  %v11250_v4 = vpop.permute.xlu0 %1824 }
 0x2c0   : > { %1158 = vmax.xlane.f32.xlu1 %v11221_v1  ;;  %14071 = vst [vmem:[#allocation68_spill] sm:$0xff] %v11250_v4 }
 0x2c1   : > { %v7614_v61 = vpop.f32.mrb[44].mxu0 }
 0x2c2   : > { %v11228_v5 = vsel %vm562_vm3, %v7614_v61, -1e+30  ;;  %v1059_v59 = vpop.f32.mrb[45].mxu0  ;;  %v11257_v57 = vpop.permute.xlu1 %1834 }
 0x2c3   : > { %1168 = vmax.xlane.f32.xlu0 %v11228_v5  ;;  %v11254_v47 = vsel %vm562_vm3, %v1059_v59, -1e+30  ;;  %14072 = vst [vmem:[#allocation69_spill] sm:$0xff] %v11257_v57  ;;  %v11259_v44 = vpop.permute.xlu0 %1828 }
 0x2c4   : > { %1164 = vmax.xlane.f32.xlu1 %v11234_v56  ;;  %14073 = vst [vmem:[#allocation70_spill] sm:$0xff] %v11259_v44 }
 0x2c5   : > { %v7617_v7 = vpop.f32.mrb[46].mxu0 }
 0x2c6   : > { %v1069_v48 = vpop.f32.mrb[47].mxu0  ;;  %v11266_v41 = vpop.permute.xlu1 %1838 }
 0x2c7   : > { %v11244_v61 = vsel %vm562_vm3, %v1069_v48, -1e+30  ;;  %v11263_v48 = vsel %vm562_vm3, %v7617_v7, -1e+30  ;;  %14074 = vst [vmem:[#allocation71_spill] sm:$0xff] %v11266_v41  ;;  %v11268_v62 = vpop.permute.xlu0 %1832 }
 0x2c8   : > { %1162 = vmax.xlane.f32.xlu1 %v11240_v53  ;;  %1170 = vmax.xlane.f32.xlu0 %v11244_v61  ;;  %14075 = vst [vmem:[#allocation72_spill] sm:$0xff] %v11268_v62 }
 0x2ca   : > { %v11270_v8 = vpop.permute.xlu1 %1842 }
 0x2cb   : > { %14076 = vst [vmem:[#allocation73_spill] sm:$0xff] %v11270_v8  ;;  %v11272_v59 = vpop.permute.xlu0 %1836 }
 0x2cc   : > { %1166 = vmax.xlane.f32.xlu1 %v11254_v47  ;;  %14077 = vst [vmem:[#allocation74_spill] sm:$0xff] %v11272_v59 }
 0x2ce   : > { %v11274_v50 = vpop.permute.xlu1 %1846 }
 0x2cf   : > { %14078 = vst [vmem:[#allocation75_spill] sm:$0xff] %v11274_v50  ;;  %v11276_v14 = vpop.permute.xlu0 %1840 }
 0x2d0   : > { %1172 = vmax.xlane.f32.xlu1 %v11263_v48  ;;  %14079 = vst [vmem:[#allocation76_spill] sm:$0xff] %v11276_v14 }
 0x2d2   : > { %v11278_v57 = vpop.permute.xlu1 %2095 }
 0x2d3   : > { %14080 = vst [vmem:[#allocation77_spill] sm:$0xff] %v11278_v57  ;;  %v11280_v44 = vpop.permute.xlu0 %1844 }
 0x2d4   : > { %14081 = vst [vmem:[#allocation78_spill] sm:$0xff] %v11280_v44 }
 0x2d6   : > { %v11282_v7 = vpop.permute.xlu1 %9408 }
 0x2d7   : > { %14082 = vst [vmem:[#allocation79_spill] sm:$0xff] %v11282_v7  ;;  %v11284_v27 = vpop.permute.xlu0 %2093 }
 0x2d8   : > { %14083 = vst [vmem:[#allocation80_spill] sm:$0xff] %v11284_v27 }
 0x2da   : > { %v11286_v60 = vpop.permute.xlu1 %2099 }
 0x2db   : > { %14084 = vst [vmem:[#allocation81_spill] sm:$0xff] %v11286_v60  ;;  %v11288_v41 = vpop.permute.xlu0 %2097 }
 0x2dc   : > { %14085 = vst [vmem:[#allocation82_spill] sm:$0xff] %v11288_v41 }
 0x2de   : > { %v11290_v62 = vpop.permute.xlu1 %2103 }
 0x2df   : > { %14086 = vst [vmem:[#allocation83_spill] sm:$0xff] %v11290_v62  ;;  %v11292_v8 = vpop.permute.xlu0 %2101 }
 0x2e0   : > { %14087 = vst [vmem:[#allocation84_spill] sm:$0xff] %v11292_v8 }
 0x2e2   : > { %v11294_v59 = vpop.permute.xlu1 %2107 }
 0x2e3   : > { %14088 = vst [vmem:[#allocation85_spill] sm:$0xff] %v11294_v59  ;;  %v11296_v50 = vpop.permute.xlu0 %2105 }
 0x2e4   : > { %14089 = vst [vmem:[#allocation86_spill] sm:$0xff] %v11296_v50 }
 0x2e6   : > { %v11298_v14 = vpop.permute.xlu1 %2111 }
 0x2e7   : > { %14090 = vst [vmem:[#allocation87_spill] sm:$0xff] %v11298_v14  ;;  %v11300_v57 = vpop.permute.xlu0 %2109 }
 0x2e8   : > { %14091 = vst [vmem:[#allocation88_spill] sm:$0xff] %v11300_v57 }
 0x2ea   : > { %v11302_v44 = vpop.permute.xlu1 %2115 }
 0x2eb   : > { %14092 = vst [vmem:[#allocation89_spill] sm:$0xff] %v11302_v44  ;;  %v11304_v7 = vpop.permute.xlu0 %2113 }
 0x2ec   : > { %14093 = vst [vmem:[#allocation90_spill] sm:$0xff] %v11304_v7 }
 0x2ee   : > { %v11306_v27 = vpop.permute.xlu1 %2119 }
 0x2ef   : > { %14094 = vst [vmem:[#allocation91_spill] sm:$0xff] %v11306_v27  ;;  %v11308_v60 = vpop.permute.xlu0 %2117 }
 0x2f0   : > { %14095 = vst [vmem:[#allocation92_spill] sm:$0xff] %v11308_v60 }
 0x314   : > { %v1113_v41 = vpop.xlane.xlu1 %1112 }
 0x315   : > { %v1175_v62 = vsub.f32 %v11082_v18, %v1113_v41  ;;  %v1111_v8 = vpop.xlane.xlu0 %1110 }
 0x316   : > { %v1174_v59 = vsub.f32 %v11087_v3, %v1111_v8 }
 0x317   : > { %v1208_v54 = vmul.f32 1.442695, %v1175_v62 }
 0x318   : > { %v1206_v50 = vmul.f32 1.442695, %v1174_v59 }
 0x319   : > { %9812 = vpow2.f32 %v1208_v54  ;;  %v1117_v14 = vpop.xlane.xlu0 %1116  ;;  %v1115_v4 = vpop.xlane.xlu1 %1114 }
 0x31a   : > { %v1177_v57 = vsub.f32 %v11092_v38, %v1117_v14  ;;  %9814 = vpow2.f32 %v1206_v50  ;;  %v1176_v7 = vsub.f32 %v11096_v0, %v1115_v4 }
 0x31c   : > { %v1212_v44 = vmul.f32 1.442695, %v1177_v57  ;;  %v1210_v41 = vmul.f32 1.442695, %v1176_v7 }
 0x31d   : > { %v1121_v27 = vpop.xlane.xlu0 %1120  ;;  %v1119_v39 = vpop.xlane.xlu1 %1118 }
 0x31e   : > { %v1178_v60 = vsub.f32 %v11106_v31, %v1119_v39  ;;  %9816 = vpow2.f32 %v1212_v44  ;;  %v1179_v8 = vsub.f32 %v11102_v33, %v1121_v27 }
 0x320   : > { %v1214_v51 = vmul.f32 1.442695, %v1178_v60  ;;  %v1216_v14 = vmul.f32 1.442695, %v1179_v8 }
 0x321   : > { %v1125_v62 = vpop.xlane.xlu0 %1124  ;;  %v1123_v54 = vpop.xlane.xlu1 %1122 }
 0x322   : > { %v1180_v18 = vsub.f32 %v11116_v63, %v1123_v54  ;;  %9818 = vpow2.f32 %v1214_v51  ;;  %v1181_v38 = vsub.f32 %v11112_v35, %v1125_v62 }
 0x323   : > { %v11317_v3 = vpop.eup %9812  ;;  %9820 = vpow2.f32 %v1210_v41 }
 0x324   : > { %v1218_v50 = vmul.f32 1.442695, %v1180_v18  ;;  %1272 = vadd.xlane.f32.xlu1 %v11317_v3  ;;  %v11321_v44 = vpop.eup %9814  ;;  %v1220_v27 = vmul.f32 1.442695, %v1181_v38 }
 0x325   : > { %v1129_v0 = vpop.xlane.xlu0 %1128  ;;  %v1127_v60 = vpop.xlane.xlu1 %1126 }
 0x326   : > { %9822 = vpow2.f32 %v1218_v50  ;;  %v1183_v33 = vsub.f32 %v11122_v37, %v1129_v0  ;;  %v1182_v59 = vsub.f32 %v11126_v29, %v1127_v60 }
 0x327   : > { %9824 = vpow2.f32 %v1216_v14 }
 0x328   : > { %1270 = vadd.xlane.f32.xlu1 %v11321_v44  ;;  %v11326_v39 = vpop.eup %9816  ;;  %9826 = vpow2.f32 %v1220_v27  ;;  %v1224_v57 = vmul.f32 1.442695, %v1183_v33  ;;  %v1222_v18 = vmul.f32 1.442695, %v1182_v59 }
 0x329   : > { %v1133_v31 = vpop.xlane.xlu0 %1132  ;;  %v1131_v51 = vpop.xlane.xlu1 %1130 }
 0x32a   : > { %v1184_v63 = vsub.f32 %v11136_v23, %v1131_v51  ;;  %v1185_v29 = vsub.f32 %v11132_v36, %v1133_v31 }
 0x32c   : > { %v1226_v4 = vmul.f32 1.442695, %v1184_v63  ;;  %1276 = vadd.xlane.f32.xlu1 %v11326_v39  ;;  %v11329_v35 = vpop.eup %9818 }
 0x32d   : > { %v1137_v7 = vpop.xlane.xlu0 %1136  ;;  %v1135_v41 = vpop.xlane.xlu1 %1134  ;;  %1278 = vadd.xlane.f32.xlu0 %v11329_v35 }
 0x32e   : > { %v1187_v8 = vsub.f32 %v11142_v42, %v1137_v7  ;;  %v11334_v37 = vpop.eup %9820  ;;  %9828 = vpow2.f32 %v1226_v4  ;;  %v1186_v23 = vsub.f32 %v11146_v45, %v1135_v41  ;;  %v1228_v45 = vmul.f32 1.442695, %v1185_v29 }
 0x32f   : > { %9830 = vpow2.f32 %v1224_v57 }
 0x330   : > { %v1232_v62 = vmul.f32 1.442695, %v1187_v8  ;;  %1274 = vadd.xlane.f32.xlu1 %v11334_v37  ;;  %v11338_v54 = vpop.eup %9822  ;;  %v1230_v38 = vmul.f32 1.442695, %v1186_v23 }
 0x331   : > { %v1139_v50 = vpop.xlane.xlu1 %1138  ;;  %v1141_v14 = vpop.xlane.xlu0 %1140  ;;  %1282 = vadd.xlane.f32.xlu0 %v11338_v54 }
 0x332   : > { %9832 = vpow2.f32 %v1232_v62  ;;  %v11342_v42 = vpop.eup %9824  ;;  %v1188_v0 = vsub.f32 %v11156_v26, %v1139_v50  ;;  %v1189_v60 = vsub.f32 %v11152_v28, %v1141_v14 }
 0x333   : > { %9834 = vpow2.f32 %v1222_v18  ;;  %v11347_v27 = vpop.eup %9826 }
 0x334   : > { %1280 = vadd.xlane.f32.xlu1 %v11342_v42  ;;  %9836 = vpow2.f32 %v1230_v38  ;;  %v1234_v36 = vmul.f32 1.442695, %v1188_v0  ;;  %v1236_v51 = vmul.f32 1.442695, %v1189_v60 }
 0x335   : > { %9838 = vpow2.f32 %v1228_v45 }
 0x336   : > { %9840 = vpow2.f32 %v1234_v36 }
 0x337   : > { %9842 = vpow2.f32 %v1236_v51 }
 0x338   : > { %v1145_v33 = vpop.xlane.xlu0 %1144  ;;  %1284 = vadd.xlane.f32.xlu1 %v11347_v27  ;;  %v11350_v31 = vpop.eup %9828 }
 0x339   : > { %v1191_v63 = vsub.f32 %v11164_v15, %v1145_v33  ;;  %1290 = vadd.xlane.f32.xlu0 %v11350_v31  ;;  %v11354_v26 = vpop.eup %9830 }
 0x33b   : > { %v1240_v28 = vmul.f32 1.442695, %v1191_v63 }
 0x33c   : > { %v11356_v4 = vpop.eup %9832  ;;  %v1143_v57 = vpop.xlane.xlu0 %1142  ;;  %1288 = vadd.xlane.f32.xlu1 %v11354_v26 }
 0x33d   : > { %v1190_v59 = vsub.f32 %v11169_v20, %v1143_v57  ;;  %v1147_v7 = vpop.xlane.xlu1 %1146  ;;  %1296 = vadd.xlane.f32.xlu0 %v11356_v4  ;;  %v11362_v15 = vpop.eup %9834  ;;  %9844 = vpow2.f32 %v1240_v28 }
 0x33e   : > { %v1192_v41 = vsub.f32 %v11174_v17, %v1147_v7  ;;  %v11365_v18 = vpop.eup %9836 }
 0x33f   : > { %v1238_v8 = vmul.f32 1.442695, %v1190_v59  ;;  %v11369_v20 = vpop.eup %9838 }
 0x340   : > { %v1242_v23 = vmul.f32 1.442695, %v1192_v41  ;;  %v1149_v62 = vpop.xlane.xlu0 %1148  ;;  %1286 = vadd.xlane.f32.xlu1 %v11362_v15  ;;  %v11372_v38 = vpop.eup %9840 }
 0x341   : > { %9846 = vpow2.f32 %v1238_v8  ;;  %v1193_v29 = vsub.f32 %v11183_v11, %v1149_v62  ;;  %v1151_v50 = vpop.xlane.xlu1 %1150  ;;  %1294 = vadd.xlane.f32.xlu0 %v11365_v18  ;;  %v11378_v36 = vpop.eup %9842 }
 0x342   : > { %9848 = vpow2.f32 %v1242_v23  ;;  %v1194_v0 = vsub.f32 %v11188_v16, %v1151_v50 }
 0x343   : > { %v1244_v17 = vmul.f32 1.442695, %v1193_v29 }
 0x344   : > { %v1153_v14 = vpop.xlane.xlu0 %1152  ;;  %1292 = vadd.xlane.f32.xlu1 %v11369_v20  ;;  %v1246_v63 = vmul.f32 1.442695, %v1194_v0 }
 0x345   : > { %9850 = vpow2.f32 %v1244_v17  ;;  %v1195_v45 = vsub.f32 %v11195_v13, %v1153_v14  ;;  %v1157_v60 = vpop.xlane.xlu1 %1156  ;;  %1298 = vadd.xlane.f32.xlu0 %v11372_v38 }
 0x346   : > { %v1197_v11 = vsub.f32 %v11199_v30, %v1157_v60 }
 0x347   : > { %v1248_v33 = vmul.f32 1.442695, %v1195_v45  ;;  %v11381_v57 = vpop.eup %9844 }
 0x348   : > { %v1252_v51 = vmul.f32 1.442695, %v1197_v11  ;;  %1300 = vadd.xlane.f32.xlu1 %v11378_v36  ;;  %v1161_v16 = vpop.xlane.xlu0 %1160 }
 0x349   : > { %9852 = vpow2.f32 %v1248_v33  ;;  %v1155_v28 = vpop.xlane.xlu1 %1154  ;;  %v1199_v30 = vsub.f32 %v11207_v2, %v1161_v16 }
 0x34a   : > { %9854 = vpow2.f32 %v1252_v51  ;;  %v1196_v13 = vsub.f32 %v11211_v19, %v1155_v28 }
 0x34b   : > { %v11384_v59 = vpop.eup %9846  ;;  %9856 = vpow2.f32 %v1246_v63  ;;  %v1256_v19 = vmul.f32 1.442695, %v1199_v30 }
 0x34c   : > { %1304 = vadd.xlane.f32.xlu1 %v11381_v57  ;;  %1302 = vadd.xlane.f32.xlu0 %v11384_v59  ;;  %v1250_v7 = vmul.f32 1.442695, %v1196_v13  ;;  %v11389_v8 = vpop.eup %9848 }
 0x34d   : > { %v1159_v41 = vpop.xlane.xlu1 %1158 }
 0x34e   : > { %9858 = vpow2.f32 %v1250_v7  ;;  %v1198_v62 = vsub.f32 %v11221_v1, %v1159_v41 }
 0x34f   : > { %v11391_v23 = vpop.eup %9850  ;;  %9860 = vpow2.f32 %v1256_v19 }
 0x350   : > { %1308 = vadd.xlane.f32.xlu1 %v11391_v23  ;;  %1306 = vadd.xlane.f32.xlu0 %v11389_v8  ;;  %v1169_v29 = vpop.xlane.xlu0 %1168  ;;  %v1254_v2 = vmul.f32 1.442695, %v1198_v62 }
 0x351   : > { %v1165_v50 = vpop.xlane.xlu1 %1164  ;;  %v1203_v51 = vsub.f32 %v11228_v5, %v1169_v29 }
 0x352   : > { %v1201_v0 = vsub.f32 %v11234_v56, %v1165_v50  ;;  %9862 = vpow2.f32 %v1254_v2 }
 0x353   : > { %v11396_v17 = vpop.eup %9852 }
 0x354   : > { %v11398_v14 = vpop.eup %9854  ;;  %1312 = vadd.xlane.f32.xlu0 %v11396_v17  ;;  %v1260_v63 = vmul.f32 1.442695, %v1201_v0 }
 0x355   : > { %v1163_v45 = vpop.xlane.xlu1 %1162  ;;  %1316 = vadd.xlane.f32.xlu1 %v11398_v14  ;;  %v11404_v11 = vpop.eup %9856 }
 0x356   : > { %v1200_v60 = vsub.f32 %v11240_v53, %v1163_v45  ;;  %v1171_v1 = vpop.xlane.xlu0 %1170  ;;  %v1264_v53 = vmul.f32 1.442695, %v1203_v51  ;;  %v14096_v45 = vld [vmem:[#allocation20_spill] sm:$0xff]  ;;  %v14100_v51 = vld [vmem:[#allocation29_spill] sm:$0xff] }
 0x357   : > { %v1204_v16 = vsub.f32 %v11244_v61, %v1171_v1  ;;  %v14098_v1 = vld [vmem:[#allocation26_spill] sm:$0xff] }
 0x358   : > { %v1258_v33 = vmul.f32 1.442695, %v1200_v60  ;;  %1310 = vadd.xlane.f32.xlu0 %v11404_v11  ;;  %v11410_v13 = vpop.eup %9858  ;;  %v14097_v60 = vld [vmem:[#allocation41_spill] sm:$0xff] }
 0x359   : > { %v1167_v28 = vpop.xlane.xlu1 %1166  ;;  %v1266_v41 = vmul.f32 1.442695, %v1204_v16  ;;  %v11414_v5 = vpop.eup %9860  ;;  %v14103_v16 = vld [vmem:[#allocation47_spill] sm:$0xff] }
 0x35a   : > { %9864 = vpow2.f32 %v1258_v33  ;;  %v1202_v56 = vsub.f32 %v11254_v47, %v1167_v28  ;;  %v14099_v33 = vld [vmem:[#allocation44_spill] sm:$0xff]  ;;  %v14102_v28 = vld [vmem:[#allocation35_spill] sm:$0xff] }
 0x35b   : > { %9866 = vpow2.f32 %v1260_v63  ;;  %v14101_v63 = vld [vmem:[#allocation32_spill] sm:$0xff] }
 0x35c   : > { %v1262_v30 = vmul.f32 1.442695, %v1202_v56  ;;  %1314 = vadd.xlane.f32.xlu0 %v11410_v13  ;;  %v11417_v47 = vpop.eup %9862  ;;  %v14104_v56 = vld [vmem:[#allocation50_spill] sm:$0xff] }
 0x35d   : > { %v1173_v7 = vpop.xlane.xlu1 %1172 }
 0x35e   : > { %9868 = vpow2.f32 %v1262_v30  ;;  %v1205_v19 = vsub.f32 %v11263_v48, %v1173_v7 }
 0x35f   : > { %9870 = vpow2.f32 %v1264_v53  ;;  %v14105_v53 = vld [vmem:[#allocation53_spill] sm:$0xff] }
 0x360   : > { %1320 = vadd.xlane.f32.xlu0 %v11414_v5  ;;  %v1268_v61 = vmul.f32 1.442695, %v1205_v19  ;;  %9872 = vpow2.f32 %v1266_v41 }
 0x362   : > { %9874 = vpow2.f32 %v1268_v61 }
 0x364   : > { %v11419_v62 = vpop.eup %9864  ;;  %1318 = vadd.xlane.f32.xlu0 %v11417_v47 }
 0x365   : > { %1322 = vadd.xlane.f32.xlu1 %v11419_v62  ;;  %v11423_v29 = vpop.eup %9866 }
 0x368   : > { %v11425_v50 = vpop.eup %9868  ;;  %1324 = vadd.xlane.f32.xlu0 %v11423_v29 }
 0x369   : > { %1326 = vadd.xlane.f32.xlu1 %v11425_v50  ;;  %v11429_v48 = vpop.eup %9870 }
 0x36a   : > { %v11431_v2 = vpop.eup %9872 }
 0x36c   : > { %1328 = vadd.xlane.f32.xlu0 %v11429_v48  ;;  %v11435_v0 = vpop.eup %9874 }
 0x36d   : > { %1330 = vadd.xlane.f32.xlu1 %v11431_v2 }
 0x370   : > { %1332 = vadd.xlane.f32.xlu0 %v11435_v0 }
 0x37e   : > { %9418 = vrot.lane.b32.xlu1 %v10577_v43, %s10392_s27 }
 0x382   : > { %9428 = vrot.lane.b32.xlu1 %v10601_v49, %s10392_s27 }
 0x386   : > { %9413 = vrot.lane.b32.xlu0 %v10567_v40, %s10392_s27  ;;  %9438 = vrot.lane.b32.xlu1 %v10625_v55, %s10392_s27 }
 0x38a   : > { %9423 = vrot.lane.b32.xlu0 %v10589_v46, %s10392_s27  ;;  %9468 = vrot.lane.b32.xlu1 %v10687_v6, %s10392_s27 }
 0x38e   : > { %9433 = vrot.lane.b32.xlu0 %v14096_v45, %s10392_s27  ;;  %9473 = vrot.lane.b32.xlu1 %v14097_v60, %s10392_s27 }
 0x392   : > { %9443 = vrot.lane.b32.xlu0 %v14098_v1, %s10392_s27  ;;  %9483 = vrot.lane.b32.xlu1 %v14099_v33, %s10392_s27 }
 0x396   : > { %9448 = vrot.lane.b32.xlu0 %v14100_v51, %s10392_s27  ;;  %9493 = vrot.lane.b32.xlu1 %v10589_v46, %s10393_s28  ;;  %v14106_v46 = vld [vmem:[#allocation55_spill] sm:$0xff] }
 0x39a   : > { %9453 = vrot.lane.b32.xlu0 %v14101_v63, %s10392_s27  ;;  %9508 = vrot.lane.b32.xlu1 %v10601_v49, %s10393_s28 }
 0x39e   : > { %9458 = vrot.lane.b32.xlu0 %v14102_v28, %s10392_s27  ;;  %9518 = vrot.lane.b32.xlu1 %v14101_v63, %s10393_s28 }
 0x3a2   : > { %9463 = vrot.lane.b32.xlu0 %v10567_v40, %s10393_s28  ;;  %9528 = vrot.lane.b32.xlu1 %v14102_v28, %s10393_s28 }
 0x3a6   : > { %9478 = vrot.lane.b32.xlu0 %v10577_v43, %s10393_s28  ;;  %9538 = vrot.lane.b32.xlu1 %v10687_v6, %s10393_s28  ;;  %v9200_v6 = vunpack.i.l.bf16 %v14106_v46 }
 0x3aa   : > { %9488 = vrot.lane.b32.xlu0 %v14103_v16, %s10392_s27 }
 0x3ae   : > { %9498 = vrot.lane.b32.xlu0 %v14104_v56, %s10392_s27 }
 0x3b1   : > { %v1273_v30 = vpop.xlane.xlu1 %1272 }
 0x3b2   : > { %9503 = vrot.lane.b32.xlu0 %v14105_v53, %s10392_s27  ;;  %9876 = vrcp.f32 %v1273_v30  ;;  %s10401_s27 = smov 24  }
 0x3b5   : > { %v1271_v7 = vpop.xlane.xlu1 %1270 }
 0x3b6   : > { %9878 = vrcp.f32 %v1271_v7  ;;  %9513 = vrot.lane.b32.xlu0 %v14096_v45, %s10393_s28  ;;  %v9201_v7 = vunpack.i.h.bf16 %v14106_v46 }
 0x3b9   : > { %v1277_v41 = vpop.xlane.xlu1 %1276 }
 0x3ba   : > { %9523 = vrot.lane.b32.xlu0 %v10625_v55, %s10393_s28  ;;  %v1279_v19 = vpop.xlane.xlu0 %1278  ;;  %9880 = vrcp.f32 %v1277_v41 }
 0x3bb   : > { %9882 = vrcp.f32 %v1279_v19  ;;  %v8632_v19 = vpack.c.bf16 %v9201_v7, %v9200_v6 }
 0x3bc   : > { %v9877_v28 = vpop.eup %9876 }
 0x3bd   : > { %v1275_v61 = vpop.xlane.xlu1 %1274  ;;  %v1367_v41 = vmul.f32 %v9877_v28, %v11317_v3 }
 0x3be   : > { %9884 = vrcp.f32 %v1275_v61  ;;  %9533 = vrot.lane.b32.xlu0 %v14098_v1, %s10393_s28  ;;  %v1283_v63 = vpop.xlane.xlu0 %1282 }
 0x3bf   : > { %9886 = vrcp.f32 %v1283_v63 }
 0x3c0   : > { %v9879_v30 = vpop.eup %9878 }
 0x3c1   : > { %v1281_v45 = vpop.xlane.xlu1 %1280  ;;  %v1366_v40 = vmul.f32 %v9879_v30, %v11321_v44  ;;  %v14107_v44 = vld [vmem:[#allocation54_spill] sm:$0xff] }
 0x3c2   : > { %9888 = vrcp.f32 %v1281_v45  ;;  %v9216_v45 = vunpack.i.h.bf16 %v14107_v44  ;;  %v9215_v3 = vunpack.i.l.bf16 %v14107_v44 }
 0x3c3   : > { %7650 = vmatprep.mubr.f32.mxu1 %v1366_v40 }
 0x3c4   : > { %7651 = vmatmul.mubr.f32.vlgmr.msra.gmra.mrb[16].mxu1 %v1367_v41  ;;  %v9881_v1 = vpop.eup %9880  ;;  %v8638_v49 = vpack.c.bf16 %v9216_v45, %v9215_v3 }
 0x3c5   : > { %8631 = vmatpush3.bf16.xpose.msk.msra.mxu1 %vm10811_vm2, %v11023_v34  ;;  %v1285_v61 = vpop.xlane.xlu1 %1284  ;;  %v9883_v46 = vpop.eup %9882  ;;  %v1369_v28 = vmul.f32 %v9881_v1, %v11326_v39 }
 0x3c6   : > { %8634 = vmatprep.subr.msk.bf16.mxu1 %vm10811_vm2, %v8632_v19  ;;  %9890 = vrcp.f32 %v1285_v61  ;;  %v1291_v63 = vpop.xlane.xlu0 %1290  ;;  %v1370_v7 = vmul.f32 %v9883_v46, %v11329_v35 }
 0x3c7   : > { %9892 = vrcp.f32 %v1291_v63 }
 0x3c8   : > { %v9885_v55 = vpop.eup %9884 }
 0x3c9   : > { %v1289_v40 = vpop.xlane.xlu1 %1288  ;;  %v1368_v6 = vmul.f32 %v9885_v55, %v11334_v37  ;;  %v9887_v30 = vpop.eup %9886  ;;  %v14108_v37 = vld [vmem:[#allocation56_spill] sm:$0xff] }
 0x3ca   : > { %v1297_v34 = vpop.xlane.xlu0 %1296  ;;  %9894 = vrcp.f32 %v1289_v40  ;;  %v1372_v39 = vmul.f32 %v9887_v30, %v11338_v54  ;;  %v9231_v1 = vunpack.i.h.bf16 %v14108_v37  ;;  %v9230_v46 = vunpack.i.l.bf16 %v14108_v37 }
 0x3cb   : > { %7653 = vmatprep.mubr.f32.mxu1 %v1368_v6 }
 0x3cc   : > { %v9889_v41 = vpop.eup %9888  ;;  %7654 = vmatmul.mubr.f32.gmra.mrb[18].mxu1 %v1369_v28  ;;  %v8644_v45 = vpack.c.bf16 %v9231_v1, %v9230_v46  ;;  %v14109_v28 = vld [vmem:[#allocation57_spill] sm:$0xff]  ;;  %v14110_v46 = vld [vmem:[#allocation58_spill] sm:$0xff] }
 0x3cd   : > { %8637 = vmatpush3.bf16.xpose.msk.msra.mxu1 %vm10811_vm2, %v8632_v19  ;;  %v1287_v61 = vpop.xlane.xlu1 %1286  ;;  %7656 = vmatprep.mubr.f32.mxu1 %v1370_v7  ;;  %v1371_v44 = vmul.f32 %v9889_v41, %v11342_v42  ;;  %v9246_v30 = vunpack.i.h.bf16 %v14109_v28 }
 0x3ce   : > { %8640 = vmatprep.subr.msk.bf16.mxu1 %vm10811_vm2, %v8638_v49  ;;  %9896 = vrcp.f32 %v1287_v61  ;;  %v1295_v55 = vpop.xlane.xlu0 %1294 }
 0x3cf   : > { %9898 = vrcp.f32 %v1295_v55 }
 0x3d0   : > { %v9891_v35 = vpop.eup %9890  ;;  %7657 = vmatmul.mubr.f32.gmra.mrb[20].mxu1 %v1371_v44 }
 0x3d1   : > { %v1293_v63 = vpop.xlane.xlu1 %1292  ;;  %7659 = vmatprep.mubr.f32.mxu1 %v1372_v39  ;;  %v1373_v19 = vmul.f32 %v9891_v35, %v11347_v27  ;;  %v9893_v3 = vpop.eup %9892  ;;  %v9245_v27 = vunpack.i.l.bf16 %v14109_v28  ;;  %v14111_v28 = vld [vmem:[#allocation59_spill] sm:$0xff] }
 0x3d2   : > { %9900 = vrcp.f32 %v1293_v63  ;;  %v1299_v42 = vpop.xlane.xlu0 %1298  ;;  %v1376_v44 = vmul.f32 %v9893_v3, %v11350_v31  ;;  %v9261_v63 = vunpack.i.h.bf16 %v14110_v46 }
 0x3d3   : > { %9902 = vrcp.f32 %v1297_v34  ;;  %v8650_v39 = vpack.c.bf16 %v9246_v30, %v9245_v27  ;;  %v9311_v30 = vunpack.i.h.bf16 %v14111_v28 }
 0x3d4   : > { %7660 = vmatmul.mubr.f32.gmra.mrb[22].mxu1 %v1373_v19  ;;  %9904 = vrcp.f32 %v1299_v42  ;;  %v9895_v40 = vpop.eup %9894  ;;  %v9260_v19 = vunpack.i.l.bf16 %v14110_v46 }
 0x3d5   : > { %8643 = vmatpush3.bf16.xpose.msk.msra.mxu1 %vm10811_vm2, %v8638_v49  ;;  %v1301_v54 = vpop.xlane.xlu1 %1300  ;;  %v1375_v49 = vmul.f32 %v9895_v40, %v11354_v26 }
 0x3d6   : > { %8646 = vmatprep.subr.msk.bf16.mxu1 %vm10811_vm2, %v8644_v45  ;;  %9906 = vrcp.f32 %v1301_v54  ;;  %v8656_v40 = vpack.c.bf16 %v9261_v63, %v9260_v19  ;;  %v9356_v19 = vunpack.i.h.bf16 %v10969_v12 }
 0x3d8   : > { %v9897_v6 = vpop.eup %9896 }
 0x3d9   : > { %v1305_v7 = vpop.xlane.xlu1 %1304  ;;  %v1303_v41 = vpop.xlane.xlu0 %1302  ;;  %v1374_v34 = vmul.f32 %v9897_v6, %v11362_v15 }
 0x3da   : > { %9908 = vrcp.f32 %v1305_v7  ;;  %v9899_v61 = vpop.eup %9898 }
 0x3db   : > { %9910 = vrcp.f32 %v1303_v41  ;;  %7662 = vmatprep.mubr.f32.mxu1 %v1374_v34  ;;  %v1378_v15 = vmul.f32 %v9899_v61, %v11365_v18  ;;  %v9310_v18 = vunpack.i.l.bf16 %v14111_v28  ;;  %v9340_v61 = vunpack.i.l.bf16 %v10955_v52 }
 0x3dc   : > { %v9901_v55 = vpop.eup %9900  ;;  %7663 = vmatmul.mubr.f32.gmra.mrb[24].mxu1 %v1375_v49  ;;  %v9341_v49 = vunpack.i.h.bf16 %v10955_v52  ;;  %v9366_v28 = vunpack.i.h.bf16 %v10967_v58 }
 0x3dd   : > { %8649 = vmatpush3.bf16.xpose.msk.msra.mxu1 %vm10811_vm2, %v8644_v45  ;;  %v1309_v35 = vpop.xlane.xlu1 %1308  ;;  %7665 = vmatprep.mubr.f32.mxu1 %v1376_v44  ;;  %v1307_v37 = vpop.xlane.xlu0 %1306  ;;  %v1377_v1 = vmul.f32 %v9901_v55, %v11369_v20  ;;  %v8680_v55 = vpack.c.bf16 %v9311_v30, %v9310_v18 }
 0x3de   : > { %8652 = vmatprep.subr.msk.bf16.mxu1 %vm10811_vm2, %v8650_v39  ;;  %9912 = vrcp.f32 %v1309_v35  ;;  %v9903_v26 = vpop.eup %9902  ;;  %v8662_v52 = vpack.c.bf16 %v9341_v49, %v9340_v61  ;;  %v9345_v35 = vunpack.i.l.bf16 %v10945_v32 }
 0x3df   : > { %9914 = vrcp.f32 %v1307_v37  ;;  %v9905_v31 = vpop.eup %9904  ;;  %v1379_v45 = vmul.f32 %v9903_v26, %v11356_v4  ;;  %v9350_v37 = vunpack.i.l.bf16 %v10949_v24 }
 0x3e0   : > { %7666 = vmatmul.mubr.f32.gmra.mrb[26].mxu1 %v1377_v1  ;;  %v9907_v54 = vpop.eup %9906  ;;  %v1380_v20 = vmul.f32 %v9905_v31, %v11372_v38 }
 0x3e1   : > { %7668 = vmatprep.mubr.f32.mxu1 %v1378_v15  ;;  %v1313_v42 = vpop.xlane.xlu0 %1312  ;;  %v1381_v41 = vmul.f32 %v9907_v54, %v11378_v36 }
 0x3e2   : > { %9916 = vrcp.f32 %v1313_v42  ;;  %v1317_v4 = vpop.xlane.xlu1 %1316 }
 0x3e4   : > { %v9909_v3 = vpop.eup %9908  ;;  %7669 = vmatmul.mubr.f32.gmra.mrb[28].mxu1 %v1379_v45 }
 0x3e5   : > { %v9911_v6 = vpop.eup %9910  ;;  %8655 = vmatpush3.bf16.xpose.msk.msra.mxu1 %vm10811_vm2, %v8650_v39  ;;  %7671 = vmatprep.mubr.f32.mxu1 %v1380_v20  ;;  %v1311_v27 = vpop.xlane.xlu0 %1310  ;;  %v1383_v7 = vmul.f32 %v9909_v3, %v11381_v57 }
 0x3e6   : > { %8658 = vmatprep.subr.msk.bf16.mxu1 %vm10811_vm2, %v8656_v40  ;;  %9918 = vrcp.f32 %v1311_v27  ;;  %v1382_v38 = vmul.f32 %v9911_v6, %v11384_v59  ;;  %v9346_v59 = vunpack.i.h.bf16 %v10945_v32 }
 0x3e7   : > { %9920 = vrcp.f32 %v1317_v4 }
 0x3e8   : > { %v9913_v34 = vpop.eup %9912  ;;  %7706 = vmatprep.mubr.f32.mxu0 %v1382_v38  ;;  %7672 = vmatmul.mubr.f32.gmra.mrb[30].mxu1 %v1381_v41  ;;  %v8686_v1 = vpack.c.bf16 %v9346_v59, %v9345_v35 }
 0x3e9   : > { %v9915_v44 = vpop.eup %9914  ;;  %7707 = vmatmul.mubr.f32.vlgmr.msra.gmra.mrb[48].mxu0 %v1383_v7  ;;  %7762 = vmatprep.mubr.msk.f32.mxu1 %vm611_vm1, %v11179_v22  ;;  %v1315_v57 = vpop.xlane.xlu0 %1314  ;;  %v1385_v39 = vmul.f32 %v9913_v34, %v11391_v23 }
 0x3ea   : > { %8679 = vmatpush3.bf16.xpose.msk.msra.mxu0 %vm10811_vm2, %v11070_v9  ;;  %9922 = vrcp.f32 %v1315_v57  ;;  %v1384_v36 = vmul.f32 %v9915_v44, %v11389_v8  ;;  %v9351_v8 = vunpack.i.h.bf16 %v10949_v24 }
 0x3eb   : > { %8682 = vmatprep.subr.msk.bf16.mxu0 %vm10811_vm2, %v8680_v55 }
 0x3ec   : > { %7709 = vmatprep.mubr.f32.mxu0 %v1384_v36  ;;  %v9917_v9 = vpop.eup %9916  ;;  %v8668_v24 = vpack.c.bf16 %v9351_v8, %v9350_v37  ;;  %v9400_v36 = vunpack.i.l.bf16 %v11160_v21  ;;  %v14113_v37 = vld [vmem:[#allocation63_spill] sm:$0xff] }
 0x3ed   : > { %7710 = vmatmul.mubr.f32.gmra.mrb[50].mxu0 %v1385_v39  ;;  %8661 = vmatpush3.bf16.xpose.msk.msra.mxu1 %vm10811_vm2, %v8656_v40  ;;  %v1321_v22 = vpop.xlane.xlu0 %1320  ;;  %v1387_v31 = vmul.f32 %v9917_v9, %v11396_v17 }
 0x3ee   : > { %8664 = vmatprep.subr.msk.bf16.mxu1 %vm10811_vm2, %v8662_v52  ;;  %9924 = vrcp.f32 %v1321_v22 }
 0x3f0   : > { %v9919_v23 = vpop.eup %9918 }
 0x3f1   : > { %v1319_v26 = vpop.xlane.xlu0 %1318  ;;  %v1386_v15 = vmul.f32 %v9919_v23, %v11404_v11  ;;  %v9921_v46 = vpop.eup %9920  ;;  %v9355_v11 = vunpack.i.l.bf16 %v10969_v12 }
 0x3f2   : > { %8685 = vmatpush3.bf16.xpose.msk.msra.mxu0 %vm10811_vm2, %v8680_v55  ;;  %9926 = vrcp.f32 %v1319_v26  ;;  %v1323_v32 = vpop.xlane.xlu1 %1322  ;;  %v1389_v54 = vmul.f32 %v9921_v46, %v11398_v14  ;;  %v9365_v14 = vunpack.i.l.bf16 %v10967_v58  ;;  %v14116_v46 = vld [vmem:[#allocation64_spill] sm:$0xff] }
 0x3f3   : > { %8688 = vmatprep.subr.msk.bf16.mxu0 %vm10811_vm2, %v8686_v1  ;;  %9928 = vrcp.f32 %v1323_v32  ;;  %7712 = vmatprep.mubr.f32.mxu0 %v1386_v15  ;;  %v8692_v20 = vpack.c.bf16 %v9356_v19, %v9355_v11 }
 0x3f4   : > { %v9923_v63 = vpop.eup %9922  ;;  %7713 = vmatmul.mubr.f32.gmra.mrb[52].mxu0 %v1387_v31  ;;  %v8698_v34 = vpack.c.bf16 %v9366_v28, %v9365_v14  ;;  %v14115_v31 = vld [vmem:[#allocation65_spill] sm:$0xff] }
 0x3f5   : > { %8667 = vmatpush3.bf16.xpose.msk.msra.mxu1 %vm10811_vm2, %v8662_v52  ;;  %v1325_v42 = vpop.xlane.xlu0 %1324  ;;  %v1388_v45 = vmul.f32 %v9923_v63, %v11410_v13  ;;  %v14112_v52 = vld [vmem:[#allocation66_spill] sm:$0xff]  ;;  %v9406_v63 = vunpack.i.h.bf16 %v14116_v46  ;;  %v14121_v14 = vld [vmem:[#allocation69_spill] sm:$0xff] }
 0x3f6   : > { %8670 = vmatprep.subr.msk.bf16.mxu1 %vm10811_vm2, %v8668_v24  ;;  %9930 = vrcp.f32 %v1325_v42  ;;  %v1327_v17 = vpop.xlane.xlu1 %1326 }
 0x3f7   : > { %9932 = vrcp.f32 %v1327_v17  ;;  %7715 = vmatprep.mubr.f32.mxu0 %v1388_v45  ;;  %v14118_v45 = vld [vmem:[#allocation61_spill] sm:$0xff] }
 0x3f8   : > { %7716 = vmatmul.mubr.f32.gmra.mrb[54].mxu0 %v1389_v54  ;;  %v9925_v40 = vpop.eup %9924 }
 0x3f9   : > { %v1329_v3 = vpop.xlane.xlu0 %1328  ;;  %v1391_v27 = vmul.f32 %v9925_v40, %v11414_v5 }
 0x3fa   : > { %8691 = vmatpush3.bf16.xpose.msk.msra.mxu0 %vm10811_vm2, %v8686_v1  ;;  %9934 = vrcp.f32 %v1329_v3  ;;  %v1331_v12 = vpop.xlane.xlu1 %1330  ;;  %v14114_v1 = vld [vmem:[#allocation68_spill] sm:$0xff] }
 0x3fb   : > { %8694 = vmatprep.subr.msk.bf16.mxu0 %vm10811_vm2, %v8692_v20  ;;  %9936 = vrcp.f32 %v1331_v12  ;;  %v14120_v12 = vld [vmem:[#allocation72_spill] sm:$0xff] }
 0x3fc   : > { %v9927_v13 = vpop.eup %9926 }
 0x3fd   : > { %v9929_v6 = vpop.eup %9928  ;;  %8673 = vmatpush3.bf16.xpose.msk.msra.mxu1 %vm10811_vm2, %v8668_v24  ;;  %v1333_v30 = vpop.xlane.xlu0 %1332  ;;  %v1390_v18 = vmul.f32 %v9927_v13, %v11417_v47  ;;  %v9405_v24 = vunpack.i.l.bf16 %v14116_v46 }
 0x3fe   : > { %9938 = vrcp.f32 %v1333_v30  ;;  %v1392_v7 = vmul.f32 %v9929_v6, %v11419_v62  ;;  %v9419_v38 = vpop.permute.xlu1 %9418  ;;  %v14122_v30 = vld [vmem:[#allocation79_spill] sm:$0xff] }
 0x3ff   : > { %7718 = vmatprep.mubr.f32.mxu0 %v1390_v18  ;;  %v9421_v5 = vunpack.i.h.bf16 %v9419_v38  ;;  %v9420_v55 = vunpack.i.l.bf16 %v9419_v38  ;;  %v8710_v3 = vpack.c.bf16 %v9406_v63, %v9405_v24  ;;  %v9411_v18 = vunpack.i.h.bf16 %v14122_v30  ;;  %v14131_v63 = vld [vmem:[#allocation77_spill] sm:$0xff] }
 0x400   : > { %v9931_v4 = vpop.eup %9930  ;;  %7719 = vmatmul.mubr.f32.gmra.mrb[56].mxu0 %v1391_v27  ;;  %v9410_v27 = vunpack.i.l.bf16 %v14122_v30 }
 0x401   : > { %v9933_v41 = vpop.eup %9932  ;;  %7721 = vmatprep.mubr.f32.mxu0 %v1392_v7  ;;  %v9414_v49 = vpop.permute.xlu0 %9413  ;;  %v1393_v58 = vmul.f32 %v9931_v4, %v11423_v29  ;;  %v9401_v29 = vunpack.i.h.bf16 %v11160_v21  ;;  %v8726_v23 = vpack.c.bf16 %v9421_v5, %v9420_v55  ;;  %v14123_v7 = vld [vmem:[#allocation74_spill] sm:$0xff] }
 0x402   : > { %8697 = vmatpush3.bf16.xpose.msk.msra.mxu0 %vm10811_vm2, %v8692_v20  ;;  %v9416_v61 = vunpack.i.h.bf16 %v9414_v49  ;;  %v9415_v47 = vunpack.i.l.bf16 %v9414_v49  ;;  %v1394_v44 = vmul.f32 %v9933_v41, %v11425_v50  ;;  %v9429_v22 = vpop.permute.xlu1 %9428  ;;  %v14119_v20 = vld [vmem:[#allocation67_spill] sm:$0xff] }
 0x403   : > { %8700 = vmatprep.subr.msk.bf16.mxu0 %vm10811_vm2, %v8698_v34  ;;  %v8704_v21 = vpack.c.bf16 %v9401_v29, %v9400_v36  ;;  %v9431_v15 = vunpack.i.h.bf16 %v9429_v22  ;;  %v14124_v49 = vld [vmem:[#allocation71_spill] sm:$0xff]  ;;  %v14127_v29 = vld [vmem:[#allocation78_spill] sm:$0xff] }
 0x404   : > { %v9935_v62 = vpop.eup %9934  ;;  %7763 = vmatmul.mubr.msk.f32.vlgmr.msra.gmra.mrb[32].mxu1 %vm611_vm1, %v11201_v10  ;;  %7722 = vmatmul.mubr.f32.gmra.mrb[58].mxu0 %v1393_v58  ;;  %v8722_v57 = vpack.c.bf16 %v9416_v61, %v9415_v47  ;;  %v8716_v58 = vpack.c.bf16 %v9411_v18, %v9410_v27  ;;  %v14125_v61 = vld [vmem:[#allocation76_spill] sm:$0xff]  ;;  %v14137_v27 = vld [vmem:[#allocation85_spill] sm:$0xff] }
 0x405   : > { %v9937_v39 = vpop.eup %9936  ;;  %7765 = vmatprep.mubr.msk.f32.mxu1 %vm611_vm1, %v14112_v52  ;;  %7724 = vmatprep.mubr.f32.mxu0 %v1394_v44  ;;  %v9424_v50 = vpop.permute.xlu0 %9423  ;;  %v1395_v59 = vmul.f32 %v9935_v62, %v11429_v48  ;;  %v14126_v62 = vld [vmem:[#allocation73_spill] sm:$0xff] }
 0x406   : > { %8723 = vmatprep.subr.bf16.mxu1 %v8722_v57  ;;  %v1396_v35 = vmul.f32 %v9937_v39, %v11431_v2  ;;  %v9426_v9 = vunpack.i.h.bf16 %v9424_v50  ;;  %v9425_v10 = vunpack.i.l.bf16 %v9424_v50  ;;  %v9430_v2 = vunpack.i.l.bf16 %v9429_v22  ;;  %v9439_v54 = vpop.permute.xlu1 %9438  ;;  %v14128_v22 = vld [vmem:[#allocation75_spill] sm:$0xff] }
 0x407   : > { %8725 = vmatpush3.bf16.msra.mxu1 %v8722_v57  ;;  %v9441_v13 = vunpack.i.h.bf16 %v9439_v54  ;;  %v9440_v6 = vunpack.i.l.bf16 %v9439_v54 }
 0x408   : > { %v9939_v8 = vpop.eup %9938  ;;  %7766 = vmatmul.mubr.msk.f32.gmra.mrb[34].mxu1 %vm611_vm1, %v14113_v37  ;;  %7725 = vmatmul.mubr.f32.gmra.mrb[60].mxu0 %v1395_v59  ;;  %v8730_v32 = vpack.c.bf16 %v9426_v9, %v9425_v10  ;;  %v8734_v17 = vpack.c.bf16 %v9431_v15, %v9430_v2  ;;  %v14130_v2 = vld [vmem:[#allocation80_spill] sm:$0xff] }
 0x409   : > { %7768 = vmatprep.mubr.msk.f32.mxu1 %vm611_vm1, %v14114_v1  ;;  %8727 = vmatprep.subr.bf16.mxu1 %v8726_v23  ;;  %v9434_v26 = vpop.permute.xlu0 %9433  ;;  %v1397_v48 = vmul.f32 %v9939_v8, %v11435_v0  ;;  %v14117_v0 = vld [vmem:[#allocation70_spill] sm:$0xff] }
 0x40a   : > { %8703 = vmatpush3.bf16.xpose.msk.msra.mxu0 %vm10811_vm2, %v8698_v34  ;;  %7727 = vmatprep.mubr.f32.mxu0 %v1396_v35  ;;  %v9436_v11 = vunpack.i.h.bf16 %v9434_v26  ;;  %v9435_v42 = vunpack.i.l.bf16 %v9434_v26  ;;  %v8742_v34 = vpack.c.bf16 %v9441_v13, %v9440_v6  ;;  %v9469_v35 = vpop.permute.xlu1 %9468  ;;  %v14135_v13 = vld [vmem:[#allocation83_spill] sm:$0xff] }
 0x40b   : > { %8706 = vmatprep.subr.msk.bf16.mxu0 %vm10811_vm2, %v8704_v21  ;;  %8729 = vmatpush3.bf16.msra.mxu1 %v8726_v23  ;;  %v9471_v1 = vunpack.i.h.bf16 %v9469_v35  ;;  %v9470_v26 = vunpack.i.l.bf16 %v9469_v35 }
 0x40c   : > { %7769 = vmatmul.mubr.msk.f32.gmra.mrb[36].mxu1 %vm611_vm1, %v14115_v31  ;;  %7728 = vmatmul.mubr.f32.gmra.mrb[62].mxu0 %v1397_v48  ;;  %v8738_v28 = vpack.c.bf16 %v9436_v11, %v9435_v42  ;;  %v14129_v48 = vld [vmem:[#allocation62_spill] sm:$0xff] }
 0x40d   : > { %7771 = vmatprep.mubr.msk.f32.mxu1 %vm611_vm1, %v14117_v0  ;;  %8731 = vmatprep.subr.bf16.mxu1 %v8730_v32  ;;  %v9444_v19 = vpop.permute.xlu0 %9443  ;;  %v8762_v24 = vpack.c.bf16 %v9471_v1, %v9470_v26 }
 0x40e   : > { %7818 = vmatprep.mubr.msk.f32.mxu0 %vm611_vm1, %v14118_v45  ;;  %v9446_v38 = vunpack.i.h.bf16 %v9444_v19  ;;  %v9445_v41 = vunpack.i.l.bf16 %v9444_v19  ;;  %v9474_v37 = vpop.permute.xlu1 %9473  ;;  %v14132_v19 = vld [vmem:[#allocation82_spill] sm:$0xff]  ;;  %v14133_v45 = vld [vmem:[#allocation81_spill] sm:$0xff] }
 0x40f   : > { %8733 = vmatpush3.bf16.msra.mxu1 %v8730_v32  ;;  %v9476_v31 = vunpack.i.h.bf16 %v9474_v37  ;;  %v9475_v46 = vunpack.i.l.bf16 %v9474_v37 }
 0x410   : > { %7772 = vmatmul.mubr.msk.f32.gmra.mrb[38].mxu1 %vm611_vm1, %v14119_v20  ;;  %8735 = vmatprep.subr.bf16.mxu1 %v8734_v17  ;;  %v8746_v55 = vpack.c.bf16 %v9446_v38, %v9445_v41  ;;  %v14134_v20 = vld [vmem:[#allocation84_spill] sm:$0xff] }
 0x411   : > { %7774 = vmatprep.mubr.msk.f32.mxu1 %vm611_vm1, %v14120_v12  ;;  %v9449_v40 = vpop.permute.xlu0 %9448  ;;  %v14138_v38 = vld [vmem:[#allocation88_spill] sm:$0xff] }
 0x412   : > { %8709 = vmatpush3.bf16.xpose.msk.msra.mxu0 %vm10811_vm2, %v8704_v21  ;;  %v9451_v44 = vunpack.i.h.bf16 %v9449_v40  ;;  %v9450_v5 = vunpack.i.l.bf16 %v9449_v40  ;;  %v9484_v32 = vpop.permute.xlu1 %9483 }
 0x413   : > { %8712 = vmatprep.subr.msk.bf16.mxu0 %vm10811_vm2, %v8710_v3  ;;  %8737 = vmatpush3.bf16.msra.mxu1 %v8734_v17  ;;  %v9486_v11 = vunpack.i.h.bf16 %v9484_v32  ;;  %v9485_v42 = vunpack.i.l.bf16 %v9484_v32  ;;  %v8766_v17 = vpack.c.bf16 %v9476_v31, %v9475_v46 }
 0x414   : > { %7775 = vmatmul.mubr.msk.f32.gmra.mrb[40].mxu1 %vm611_vm1, %v14121_v14  ;;  %8739 = vmatprep.subr.bf16.mxu1 %v8738_v28  ;;  %v8750_v59 = vpack.c.bf16 %v9451_v44, %v9450_v5 }
 0x415   : > { %7777 = vmatprep.mubr.msk.f32.mxu1 %vm611_vm1, %v14123_v7  ;;  %v9454_v4 = vpop.permute.xlu0 %9453  ;;  %v8770_v6 = vpack.c.bf16 %v9486_v11, %v9485_v42 }
 0x416   : > { %v9456_v57 = vunpack.i.h.bf16 %v9454_v4  ;;  %v9455_v39 = vunpack.i.l.bf16 %v9454_v4  ;;  %v11647_v54 = vpop.permute.xlu1 %9493 }
 0x417   : > { %8741 = vmatpush3.bf16.msra.mxu1 %v8738_v28  ;;  %v14136_v28 = vld [vmem:[#allocation86_spill] sm:$0xff] }
 0x418   : > { %7778 = vmatmul.mubr.msk.f32.gmra.mrb[42].mxu1 %vm611_vm1, %v14124_v49  ;;  %8743 = vmatprep.subr.bf16.mxu1 %v8742_v34  ;;  %v8754_v9 = vpack.c.bf16 %v9456_v57, %v9455_v39  ;;  %v14139_v49 = vld [vmem:[#allocation87_spill] sm:$0xff]  ;;  %v14142_v57 = vld [vmem:[#allocation92_spill] sm:$0xff] }
 0x419   : > { %7780 = vmatprep.mubr.msk.f32.mxu1 %vm611_vm1, %v14125_v61  ;;  %v9459_v47 = vpop.permute.xlu0 %9458 }
 0x41a   : > { %8715 = vmatpush3.bf16.xpose.msk.msra.mxu0 %vm10811_vm2, %v8710_v3  ;;  %v9461_v23 = vunpack.i.h.bf16 %v9459_v47  ;;  %v9460_v8 = vunpack.i.l.bf16 %v9459_v47  ;;  %v11655_v14 = vpop.permute.xlu1 %9508  ;;  %v14140_v47 = vld [vmem:[#allocation90_spill] sm:$0xff] }
 0x41b   : > { %8718 = vmatprep.subr.msk.bf16.mxu0 %vm10811_vm2, %v8716_v58  ;;  %8745 = vmatpush3.bf16.msra.mxu1 %v8742_v34 }
 0x41c   : > { %7781 = vmatmul.mubr.msk.f32.gmra.mrb[44].mxu1 %vm611_vm1, %v14126_v62  ;;  %8747 = vmatprep.subr.bf16.mxu1 %v8746_v55  ;;  %v8758_v15 = vpack.c.bf16 %v9461_v23, %v9460_v8 }
 0x41d   : > { %7783 = vmatprep.mubr.msk.f32.mxu1 %vm611_vm1, %v14127_v29  ;;  %v9464_v36 = vpop.permute.xlu0 %9463  ;;  %v14143_v29 = vld [vmem:[#allocation91_spill] sm:$0xff] }
 0x41e   : > { %v9466_v52 = vunpack.i.h.bf16 %v9464_v36  ;;  %v9465_v50 = vunpack.i.l.bf16 %v9464_v36  ;;  %v9519_v61 = vpop.permute.xlu1 %9518 }
 0x41f   : > { %8749 = vmatpush3.bf16.msra.mxu1 %v8746_v55  ;;  %v9521_v44 = vunpack.i.h.bf16 %v9519_v61  ;;  %v9520_v5 = vunpack.i.l.bf16 %v9519_v61  ;;  %v14141_v55 = vld [vmem:[#allocation89_spill] sm:$0xff] }
 0x420   : > { %7784 = vmatmul.mubr.msk.f32.gmra.mrb[46].mxu1 %vm611_vm1, %v14128_v22  ;;  %8751 = vmatprep.subr.bf16.mxu1 %v8750_v59  ;;  %v11628_v10 = vpack.c.bf16 %v9466_v52, %v9465_v50 }
 0x421   : > { %v11635_v21 = vpop.permute.xlu0 %9478  ;;  %v11669_v39 = vpack.c.bf16 %v9521_v44, %v9520_v5 }
 0x422   : > { %8721 = vmatpush3.bf16.xpose.msk.msra.mxu0 %vm10811_vm2, %v8716_v58 }
 0x423   : > { %8755 = vmatprep.subr.bf16.mxu0 %v8754_v9  ;;  %8753 = vmatpush3.bf16.msra.mxu1 %v8750_v59 }
 0x424   : > { %8788 = vmatprep.subr.msk.bf16.mxu1 %vm10811_vm2, %v11628_v10 }
 0x425   : > { %v9489_v0 = vpop.permute.xlu0 %9488 }
 0x426   : > { %v9491_v12 = vunpack.i.h.bf16 %v9489_v0  ;;  %v9490_v40 = vunpack.i.l.bf16 %v9489_v0 }
 0x428   : > { %v8774_v7 = vpack.c.bf16 %v9491_v12, %v9490_v40 }
 0x429   : > { %7819 = vmatmul.mubr.msk.f32.vlgmr.msra.gmra.mrb[64].mxu0 %vm611_vm1, %v14129_v48  ;;  %v9499_v3 = vpop.permute.xlu0 %9498 }
 0x42a   : > { %7821 = vmatprep.mubr.msk.f32.mxu0 %vm611_vm1, %v14130_v2  ;;  %8757 = vmatpush3.bf16.msra.mxu0 %v8754_v9  ;;  %v9501_v30 = vunpack.i.h.bf16 %v9499_v3  ;;  %v9500_v18 = vunpack.i.l.bf16 %v9499_v3 }
 0x42b   : > { %8759 = vmatprep.subr.bf16.mxu0 %v8758_v15 }
 0x42c   : > { %v8778_v58 = vpack.c.bf16 %v9501_v30, %v9500_v18 }
 0x42d   : > { %7822 = vmatmul.mubr.msk.f32.gmra.mrb[66].mxu0 %vm611_vm1, %v14131_v63  ;;  %v9504_v4 = vpop.permute.xlu0 %9503 }
 0x42e   : > { %7824 = vmatprep.mubr.msk.f32.mxu0 %vm611_vm1, %v14132_v19  ;;  %8761 = vmatpush3.bf16.msra.mxu0 %v8758_v15  ;;  %v9506_v41 = vunpack.i.h.bf16 %v9504_v4  ;;  %v9505_v34 = vunpack.i.l.bf16 %v9504_v4 }
 0x42f   : > { %8763 = vmatprep.subr.bf16.mxu0 %v8762_v24 }
 0x430   : > { %v8782_v62 = vpack.c.bf16 %v9506_v41, %v9505_v34 }
 0x431   : > { %7825 = vmatmul.mubr.msk.f32.gmra.mrb[68].mxu0 %vm611_vm1, %v14133_v45 }
 0x432   : > { %7827 = vmatprep.mubr.msk.f32.mxu0 %vm611_vm1, %v14134_v20  ;;  %8765 = vmatpush3.bf16.msra.mxu0 %v8762_v24 }
 0x433   : > { %8767 = vmatprep.subr.bf16.mxu0 %v8766_v17 }
 0x435   : > { %7828 = vmatmul.mubr.msk.f32.gmra.mrb[70].mxu0 %vm611_vm1, %v14135_v13 }
 0x436   : > { %7830 = vmatprep.mubr.msk.f32.mxu0 %vm611_vm1, %v14136_v28  ;;  %8769 = vmatpush3.bf16.msra.mxu0 %v8766_v17 }
 0x437   : > { %8771 = vmatprep.subr.bf16.mxu0 %v8770_v6 }
 0x439   : > { %7831 = vmatmul.mubr.msk.f32.gmra.mrb[72].mxu0 %vm611_vm1, %v14137_v27 }
 0x43a   : > { %7833 = vmatprep.mubr.msk.f32.mxu0 %vm611_vm1, %v14138_v38  ;;  %8773 = vmatpush3.bf16.msra.mxu0 %v8770_v6 }
 0x43b   : > { %8775 = vmatprep.subr.bf16.mxu0 %v8774_v7 }
 0x43d   : > { %7834 = vmatmul.mubr.msk.f32.gmra.mrb[74].mxu0 %vm611_vm1, %v14139_v49 }
 0x43e   : > { %7836 = vmatprep.mubr.msk.f32.mxu0 %vm611_vm1, %v14140_v47  ;;  %8777 = vmatpush3.bf16.msra.mxu0 %v8774_v7 }
 0x43f   : > { %8779 = vmatprep.subr.bf16.mxu0 %v8778_v58 }
 0x441   : > { %7837 = vmatmul.mubr.msk.f32.gmra.mrb[76].mxu0 %vm611_vm1, %v14141_v55 }
 0x442   : > { %7839 = vmatprep.mubr.msk.f32.mxu0 %vm611_vm1, %v14142_v57  ;;  %8781 = vmatpush3.bf16.msra.mxu0 %v8778_v58 }
 0x443   : > { %8783 = vmatprep.subr.bf16.mxu0 %v8782_v62 }
 0x445   : > { %7840 = vmatmul.mubr.msk.f32.gmra.mrb[78].mxu0 %vm611_vm1, %v14143_v29 }
 0x446   : > { %8785 = vmatpush3.bf16.msra.mxu0 %v8782_v62 }
 0x447   : > { %8836 = vmatprep.subr.msk.bf16.mxu0 %vm10811_vm2, %v11669_v39 }
 0x497   : > { %v7652_v36 = vpop.f32.mrb[16].mxu1 }
 0x498   : > { %1785 = vst.msk [vmem:[#allocation2 + $0x8] sm:$0xff] %vm611_vm1, %v7652_v36  ;;  %v1512_v52 = vpop.f32.mrb[17].mxu1 }
 0x499   : > { %1784 = vst.msk [vmem:[#allocation2] sm:$0xff] %vm611_vm1, %v1512_v52 }
 0x49f   : > { %v7655_v50 = vpop.f32.mrb[18].mxu1 }
 0x4a0   : > { %1787 = vst.msk [vmem:[#allocation2 + $0x18] sm:$0xff] %vm611_vm1, %v7655_v50  ;;  %v1522_v59 = vpop.f32.mrb[19].mxu1 }
 0x4a1   : > { %1786 = vst.msk [vmem:[#allocation2 + $0x10] sm:$0xff] %vm611_vm1, %v1522_v59 }
 0x4a3   : > { %v7658_v35 = vpop.f32.mrb[20].mxu1 }
 0x4a4   : > { %1789 = vst.msk [vmem:[#allocation2 + $0x28] sm:$0xff] %vm611_vm1, %v7658_v35  ;;  %v1532_v22 = vpop.f32.mrb[21].mxu1 }
 0x4a5   : > { %1788 = vst.msk [vmem:[#allocation2 + $0x20] sm:$0xff] %vm611_vm1, %v1532_v22 }
 0x4a7   : > { %v7661_v9 = vpop.f32.mrb[22].mxu1 }
 0x4a8   : > { %1791 = vst.msk [vmem:[#allocation2 + $0x38] sm:$0xff] %vm611_vm1, %v7661_v9  ;;  %v1542_v23 = vpop.f32.mrb[23].mxu1 }
 0x4a9   : > { %1790 = vst.msk [vmem:[#allocation2 + $0x30] sm:$0xff] %vm611_vm1, %v1542_v23 }
 0x4af   : > { %v7664_v8 = vpop.f32.mrb[24].mxu1 }
 0x4b0   : > { %1793 = vst.msk [vmem:[#allocation2 + $0x48] sm:$0xff] %vm611_vm1, %v7664_v8  ;;  %v1552_v37 = vpop.f32.mrb[25].mxu1 }
 0x4b1   : > { %1792 = vst.msk [vmem:[#allocation2 + $0x40] sm:$0xff] %vm611_vm1, %v1552_v37 }
 0x4b3   : > { %v7667_v1 = vpop.f32.mrb[26].mxu1 }
 0x4b4   : > { %1795 = vst.msk [vmem:[#allocation2 + $0x58] sm:$0xff] %vm611_vm1, %v7667_v1  ;;  %v1562_v26 = vpop.f32.mrb[27].mxu1 }
 0x4b5   : > { %1794 = vst.msk [vmem:[#allocation2 + $0x50] sm:$0xff] %vm611_vm1, %v1562_v26 }
 0x4b7   : > { %v7670_v48 = vpop.f32.mrb[28].mxu1 }
 0x4b8   : > { %1797 = vst.msk [vmem:[#allocation2 + $0x68] sm:$0xff] %vm611_vm1, %v7670_v48  ;;  %v1572_v15 = vpop.f32.mrb[29].mxu1 }
 0x4b9   : > { %1796 = vst.msk [vmem:[#allocation2 + $0x60] sm:$0xff] %vm611_vm1, %v1572_v15 }
 0x4bb   : > { %v7673_v2 = vpop.f32.mrb[30].mxu1 }
 0x4bc   : > { %1799 = vst.msk [vmem:[#allocation2 + $0x78] sm:$0xff] %vm611_vm1, %v7673_v2  ;;  %v7708_v32 = vpop.f32.mrb[48].mxu0  ;;  %v1582_v31 = vpop.f32.mrb[31].mxu1 }
 0x4bd   : > { %1801 = vst.msk [vmem:[#allocation2 + $0x88] sm:$0xff] %vm611_vm1, %v7708_v32  ;;  %1798 = vst.msk [vmem:[#allocation2 + $0x70] sm:$0xff] %vm611_vm1, %v1582_v31  ;;  %v1705_v46 = vpop.f32.mrb[49].mxu0 }
 0x4be   : > { %1800 = vst.msk [vmem:[#allocation2 + $0x80] sm:$0xff] %vm611_vm1, %v1705_v46 }
 0x4c0   : > { %v7711_v63 = vpop.f32.mrb[50].mxu0 }
 0x4c1   : > { %1803 = vst.msk [vmem:[#allocation2 + $0x98] sm:$0xff] %vm611_vm1, %v7711_v63  ;;  %v1715_v24 = vpop.f32.mrb[51].mxu0 }
 0x4c2   : > { %1802 = vst.msk [vmem:[#allocation2 + $0x90] sm:$0xff] %vm611_vm1, %v1715_v24 }
 0x4c7   : > { %v7714_v0 = vpop.f32.mrb[52].mxu0 }
 0x4c8   : > { %1805 = vst.msk [vmem:[#allocation2 + $0xa8] sm:$0xff] %vm611_vm1, %v7714_v0  ;;  %v1725_v19 = vpop.f32.mrb[53].mxu0 }
 0x4c9   : > { %1804 = vst.msk [vmem:[#allocation2 + $0xa0] sm:$0xff] %vm611_vm1, %v1725_v19 }
 0x4cb   : > { %v7717_v11 = vpop.f32.mrb[54].mxu0 }
 0x4cc   : > { %1807 = vst.msk [vmem:[#allocation2 + $0xb8] sm:$0xff] %vm611_vm1, %v7717_v11  ;;  %v1735_v42 = vpop.f32.mrb[55].mxu0 }
 0x4cd   : > { %1806 = vst.msk [vmem:[#allocation2 + $0xb0] sm:$0xff] %vm611_vm1, %v1735_v42 }
 0x4d3   : > { %v7720_v45 = vpop.f32.mrb[56].mxu0 }
 0x4d4   : > { %1809 = vst.msk [vmem:[#allocation2 + $0xc8] sm:$0xff] %vm611_vm1, %v7720_v45  ;;  %v1745_v17 = vpop.f32.mrb[57].mxu0 }
 0x4d5   : > { %1808 = vst.msk [vmem:[#allocation2 + $0xc0] sm:$0xff] %vm611_vm1, %v1745_v17 }
 0x4d7   : > { %v7764_v20 = vpop.f32.mrb[32].mxu1  ;;  %v7723_v3 = vpop.f32.mrb[58].mxu0 }
 0x4d8   : > { %v11704_v40 = vsel %vm562_vm3, %v7764_v20, -1e+30  ;;  %1811 = vst.msk [vmem:[#allocation2 + $0xd8] sm:$0xff] %vm611_vm1, %v7723_v3  ;;  %v2010_v13 = vpop.f32.mrb[33].mxu1  ;;  %v1755_v6 = vpop.f32.mrb[59].mxu0 }
 0x4d9   : > { %v11709_v28 = vsel %vm562_vm3, %v2010_v13, -1e+30  ;;  %2396 = vmax.xlane.f32.xlu1 %v11704_v40  ;;  %1810 = vst.msk [vmem:[#allocation2 + $0xd0] sm:$0xff] %vm611_vm1, %v1755_v6 }
 0x4da   : > { %2394 = vmax.xlane.f32.xlu0 %v11709_v28 }
 0x4db   : > { %v7767_v30 = vpop.f32.mrb[34].mxu1  ;;  %v7726_v18 = vpop.f32.mrb[60].mxu0 }
 0x4dc   : > { %v11716_v27 = vsel %vm562_vm3, %v7767_v30, -1e+30  ;;  %1813 = vst.msk [vmem:[#allocation2 + $0xe8] sm:$0xff] %vm611_vm1, %v7726_v18  ;;  %v2020_v7 = vpop.f32.mrb[35].mxu1  ;;  %v1765_v4 = vpop.f32.mrb[61].mxu0 }
 0x4dd   : > { %v11721_v38 = vsel %vm562_vm3, %v2020_v7, -1e+30  ;;  %1812 = vst.msk [vmem:[#allocation2 + $0xe0] sm:$0xff] %vm611_vm1, %v1765_v4 }
 0x4de   : > { %2400 = vmax.xlane.f32.xlu0 %v11716_v27  ;;  %2398 = vmax.xlane.f32.xlu1 %v11721_v38 }
 0x4df   : > { %v7770_v41 = vpop.f32.mrb[36].mxu1  ;;  %v7729_v34 = vpop.f32.mrb[62].mxu0 }
 0x4e0   : > { %v11728_v49 = vsel %vm562_vm3, %v7770_v41, -1e+30  ;;  %1815 = vst.msk [vmem:[#allocation2 + $0xf8] sm:$0xff] %vm611_vm1, %v7729_v34  ;;  %v2030_v58 = vpop.f32.mrb[37].mxu1  ;;  %v1775_v61 = vpop.f32.mrb[63].mxu0 }
 0x4e1   : > { %v11733_v47 = vsel %vm562_vm3, %v2030_v58, -1e+30  ;;  %1814 = vst.msk [vmem:[#allocation2 + $0xf0] sm:$0xff] %vm611_vm1, %v1775_v61 }
 0x4e2   : > { %2404 = vmax.xlane.f32.xlu0 %v11728_v49  ;;  %2402 = vmax.xlane.f32.xlu1 %v11733_v47 }
 0x4e3   : > { %v7773_v44 = vpop.f32.mrb[38].mxu1 }
 0x4e4   : > { %v11740_v5 = vsel %vm562_vm3, %v7773_v44, -1e+30  ;;  %v2040_v55 = vpop.f32.mrb[39].mxu1 }
 0x4e5   : > { %v11744_v62 = vsel %vm562_vm3, %v2040_v55, -1e+30 }
 0x4e6   : > { %2408 = vmax.xlane.f32.xlu0 %v11740_v5  ;;  %2406 = vmax.xlane.f32.xlu1 %v11744_v62 }
 0x4e7   : > { %v7776_v57 = vpop.f32.mrb[40].mxu1 }
 0x4e8   : > { %v11750_v29 = vsel %vm562_vm3, %v7776_v57, -1e+30  ;;  %v2050_v36 = vpop.f32.mrb[41].mxu1 }
 0x4e9   : > { %v11754_v52 = vsel %vm562_vm3, %v2050_v36, -1e+30 }
 0x4ea   : > { %2412 = vmax.xlane.f32.xlu0 %v11750_v29  ;;  %2410 = vmax.xlane.f32.xlu1 %v11754_v52 }
 0x4eb   : > { %v7779_v50 = vpop.f32.mrb[42].mxu1 }
 0x4ec   : > { %v11760_v59 = vsel %vm562_vm3, %v7779_v50, -1e+30  ;;  %v2060_v35 = vpop.f32.mrb[43].mxu1 }
 0x4ed   : > { %v11764_v22 = vsel %vm562_vm3, %v2060_v35, -1e+30 }
 0x4ee   : > { %2416 = vmax.xlane.f32.xlu0 %v11760_v59  ;;  %2414 = vmax.xlane.f32.xlu1 %v11764_v22 }
 0x4ef   : > { %v7782_v9 = vpop.f32.mrb[44].mxu1 }
 0x4f0   : > { %v11770_v23 = vsel %vm562_vm3, %v7782_v9, -1e+30  ;;  %v2070_v8 = vpop.f32.mrb[45].mxu1 }
 0x4f1   : > { %v11774_v37 = vsel %vm562_vm3, %v2070_v8, -1e+30 }
 0x4f2   : > { %2420 = vmax.xlane.f32.xlu0 %v11770_v23  ;;  %2418 = vmax.xlane.f32.xlu1 %v11774_v37 }
 0x4f3   : > { %v7785_v1 = vpop.f32.mrb[46].mxu1 }
 0x4f4   : > { %v11780_v26 = vsel %vm562_vm3, %v7785_v1, -1e+30  ;;  %v2080_v48 = vpop.f32.mrb[47].mxu1  ;;  %v11868_v1 = vpop.permute.xlu0 %9513 }
 0x4f5   : > { %v11784_v15 = vsel %vm562_vm3, %v2080_v48, -1e+30  ;;  %v11870_v48 = vpop.permute.xlu1 %9528 }
 0x4f6   : > { %2424 = vmax.xlane.f32.xlu0 %v11780_v26  ;;  %2422 = vmax.xlane.f32.xlu1 %v11784_v15 }
 0x4fc   : > { %v7820_v2 = vpop.f32.mrb[64].mxu0 }
 0x4fd   : > { %v11790_v32 = vsel %vm562_vm3, %v7820_v2, -1e+30  ;;  %v2283_v31 = vpop.f32.mrb[65].mxu0  ;;  %v11872_v2 = vpop.permute.xlu0 %9523 }
 0x4fe   : > { %2428 = vmax.xlane.f32.xlu0 %v11790_v32  ;;  %v11795_v63 = vsel %vm562_vm3, %v2283_v31, -1e+30  ;;  %v11874_v31 = vpop.permute.xlu1 %9538 }
 0x500   : > { %v7823_v46 = vpop.f32.mrb[66].mxu0 }
 0x501   : > { %v2293_v24 = vpop.f32.mrb[67].mxu0  ;;  %v11805_v11 = vsel %vm562_vm3, %v7823_v46, -1e+30  ;;  %v11876_v46 = vpop.permute.xlu0 %9533 }
 0x502   : > { %v11799_v0 = vsel %vm562_vm3, %v2293_v24, -1e+30  ;;  %2426 = vmax.xlane.f32.xlu0 %v11795_v63 }
 0x503   : > { %2430 = vmax.xlane.f32.xlu1 %v11799_v0 }
 0x504   : > { %v7826_v19 = vpop.f32.mrb[68].mxu0 }
 0x505   : > { %v2303_v42 = vpop.f32.mrb[69].mxu0  ;;  %v11815_v20 = vsel %vm562_vm3, %v7826_v19, -1e+30 }
 0x506   : > { %v11809_v45 = vsel %vm562_vm3, %v2303_v42, -1e+30  ;;  %2432 = vmax.xlane.f32.xlu0 %v11805_v11 }
 0x507   : > { %2434 = vmax.xlane.f32.xlu1 %v11809_v45 }
 0x508   : > { %v7829_v17 = vpop.f32.mrb[70].mxu0 }
 0x509   : > { %v11819_v3 = vsel %vm562_vm3, %v7829_v17, -1e+30  ;;  %v2313_v13 = vpop.f32.mrb[71].mxu0 }
 0x50a   : > { %2436 = vmax.xlane.f32.xlu0 %v11815_v20  ;;  %v11829_v7 = vsel %vm562_vm3, %v2313_v13, -1e+30 }
 0x50b   : > { %2440 = vmax.xlane.f32.xlu1 %v11819_v3 }
 0x50c   : > { %v7832_v6 = vpop.f32.mrb[72].mxu0 }
 0x50d   : > { %v11825_v30 = vsel %vm562_vm3, %v7832_v6, -1e+30  ;;  %v2323_v18 = vpop.f32.mrb[73].mxu0 }
 0x50e   : > { %2444 = vmax.xlane.f32.xlu0 %v11825_v30  ;;  %v11835_v34 = vsel %vm562_vm3, %v2323_v18, -1e+30 }
 0x50f   : > { %2438 = vmax.xlane.f32.xlu1 %v11829_v7 }
 0x510   : > { %v7835_v4 = vpop.f32.mrb[74].mxu0 }
 0x511   : > { %v2333_v41 = vpop.f32.mrb[75].mxu0  ;;  %v11844_v55 = vsel %vm562_vm3, %v7835_v4, -1e+30 }
 0x512   : > { %v11850_v50 = vsel %vm562_vm3, %v2333_v41, -1e+30 }
 0x513   : > { %2442 = vmax.xlane.f32.xlu1 %v11835_v34 }
 0x514   : > { %v7838_v58 = vpop.f32.mrb[76].mxu0 }
 0x515   : > { %v11840_v61 = vsel %vm562_vm3, %v7838_v58, -1e+30  ;;  %v2343_v44 = vpop.f32.mrb[77].mxu0 }
 0x516   : > { %2452 = vmax.xlane.f32.xlu0 %v11840_v61  ;;  %v11860_v9 = vsel %vm562_vm3, %v2343_v44, -1e+30 }
 0x517   : > { %2448 = vmax.xlane.f32.xlu1 %v11844_v55 }
 0x518   : > { %v7841_v57 = vpop.f32.mrb[78].mxu0 }
 0x519   : > { %v2353_v36 = vpop.f32.mrb[79].mxu0  ;;  %v11865_v8 = vsel %vm562_vm3, %v7841_v57, -1e+30 }
 0x51a   : > { %v11854_v35 = vsel %vm562_vm3, %v2353_v36, -1e+30 }
 0x51b   : > { %2446 = vmax.xlane.f32.xlu1 %v11850_v50  ;;  %2454 = vmax.xlane.f32.xlu0 %v11854_v35 }
 0x51f   : > { %2450 = vmax.xlane.f32.xlu1 %v11860_v9 }
 0x523   : > { %2456 = vmax.xlane.f32.xlu1 %v11865_v8 }
 0x566   : > { %v2397_v24 = vpop.xlane.xlu1 %2396 }
 0x567   : > { %v2459_v19 = vsub.f32 %v11704_v40, %v2397_v24  ;;  %v2395_v42 = vpop.xlane.xlu0 %2394 }
 0x568   : > { %v2458_v17 = vsub.f32 %v11709_v28, %v2395_v42 }
 0x569   : > { %v2492_v13 = vmul.f32 1.442695, %v2459_v19 }
 0x56a   : > { %v2490_v6 = vmul.f32 1.442695, %v2458_v17 }
 0x56b   : > { %9940 = vpow2.f32 %v2492_v13  ;;  %v2399_v18 = vpop.xlane.xlu1 %2398  ;;  %v2401_v4 = vpop.xlane.xlu0 %2400 }
 0x56c   : > { %v2461_v41 = vsub.f32 %v11716_v27, %v2401_v4  ;;  %9942 = vpow2.f32 %v2490_v6  ;;  %v2460_v58 = vsub.f32 %v11721_v38, %v2399_v18 }
 0x56e   : > { %v2496_v44 = vmul.f32 1.442695, %v2461_v41  ;;  %v2494_v40 = vmul.f32 1.442695, %v2460_v58 }
 0x56f   : > { %v2403_v57 = vpop.xlane.xlu1 %2402  ;;  %v2405_v36 = vpop.xlane.xlu0 %2404 }
 0x570   : > { %v2462_v12 = vsub.f32 %v11733_v47, %v2403_v57  ;;  %9944 = vpow2.f32 %v2496_v44  ;;  %v2463_v28 = vsub.f32 %v11728_v49, %v2405_v36 }
 0x572   : > { %v2498_v43 = vmul.f32 1.442695, %v2462_v12  ;;  %v2500_v38 = vmul.f32 1.442695, %v2463_v28 }
 0x573   : > { %v2407_v24 = vpop.xlane.xlu1 %2406  ;;  %v2409_v19 = vpop.xlane.xlu0 %2408 }
 0x574   : > { %9946 = vpow2.f32 %v2498_v43  ;;  %v2464_v42 = vsub.f32 %v11744_v62, %v2407_v24  ;;  %v2465_v13 = vsub.f32 %v11740_v5, %v2409_v19 }
 0x575   : > { %v11885_v17 = vpop.eup %9940  ;;  %9948 = vpow2.f32 %v2494_v40 }
 0x576   : > { %v2502_v27 = vmul.f32 1.442695, %v2464_v42  ;;  %2556 = vadd.xlane.f32.xlu1 %v11885_v17  ;;  %v11889_v6 = vpop.eup %9942  ;;  %v2504_v43 = vmul.f32 1.442695, %v2465_v13 }
 0x577   : > { %v2411_v47 = vpop.xlane.xlu1 %2410  ;;  %v2413_v12 = vpop.xlane.xlu0 %2412 }
 0x578   : > { %9950 = vpow2.f32 %v2502_v27  ;;  %v2467_v49 = vsub.f32 %v11750_v29, %v2413_v12  ;;  %v2466_v44 = vsub.f32 %v11754_v52, %v2411_v47 }
 0x579   : > { %9952 = vpow2.f32 %v2500_v38 }
 0x57a   : > { %2554 = vadd.xlane.f32.xlu1 %v11889_v6  ;;  %v11894_v41 = vpop.eup %9944  ;;  %9954 = vpow2.f32 %v2504_v43  ;;  %v2508_v57 = vmul.f32 1.442695, %v2467_v49  ;;  %v2506_v42 = vmul.f32 1.442695, %v2466_v44 }
 0x57b   : > { %v2415_v62 = vpop.xlane.xlu1 %2414  ;;  %v2417_v18 = vpop.xlane.xlu0 %2416 }
 0x57c   : > { %v2468_v4 = vsub.f32 %v11764_v22, %v2415_v62  ;;  %v2469_v52 = vsub.f32 %v11760_v59, %v2417_v18 }
 0x57e   : > { %v11896_v58 = vpop.eup %9946  ;;  %v2510_v5 = vmul.f32 1.442695, %v2468_v4  ;;  %2560 = vadd.xlane.f32.xlu1 %v11894_v41 }
 0x57f   : > { %v2419_v36 = vpop.xlane.xlu1 %2418  ;;  %2562 = vadd.xlane.f32.xlu0 %v11896_v58  ;;  %v2421_v40 = vpop.xlane.xlu0 %2420 }
 0x580   : > { %9956 = vpow2.f32 %v2510_v5  ;;  %v2471_v29 = vsub.f32 %v11770_v23, %v2421_v40  ;;  %v11902_v28 = vpop.eup %9948  ;;  %v2470_v22 = vsub.f32 %v11774_v37, %v2419_v36  ;;  %v2512_v37 = vmul.f32 1.442695, %v2469_v52 }
 0x581   : > { %9958 = vpow2.f32 %v2508_v57 }
 0x582   : > { %v11905_v24 = vpop.eup %9950  ;;  %v2516_v19 = vmul.f32 1.442695, %v2471_v29  ;;  %2558 = vadd.xlane.f32.xlu1 %v11902_v28  ;;  %v2514_v23 = vmul.f32 1.442695, %v2470_v22 }
 0x583   : > { %v2423_v27 = vpop.xlane.xlu1 %2422  ;;  %2566 = vadd.xlane.f32.xlu0 %v11905_v24  ;;  %v2425_v38 = vpop.xlane.xlu0 %2424 }
 0x584   : > { %v11910_v13 = vpop.eup %9952  ;;  %9960 = vpow2.f32 %v2516_v19  ;;  %v2472_v47 = vsub.f32 %v11784_v15, %v2423_v27  ;;  %v2473_v12 = vsub.f32 %v11780_v26, %v2425_v38 }
 0x585   : > { %9962 = vpow2.f32 %v2506_v42  ;;  %v11915_v43 = vpop.eup %9954 }
 0x586   : > { %2564 = vadd.xlane.f32.xlu1 %v11910_v13  ;;  %9964 = vpow2.f32 %v2514_v23  ;;  %v2518_v59 = vmul.f32 1.442695, %v2472_v47  ;;  %v2520_v62 = vmul.f32 1.442695, %v2473_v12 }
 0x587   : > { %9966 = vpow2.f32 %v2512_v37 }
 0x588   : > { %9968 = vpow2.f32 %v2518_v59 }
 0x589   : > { %9970 = vpow2.f32 %v2520_v62 }
 0x58a   : > { %v11917_v49 = vpop.eup %9956  ;;  %2568 = vadd.xlane.f32.xlu1 %v11915_v43 }
 0x58b   : > { %v2429_v18 = vpop.xlane.xlu0 %2428  ;;  %2574 = vadd.xlane.f32.xlu0 %v11917_v49  ;;  %v11922_v4 = vpop.eup %9958 }
 0x58c   : > { %v2475_v15 = vsub.f32 %v11790_v32, %v2429_v18 }
 0x58e   : > { %2572 = vadd.xlane.f32.xlu1 %v11922_v4  ;;  %v11925_v26 = vpop.eup %9960  ;;  %v2524_v5 = vmul.f32 1.442695, %v2475_v15 }
 0x58f   : > { %v2427_v44 = vpop.xlane.xlu0 %2426  ;;  %2580 = vadd.xlane.f32.xlu0 %v11925_v26  ;;  %v11929_v40 = vpop.eup %9962 }
 0x590   : > { %v2474_v57 = vsub.f32 %v11795_v63, %v2427_v44  ;;  %v2431_v36 = vpop.xlane.xlu1 %2430  ;;  %v11933_v22 = vpop.eup %9964  ;;  %9972 = vpow2.f32 %v2524_v5 }
 0x591   : > { %v2476_v29 = vsub.f32 %v11799_v0, %v2431_v36  ;;  %v11937_v63 = vpop.eup %9966 }
 0x592   : > { %v2522_v32 = vmul.f32 1.442695, %v2474_v57  ;;  %2570 = vadd.xlane.f32.xlu1 %v11929_v40  ;;  %v11940_v0 = vpop.eup %9968 }
 0x593   : > { %v2526_v19 = vmul.f32 1.442695, %v2476_v29  ;;  %v2433_v42 = vpop.xlane.xlu0 %2432  ;;  %2578 = vadd.xlane.f32.xlu0 %v11933_v22 }
 0x594   : > { %9974 = vpow2.f32 %v2522_v32  ;;  %v2477_v52 = vsub.f32 %v11805_v11, %v2433_v42  ;;  %v2435_v27 = vpop.xlane.xlu1 %2434  ;;  %v11945_v11 = vpop.eup %9970 }
 0x595   : > { %9976 = vpow2.f32 %v2526_v19  ;;  %v2478_v47 = vsub.f32 %v11809_v45, %v2435_v27 }
 0x596   : > { %v2528_v38 = vmul.f32 1.442695, %v2477_v52  ;;  %2576 = vadd.xlane.f32.xlu1 %v11937_v63 }
 0x597   : > { %v2437_v23 = vpop.xlane.xlu0 %2436  ;;  %2582 = vadd.xlane.f32.xlu0 %v11940_v0  ;;  %v2530_v15 = vmul.f32 1.442695, %v2478_v47 }
 0x598   : > { %9978 = vpow2.f32 %v2528_v38  ;;  %v2479_v37 = vsub.f32 %v11815_v20, %v2437_v23  ;;  %v2441_v12 = vpop.xlane.xlu1 %2440 }
 0x599   : > { %v2481_v59 = vsub.f32 %v11819_v3, %v2441_v12 }
 0x59a   : > { %v2532_v62 = vmul.f32 1.442695, %v2479_v37  ;;  %2584 = vadd.xlane.f32.xlu1 %v11945_v11  ;;  %v11949_v44 = vpop.eup %9972 }
 0x59b   : > { %v2536_v18 = vmul.f32 1.442695, %v2481_v59  ;;  %v2445_v29 = vpop.xlane.xlu0 %2444 }
 0x59c   : > { %9980 = vpow2.f32 %v2532_v62  ;;  %v2439_v5 = vpop.xlane.xlu1 %2438 }
 0x59d   : > { %9982 = vpow2.f32 %v2536_v18  ;;  %v2480_v45 = vsub.f32 %v11829_v7, %v2439_v5  ;;  %v2483_v7 = vsub.f32 %v11825_v30, %v2445_v29 }
 0x59e   : > { %v11952_v20 = vpop.eup %9974  ;;  %2588 = vadd.xlane.f32.xlu1 %v11949_v44  ;;  %9984 = vpow2.f32 %v2530_v15 }
 0x59f   : > { %2586 = vadd.xlane.f32.xlu0 %v11952_v20  ;;  %v2534_v3 = vmul.f32 1.442695, %v2480_v45  ;;  %v11956_v36 = vpop.eup %9976  ;;  %v2540_v38 = vmul.f32 1.442695, %v2483_v7 }
 0x5a0   : > { %v2443_v57 = vpop.xlane.xlu1 %2442 }
 0x5a1   : > { %v2482_v32 = vsub.f32 %v11835_v34, %v2443_v57  ;;  %9986 = vpow2.f32 %v2534_v3 }
 0x5a2   : > { %v11959_v19 = vpop.eup %9978 }
 0x5a3   : > { %2590 = vadd.xlane.f32.xlu0 %v11956_v36  ;;  %2592 = vadd.xlane.f32.xlu1 %v11959_v19  ;;  %v2538_v42 = vmul.f32 1.442695, %v2482_v32  ;;  %v2453_v3 = vpop.xlane.xlu0 %2452 }
 0x5a4   : > { %v2449_v37 = vpop.xlane.xlu1 %2448  ;;  %v2487_v29 = vsub.f32 %v11840_v61, %v2453_v3 }
 0x5a5   : > { %9988 = vpow2.f32 %v2538_v42  ;;  %v2485_v45 = vsub.f32 %v11844_v55, %v2449_v37 }
 0x5a6   : > { %v11964_v52 = vpop.eup %9980  ;;  %9990 = vpow2.f32 %v2540_v38  ;;  %v2548_v7 = vmul.f32 1.442695, %v2487_v29 }
 0x5a7   : > { %v11966_v27 = vpop.eup %9982  ;;  %2596 = vadd.xlane.f32.xlu0 %v11964_v52  ;;  %v2544_v32 = vmul.f32 1.442695, %v2485_v45 }
 0x5a8   : > { %2600 = vadd.xlane.f32.xlu1 %v11966_v27  ;;  %v11970_v34 = vpop.eup %9984  ;;  %v2447_v12 = vpop.xlane.xlu1 %2446 }
 0x5a9   : > { %v2484_v59 = vsub.f32 %v11850_v50, %v2447_v12  ;;  %v2455_v42 = vpop.xlane.xlu0 %2454  ;;  %v14145_v12 = vld [vmem:[#allocation7_spill] sm:$0xff] }
 0x5aa   : > { %v2488_v38 = vsub.f32 %v11854_v35, %v2455_v42 }
 0x5ab   : > { %2594 = vadd.xlane.f32.xlu0 %v11970_v34  ;;  %v11973_v23 = vpop.eup %9986  ;;  %v2542_v18 = vmul.f32 1.442695, %v2484_v59 }
 0x5ac   : > { %v2451_v62 = vpop.xlane.xlu1 %2450  ;;  %v2550_v59 = vmul.f32 1.442695, %v2488_v38 }
 0x5ad   : > { %v2486_v15 = vsub.f32 %v11860_v9, %v2451_v62  ;;  %9992 = vpow2.f32 %v2542_v18  ;;  %v14146_v18 = vld [vmem:[#allocation6_spill] sm:$0xff] }
 0x5af   : > { %2598 = vadd.xlane.f32.xlu0 %v11973_v23  ;;  %v11976_v30 = vpop.eup %9988  ;;  %v2546_v5 = vmul.f32 1.442695, %v2486_v15 }
 0x5b0   : > { %v11979_v47 = vpop.eup %9990  ;;  %v2457_v61 = vpop.xlane.xlu1 %2456 }
 0x5b1   : > { %9994 = vpow2.f32 %v2546_v5 }
 0x5b2   : > { %9996 = vpow2.f32 %v2544_v32  ;;  %v9481_v32 = vunpack.i.h.bf16 %v11635_v21 }
 0x5b3   : > { %2602 = vadd.xlane.f32.xlu0 %v11976_v30  ;;  %9998 = vpow2.f32 %v2548_v7  ;;  %v9480_v7 = vunpack.i.l.bf16 %v11635_v21 }
 0x5b7   : > { %2604 = vadd.xlane.f32.xlu0 %v11979_v47  ;;  %v11989_v57 = vpop.eup %9992 }
 0x5b9   : > { %9543 = vrot.lane.b32.xlu1 %v14100_v51, %s10393_s28 }
 0x5bb   : > { %v11993_v50 = vpop.eup %9994 }
 0x5bc   : > { %v11996_v9 = vpop.eup %9996 }
 0x5bd   : > { %v11999_v55 = vpop.eup %9998 }
 0x5cd   : > { %9548 = vrot.lane.b32.xlu0 %v14097_v60, %s10393_s28 }
 0x5dd   : > { %2606 = vadd.xlane.f32.xlu1 %v11989_v57 }
 0x5e1   : > { %2610 = vadd.xlane.f32.xlu1 %v11993_v50 }
 0x5ec   : > { %2608 = vadd.xlane.f32.xlu0 %v11996_v9 }
 0x5f0   : > { %2612 = vadd.xlane.f32.xlu0 %v11999_v55 }
 0x5f2   : > { %9553 = vrot.lane.b32.xlu1 %v14099_v33, %s10393_s28 }
 0x603   : > { %v2557_v37 = vpop.xlane.xlu1 %2556 }
 0x604   : > { %10000 = vrcp.f32 %v2557_v37 }
 0x606   : > { %3229 = vrot.lane.b32.xlu0 %v14145_v12, %s10394_s29 }
 0x607   : > { %v2555_v62 = vpop.xlane.xlu1 %2554 }
 0x608   : > { %10002 = vrcp.f32 %v2555_v62  ;;  %v8792_v62 = vpack.c.bf16 %v9481_v32, %v9480_v7 }
 0x609   : > { %10004 = vpow2.f32 %v2550_v59 }
 0x60a   : > { %3231 = vrot.lane.b32.xlu0 %v14146_v18, %s10394_s29 }
 0x60b   : > { %v2561_v15 = vpop.xlane.xlu1 %2560 }
 0x60c   : > { %v2563_v5 = vpop.xlane.xlu0 %2562  ;;  %10006 = vrcp.f32 %v2561_v15  ;;  %v2489_v15 = vsub.f32 %v11865_v8, %v2457_v61  ;;  %v9495_v8 = vunpack.i.l.bf16 %v11647_v54 }
 0x60d   : > { %10008 = vrcp.f32 %v2563_v5 }
 0x60e   : > { %v10001_v3 = vpop.eup %10000  ;;  %v2552_v61 = vmul.f32 1.442695, %v2489_v15 }
 0x60f   : > { %v2559_v45 = vpop.xlane.xlu1 %2558  ;;  %v2651_v37 = vmul.f32 %v10001_v3, %v11885_v17 }
 0x610   : > { %10010 = vrcp.f32 %v2559_v45  ;;  %v2567_v35 = vpop.xlane.xlu0 %2566 }
 0x611   : > { %10012 = vrcp.f32 %v2567_v35  ;;  %v9496_v35 = vunpack.i.h.bf16 %v11647_v54 }
 0x612   : > { %v10003_v29 = vpop.eup %10002 }
 0x613   : > { %v2565_v42 = vpop.xlane.xlu1 %2564  ;;  %v2650_v38 = vmul.f32 %v10003_v29, %v11889_v6  ;;  %v12013_v59 = vpop.eup %10004 }
 0x614   : > { %10014 = vrcp.f32 %v2565_v42 }
 0x615   : > { %7874 = vmatprep.mubr.f32.mxu1 %v2650_v38 }
 0x616   : > { %2614 = vadd.xlane.f32.xlu1 %v12013_v59  ;;  %7875 = vmatmul.mubr.f32.vlgmr.msra.gmra.mrb[48].mxu1 %v2651_v37  ;;  %v10007_v5 = vpop.eup %10006  ;;  %v8798_v37 = vpack.c.bf16 %v9496_v35, %v9495_v8  ;;  %v9516_v35 = vunpack.i.h.bf16 %v11868_v1  ;;  %v9515_v8 = vunpack.i.l.bf16 %v11868_v1 }
 0x617   : > { %8791 = vmatpush3.bf16.xpose.msk.msra.mxu1 %vm10811_vm2, %v11628_v10  ;;  %v2569_v21 = vpop.xlane.xlu1 %2568  ;;  %v10009_v6 = vpop.eup %10008  ;;  %v2653_v32 = vmul.f32 %v10007_v5, %v11894_v41  ;;  %v9510_v5 = vunpack.i.l.bf16 %v11655_v14 }
 0x618   : > { %10016 = vrcp.f32 %v2569_v21  ;;  %8794 = vmatprep.subr.msk.bf16.mxu1 %vm10811_vm2, %v8792_v62  ;;  %v2575_v17 = vpop.xlane.xlu0 %2574  ;;  %v2654_v42 = vmul.f32 %v10009_v6, %v11896_v58  ;;  %v9511_v21 = vunpack.i.h.bf16 %v11655_v14 }
 0x619   : > { %10018 = vpow2.f32 %v2552_v61 }
 0x61a   : > { %v10011_v45 = vpop.eup %10010 }
 0x61b   : > { %v2573_v3 = vpop.xlane.xlu1 %2572  ;;  %v2652_v29 = vmul.f32 %v10011_v45, %v11902_v28  ;;  %v10013_v10 = vpop.eup %10012 }
 0x61c   : > { %v2581_v7 = vpop.xlane.xlu0 %2580  ;;  %10020 = vrcp.f32 %v2573_v3  ;;  %v2656_v58 = vmul.f32 %v10013_v10, %v11905_v24 }
 0x61d   : > { %7877 = vmatprep.mubr.f32.mxu1 %v2652_v29 }
 0x61e   : > { %v10015_v38 = vpop.eup %10014  ;;  %7878 = vmatmul.mubr.f32.gmra.mrb[50].mxu1 %v2653_v32 }
 0x61f   : > { %8797 = vmatpush3.bf16.xpose.msk.msra.mxu1 %vm10811_vm2, %v8792_v62  ;;  %v2571_v54 = vpop.xlane.xlu1 %2570  ;;  %7880 = vmatprep.mubr.f32.mxu1 %v2654_v42  ;;  %v2655_v15 = vmul.f32 %v10015_v38, %v11910_v13  ;;  %v8804_v13 = vpack.c.bf16 %v9511_v21, %v9510_v5  ;;  %v8810_v38 = vpack.c.bf16 %v9516_v35, %v9515_v8  ;;  %v14148_v21 = vld [vmem:[#allocation30_spill] sm:$0xff] }
 0x620   : > { %10022 = vrcp.f32 %v2571_v54  ;;  %8800 = vmatprep.subr.msk.bf16.mxu1 %vm10811_vm2, %v8798_v37  ;;  %v2579_v41 = vpop.xlane.xlu0 %2578 }
 0x621   : > { %10024 = vrcp.f32 %v2575_v17 }
 0x622   : > { %v10017_v28 = vpop.eup %10016  ;;  %7881 = vmatmul.mubr.f32.gmra.mrb[52].mxu1 %v2655_v15  ;;  %10026 = vrcp.f32 %v2579_v41 }
 0x623   : > { %v2577_v62 = vpop.xlane.xlu1 %2576  ;;  %7883 = vmatprep.mubr.f32.mxu1 %v2656_v58  ;;  %v2657_v6 = vmul.f32 %v10017_v28, %v11915_v43  ;;  %v12040_v17 = vpop.eup %10018  ;;  %v9525_v58 = vunpack.i.l.bf16 %v11872_v2 }
 0x624   : > { %10028 = vrcp.f32 %v2577_v62  ;;  %v2583_v45 = vpop.xlane.xlu0 %2582 }
 0x625   : > { %10030 = vrcp.f32 %v2581_v7 }
 0x626   : > { %7884 = vmatmul.mubr.f32.gmra.mrb[54].mxu1 %v2657_v6  ;;  %v10021_v14 = vpop.eup %10020  ;;  %10032 = vrcp.f32 %v2583_v45 }
 0x627   : > { %9558 = vrot.lane.b32.xlu1 %v14103_v16, %s10393_s28  ;;  %8803 = vmatpush3.bf16.xpose.msk.msra.mxu1 %vm10811_vm2, %v8798_v37  ;;  %v2585_v24 = vpop.xlane.xlu1 %2584  ;;  %v2659_v10 = vmul.f32 %v10021_v14, %v11922_v4  ;;  %v14147_v37 = vld [vmem:[#allocation31_spill] sm:$0xff]  ;;  %v14149_v14 = vld [vmem:[#allocation9_spill] sm:$0xff] }
 0x628   : > { %8806 = vmatprep.subr.msk.bf16.mxu1 %vm10811_vm2, %v8804_v13  ;;  %10034 = vrcp.f32 %v2585_v24  ;;  %v9531_v24 = vunpack.i.h.bf16 %v11870_v48 }
 0x629   : > { %2616 = vadd.xlane.f32.xlu0 %v12040_v17 }
 0x62a   : > { %v10023_v43 = vpop.eup %10022 }
 0x62b   : > { %v10025_v61 = vpop.eup %10024  ;;  %9568 = vrot.lane.b32.xlu1 %v14105_v53, %s10393_s28  ;;  %v2589_v3 = vpop.xlane.xlu1 %2588  ;;  %v2658_v29 = vmul.f32 %v10023_v43, %v11929_v40 }
 0x62c   : > { %10036 = vrcp.f32 %v2589_v3  ;;  %v2587_v32 = vpop.xlane.xlu0 %2586  ;;  %v10027_v7 = vpop.eup %10026  ;;  %v2660_v1 = vmul.f32 %v10025_v61, %v11917_v49  ;;  %v9526_v49 = vunpack.i.h.bf16 %v11872_v2  ;;  %v9530_v2 = vunpack.i.l.bf16 %v11870_v48  ;;  %v14150_v3 = vld [vmem:[#allocation12_spill] sm:$0xff] }
 0x62d   : > { %10038 = vrcp.f32 %v2587_v32  ;;  %7886 = vmatprep.mubr.f32.mxu1 %v2658_v29  ;;  %v2662_v41 = vmul.f32 %v10027_v7, %v11933_v22  ;;  %v9536_v29 = vunpack.i.h.bf16 %v11876_v46  ;;  %v9535_v32 = vunpack.i.l.bf16 %v11876_v46 }
 0x62e   : > { %v10029_v42 = vpop.eup %10028  ;;  %7887 = vmatmul.mubr.f32.gmra.mrb[56].mxu1 %v2659_v10  ;;  %v8840_v61 = vpack.c.bf16 %v9531_v24, %v9530_v2  ;;  %v9541_v7 = vunpack.i.h.bf16 %v11874_v31 }
 0x62f   : > { %3502 = vrot.lane.b32.xlu1 %v14147_v37, %s10394_s29  ;;  %8809 = vmatpush3.bf16.xpose.msk.msra.mxu1 %vm10811_vm2, %v8804_v13  ;;  %v2661_v40 = vmul.f32 %v10029_v42, %v11937_v63  ;;  %v10031_v4 = vpop.eup %10030  ;;  %v8816_v13 = vpack.c.bf16 %v9526_v49, %v9525_v58  ;;  %v9540_v42 = vunpack.i.l.bf16 %v11874_v31  ;;  %v8822_v46 = vpack.c.bf16 %v9536_v29, %v9535_v32  ;;  %v14165_v29 = vld [vmem:[#allocation39_spill] sm:$0xff]  ;;  %v14166_v32 = vld [vmem:[#allocation34_spill] sm:$0xff] }
 0x630   : > { %v2593_v54 = vpop.xlane.xlu1 %2592  ;;  %v2591_v15 = vpop.xlane.xlu0 %2590  ;;  %7889 = vmatprep.mubr.f32.mxu1 %v2660_v1  ;;  %8812 = vmatprep.subr.msk.bf16.mxu1 %vm10811_vm2, %v8810_v38  ;;  %v2663_v5 = vmul.f32 %v10031_v4, %v11925_v26  ;;  %v14153_v4 = vld [vmem:[#allocation18_spill] sm:$0xff] }
 0x631   : > { %10040 = vrcp.f32 %v2593_v54  ;;  %v10033_v28 = vpop.eup %10032  ;;  %v8846_v1 = vpack.c.bf16 %v9541_v7, %v9540_v42  ;;  %v14170_v7 = vld [vmem:[#allocation40_spill] sm:$0xff] }
 0x632   : > { %10042 = vrcp.f32 %v2591_v15  ;;  %7890 = vmatmul.mubr.f32.gmra.mrb[58].mxu1 %v2661_v40  ;;  %v10035_v62 = vpop.eup %10034  ;;  %v2664_v22 = vmul.f32 %v10033_v28, %v11940_v0  ;;  %v14152_v40 = vld [vmem:[#allocation10_spill] sm:$0xff]  ;;  %v14171_v42 = vld [vmem:[#allocation48_spill] sm:$0xff] }
 0x633   : > { %3504 = vrot.lane.b32.xlu1 %v14148_v21, %s10394_s29  ;;  %7892 = vmatprep.mubr.f32.mxu1 %v2662_v41  ;;  %v2665_v35 = vmul.f32 %v10035_v62, %v11945_v11 }
 0x634   : > { %v2597_v63 = vpop.xlane.xlu0 %2596 }
 0x635   : > { %10044 = vrcp.f32 %v2597_v63  ;;  %v2601_v8 = vpop.xlane.xlu1 %2600 }
 0x636   : > { %v10037_v6 = vpop.eup %10036  ;;  %7893 = vmatmul.mubr.f32.gmra.mrb[60].mxu1 %v2663_v5  ;;  %v14154_v5 = vld [vmem:[#allocation13_spill] sm:$0xff] }
 0x637   : > { %v10039_v45 = vpop.eup %10038  ;;  %3235 = vrot.lane.b32.xlu1 %v14149_v14, %s10394_s29  ;;  %8815 = vmatpush3.bf16.xpose.msk.msra.mxu1 %vm10811_vm2, %v8810_v38  ;;  %v2667_v43 = vmul.f32 %v10037_v6, %v11949_v44  ;;  %v14155_v6 = vld [vmem:[#allocation21_spill] sm:$0xff] }
 0x638   : > { %v2595_v26 = vpop.xlane.xlu0 %2594  ;;  %7895 = vmatprep.mubr.f32.mxu1 %v2664_v22  ;;  %8818 = vmatprep.subr.msk.bf16.mxu1 %vm10811_vm2, %v8816_v13  ;;  %v2666_v0 = vmul.f32 %v10039_v45, %v11952_v20 }
 0x639   : > { %10046 = vrcp.f32 %v2595_v26  ;;  %v9544_v38 = vpop.permute.xlu1 %9543  ;;  %v14157_v26 = vld [vmem:[#allocation24_spill] sm:$0xff] }
 0x63a   : > { %7930 = vmatprep.mubr.f32.mxu0 %v2666_v0  ;;  %7896 = vmatmul.mubr.f32.gmra.mrb[62].mxu1 %v2665_v35  ;;  %10048 = vrcp.f32 %v2601_v8  ;;  %v9546_v54 = vunpack.i.h.bf16 %v9544_v38  ;;  %v9545_v15 = vunpack.i.l.bf16 %v9544_v38  ;;  %v14158_v0 = vld [vmem:[#allocation19_spill] sm:$0xff] }
 0x63b   : > { %v10041_v48 = vpop.eup %10040  ;;  %3239 = vrot.lane.b32.xlu1 %v14150_v3, %s10394_s29  ;;  %7931 = vmatmul.mubr.f32.vlgmr.msra.gmra.mrb[80].mxu0 %v2667_v43  ;;  %v14156_v43 = vld [vmem:[#allocation16_spill] sm:$0xff]  ;;  %v14159_v35 = vld [vmem:[#allocation27_spill] sm:$0xff] }
 0x63c   : > { %v10043_v44 = vpop.eup %10042  ;;  %8839 = vmatpush3.bf16.xpose.msk.msra.mxu0 %vm10811_vm2, %v11669_v39  ;;  %v2599_v11 = vpop.xlane.xlu0 %2598  ;;  %v2669_v20 = vmul.f32 %v10041_v48, %v11959_v19  ;;  %v14151_v39 = vld [vmem:[#allocation15_spill] sm:$0xff]  ;;  %v8828_v62 = vpack.c.bf16 %v9546_v54, %v9545_v15  ;;  %v14160_v48 = vld [vmem:[#allocation22_spill] sm:$0xff] }
 0x63d   : > { %10050 = vrcp.f32 %v2599_v11  ;;  %8842 = vmatprep.subr.msk.bf16.mxu0 %vm10811_vm2, %v8840_v61  ;;  %v2668_v10 = vmul.f32 %v10043_v44, %v11956_v36  ;;  %v14163_v44 = vld [vmem:[#allocation36_spill] sm:$0xff]  ;;  %v14167_v11 = vld [vmem:[#allocation42_spill] sm:$0xff]  ;;  %v14173_v38 = vld [vmem:[#allocation51_spill] sm:$0xff] }
 0x63f   : > { %7933 = vmatprep.mubr.f32.mxu0 %v2668_v10  ;;  %9563 = vrot.lane.b32.xlu0 %v14104_v56, %s10393_s28  ;;  %v10045_v36 = vpop.eup %10044  ;;  %v14169_v10 = vld [vmem:[#allocation45_spill] sm:$0xff]  ;;  %s191_s28 = sand.u32 1, %s10378_s16  }
 0x640   : > { %3243 = vrot.lane.b32.xlu1 %v14151_v39, %s10394_s29  ;;  %7934 = vmatmul.mubr.f32.gmra.mrb[82].mxu0 %v2669_v20  ;;  %v2603_v19 = vpop.xlane.xlu0 %2602  ;;  %v2671_v58 = vmul.f32 %v10045_v36, %v11964_v52  ;;  %v14168_v20 = vld [vmem:[#allocation37_spill] sm:$0xff] }
 0x641   : > { %8821 = vmatpush3.bf16.xpose.msk.msra.mxu1 %vm10811_vm2, %v8816_v13  ;;  %10052 = vrcp.f32 %v2603_v19  ;;  %v14172_v19 = vld [vmem:[#allocation43_spill] sm:$0xff] }
 0x642   : > { %8824 = vmatprep.subr.msk.bf16.mxu1 %vm10811_vm2, %v8822_v46 }
 0x643   : > { %v10047_v31 = vpop.eup %10046  ;;  %3233 = vrot.lane.b32.xlu0 %v14152_v40, %s10394_s29 }
 0x644   : > { %3247 = vrot.lane.b32.xlu1 %v14153_v4, %s10394_s29  ;;  %8845 = vmatpush3.bf16.xpose.msk.msra.mxu0 %vm10811_vm2, %v8840_v61  ;;  %v2605_v41 = vpop.xlane.xlu0 %2604  ;;  %v2670_v49 = vmul.f32 %v10047_v31, %v11970_v34  ;;  %v10049_v28 = vpop.eup %10048  ;;  %v14162_v61 = vld [vmem:[#allocation25_spill] sm:$0xff]  ;;  %v14174_v31 = vld [vmem:[#allocation46_spill] sm:$0xff] }
 0x645   : > { %10054 = vrcp.f32 %v2605_v41  ;;  %8848 = vmatprep.subr.msk.bf16.mxu0 %vm10811_vm2, %v8846_v1  ;;  %v2673_v52 = vmul.f32 %v10049_v28, %v11966_v27 }
 0x646   : > { %7936 = vmatprep.mubr.f32.mxu0 %v2670_v49  ;;  %v14176_v49 = vld [vmem:[#allocation49_spill] sm:$0xff] }
 0x647   : > { %v10051_v63 = vpop.eup %10050  ;;  %3237 = vrot.lane.b32.xlu0 %v14154_v5, %s10394_s29  ;;  %7937 = vmatmul.mubr.f32.gmra.mrb[84].mxu0 %v2671_v58  ;;  %v14177_v58 = vld [vmem:[#allocation17_spill] sm:$0xff] }
 0x648   : > { %3251 = vrot.lane.b32.xlu1 %v14155_v6, %s10394_s29  ;;  %v9549_v13 = vpop.permute.xlu0 %9548  ;;  %v2672_v34 = vmul.f32 %v10051_v63, %v11973_v23 }
 0x649   : > { %8827 = vmatpush3.bf16.xpose.msk.msra.mxu1 %vm10811_vm2, %v8822_v46  ;;  %v9551_v22 = vunpack.i.h.bf16 %v9549_v13  ;;  %v9550_v45 = vunpack.i.l.bf16 %v9549_v13  ;;  %v14178_v13 = vld [vmem:[#allocation52_spill] sm:$0xff] }
 0x64a   : > { %8830 = vmatprep.subr.msk.bf16.mxu1 %vm10811_vm2, %v8828_v62  ;;  %7939 = vmatprep.mubr.f32.mxu0 %v2672_v34  ;;  %v14179_v34 = vld [vmem:[#allocation23_spill] sm:$0xff] }
 0x64b   : > { %v10053_v24 = vpop.eup %10052  ;;  %v8852_v2 = vpack.c.bf16 %v9551_v22, %v9550_v45  ;;  %3241 = vrot.lane.b32.xlu0 %v14156_v43, %s10394_s29  ;;  %7940 = vmatmul.mubr.f32.gmra.mrb[86].mxu0 %v2673_v52  ;;  %v14180_v45 = vld [vmem:[#allocation8_spill] sm:$0xff] }
 0x64c   : > { %3255 = vrot.lane.b32.xlu1 %v14157_v26, %s10394_s29  ;;  %8851 = vmatpush3.bf16.xpose.msk.msra.mxu0 %vm10811_vm2, %v8846_v1  ;;  %v2674_v23 = vmul.f32 %v10053_v24, %v11976_v30  ;;  %v14161_v30 = vld [vmem:[#allocation33_spill] sm:$0xff]  ;;  %v14175_v1 = vld [vmem:[#allocation11_spill] sm:$0xff]  ;;  %v14182_v24 = vld [vmem:[#allocation14_spill] sm:$0xff] }
 0x64d   : > { %8854 = vmatprep.subr.msk.bf16.mxu0 %vm10811_vm2, %v8852_v2 }
 0x64e   : > { %7942 = vmatprep.mubr.f32.mxu0 %v2674_v23 }
 0x64f   : > { %v10055_v27 = vpop.eup %10054  ;;  %3245 = vrot.lane.b32.xlu0 %v14158_v0, %s10394_s29 }
 0x650   : > { %3259 = vrot.lane.b32.xlu1 %v14159_v35, %s10394_s29  ;;  %v2675_v8 = vmul.f32 %v10055_v27, %v11979_v47  ;;  %v14164_v47 = vld [vmem:[#allocation28_spill] sm:$0xff] }
 0x651   : > { %8833 = vmatpush3.bf16.xpose.msk.msra.mxu1 %vm10811_vm2, %v8828_v62  ;;  %v14183_v27 = vld [vmem:[#allocation20_spill] sm:$0xff] }
 0x652   : > { %7943 = vmatmul.mubr.f32.gmra.mrb[88].mxu0 %v2675_v8 }
 0x653   : > { %3249 = vrot.lane.b32.xlu0 %v14160_v48, %s10394_s29 }
 0x654   : > { %3508 = vrot.lane.b32.xlu1 %v14161_v30, %s10394_s29  ;;  %8857 = vmatpush3.bf16.xpose.msk.msra.mxu0 %vm10811_vm2, %v8852_v2 }
 0x657   : > { %3253 = vrot.lane.b32.xlu0 %v14162_v61, %s10394_s29 }
 0x658   : > { %3512 = vrot.lane.b32.xlu1 %v14163_v44, %s10394_s29 }
 0x65b   : > { %3257 = vrot.lane.b32.xlu0 %v14164_v47, %s10394_s29 }
 0x65c   : > { %3516 = vrot.lane.b32.xlu1 %v14165_v29, %s10394_s29 }
 0x65f   : > { %3506 = vrot.lane.b32.xlu0 %v14166_v32, %s10394_s29 }
 0x660   : > { %3520 = vrot.lane.b32.xlu1 %v14167_v11, %s10394_s29 }
 0x663   : > { %3510 = vrot.lane.b32.xlu0 %v14168_v20, %s10394_s29 }
 0x664   : > { %3524 = vrot.lane.b32.xlu1 %v14169_v10, %s10394_s29 }
 0x667   : > { %3514 = vrot.lane.b32.xlu0 %v14170_v7, %s10394_s29 }
 0x668   : > { %3528 = vrot.lane.b32.xlu1 %v14171_v42, %s10394_s29 }
 0x66a   : > { %v2607_v46 = vpop.xlane.xlu1 %2606 }
 0x66b   : > { %10056 = vrcp.f32 %v2607_v46  ;;  %3518 = vrot.lane.b32.xlu0 %v14172_v19, %s10394_s29 }
 0x66c   : > { %3532 = vrot.lane.b32.xlu1 %v14173_v38, %s10394_s29 }
 0x66e   : > { %v2611_v36 = vpop.xlane.xlu1 %2610 }
 0x66f   : > { %3522 = vrot.lane.b32.xlu0 %v14174_v31, %s10394_s29  ;;  %10058 = vrcp.f32 %v2611_v36 }
 0x670   : > { %9578 = vrot.lane.b32.xlu1 %v14175_v1, %s10395_s30 }
 0x672   : > { %v9554_v54 = vpop.permute.xlu1 %9553 }
 0x673   : > { %v9556_v15 = vunpack.i.h.bf16 %v9554_v54  ;;  %v9555_v41 = vunpack.i.l.bf16 %v9554_v54  ;;  %3526 = vrot.lane.b32.xlu0 %v14176_v49, %s10394_s29 }
 0x674   : > { %9588 = vrot.lane.b32.xlu1 %v14177_v58, %s10395_s30 }
 0x675   : > { %v10057_v28 = vpop.eup %10056  ;;  %v8858_v63 = vpack.c.bf16 %v9556_v15, %v9555_v41  ;;  %v14184_v15 = vld [vmem:[#allocation26_spill] sm:$0xff] }
 0x676   : > { %v2676_v62 = vmul.f32 %v10057_v28, %v11989_v57  ;;  %v14181_v57 = vld [vmem:[#allocation38_spill] sm:$0xff] }
 0x677   : > { %3530 = vrot.lane.b32.xlu0 %v14178_v13, %s10394_s29  ;;  %8860 = vmatprep.subr.msk.bf16.mxu0 %vm10811_vm2, %v8858_v63  ;;  %s6532_s29 = sshll.u32 %s191_s28, 8 }
 0x678   : > { %9598 = vrot.lane.b32.xlu1 %v14179_v34, %s10395_s30  ;;  %7945 = vmatprep.mubr.f32.mxu0 %v2676_v62 }
 0x679   : > { %8863 = vmatpush3.bf16.xpose.msk.msra.mxu0 %vm10811_vm2, %v8858_v63  ;;  %v2609_v22 = vpop.xlane.xlu0 %2608  ;;  %v10059_v23 = vpop.eup %10058  ;;  %v14185_v63 = vld [vmem:[#allocation32_spill] sm:$0xff] }
 0x67a   : > { %10060 = vrcp.f32 %v2609_v22  ;;  %v2678_v54 = vmul.f32 %v10059_v23, %v11993_v50 }
 0x67b   : > { %9573 = vrot.lane.b32.xlu0 %v14180_v45, %s10395_s30 }
 0x67c   : > { %9628 = vrot.lane.b32.xlu1 %v14181_v57, %s10395_s30 }
 0x67d   : > { %v2613_v52 = vpop.xlane.xlu0 %2612 }
 0x67e   : > { %10062 = vrcp.f32 %v2613_v52 }
 0x67f   : > { %9583 = vrot.lane.b32.xlu0 %v14182_v24, %s10395_s30 }
 0x680   : > { %9633 = vrot.lane.b32.xlu1 %v14097_v60, %s10395_s30 }
 0x681   : > { %v3230_v2 = vpop.permute.xlu0 %3229 }
 0x682   : > { %7986 = vmatprep.mubr.msk.f32.mxu1 %vm611_vm1, %v3230_v2 }
 0x683   : > { %9593 = vrot.lane.b32.xlu0 %v14183_v27, %s10395_s30 }
 0x684   : > { %v10061_v8 = vpop.eup %10060 }
 0x685   : > { %v3232_v46 = vpop.permute.xlu0 %3231  ;;  %v2677_v36 = vmul.f32 %v10061_v8, %v11996_v9  ;;  %v14186_v9 = vld [vmem:[#allocation35_spill] sm:$0xff] }
 0x686   : > { %7987 = vmatmul.mubr.msk.f32.vlgmr.msra.gmra.mrb[64].mxu1 %vm611_vm1, %v3232_v46 }
 0x687   : > { %9603 = vrot.lane.b32.xlu0 %v14184_v15, %s10395_s30  ;;  %7946 = vmatmul.mubr.f32.gmra.mrb[90].mxu0 %v2677_v36 }
 0x688   : > { %v10063_v41 = vpop.eup %10062  ;;  %7948 = vmatprep.mubr.f32.mxu0 %v2678_v54 }
 0x689   : > { %v2679_v28 = vmul.f32 %v10063_v41, %v11999_v55 }
 0x68b   : > { %9608 = vrot.lane.b32.xlu0 %v14100_v51, %s10395_s30  ;;  %7949 = vmatmul.mubr.f32.gmra.mrb[92].mxu0 %v2679_v28 }
 0x68f   : > { %9613 = vrot.lane.b32.xlu0 %v14185_v63, %s10395_s30 }
 0x693   : > { %9618 = vrot.lane.b32.xlu0 %v14186_v9, %s10395_s30 }
 0x697   : > { %9623 = vrot.lane.b32.xlu0 %v14180_v45, %s10396_s5 }
 0x6a3   : > { %v2615_v50 = vpop.xlane.xlu1 %2614 }
 0x6a4   : > { %10064 = vrcp.f32 %v2615_v50 }
 0x6a7   : > { %v9559_v62 = vpop.permute.xlu1 %9558 }
 0x6a8   : > { %v9561_v22 = vunpack.i.h.bf16 %v9559_v62  ;;  %v9560_v52 = vunpack.i.l.bf16 %v9559_v62 }
 0x6aa   : > { %v8864_v55 = vpack.c.bf16 %v9561_v22, %v9560_v52 }
 0x6ab   : > { %v9569_v2 = vpop.permute.xlu1 %9568 }
 0x6ac   : > { %8866 = vmatprep.subr.msk.bf16.mxu0 %vm10811_vm2, %v8864_v55  ;;  %v9571_v50 = vunpack.i.h.bf16 %v9569_v2  ;;  %v9570_v62 = vunpack.i.l.bf16 %v9569_v2 }
 0x6ad   : > { %8869 = vmatpush3.bf16.xpose.msk.msra.mxu0 %vm10811_vm2, %v8864_v55 }
 0x6ae   : > { %v10065_v23 = vpop.eup %10064  ;;  %v8876_v31 = vpack.c.bf16 %v9571_v50, %v9570_v62 }
 0x6af   : > { %v3503_v8 = vpop.permute.xlu1 %3502  ;;  %v2680_v46 = vmul.f32 %v10065_v23, %v12013_v59 }
 0x6b1   : > { %7951 = vmatprep.mubr.f32.mxu0 %v2680_v46 }
 0x6b3   : > { %v3505_v36 = vpop.permute.xlu1 %3504 }
 0x6b6   : > { %v2617_v54 = vpop.xlane.xlu0 %2616 }
 0x6b7   : > { %10066 = vrcp.f32 %v2617_v54  ;;  %v3236_v41 = vpop.permute.xlu1 %3235 }
 0x6ba   : > { %v9564_v28 = vpop.permute.xlu0 %9563 }
 0x6bb   : > { %v9566_v22 = vunpack.i.h.bf16 %v9564_v28  ;;  %v9565_v52 = vunpack.i.l.bf16 %v9564_v28  ;;  %v3240_v45 = vpop.permute.xlu1 %3239 }
 0x6bd   : > { %v8870_v13 = vpack.c.bf16 %v9566_v22, %v9565_v52 }
 0x6be   : > { %v3234_v49 = vpop.permute.xlu0 %3233 }
 0x6bf   : > { %v3244_v19 = vpop.permute.xlu1 %3243  ;;  %7989 = vmatprep.mubr.msk.f32.mxu1 %vm611_vm1, %v3234_v49  ;;  %8872 = vmatprep.subr.msk.bf16.mxu0 %vm10811_vm2, %v8870_v13 }
 0x6c0   : > { %7990 = vmatmul.mubr.msk.f32.gmra.mrb[66].mxu1 %vm611_vm1, %v3236_v41  ;;  %8875 = vmatpush3.bf16.xpose.msk.msra.mxu0 %vm10811_vm2, %v8870_v13 }
 0x6c1   : > { %v10067_v59 = vpop.eup %10066  ;;  %8878 = vmatprep.subr.msk.bf16.mxu0 %vm10811_vm2, %v8876_v31 }
 0x6c2   : > { %v3238_v55 = vpop.permute.xlu0 %3237  ;;  %v2681_v2 = vmul.f32 %v10067_v59, %v12040_v17 }
 0x6c3   : > { %v3248_v23 = vpop.permute.xlu1 %3247  ;;  %7992 = vmatprep.mubr.msk.f32.mxu1 %vm611_vm1, %v3238_v55 }
 0x6c4   : > { %7952 = vmatmul.mubr.f32.gmra.mrb[94].mxu0 %v2681_v2  ;;  %7993 = vmatmul.mubr.msk.f32.gmra.mrb[68].mxu1 %vm611_vm1, %v3240_v45 }
 0x6c5   : > { %8042 = vmatprep.mubr.msk.f32.mxu0 %vm611_vm1, %v3503_v8 }
 0x6c6   : > { %v3242_v49 = vpop.permute.xlu0 %3241 }
 0x6c7   : > { %v3252_v46 = vpop.permute.xlu1 %3251  ;;  %7995 = vmatprep.mubr.msk.f32.mxu1 %vm611_vm1, %v3242_v49 }
 0x6c8   : > { %7996 = vmatmul.mubr.msk.f32.gmra.mrb[70].mxu1 %vm611_vm1, %v3244_v19  ;;  %8881 = vmatpush3.bf16.xpose.msk.msra.mxu0 %vm10811_vm2, %v8876_v31 }
 0x6ca   : > { %v3246_v13 = vpop.permute.xlu0 %3245 }
 0x6cb   : > { %v3256_v54 = vpop.permute.xlu1 %3255  ;;  %7998 = vmatprep.mubr.msk.f32.mxu1 %vm611_vm1, %v3246_v13 }
 0x6cc   : > { %7999 = vmatmul.mubr.msk.f32.gmra.mrb[72].mxu1 %vm611_vm1, %v3248_v23 }
 0x6ce   : > { %v3250_v17 = vpop.permute.xlu0 %3249 }
 0x6cf   : > { %v3260_v41 = vpop.permute.xlu1 %3259  ;;  %8001 = vmatprep.mubr.msk.f32.mxu1 %vm611_vm1, %v3250_v17  ;;  %8043 = vmatmul.mubr.msk.f32.vlgmr.msra.gmra.mrb[96].mxu0 %vm611_vm1, %v3505_v36 }
 0x6d0   : > { %8002 = vmatmul.mubr.msk.f32.gmra.mrb[74].mxu1 %vm611_vm1, %v3252_v46 }
 0x6d2   : > { %v3254_v45 = vpop.permute.xlu0 %3253 }
 0x6d3   : > { %v3509_v8 = vpop.permute.xlu1 %3508  ;;  %8004 = vmatprep.mubr.msk.f32.mxu1 %vm611_vm1, %v3254_v45 }
 0x6d4   : > { %8005 = vmatmul.mubr.msk.f32.gmra.mrb[76].mxu1 %vm611_vm1, %v3256_v54 }
 0x6d6   : > { %v3258_v19 = vpop.permute.xlu0 %3257 }
 0x6d7   : > { %v3513_v31 = vpop.permute.xlu1 %3512  ;;  %8007 = vmatprep.mubr.msk.f32.mxu1 %vm611_vm1, %v3258_v19 }
 0x6d8   : > { %8008 = vmatmul.mubr.msk.f32.gmra.mrb[78].mxu1 %vm611_vm1, %v3260_v41 }
 0x6da   : > { %v3507_v28 = vpop.permute.xlu0 %3506 }
 0x6db   : > { %v3517_v50 = vpop.permute.xlu1 %3516  ;;  %8045 = vmatprep.mubr.msk.f32.mxu0 %vm611_vm1, %v3507_v28 }
 0x6dc   : > { %8046 = vmatmul.mubr.msk.f32.gmra.mrb[98].mxu0 %vm611_vm1, %v3509_v8 }
 0x6de   : > { %v3511_v36 = vpop.permute.xlu0 %3510 }
 0x6df   : > { %v3521_v62 = vpop.permute.xlu1 %3520  ;;  %8048 = vmatprep.mubr.msk.f32.mxu0 %vm611_vm1, %v3511_v36 }
 0x6e0   : > { %8049 = vmatmul.mubr.msk.f32.gmra.mrb[100].mxu0 %vm611_vm1, %v3513_v31 }
 0x6e2   : > { %v3515_v22 = vpop.permute.xlu0 %3514 }
 0x6e3   : > { %v3525_v52 = vpop.permute.xlu1 %3524  ;;  %8051 = vmatprep.mubr.msk.f32.mxu0 %vm611_vm1, %v3515_v22 }
 0x6e4   : > { %8052 = vmatmul.mubr.msk.f32.gmra.mrb[102].mxu0 %vm611_vm1, %v3517_v50 }
 0x6e6   : > { %v3519_v59 = vpop.permute.xlu0 %3518 }
 0x6e7   : > { %8054 = vmatprep.mubr.msk.f32.mxu0 %vm611_vm1, %v3519_v59  ;;  %v3529_v55 = vpop.permute.xlu1 %3528 }
 0x6e8   : > { %8055 = vmatmul.mubr.msk.f32.gmra.mrb[104].mxu0 %vm611_vm1, %v3521_v62 }
 0x6e9   : > { %v12244_v2 = vpop.f32.mrb[48].mxu1 }
 0x6ea   : > { %14187 = vst [vmem:[#allocation29_spill] sm:$0xff] %v12244_v2  ;;  %v3523_v23 = vpop.permute.xlu0 %3522  ;;  %v12246_v49 = vpop.f32.mrb[49].mxu1 }
 0x6eb   : > { %14188 = vst [vmem:[#allocation55_spill] sm:$0xff] %v12246_v49  ;;  %8057 = vmatprep.mubr.msk.f32.mxu0 %vm611_vm1, %v3523_v23  ;;  %v3533_v46 = vpop.permute.xlu1 %3532 }
 0x6ec   : > { %8058 = vmatmul.mubr.msk.f32.gmra.mrb[106].mxu0 %vm611_vm1, %v3525_v52 }
 0x6ee   : > { %v3527_v13 = vpop.permute.xlu0 %3526 }
 0x6ef   : > { %8060 = vmatprep.mubr.msk.f32.mxu0 %vm611_vm1, %v3527_v13  ;;  %v9579_v45 = vpop.permute.xlu1 %9578 }
 0x6f0   : > { %8061 = vmatmul.mubr.msk.f32.gmra.mrb[108].mxu0 %vm611_vm1, %v3529_v55  ;;  %v9581_v28 = vunpack.i.h.bf16 %v9579_v45  ;;  %v9580_v50 = vunpack.i.l.bf16 %v9579_v45 }
 0x6f1   : > { %v12252_v54 = vpop.f32.mrb[50].mxu1 }
 0x6f2   : > { %14189 = vst [vmem:[#allocation54_spill] sm:$0xff] %v12252_v54  ;;  %v3531_v17 = vpop.permute.xlu0 %3530  ;;  %v12254_v41 = vpop.f32.mrb[51].mxu1 }
 0x6f3   : > { %14190 = vst [vmem:[#allocation56_spill] sm:$0xff] %v12254_v41  ;;  %8063 = vmatprep.mubr.msk.f32.mxu0 %vm611_vm1, %v3531_v17  ;;  %v9589_v23 = vpop.permute.xlu1 %9588 }
 0x6f4   : > { %8064 = vmatmul.mubr.msk.f32.gmra.mrb[110].mxu0 %vm611_vm1, %v3533_v46  ;;  %v8886_v46 = vpack.c.bf16 %v9581_v28, %v9580_v50  ;;  %v9591_v54 = vunpack.i.h.bf16 %v9589_v23 }
 0x6f5   : > { %v12258_v8 = vpop.f32.mrb[52].mxu1 }
 0x6f6   : > { %14191 = vst [vmem:[#allocation57_spill] sm:$0xff] %v12258_v8  ;;  %v9574_v19 = vpop.permute.xlu0 %9573  ;;  %v12260_v31 = vpop.f32.mrb[53].mxu1 }
 0x6f7   : > { %14192 = vst [vmem:[#allocation58_spill] sm:$0xff] %v12260_v31  ;;  %v9576_v36 = vunpack.i.h.bf16 %v9574_v19  ;;  %v9575_v62 = vunpack.i.l.bf16 %v9574_v19  ;;  %v9590_v31 = vunpack.i.l.bf16 %v9589_v23  ;;  %v9599_v45 = vpop.permute.xlu1 %9598 }
 0x6f8   : > { %v9600_v23 = vunpack.i.l.bf16 %v9599_v45 }
 0x6f9   : > { %v12262_v22 = vpop.f32.mrb[54].mxu1  ;;  %v8882_v52 = vpack.c.bf16 %v9576_v36, %v9575_v62  ;;  %v8894_v2 = vpack.c.bf16 %v9591_v54, %v9590_v31 }
 0x6fa   : > { %14193 = vst [vmem:[#allocation59_spill] sm:$0xff] %v12262_v22  ;;  %v9584_v59 = vpop.permute.xlu0 %9583  ;;  %v12264_v55 = vpop.f32.mrb[55].mxu1 }
 0x6fb   : > { %14194 = vst [vmem:[#allocation66_spill] sm:$0xff] %v12264_v55  ;;  %v9586_v13 = vunpack.i.h.bf16 %v9584_v59  ;;  %v9585_v17 = vunpack.i.l.bf16 %v9584_v59  ;;  %8883 = vmatprep.subr.bf16.mxu1 %v8882_v52  ;;  %v9601_v59 = vunpack.i.h.bf16 %v9599_v45 }
 0x6fc   : > { %8885 = vmatpush3.bf16.msra.mxu1 %v8882_v52 }
 0x6fd   : > { %8887 = vmatprep.subr.bf16.mxu1 %v8886_v46  ;;  %v8890_v41 = vpack.c.bf16 %v9586_v13, %v9585_v17  ;;  %v9629_v13 = vpop.permute.xlu1 %9628  ;;  %v8902_v31 = vpack.c.bf16 %v9601_v59, %v9600_v23 }
 0x6fe   : > { %v9594_v8 = vpop.permute.xlu0 %9593  ;;  %v9631_v7 = vunpack.i.h.bf16 %v9629_v13 }
 0x6ff   : > { %v9596_v22 = vunpack.i.h.bf16 %v9594_v8  ;;  %v9595_v55 = vunpack.i.l.bf16 %v9594_v8 }
 0x700   : > { %8889 = vmatpush3.bf16.msra.mxu1 %v8886_v46 }
 0x701   : > { %8891 = vmatprep.subr.bf16.mxu1 %v8890_v41  ;;  %v12266_v19 = vpop.f32.mrb[56].mxu1  ;;  %v8898_v17 = vpack.c.bf16 %v9596_v22, %v9595_v55  ;;  %v9630_v22 = vunpack.i.l.bf16 %v9629_v13 }
 0x702   : > { %14195 = vst [vmem:[#allocation63_spill] sm:$0xff] %v12266_v19  ;;  %v9604_v36 = vpop.permute.xlu0 %9603  ;;  %v12268_v62 = vpop.f32.mrb[57].mxu1 }
 0x703   : > { %14196 = vst [vmem:[#allocation68_spill] sm:$0xff] %v12268_v62  ;;  %v9606_v19 = vunpack.i.h.bf16 %v9604_v36  ;;  %v9605_v62 = vunpack.i.l.bf16 %v9604_v36  ;;  %v8922_v13 = vpack.c.bf16 %v9631_v7, %v9630_v22 }
 0x704   : > { %8893 = vmatpush3.bf16.msra.mxu1 %v8890_v41 }
 0x705   : > { %8895 = vmatprep.subr.bf16.mxu1 %v8894_v2  ;;  %v12270_v28 = vpop.f32.mrb[58].mxu1 }
 0x706   : > { %14197 = vst [vmem:[#allocation65_spill] sm:$0xff] %v12270_v28  ;;  %v9609_v50 = vpop.permute.xlu0 %9608  ;;  %v12272_v52 = vpop.f32.mrb[59].mxu1 }
 0x707   : > { %14198 = vst [vmem:[#allocation64_spill] sm:$0xff] %v12272_v52  ;;  %v9634_v28 = vpop.permute.xlu1 %9633  ;;  %v9611_v38 = vunpack.i.h.bf16 %v9609_v50  ;;  %v9610_v36 = vunpack.i.l.bf16 %v9609_v50 }
 0x708   : > { %8897 = vmatpush3.bf16.msra.mxu1 %v8894_v2  ;;  %v9636_v23 = vunpack.i.h.bf16 %v9634_v28 }
 0x709   : > { %8899 = vmatprep.subr.bf16.mxu1 %v8898_v17  ;;  %v12274_v46 = vpop.f32.mrb[60].mxu1 }
 0x70a   : > { %14199 = vst [vmem:[#allocation70_spill] sm:$0xff] %v12274_v46  ;;  %v9614_v49 = vpop.permute.xlu0 %9613  ;;  %v12276_v8 = vpop.f32.mrb[61].mxu1  ;;  %v8906_v46 = vpack.c.bf16 %v9606_v19, %v9605_v62  ;;  %v8910_v62 = vpack.c.bf16 %v9611_v38, %v9610_v36 }
 0x70b   : > { %14200 = vst [vmem:[#allocation61_spill] sm:$0xff] %v12276_v8  ;;  %v9616_v54 = vunpack.i.h.bf16 %v9614_v49  ;;  %v9615_v41 = vunpack.i.l.bf16 %v9614_v49 }
 0x70c   : > { %8901 = vmatpush3.bf16.msra.mxu1 %v8898_v17 }
 0x70d   : > { %8903 = vmatprep.subr.bf16.mxu1 %v8902_v31  ;;  %v12278_v52 = vpop.f32.mrb[62].mxu1  ;;  %v8914_v45 = vpack.c.bf16 %v9616_v54, %v9615_v41  ;;  %v9635_v54 = vunpack.i.l.bf16 %v9634_v28 }
 0x70e   : > { %14201 = vst [vmem:[#allocation67_spill] sm:$0xff] %v12278_v52  ;;  %v9619_v2 = vpop.permute.xlu0 %9618  ;;  %v12280_v55 = vpop.f32.mrb[80].mxu0 }
 0x70f   : > { %14202 = vst [vmem:[#allocation72_spill] sm:$0xff] %v12280_v55  ;;  %v9621_v20 = vunpack.i.h.bf16 %v9619_v2  ;;  %v9620_v42 = vunpack.i.l.bf16 %v9619_v2  ;;  %v12282_v8 = vpop.f32.mrb[63].mxu1  ;;  %v12284_v49 = vpop.f32.mrb[81].mxu0  ;;  %8915 = vmatprep.subr.bf16.mxu0 %v8914_v45 }
 0x710   : > { %14203 = vst [vmem:[#allocation69_spill] sm:$0xff] %v12282_v8  ;;  %14204 = vst [vmem:[#allocation79_spill] sm:$0xff] %v12284_v49  ;;  %8905 = vmatpush3.bf16.msra.mxu1 %v8902_v31  ;;  %8917 = vmatpush3.bf16.msra.mxu0 %v8914_v45  ;;  %v8926_v45 = vpack.c.bf16 %v9636_v23, %v9635_v54 }
 0x711   : > { %8907 = vmatprep.subr.bf16.mxu1 %v8906_v46  ;;  %v8918_v59 = vpack.c.bf16 %v9621_v20, %v9620_v42 }
 0x712   : > { %v9624_v17 = vpop.permute.xlu0 %9623 }
 0x713   : > { %v9626_v41 = vunpack.i.h.bf16 %v9624_v17  ;;  %v9625_v55 = vunpack.i.l.bf16 %v9624_v17  ;;  %v12286_v19 = vpop.f32.mrb[82].mxu0  ;;  %8919 = vmatprep.subr.bf16.mxu0 %v8918_v59 }
 0x714   : > { %14205 = vst [vmem:[#allocation74_spill] sm:$0xff] %v12286_v19  ;;  %v12288_v50 = vpop.f32.mrb[83].mxu0  ;;  %8909 = vmatpush3.bf16.msra.mxu1 %v8906_v46  ;;  %8921 = vmatpush3.bf16.msra.mxu0 %v8918_v59 }
 0x715   : > { %14206 = vst [vmem:[#allocation71_spill] sm:$0xff] %v12288_v50  ;;  %8911 = vmatprep.subr.bf16.mxu1 %v8910_v62  ;;  %8923 = vmatprep.subr.bf16.mxu0 %v8922_v13  ;;  %v12290_v31 = vpack.c.bf16 %v9626_v41, %v9625_v55 }
 0x718   : > { %8913 = vmatpush3.bf16.msra.mxu1 %v8910_v62  ;;  %8925 = vmatpush3.bf16.msra.mxu0 %v8922_v13 }
 0x719   : > { %8927 = vmatprep.subr.bf16.mxu0 %v8926_v45  ;;  %8948 = vmatprep.subr.msk.bf16.mxu1 %vm10811_vm2, %v12290_v31 }
 0x71a   : > { %v12295_v20 = vpop.f32.mrb[84].mxu0 }
 0x71b   : > { %14207 = vst [vmem:[#allocation76_spill] sm:$0xff] %v12295_v20  ;;  %v12297_v7 = vpop.f32.mrb[85].mxu0 }
 0x71c   : > { %14208 = vst [vmem:[#allocation73_spill] sm:$0xff] %v12297_v7  ;;  %8929 = vmatpush3.bf16.msra.mxu0 %v8926_v45 }
 0x71e   : > { %v12299_v42 = vpop.f32.mrb[86].mxu0 }
 0x71f   : > { %14209 = vst [vmem:[#allocation78_spill] sm:$0xff] %v12299_v42  ;;  %v12301_v38 = vpop.f32.mrb[87].mxu0 }
 0x720   : > { %14210 = vst [vmem:[#allocation75_spill] sm:$0xff] %v12301_v38 }
 0x725   : > { %v12303_v28 = vpop.f32.mrb[88].mxu0 }
 0x726   : > { %14211 = vst [vmem:[#allocation62_spill] sm:$0xff] %v12303_v28  ;;  %v12305_v46 = vpop.f32.mrb[89].mxu0 }
 0x727   : > { %14212 = vst [vmem:[#allocation80_spill] sm:$0xff] %v12305_v46 }
 0x759   : > { %v7988_v22 = vpop.f32.mrb[64].mxu1 }
 0x75a   : > { %v12309_v55 = vsel %vm562_vm3, %v7988_v22, -1e+30  ;;  %v12311_v36 = vpop.f32.mrb[90].mxu0  ;;  %v3423_v59 = vpop.f32.mrb[65].mxu1 }
 0x75b   : > { %14214 = vst [vmem:[#allocation77_spill] sm:$0xff] %v12311_v36  ;;  %v12315_v23 = vsel %vm562_vm3, %v3423_v59, -1e+30  ;;  %v12317_v17 = vpop.f32.mrb[91].mxu0  ;;  %3809 = vmax.xlane.f32.xlu1 %v12309_v55 }
 0x75c   : > { %14215 = vst [vmem:[#allocation82_spill] sm:$0xff] %v12317_v17  ;;  %3807 = vmax.xlane.f32.xlu0 %v12315_v23 }
 0x75e   : > { %v12321_v13 = vpop.f32.mrb[92].mxu0 }
 0x75f   : > { %14216 = vst [vmem:[#allocation81_spill] sm:$0xff] %v12321_v13  ;;  %v12323_v54 = vpop.f32.mrb[93].mxu0 }
 0x760   : > { %14217 = vst [vmem:[#allocation84_spill] sm:$0xff] %v12323_v54 }
 0x793   : > { %v7991_v41 = vpop.f32.mrb[66].mxu1 }
 0x794   : > { %v12327_v62 = vsel %vm562_vm3, %v7991_v41, -1e+30  ;;  %v3433_v45 = vpop.f32.mrb[67].mxu1 }
 0x795   : > { %v12331_v22 = vsel %vm562_vm3, %v3433_v45, -1e+30  ;;  %3813 = vmax.xlane.f32.xlu0 %v12327_v62 }
 0x796   : > { %3811 = vmax.xlane.f32.xlu1 %v12331_v22 }
 0x797   : > { %v12335_v59 = vpop.f32.mrb[94].mxu0  ;;  %v7994_v36 = vpop.f32.mrb[68].mxu1 }
 0x798   : > { %14218 = vst [vmem:[#allocation83_spill] sm:$0xff] %v12335_v59  ;;  %v12339_v13 = vsel %vm562_vm3, %v7994_v36, -1e+30  ;;  %v12341_v54 = vpop.f32.mrb[95].mxu0  ;;  %v3443_v41 = vpop.f32.mrb[69].mxu1 }
 0x799   : > { %14219 = vst [vmem:[#allocation86_spill] sm:$0xff] %v12341_v54  ;;  %v12345_v17 = vsel %vm562_vm3, %v3443_v41, -1e+30  ;;  %3817 = vmax.xlane.f32.xlu0 %v12339_v13 }
 0x79a   : > { %3815 = vmax.xlane.f32.xlu1 %v12345_v17 }
 0x79b   : > { %v7997_v45 = vpop.f32.mrb[70].mxu1 }
 0x79c   : > { %v12351_v59 = vsel %vm562_vm3, %v7997_v45, -1e+30  ;;  %v3453_v28 = vpop.f32.mrb[71].mxu1 }
 0x79d   : > { %v12355_v36 = vsel %vm562_vm3, %v3453_v28, -1e+30  ;;  %3821 = vmax.xlane.f32.xlu0 %v12351_v59 }
 0x79e   : > { %3819 = vmax.xlane.f32.xlu1 %v12355_v36 }
 0x79f   : > { %v8000_v41 = vpop.f32.mrb[72].mxu1 }
 0x7a0   : > { %v12361_v54 = vsel %vm562_vm3, %v8000_v41, -1e+30  ;;  %v3463_v46 = vpop.f32.mrb[73].mxu1 }
 0x7a1   : > { %v12365_v42 = vsel %vm562_vm3, %v3463_v46, -1e+30  ;;  %3825 = vmax.xlane.f32.xlu0 %v12361_v54 }
 0x7a2   : > { %v8044_v45 = vpop.f32.mrb[96].mxu0  ;;  %3823 = vmax.xlane.f32.xlu1 %v12365_v42 }
 0x7a3   : > { %v8003_v28 = vpop.f32.mrb[74].mxu1  ;;  %v3696_v38 = vpop.f32.mrb[97].mxu0 }
 0x7a4   : > { %v12371_v20 = vsel %vm562_vm3, %v8003_v28, -1e+30  ;;  %v3473_v7 = vpop.f32.mrb[75].mxu1 }
 0x7a5   : > { %v12375_v41 = vsel %vm562_vm3, %v3473_v7, -1e+30  ;;  %3829 = vmax.xlane.f32.xlu0 %v12371_v20 }
 0x7a6   : > { %3827 = vmax.xlane.f32.xlu1 %v12375_v41 }
 0x7a7   : > { %v8006_v46 = vpop.f32.mrb[76].mxu1 }
 0x7a8   : > { %v12381_v19 = vsel %vm562_vm3, %v8006_v46, -1e+30  ;;  %v3483_v50 = vpop.f32.mrb[77].mxu1  ;;  %v12401_v46 = vsel %vm562_vm3, %v8044_v45, -1e+30 }
 0x7a9   : > { %v12385_v49 = vsel %vm562_vm3, %v3483_v50, -1e+30  ;;  %3833 = vmax.xlane.f32.xlu0 %v12381_v19 }
 0x7aa   : > { %3831 = vmax.xlane.f32.xlu1 %v12385_v49 }
 0x7ab   : > { %v8009_v7 = vpop.f32.mrb[78].mxu1 }
 0x7ac   : > { %v12391_v28 = vsel %vm562_vm3, %v8009_v7, -1e+30  ;;  %v3493_v52 = vpop.f32.mrb[79].mxu1  ;;  %v12411_v7 = vsel %vm562_vm3, %v3696_v38, -1e+30 }
 0x7ad   : > { %v12395_v8 = vsel %vm562_vm3, %v3493_v52, -1e+30  ;;  %3837 = vmax.xlane.f32.xlu0 %v12391_v28 }
 0x7ae   : > { %3835 = vmax.xlane.f32.xlu1 %v12395_v8 }
 0x7af   : > { %v8047_v50 = vpop.f32.mrb[98].mxu0 }
 0x7b0   : > { %v3706_v32 = vpop.f32.mrb[99].mxu0  ;;  %v12421_v45 = vsel %vm562_vm3, %v8047_v50, -1e+30 }
 0x7b1   : > { %v12405_v10 = vsel %vm562_vm3, %v3706_v32, -1e+30  ;;  %3841 = vmax.xlane.f32.xlu0 %v12401_v46 }
 0x7b2   : > { %3843 = vmax.xlane.f32.xlu1 %v12405_v10 }
 0x7b3   : > { %v8050_v52 = vpop.f32.mrb[100].mxu0 }
 0x7b4   : > { %v3716_v37 = vpop.f32.mrb[101].mxu0  ;;  %v12431_v29 = vsel %vm562_vm3, %v8050_v52, -1e+30 }
 0x7b5   : > { %v12415_v11 = vsel %vm562_vm3, %v3716_v37, -1e+30  ;;  %3839 = vmax.xlane.f32.xlu0 %v12411_v7 }
 0x7b6   : > { %3847 = vmax.xlane.f32.xlu1 %v12415_v11 }
 0x7b7   : > { %v8053_v32 = vpop.f32.mrb[102].mxu0 }
 0x7b8   : > { %v12425_v47 = vsel %vm562_vm3, %v8053_v32, -1e+30  ;;  %v3726_v38 = vpop.f32.mrb[103].mxu0 }
 0x7b9   : > { %3845 = vmax.xlane.f32.xlu0 %v12421_v45  ;;  %v12435_v44 = vsel %vm562_vm3, %v3726_v38, -1e+30 }
 0x7ba   : > { %3853 = vmax.xlane.f32.xlu1 %v12425_v47 }
 0x7bb   : > { %v8056_v37 = vpop.f32.mrb[104].mxu0 }
 0x7bc   : > { %v3736_v61 = vpop.f32.mrb[105].mxu0  ;;  %v12441_v32 = vsel %vm562_vm3, %v8056_v37, -1e+30 }
 0x7bd   : > { %3849 = vmax.xlane.f32.xlu0 %v12431_v29  ;;  %v12445_v30 = vsel %vm562_vm3, %v3736_v61, -1e+30 }
 0x7be   : > { %3851 = vmax.xlane.f32.xlu1 %v12435_v44 }
 0x7bf   : > { %v8059_v50 = vpop.f32.mrb[106].mxu0 }
 0x7c0   : > { %v3746_v6 = vpop.f32.mrb[107].mxu0  ;;  %v12455_v21 = vsel %vm562_vm3, %v8059_v50, -1e+30 }
 0x7c1   : > { %3857 = vmax.xlane.f32.xlu0 %v12441_v32  ;;  %14221 = vst [vmem:[#allocation88_spill] sm:$0xff] %v12455_v21  ;;  %v12461_v35 = vsel %vm562_vm3, %v3746_v6, -1e+30 }
 0x7c2   : > { %3855 = vmax.xlane.f32.xlu1 %v12445_v30  ;;  %14222 = vst [vmem:[#allocation87_spill] sm:$0xff] %v12461_v35 }
 0x7c3   : > { %v8062_v52 = vpop.f32.mrb[108].mxu0 }
 0x7c4   : > { %v12451_v38 = vsel %vm562_vm3, %v8062_v52, -1e+30  ;;  %v3756_v4 = vpop.f32.mrb[109].mxu0 }
 0x7c5   : > { %14220 = vst [vmem:[#allocation85_spill] sm:$0xff] %v12451_v38  ;;  %3865 = vmax.xlane.f32.xlu0 %v12451_v38  ;;  %v12471_v50 = vsel %vm562_vm3, %v3756_v4, -1e+30 }
 0x7c6   : > { %3861 = vmax.xlane.f32.xlu1 %v12455_v21  ;;  %14224 = vst [vmem:[#allocation89_spill] sm:$0xff] %v12471_v50 }
 0x7c7   : > { %v8065_v61 = vpop.f32.mrb[110].mxu0 }
 0x7c8   : > { %v3766_v37 = vpop.f32.mrb[111].mxu0  ;;  %v12476_v52 = vsel %vm562_vm3, %v8065_v61, -1e+30 }
 0x7c9   : > { %v12465_v43 = vsel %vm562_vm3, %v3766_v37, -1e+30  ;;  %14225 = vst [vmem:[#allocation92_spill] sm:$0xff] %v12476_v52 }
 0x7ca   : > { %14223 = vst [vmem:[#allocation90_spill] sm:$0xff] %v12465_v43  ;;  %3867 = vmax.xlane.f32.xlu0 %v12465_v43  ;;  %3859 = vmax.xlane.f32.xlu1 %v12461_v35 }
 0x7ce   : > { %3863 = vmax.xlane.f32.xlu1 %v12471_v50 }
 0x7d2   : > { %3869 = vmax.xlane.f32.xlu1 %v12476_v52 }
 0x7e0   : > { %9638 = vrot.lane.b32.xlu0 %v14175_v1, %s10396_s5 }
 0x7e3   : > { %9643 = vrot.lane.b32.xlu1 %v14099_v33, %s10395_s30 }
 0x7e4   : > { %9648 = vrot.lane.b32.xlu0 %v14103_v16, %s10395_s30 }
 0x7e7   : > { %9653 = vrot.lane.b32.xlu1 %v14182_v24, %s10396_s5 }
 0x7e8   : > { %v3810_v4 = vpop.xlane.xlu1 %3809 }
 0x7e9   : > { %v3872_v6 = vsub.f32 %v12309_v55, %v3810_v4  ;;  %v3808_v37 = vpop.xlane.xlu0 %3807 }
 0x7ea   : > { %v3871_v2 = vsub.f32 %v12315_v23, %v3808_v37 }
 0x7eb   : > { %v3905_v61 = vmul.f32 1.442695, %v3872_v6 }
 0x7ec   : > { %v3903_v26 = vmul.f32 1.442695, %v3871_v2 }
 0x7ed   : > { %10068 = vpow2.f32 %v3905_v61 }
 0x7ee   : > { %10070 = vpow2.f32 %v3903_v26 }
 0x7f7   : > { %v12489_v1 = vpop.eup %10068 }
 0x7f8   : > { %v12492_v14 = vpop.eup %10070 }
 0x80b   : > { %3969 = vadd.xlane.f32.xlu1 %v12489_v1 }
 0x80f   : > { %3967 = vadd.xlane.f32.xlu1 %v12492_v14 }
 0x822   : > { %v3814_v48 = vpop.xlane.xlu0 %3813 }
 0x823   : > { %v3874_v24 = vsub.f32 %v12327_v62, %v3814_v48  ;;  %v3812_v0 = vpop.xlane.xlu1 %3811 }
 0x824   : > { %v3873_v55 = vsub.f32 %v12331_v22, %v3812_v0 }
 0x825   : > { %v3909_v4 = vmul.f32 1.442695, %v3874_v24 }
 0x826   : > { %v3818_v6 = vpop.xlane.xlu0 %3817  ;;  %v3907_v23 = vmul.f32 1.442695, %v3873_v55 }
 0x827   : > { %10072 = vpow2.f32 %v3909_v4  ;;  %v3876_v26 = vsub.f32 %v12339_v13, %v3818_v6  ;;  %v3816_v2 = vpop.xlane.xlu1 %3815 }
 0x828   : > { %v3875_v37 = vsub.f32 %v12345_v17, %v3816_v2  ;;  %10074 = vpow2.f32 %v3907_v23 }
 0x829   : > { %v3913_v3 = vmul.f32 1.442695, %v3876_v26 }
 0x82a   : > { %v3911_v61 = vmul.f32 1.442695, %v3875_v37  ;;  %v3822_v39 = vpop.xlane.xlu0 %3821 }
 0x82b   : > { %v3820_v5 = vpop.xlane.xlu1 %3819  ;;  %v3878_v26 = vsub.f32 %v12351_v59, %v3822_v39 }
 0x82c   : > { %10076 = vpow2.f32 %v3911_v61  ;;  %v3877_v48 = vsub.f32 %v12355_v36, %v3820_v5 }
 0x82d   : > { %10078 = vpow2.f32 %v3913_v3 }
 0x82e   : > { %v3915_v62 = vmul.f32 1.442695, %v3877_v48  ;;  %v3826_v16 = vpop.xlane.xlu0 %3825 }
 0x82f   : > { %v3824_v0 = vpop.xlane.xlu1 %3823  ;;  %v3880_v39 = vsub.f32 %v12361_v54, %v3826_v16 }
 0x830   : > { %10080 = vpow2.f32 %v3915_v62  ;;  %v3917_v62 = vmul.f32 1.442695, %v3878_v26  ;;  %v3879_v52 = vsub.f32 %v12365_v42, %v3824_v0 }
 0x831   : > { %v12500_v24 = vpop.eup %10072  ;;  %v3921_v26 = vmul.f32 1.442695, %v3880_v39 }
 0x832   : > { %v12502_v22 = vpop.xlane.xlu0 %3829  ;;  %3973 = vadd.xlane.f32.xlu1 %v12500_v24  ;;  %v12507_v13 = vpop.eup %10074  ;;  %v3919_v59 = vmul.f32 1.442695, %v3879_v52 }
 0x833   : > { %v12505_v17 = vpop.xlane.xlu1 %3827 }
 0x836   : > { %v12509_v55 = vpop.eup %10076  ;;  %v12511_v4 = vpop.xlane.xlu0 %3833  ;;  %3971 = vadd.xlane.f32.xlu1 %v12507_v13 }
 0x837   : > { %v12514_v5 = vpop.xlane.xlu1 %3831  ;;  %3975 = vadd.xlane.f32.xlu0 %v12509_v55  ;;  %v12517_v3 = vpop.eup %10078 }
 0x83a   : > { %v12519_v36 = vpop.eup %10080  ;;  %v12521_v6 = vpop.xlane.xlu0 %3837  ;;  %3977 = vadd.xlane.f32.xlu1 %v12517_v3 }
 0x83b   : > { %3979 = vadd.xlane.f32.xlu0 %v12519_v36  ;;  %v12525_v23 = vpop.xlane.xlu1 %3835 }
 0x83e   : > { %v3842_v2 = vpop.xlane.xlu0 %3841 }
 0x83f   : > { %v3888_v37 = vsub.f32 %v12401_v46, %v3842_v2  ;;  %v12529_v61 = vpop.xlane.xlu1 %3843 }
 0x841   : > { %v3937_v48 = vmul.f32 1.442695, %v3888_v37 }
 0x842   : > { %v3840_v40 = vpop.xlane.xlu0 %3839 }
 0x843   : > { %10082 = vpow2.f32 %v3937_v48  ;;  %v3887_v18 = vsub.f32 %v12411_v7, %v3840_v40  ;;  %v12533_v12 = vpop.xlane.xlu1 %3847 }
 0x844   : > { %10084 = vpow2.f32 %v3917_v62 }
 0x845   : > { %v3935_v43 = vmul.f32 1.442695, %v3887_v18 }
 0x846   : > { %v12535_v33 = vpop.xlane.xlu0 %3845 }
 0x847   : > { %10086 = vpow2.f32 %v3935_v43  ;;  %v12538_v46 = vpop.xlane.xlu1 %3853 }
 0x848   : > { %10088 = vpow2.f32 %v3919_v59 }
 0x849   : > { %10090 = vpow2.f32 %v3921_v26 }
 0x84a   : > { %v12540_v2 = vpop.xlane.xlu0 %3849 }
 0x84b   : > { %v12542_v42 = vpop.xlane.xlu1 %3851 }
 0x84d   : > { %v12544_v0 = vpop.eup %10082 }
 0x84e   : > { %v12546_v40 = vpop.xlane.xlu0 %3857  ;;  %4001 = vadd.xlane.f32.xlu1 %v12544_v0  ;;  %v12551_v16 = vpop.eup %10084 }
 0x84f   : > { %v12549_v18 = vpop.xlane.xlu1 %3855 }
 0x851   : > { %v12553_v43 = vpop.eup %10086 }
 0x852   : > { %3999 = vadd.xlane.f32.xlu0 %v12553_v43  ;;  %v12556_v54 = vpop.xlane.xlu0 %3865  ;;  %3981 = vadd.xlane.f32.xlu1 %v12551_v16  ;;  %v12561_v52 = vpop.eup %10088 }
 0x853   : > { %14226 = vst [vmem:[#allocation91_spill] sm:$0xff] %v12556_v54  ;;  %v12559_v7 = vpop.xlane.xlu1 %3861  ;;  %v12568_v62 = vpop.eup %10090 }
 0x854   : > { %14227 = vst [vmem:[#allocation23_spill] sm:$0xff] %v12559_v7 }
 0x856   : > { %3983 = vadd.xlane.f32.xlu1 %v12561_v52 }
 0x857   : > { %v12564_v37 = vpop.xlane.xlu0 %3867  ;;  %v12566_v48 = vpop.xlane.xlu1 %3859 }
 0x858   : > { %14228 = vst [vmem:[#allocation38_spill] sm:$0xff] %v12564_v37 }
 0x85a   : > { %3985 = vadd.xlane.f32.xlu1 %v12568_v62 }
 0x85b   : > { %v9639_v39 = vpop.permute.xlu0 %9638  ;;  %v12571_v59 = vpop.xlane.xlu1 %3863 }
 0x85f   : > { %v12573_v26 = vpop.xlane.xlu1 %3869  ;;  %v9649_v38 = vpop.permute.xlu0 %9648 }
 0x860   : > { %v9651_v21 = vunpack.i.h.bf16 %v9649_v38  ;;  %v9650_v7 = vunpack.i.l.bf16 %v9649_v38  ;;  %v3881_v38 = vsub.f32 %v12375_v41, %v12505_v17 }
 0x862   : > { %v8934_v37 = vpack.c.bf16 %v9651_v21, %v9650_v7 }
 0x863   : > { %v9644_v54 = vpop.permute.xlu1 %9643 }
 0x864   : > { %v9646_v60 = vunpack.i.h.bf16 %v9644_v54  ;;  %v9645_v50 = vunpack.i.l.bf16 %v9644_v54  ;;  %v3883_v54 = vsub.f32 %v12385_v49, %v12514_v5  ;;  %v9641_v5 = vunpack.i.h.bf16 %v9639_v39 }
 0x866   : > { %v8930_v35 = vpack.c.bf16 %v9646_v60, %v9645_v50  ;;  %v3882_v60 = vsub.f32 %v12371_v20, %v12502_v22  ;;  %v3923_v50 = vmul.f32 1.442695, %v3881_v38  ;;  %v3927_v7 = vmul.f32 1.442695, %v3883_v54 }
 0x867   : > { %v9640_v38 = vunpack.i.l.bf16 %v9639_v39 }
 0x868   : > { %9658 = vrot.lane.b32.xlu0 %v14104_v56, %s10395_s30  ;;  %8931 = vmatprep.subr.bf16.mxu0 %v8930_v35  ;;  %v3925_v21 = vmul.f32 1.442695, %v3882_v60  ;;  %10092 = vpow2.f32 %v3923_v50 }
 0x869   : > { %8933 = vmatpush3.bf16.msra.mxu0 %v8930_v35  ;;  %v3884_v35 = vsub.f32 %v12381_v19, %v12511_v4  ;;  %v9654_v19 = vpop.permute.xlu1 %9653  ;;  %v8952_v54 = vpack.c.bf16 %v9641_v5, %v9640_v38 }
 0x86a   : > { %8935 = vmatprep.subr.bf16.mxu0 %v8934_v37  ;;  %10094 = vpow2.f32 %v3925_v21  ;;  %v9656_v21 = vunpack.i.h.bf16 %v9654_v19 }
 0x86b   : > { %9668 = vrot.lane.b32.xlu1 %v14177_v58, %s10396_s5  ;;  %v3929_v58 = vmul.f32 1.442695, %v3884_v35  ;;  %10096 = vpow2.f32 %v3927_v7  ;;  %v9655_v35 = vunpack.i.l.bf16 %v9654_v19  ;;  %v3885_v7 = vsub.f32 %v12395_v8, %v12525_v23 }
 0x86c   : > { %9663 = vrot.lane.b32.xlu0 %v14105_v53, %s10395_s30 }
 0x86d   : > { %8937 = vmatpush3.bf16.msra.mxu0 %v8934_v37  ;;  %10098 = vpow2.f32 %v3929_v58  ;;  %v8958_v39 = vpack.c.bf16 %v9656_v21, %v9655_v35 }
 0x872   : > { %v12589_v37 = vpop.eup %10092 }
 0x874   : > { %v12592_v41 = vpop.eup %10094 }
 0x875   : > { %v12594_v20 = vpop.eup %10096 }
 0x877   : > { %v12598_v49 = vpop.eup %10098 }
 0x88b   : > { %3987 = vadd.xlane.f32.xlu0 %v12589_v37 }
 0x88f   : > { %3991 = vadd.xlane.f32.xlu0 %v12594_v20  ;;  %3989 = vadd.xlane.f32.xlu1 %v12592_v41 }
 0x893   : > { %3993 = vadd.xlane.f32.xlu0 %v12598_v49 }
 0x898   : > { %v3970_v22 = vpop.xlane.xlu1 %3969 }
 0x899   : > { %10100 = vrcp.f32 %v3970_v22 }
 0x89c   : > { %v3968_v58 = vpop.xlane.xlu1 %3967 }
 0x89d   : > { %10102 = vrcp.f32 %v3968_v58 }
 0x8a0   : > { %9678 = vrot.lane.b32.xlu1 %v14185_v63, %s10396_s5 }
 0x8a3   : > { %v10101_v17 = vpop.eup %10100 }
 0x8a4   : > { %v4064_v50 = vmul.f32 %v10101_v17, %v12489_v1 }
 0x8a7   : > { %v10103_v4 = vpop.eup %10102 }
 0x8a8   : > { %v4063_v60 = vmul.f32 %v10103_v4, %v12492_v14  ;;  %v3886_v14 = vsub.f32 %v12391_v28, %v12521_v6 }
 0x8a9   : > { %9673 = vrot.lane.b32.xlu0 %v14183_v27, %s10396_s5 }
 0x8aa   : > { %8098 = vmatprep.mubr.f32.mxu1 %v4063_v60  ;;  %v3933_v1 = vmul.f32 1.442695, %v3886_v14 }
 0x8ab   : > { %8099 = vmatmul.mubr.f32.vlgmr.msra.gmra.mrb[80].mxu1 %v4064_v50 }
 0x8ac   : > { %8951 = vmatpush3.bf16.xpose.msk.msra.mxu1 %vm10811_vm2, %v12290_v31  ;;  %10104 = vpow2.f32 %v3933_v1  ;;  %v3931_v31 = vmul.f32 1.442695, %v3885_v7 }
 0x8ad   : > { %8954 = vmatprep.subr.msk.bf16.mxu1 %vm10811_vm2, %v8952_v54 }
 0x8ae   : > { %10106 = vpow2.f32 %v3931_v31 }
 0x8b4   : > { %8957 = vmatpush3.bf16.xpose.msk.msra.mxu1 %vm10811_vm2, %v8952_v54 }
 0x8b5   : > { %8960 = vmatprep.subr.msk.bf16.mxu1 %vm10811_vm2, %v8958_v39 }
 0x8b6   : > { %v12622_v22 = vpop.eup %10104 }
 0x8b8   : > { %v12625_v8 = vpop.eup %10106 }
 0x8bc   : > { %8963 = vmatpush3.bf16.xpose.msk.msra.mxu1 %vm10811_vm2, %v8958_v39 }
 0x8bf   : > { %v3974_v19 = vpop.xlane.xlu1 %3973 }
 0x8c0   : > { %10108 = vrcp.f32 %v3974_v19 }
 0x8c3   : > { %v3972_v28 = vpop.xlane.xlu1 %3971 }
 0x8c4   : > { %10110 = vrcp.f32 %v3972_v28  ;;  %v3976_v6 = vpop.xlane.xlu0 %3975  ;;  %3997 = vadd.xlane.f32.xlu1 %v12622_v22 }
 0x8c5   : > { %10112 = vrcp.f32 %v3976_v6 }
 0x8c7   : > { %v3978_v23 = vpop.xlane.xlu1 %3977 }
 0x8c8   : > { %10114 = vrcp.f32 %v3978_v23  ;;  %v3980_v58 = vpop.xlane.xlu0 %3979  ;;  %3995 = vadd.xlane.f32.xlu0 %v12625_v8 }
 0x8c9   : > { %10116 = vrcp.f32 %v3980_v58 }
 0x8ca   : > { %v10109_v17 = vpop.eup %10108 }
 0x8cb   : > { %v4066_v60 = vmul.f32 %v10109_v17, %v12500_v24  ;;  %v3889_v17 = vsub.f32 %v12405_v10, %v12529_v61  ;;  %v3891_v10 = vsub.f32 %v12415_v11, %v12533_v12  ;;  %v3892_v12 = vsub.f32 %v12431_v29, %v12540_v2 }
 0x8cc   : > { %v3894_v2 = vsub.f32 %v12425_v47, %v12538_v46 }
 0x8ce   : > { %v10111_v4 = vpop.eup %10110 }
 0x8cf   : > { %v10113_v5 = vpop.eup %10112  ;;  %v4065_v38 = vmul.f32 %v10111_v4, %v12507_v13 }
 0x8d0   : > { %v4067_v50 = vmul.f32 %v10113_v5, %v12509_v55 }
 0x8d1   : > { %8101 = vmatprep.mubr.f32.mxu1 %v4065_v38 }
 0x8d2   : > { %v10115_v54 = vpop.eup %10114  ;;  %8102 = vmatmul.mubr.f32.gmra.mrb[82].mxu1 %v4066_v60 }
 0x8d3   : > { %v10117_v21 = vpop.eup %10116  ;;  %8104 = vmatprep.mubr.f32.mxu1 %v4067_v50  ;;  %v4068_v35 = vmul.f32 %v10115_v54, %v12517_v3 }
 0x8d4   : > { %v4069_v14 = vmul.f32 %v10117_v21, %v12519_v36  ;;  %v3890_v36 = vsub.f32 %v12421_v45, %v12535_v33 }
 0x8d5   : > { %9688 = vrot.lane.b32.xlu1 %v14186_v9, %s10396_s5 }
 0x8d6   : > { %8105 = vmatmul.mubr.f32.gmra.mrb[84].mxu1 %v4068_v35  ;;  %v3941_v5 = vmul.f32 1.442695, %v3890_v36  ;;  %v3939_v35 = vmul.f32 1.442695, %v3889_v17 }
 0x8d7   : > { %8107 = vmatprep.mubr.f32.mxu1 %v4069_v14 }
 0x8db   : > { %v4002_v39 = vpop.xlane.xlu1 %4001 }
 0x8dc   : > { %10118 = vrcp.f32 %v4002_v39 }
 0x8de   : > { %9683 = vrot.lane.b32.xlu0 %v14179_v34, %s10396_s5 }
 0x8df   : > { %v4000_v24 = vpop.xlane.xlu0 %3999  ;;  %v3982_v13 = vpop.xlane.xlu1 %3981 }
 0x8e0   : > { %10120 = vrcp.f32 %v4000_v24 }
 0x8e1   : > { %10122 = vrcp.f32 %v3982_v13 }
 0x8e3   : > { %v9659_v55 = vpop.permute.xlu0 %9658  ;;  %v3984_v1 = vpop.xlane.xlu1 %3983 }
 0x8e4   : > { %v9661_v7 = vunpack.i.h.bf16 %v9659_v55  ;;  %v9660_v3 = vunpack.i.l.bf16 %v9659_v55  ;;  %10124 = vrcp.f32 %v3984_v1 }
 0x8e6   : > { %v8938_v31 = vpack.c.bf16 %v9661_v7, %v9660_v3  ;;  %v10119_v58 = vpop.eup %10118  ;;  %v3949_v3 = vmul.f32 1.442695, %v3894_v2 }
 0x8e7   : > { %v9664_v19 = vpop.permute.xlu0 %9663  ;;  %v3986_v28 = vpop.xlane.xlu1 %3985  ;;  %v4080_v39 = vmul.f32 %v10119_v58, %v12544_v0  ;;  %v3945_v0 = vmul.f32 1.442695, %v3892_v12 }
 0x8e8   : > { %v9666_v6 = vunpack.i.h.bf16 %v9664_v19  ;;  %v9665_v23 = vunpack.i.l.bf16 %v9664_v19  ;;  %10126 = vrcp.f32 %v3986_v28  ;;  %8939 = vmatprep.subr.bf16.mxu0 %v8938_v31 }
 0x8e9   : > { %8941 = vmatpush3.bf16.msra.mxu0 %v8938_v31  ;;  %10128 = vpow2.f32 %v3941_v5  ;;  %v3893_v5 = vsub.f32 %v12435_v44, %v12542_v42 }
 0x8ea   : > { %v10121_v4 = vpop.eup %10120  ;;  %v8942_v38 = vpack.c.bf16 %v9666_v6, %v9665_v23  ;;  %10130 = vpow2.f32 %v3939_v35 }
 0x8eb   : > { %v10123_v60 = vpop.eup %10122  ;;  %v9669_v50 = vpop.permute.xlu1 %9668  ;;  %v4079_v54 = vmul.f32 %v10121_v4, %v12553_v43  ;;  %v3943_v43 = vmul.f32 1.442695, %v3891_v10  ;;  %v14230_v10 = vld [vmem:[#allocation89_spill] sm:$0xff] }
 0x8ec   : > { %v9671_v33 = vunpack.i.h.bf16 %v9669_v50  ;;  %v9670_v45 = vunpack.i.l.bf16 %v9669_v50  ;;  %8943 = vmatprep.subr.bf16.mxu0 %v8942_v38  ;;  %v4070_v21 = vmul.f32 %v10123_v60, %v12551_v16 }
 0x8ed   : > { %8945 = vmatpush3.bf16.msra.mxu0 %v8942_v38  ;;  %8154 = vmatprep.mubr.f32.mxu0 %v4079_v54  ;;  %10132 = vpow2.f32 %v3943_v43 }
 0x8ee   : > { %v10125_v14 = vpop.eup %10124  ;;  %v8964_v61 = vpack.c.bf16 %v9671_v33, %v9670_v45  ;;  %8108 = vmatmul.mubr.f32.gmra.mrb[86].mxu1 %v4070_v21  ;;  %10134 = vpow2.f32 %v3945_v0  ;;  %v3947_v33 = vmul.f32 1.442695, %v3893_v5  ;;  %v3895_v45 = vsub.f32 %v12445_v30, %v12549_v18  ;;  %v14231_v0 = vld [vmem:[#allocation41_spill] sm:$0xff] }
 0x8ef   : > { %v4071_v24 = vmul.f32 %v10125_v14, %v12561_v52 }
 0x8f0   : > { %8155 = vmatmul.mubr.f32.vlgmr.msra.gmra.mrb[112].mxu0 %v4080_v39  ;;  %8966 = vmatprep.subr.msk.bf16.mxu1 %vm10811_vm2, %v8964_v61 }
 0x8f1   : > { %8110 = vmatprep.mubr.f32.mxu1 %v4071_v24  ;;  %8969 = vmatpush3.bf16.xpose.msk.msra.mxu1 %vm10811_vm2, %v8964_v61  ;;  %v3899_v61 = vsub.f32 %v14230_v10, %v12571_v59 }
 0x8f2   : > { %v10127_v16 = vpop.eup %10126 }
 0x8f3   : > { %v4072_v11 = vmul.f32 %v10127_v16, %v12568_v62  ;;  %v12654_v52 = vpop.eup %10128  ;;  %v3959_v12 = vmul.f32 1.442695, %v3899_v61 }
 0x8f4   : > { %v12657_v13 = vpop.eup %10130 }
 0x8f5   : > { %8111 = vmatmul.mubr.f32.gmra.mrb[88].mxu1 %v4072_v11 }
 0x8f7   : > { %v12660_v55 = vpop.eup %10132 }
 0x8f8   : > { %v12663_v1 = vpop.eup %10134 }
 0x8f9   : > { %4005 = vadd.xlane.f32.xlu1 %v12654_v52 }
 0x8fd   : > { %4003 = vadd.xlane.f32.xlu0 %v12657_v13 }
 0x901   : > { %4007 = vadd.xlane.f32.xlu0 %v12660_v55 }
 0x905   : > { %4009 = vadd.xlane.f32.xlu0 %v12663_v1 }
 0x90a   : > { %9698 = vrot.lane.b32.xlu1 %v14181_v57, %s10396_s5 }
 0x918   : > { %v3988_v29 = vpop.xlane.xlu0 %3987 }
 0x919   : > { %10136 = vrcp.f32 %v3988_v29 }
 0x91b   : > { %9693 = vrot.lane.b32.xlu0 %v14184_v15, %s10396_s5 }
 0x91c   : > { %v3992_v62 = vpop.xlane.xlu0 %3991  ;;  %v3990_v7 = vpop.xlane.xlu1 %3989 }
 0x91d   : > { %10138 = vrcp.f32 %v3992_v62 }
 0x91e   : > { %10140 = vrcp.f32 %v3990_v7 }
 0x920   : > { %v3994_v36 = vpop.xlane.xlu0 %3993  ;;  %v9679_v31 = vpop.permute.xlu1 %9678 }
 0x921   : > { %10142 = vrcp.f32 %v3994_v36  ;;  %v9681_v19 = vunpack.i.h.bf16 %v9679_v31  ;;  %v9680_v28 = vunpack.i.l.bf16 %v9679_v31 }
 0x922   : > { %10144 = vpow2.f32 %v3949_v3 }
 0x923   : > { %v10137_v6 = vpop.eup %10136  ;;  %v8994_v23 = vpack.c.bf16 %v9681_v19, %v9680_v28  ;;  %10146 = vpow2.f32 %v3947_v33  ;;  %v14232_v19 = vld [vmem:[#allocation23_spill] sm:$0xff]  ;;  %v14233_v28 = vld [vmem:[#allocation88_spill] sm:$0xff] }
 0x924   : > { %v9674_v58 = vpop.permute.xlu0 %9673  ;;  %v4073_v17 = vmul.f32 %v10137_v6, %v12589_v37  ;;  %v3898_v6 = vsub.f32 %v14233_v28, %v14232_v19 }
 0x925   : > { %v9676_v47 = vunpack.i.h.bf16 %v9674_v58  ;;  %v9675_v46 = vunpack.i.l.bf16 %v9674_v58  ;;  %8996 = vmatprep.subr.msk.bf16.mxu0 %vm10811_vm2, %v8994_v23  ;;  %v14234_v58 = vld [vmem:[#allocation91_spill] sm:$0xff] }
 0x926   : > { %8113 = vmatprep.mubr.f32.mxu1 %v4073_v17  ;;  %8999 = vmatpush3.bf16.xpose.msk.msra.mxu0 %vm10811_vm2, %v8994_v23  ;;  %v14235_v17 = vld [vmem:[#allocation85_spill] sm:$0xff] }
 0x927   : > { %v10139_v4 = vpop.eup %10138  ;;  %v8970_v38 = vpack.c.bf16 %v9676_v47, %v9675_v46  ;;  %v3900_v47 = vsub.f32 %v14235_v17, %v14234_v58  ;;  %v3957_v46 = vmul.f32 1.442695, %v3898_v6  ;;  %v14248_v6 = vld [vmem:[#allocation10_spill] sm:$0xff]  ;;  %v14249_v58 = vld [vmem:[#allocation47_spill] sm:$0xff]  ;;  %v14251_v17 = vld [vmem:[#allocation12_spill] sm:$0xff] }
 0x928   : > { %v10141_v60 = vpop.eup %10140  ;;  %v4075_v50 = vmul.f32 %v10139_v4, %v12594_v20  ;;  %v3951_v20 = vmul.f32 1.442695, %v3895_v45 }
 0x929   : > { %8972 = vmatprep.subr.msk.bf16.mxu1 %vm10811_vm2, %v8970_v38  ;;  %v4074_v37 = vmul.f32 %v10141_v60, %v12592_v41  ;;  %v3896_v41 = vsub.f32 %v12441_v32, %v12546_v40  ;;  %v14229_v32 = vld [vmem:[#allocation87_spill] sm:$0xff] }
 0x92a   : > { %8975 = vmatpush3.bf16.xpose.msk.msra.mxu1 %vm10811_vm2, %v8970_v38  ;;  %10148 = vpow2.f32 %v3951_v20  ;;  %v3897_v40 = vsub.f32 %v14229_v32, %v12566_v48 }
 0x92b   : > { %v10143_v54 = vpop.eup %10142  ;;  %8114 = vmatmul.mubr.f32.gmra.mrb[90].mxu1 %v4074_v37  ;;  %v3953_v21 = vmul.f32 1.442695, %v3896_v41  ;;  %v14239_v37 = vld [vmem:[#allocation38_spill] sm:$0xff] }
 0x92c   : > { %8116 = vmatprep.mubr.f32.mxu1 %v4075_v50  ;;  %v4076_v44 = vmul.f32 %v10143_v54, %v12598_v49  ;;  %v12688_v42 = vpop.eup %10144  ;;  %v3955_v14 = vmul.f32 1.442695, %v3897_v40  ;;  %v14240_v54 = vld [vmem:[#allocation90_spill] sm:$0xff] }
 0x92d   : > { %10150 = vpow2.f32 %v3953_v21  ;;  %v12693_v35 = vpop.eup %10146  ;;  %v3901_v33 = vsub.f32 %v14240_v54, %v14239_v37 }
 0x92e   : > { %4013 = vadd.xlane.f32.xlu1 %v12688_v42 }
 0x92f   : > { %8117 = vmatmul.mubr.f32.gmra.mrb[92].mxu1 %v4076_v44  ;;  %v3963_v21 = vmul.f32 1.442695, %v3901_v33  ;;  %v14254_v33 = vld [vmem:[#allocation19_spill] sm:$0xff] }
 0x934   : > { %v12696_v30 = vpop.eup %10148 }
 0x937   : > { %v12701_v18 = vpop.eup %10150 }
 0x93a   : > { %4011 = vadd.xlane.f32.xlu0 %v12693_v35 }
 0x93e   : > { %4015 = vadd.xlane.f32.xlu0 %v12696_v30 }
 0x93f   : > { %9703 = vrot.lane.b32.xlu1 %v14100_v51, %s10396_s5 }
 0x942   : > { %4017 = vadd.xlane.f32.xlu0 %v12701_v18 }
 0x951   : > { %v3998_v49 = vpop.xlane.xlu1 %3997 }
 0x952   : > { %10152 = vrcp.f32 %v3998_v49  ;;  %v14241_v49 = vld [vmem:[#allocation7_spill] sm:$0xff] }
 0x955   : > { %v3996_v39 = vpop.xlane.xlu0 %3995  ;;  %v9689_v24 = vpop.permute.xlu1 %9688 }
 0x956   : > { %10154 = vrcp.f32 %v3996_v39  ;;  %v9691_v16 = vunpack.i.h.bf16 %v9689_v24  ;;  %v9690_v43 = vunpack.i.l.bf16 %v9689_v24  ;;  %v14242_v39 = vld [vmem:[#allocation6_spill] sm:$0xff] }
 0x957   : > { %10156 = vpow2.f32 %v3955_v14 }
 0x958   : > { %v9000_v11 = vpack.c.bf16 %v9691_v16, %v9690_v43  ;;  %9708 = vrot.lane.b32.xlu0 %v14231_v0, %s10396_s5  ;;  %10158 = vpow2.f32 %v3959_v12 }
 0x959   : > { %v9684_v29 = vpop.permute.xlu0 %9683  ;;  %10160 = vpow2.f32 %v3957_v46  ;;  %v14252_v46 = vld [vmem:[#allocation15_spill] sm:$0xff] }
 0x95a   : > { %v9686_v2 = vunpack.i.h.bf16 %v9684_v29  ;;  %v9685_v48 = vunpack.i.l.bf16 %v9684_v29  ;;  %9002 = vmatprep.subr.msk.bf16.mxu0 %vm10811_vm2, %v9000_v11 }
 0x95b   : > { %9005 = vmatpush3.bf16.xpose.msk.msra.mxu0 %vm10811_vm2, %v9000_v11 }
 0x95c   : > { %v8976_v59 = vpack.c.bf16 %v9686_v2, %v9685_v48  ;;  %v10153_v62 = vpop.eup %10152 }
 0x95d   : > { %v4078_v31 = vmul.f32 %v10153_v62, %v12622_v22  ;;  %v14236_v22 = vld [vmem:[#allocation44_spill] sm:$0xff] }
 0x95e   : > { %8978 = vmatprep.subr.msk.bf16.mxu1 %vm10811_vm2, %v8976_v59 }
 0x95f   : > { %8981 = vmatpush3.bf16.xpose.msk.msra.mxu1 %vm10811_vm2, %v8976_v59 }
 0x960   : > { %v10155_v7 = vpop.eup %10154 }
 0x961   : > { %v4077_v3 = vmul.f32 %v10155_v7, %v12625_v8  ;;  %v12719_v36 = vpop.eup %10156  ;;  %v3961_v8 = vmul.f32 1.442695, %v3900_v47 }
 0x962   : > { %v12725_v23 = vpop.eup %10158 }
 0x963   : > { %4019 = vadd.xlane.f32.xlu1 %v12719_v36  ;;  %8119 = vmatprep.mubr.f32.mxu1 %v4077_v3  ;;  %10162 = vpow2.f32 %v3961_v8  ;;  %v12730_v4 = vpop.eup %10160 }
 0x964   : > { %8120 = vmatmul.mubr.f32.gmra.mrb[94].mxu1 %v4078_v31 }
 0x967   : > { %4023 = vadd.xlane.f32.xlu1 %v12725_v23 }
 0x96d   : > { %v12735_v5 = vpop.eup %10162 }
 0x977   : > { %4021 = vadd.xlane.f32.xlu0 %v12730_v4 }
 0x978   : > { %9713 = vrot.lane.b32.xlu1 %v14236_v22, %s10396_s5 }
 0x97b   : > { %4025 = vadd.xlane.f32.xlu0 %v12735_v5 }
 0x97e   : > { %v12738_v38 = vpop.f32.mrb[80].mxu1 }
 0x97f   : > { %14237 = vst [vmem:[#allocation20_spill] sm:$0xff] %v12738_v38  ;;  %v12740_v60 = vpop.f32.mrb[81].mxu1 }
 0x980   : > { %14238 = vst [vmem:[#allocation26_spill] sm:$0xff] %v12740_v60 }
 0x986   : > { %v4006_v50 = vpop.xlane.xlu1 %4005 }
 0x987   : > { %10164 = vrcp.f32 %v4006_v50 }
 0x98a   : > { %v4004_v45 = vpop.xlane.xlu0 %4003  ;;  %v9699_v44 = vpop.permute.xlu1 %9698 }
 0x98b   : > { %10166 = vrcp.f32 %v4004_v45  ;;  %v9701_v41 = vunpack.i.h.bf16 %v9699_v44  ;;  %v9700_v20 = vunpack.i.l.bf16 %v9699_v44 }
 0x98d   : > { %v9006_v32 = vpack.c.bf16 %v9701_v41, %v9700_v20 }
 0x98e   : > { %v4008_v40 = vpop.xlane.xlu0 %4007 }
 0x98f   : > { %10168 = vrcp.f32 %v4008_v40  ;;  %9008 = vmatprep.subr.msk.bf16.mxu0 %vm10811_vm2, %v9006_v32 }
 0x990   : > { %9011 = vmatpush3.bf16.xpose.msk.msra.mxu0 %vm10811_vm2, %v9006_v32  ;;  %10170 = vpow2.f32 %v3963_v21  ;;  %v14258_v21 = vld [vmem:[#allocation22_spill] sm:$0xff] }
 0x991   : > { %4642 = vrot.lane.b32.xlu0 %v14241_v49, %s10397_s6  ;;  %v10165_v10 = vpop.eup %10164 }
 0x992   : > { %v4010_v14 = vpop.xlane.xlu0 %4009  ;;  %v4082_v11 = vmul.f32 %v10165_v10, %v12654_v52 }
 0x993   : > { %10172 = vrcp.f32 %v4010_v14  ;;  %v14261_v14 = vld [vmem:[#allocation9_spill] sm:$0xff] }
 0x995   : > { %v10167_v61 = vpop.eup %10166  ;;  %4644 = vrot.lane.b32.xlu0 %v14242_v39, %s10397_s6  ;;  %v14263_v39 = vld [vmem:[#allocation16_spill] sm:$0xff] }
 0x996   : > { %v9694_v24 = vpop.permute.xlu0 %9693  ;;  %v4081_v16 = vmul.f32 %v10167_v61, %v12657_v13  ;;  %v14243_v13 = vld [vmem:[#allocation92_spill] sm:$0xff] }
 0x997   : > { %v9696_v43 = vunpack.i.h.bf16 %v9694_v24  ;;  %v9695_v12 = vunpack.i.l.bf16 %v9694_v24  ;;  %v3902_v7 = vsub.f32 %v14243_v13, %v12573_v26  ;;  %v14250_v26 = vld [vmem:[#allocation13_spill] sm:$0xff]  ;;  %v14262_v61 = vld [vmem:[#allocation24_spill] sm:$0xff] }
 0x998   : > { %8157 = vmatprep.mubr.f32.mxu0 %v4081_v16 }
 0x999   : > { %v10169_v29 = vpop.eup %10168  ;;  %v8982_v2 = vpack.c.bf16 %v9696_v43, %v9695_v12  ;;  %8158 = vmatmul.mubr.f32.gmra.mrb[114].mxu0 %v4082_v11  ;;  %v3965_v3 = vmul.f32 1.442695, %v3902_v7  ;;  %v14264_v43 = vld [vmem:[#allocation27_spill] sm:$0xff] }
 0x99a   : > { %v4083_v48 = vmul.f32 %v10169_v29, %v12660_v55  ;;  %v12755_v59 = vpop.eup %10170 }
 0x99b   : > { %8984 = vmatprep.subr.msk.bf16.mxu1 %vm10811_vm2, %v8982_v2  ;;  %10174 = vpow2.f32 %v3965_v3  ;;  %v14266_v3 = vld [vmem:[#allocation18_spill] sm:$0xff] }
 0x99c   : > { %4027 = vadd.xlane.f32.xlu1 %v12755_v59  ;;  %8160 = vmatprep.mubr.f32.mxu0 %v4083_v48 }
 0x99d   : > { %v10173_v62 = vpop.eup %10172  ;;  %8987 = vmatpush3.bf16.xpose.msk.msra.mxu1 %vm10811_vm2, %v8982_v2 }
 0x99e   : > { %v4084_v52 = vmul.f32 %v10173_v62, %v12663_v1 }
 0x9a0   : > { %8161 = vmatmul.mubr.f32.gmra.mrb[116].mxu0 %v4084_v52  ;;  %v14265_v52 = vld [vmem:[#allocation30_spill] sm:$0xff] }
 0x9a5   : > { %v12765_v55 = vpop.f32.mrb[82].mxu1  ;;  %v12777_v1 = vpop.eup %10174 }
 0x9a6   : > { %14244 = vst [vmem:[#allocation32_spill] sm:$0xff] %v12765_v55  ;;  %v12767_v31 = vpop.f32.mrb[83].mxu1 }
 0x9a7   : > { %14245 = vst [vmem:[#allocation35_spill] sm:$0xff] %v12767_v31 }
 0x9a9   : > { %v12769_v19 = vpop.f32.mrb[84].mxu1 }
 0x9aa   : > { %14246 = vst [vmem:[#allocation87_spill] sm:$0xff] %v12769_v19  ;;  %v12771_v28 = vpop.f32.mrb[85].mxu1 }
 0x9ab   : > { %14247 = vst [vmem:[#allocation89_spill] sm:$0xff] %v12771_v28 }
 0x9ad   : > { %4646 = vrot.lane.b32.xlu1 %v14248_v6, %s10397_s6 }
 0x9b1   : > { %9718 = vrot.lane.b32.xlu1 %v14249_v58, %s10396_s5 }
 0x9b4   : > { %4029 = vadd.xlane.f32.xlu0 %v12777_v1 }
 0x9b5   : > { %4650 = vrot.lane.b32.xlu1 %v14250_v26, %s10397_s6  ;;  %v14268_v26 = vld [vmem:[#allocation21_spill] sm:$0xff] }
 0x9b9   : > { %4652 = vrot.lane.b32.xlu1 %v14251_v17, %s10397_s6 }
 0x9bb   : > { %v4014_v47 = vpop.xlane.xlu1 %4013 }
 0x9bc   : > { %10176 = vrcp.f32 %v4014_v47  ;;  %v14269_v47 = vld [vmem:[#allocation36_spill] sm:$0xff] }
 0x9bd   : > { %4656 = vrot.lane.b32.xlu1 %v14252_v46, %s10397_s6  ;;  %v14271_v46 = vld [vmem:[#allocation39_spill] sm:$0xff] }
 0x9bf   : > { %v9704_v8 = vpop.permute.xlu1 %9703 }
 0x9c0   : > { %v9706_v50 = vunpack.i.h.bf16 %v9704_v8  ;;  %v9705_v37 = vunpack.i.l.bf16 %v9704_v8  ;;  %v14272_v8 = vld [vmem:[#allocation28_spill] sm:$0xff] }
 0x9c1   : > { %v12786_v54 = vpop.f32.mrb[86].mxu1  ;;  %4658 = vrot.lane.b32.xlu1 %v14254_v33, %s10397_s6  ;;  %v14276_v33 = vld [vmem:[#allocation34_spill] sm:$0xff] }
 0x9c2   : > { %14253 = vst [vmem:[#allocation41_spill] sm:$0xff] %v12786_v54  ;;  %v8988_v45 = vpack.c.bf16 %v9706_v50, %v9705_v37  ;;  %v12790_v44 = vpop.f32.mrb[87].mxu1  ;;  %v14273_v50 = vld [vmem:[#allocation42_spill] sm:$0xff]  ;;  %v14274_v37 = vld [vmem:[#allocation31_spill] sm:$0xff] }
 0x9c3   : > { %14255 = vst [vmem:[#allocation23_spill] sm:$0xff] %v12790_v44  ;;  %v12792_v41 = vpop.f32.mrb[112].mxu0 }
 0x9c4   : > { %14256 = vst [vmem:[#allocation88_spill] sm:$0xff] %v12792_v41  ;;  %v12794_v20 = vpop.f32.mrb[113].mxu0  ;;  %8990 = vmatprep.subr.msk.bf16.mxu1 %vm10811_vm2, %v8988_v45 }
 0x9c5   : > { %14257 = vst [vmem:[#allocation91_spill] sm:$0xff] %v12794_v20  ;;  %4662 = vrot.lane.b32.xlu1 %v14258_v21, %s10397_s6  ;;  %8993 = vmatpush3.bf16.xpose.msk.msra.mxu1 %vm10811_vm2, %v8988_v45  ;;  %v14277_v45 = vld [vmem:[#allocation48_spill] sm:$0xff]  ;;  %v14278_v21 = vld [vmem:[#allocation37_spill] sm:$0xff] }
 0x9c6   : > { %v10177_v16 = vpop.eup %10176  ;;  %v14318_v20 = vld [vmem:[#allocation17_spill] sm:$0xff] }
 0x9c7   : > { %v4012_v32 = vpop.xlane.xlu0 %4011  ;;  %v4086_v62 = vmul.f32 %v10177_v16, %v12688_v42 }
 0x9c8   : > { %10178 = vrcp.f32 %v4012_v32  ;;  %v12802_v40 = vpop.f32.mrb[88].mxu1 }
 0x9c9   : > { %14259 = vst [vmem:[#allocation85_spill] sm:$0xff] %v12802_v40  ;;  %9728 = vrot.lane.b32.xlu1 %v14105_v53, %s10396_s5  ;;  %v12806_v49 = vpop.f32.mrb[89].mxu1 }
 0x9ca   : > { %14260 = vst [vmem:[#allocation44_spill] sm:$0xff] %v12806_v49  ;;  %4648 = vrot.lane.b32.xlu0 %v14261_v14, %s10397_s6  ;;  %v14279_v14 = vld [vmem:[#allocation51_spill] sm:$0xff] }
 0x9cb   : > { %v4016_v10 = vpop.xlane.xlu0 %4015 }
 0x9cc   : > { %10180 = vrcp.f32 %v4016_v10  ;;  %v14280_v10 = vld [vmem:[#allocation40_spill] sm:$0xff] }
 0x9cd   : > { %4668 = vrot.lane.b32.xlu1 %v14262_v61, %s10397_s6 }
 0x9ce   : > { %4654 = vrot.lane.b32.xlu0 %v14263_v39, %s10397_s6  ;;  %v14281_v39 = vld [vmem:[#allocation43_spill] sm:$0xff] }
 0x9cf   : > { %v4018_v24 = vpop.xlane.xlu0 %4017 }
 0x9d0   : > { %10182 = vrcp.f32 %v4018_v24 }
 0x9d1   : > { %4672 = vrot.lane.b32.xlu1 %v14264_v43, %s10397_s6 }
 0x9d2   : > { %v10179_v12 = vpop.eup %10178  ;;  %9723 = vrot.lane.b32.xlu0 %v14104_v56, %s10396_s5 }
 0x9d3   : > { %v9709_v11 = vpop.permute.xlu0 %9708  ;;  %v4085_v29 = vmul.f32 %v10179_v12, %v12693_v35  ;;  %v14267_v35 = vld [vmem:[#allocation33_spill] sm:$0xff]  ;;  %v14282_v12 = vld [vmem:[#allocation46_spill] sm:$0xff] }
 0x9d4   : > { %v9711_v2 = vunpack.i.h.bf16 %v9709_v11  ;;  %v9710_v48 = vunpack.i.l.bf16 %v9709_v11 }
 0x9d5   : > { %4917 = vrot.lane.b32.xlu1 %v14265_v52, %s10397_s6  ;;  %8163 = vmatprep.mubr.f32.mxu0 %v4085_v29 }
 0x9d6   : > { %v10181_v13 = vpop.eup %10180  ;;  %v9012_v7 = vpack.c.bf16 %v9711_v2, %v9710_v48  ;;  %4660 = vrot.lane.b32.xlu0 %v14266_v3, %s10397_s6  ;;  %8164 = vmatmul.mubr.f32.gmra.mrb[118].mxu0 %v4086_v62  ;;  %v14284_v62 = vld [vmem:[#allocation49_spill] sm:$0xff] }
 0x9d7   : > { %v4087_v6 = vmul.f32 %v10181_v13, %v12696_v30  ;;  %v14270_v30 = vld [vmem:[#allocation25_spill] sm:$0xff] }
 0x9d8   : > { %9014 = vmatprep.subr.msk.bf16.mxu0 %vm10811_vm2, %v9012_v7 }
 0x9d9   : > { %4921 = vrot.lane.b32.xlu1 %v14267_v35, %s10397_s6  ;;  %8166 = vmatprep.mubr.f32.mxu0 %v4087_v6 }
 0x9da   : > { %v10183_v42 = vpop.eup %10182  ;;  %9017 = vmatpush3.bf16.xpose.msk.msra.mxu0 %vm10811_vm2, %v9012_v7  ;;  %4664 = vrot.lane.b32.xlu0 %v14268_v26, %s10397_s6  ;;  %v14287_v7 = vld [vmem:[#allocation52_spill] sm:$0xff] }
 0x9db   : > { %v4088_v17 = vmul.f32 %v10183_v42, %v12701_v18  ;;  %v14275_v18 = vld [vmem:[#allocation45_spill] sm:$0xff] }
 0x9dd   : > { %4925 = vrot.lane.b32.xlu1 %v14269_v47, %s10397_s6  ;;  %8167 = vmatmul.mubr.f32.gmra.mrb[120].mxu0 %v4088_v17 }
 0x9de   : > { %4666 = vrot.lane.b32.xlu0 %v14270_v30, %s10397_s6 }
 0x9e1   : > { %4929 = vrot.lane.b32.xlu1 %v14271_v46, %s10397_s6 }
 0x9e2   : > { %4670 = vrot.lane.b32.xlu0 %v14272_v8, %s10397_s6 }
 0x9e5   : > { %4933 = vrot.lane.b32.xlu1 %v14273_v50, %s10397_s6 }
 0x9e6   : > { %4915 = vrot.lane.b32.xlu0 %v14274_v37, %s10397_s6 }
 0x9e9   : > { %4937 = vrot.lane.b32.xlu1 %v14275_v18, %s10397_s6 }
 0x9ea   : > { %4919 = vrot.lane.b32.xlu0 %v14276_v33, %s10397_s6 }
 0x9ed   : > { %4941 = vrot.lane.b32.xlu1 %v14277_v45, %s10397_s6 }
 0x9ee   : > { %4923 = vrot.lane.b32.xlu0 %v14278_v21, %s10397_s6 }
 0x9f0   : > { %v4020_v32 = vpop.xlane.xlu1 %4019 }
 0x9f1   : > { %10184 = vrcp.f32 %v4020_v32  ;;  %4945 = vrot.lane.b32.xlu1 %v14279_v14, %s10397_s6 }
 0x9f2   : > { %4927 = vrot.lane.b32.xlu0 %v14280_v10, %s10397_s6 }
 0x9f4   : > { %v4024_v61 = vpop.xlane.xlu1 %4023 }
 0x9f5   : > { %10186 = vrcp.f32 %v4024_v61 }
 0x9f6   : > { %4931 = vrot.lane.b32.xlu0 %v14281_v39, %s10397_s6 }
 0x9f8   : > { %v9714_v24 = vpop.permute.xlu1 %9713 }
 0x9f9   : > { %v9716_v16 = vunpack.i.h.bf16 %v9714_v24  ;;  %v9715_v43 = vunpack.i.l.bf16 %v9714_v24 }
 0x9fa   : > { %4935 = vrot.lane.b32.xlu0 %v14282_v12, %s10397_s6 }
 0x9fb   : > { %v10185_v11 = vpop.eup %10184  ;;  %v9018_v29 = vpack.c.bf16 %v9716_v16, %v9715_v43 }
 0x9fc   : > { %v4089_v2 = vmul.f32 %v10185_v11, %v12719_v36 }
 0x9fd   : > { %9020 = vmatprep.subr.msk.bf16.mxu0 %vm10811_vm2, %v9018_v29 }
 0x9fe   : > { %v12865_v48 = vpop.f32.mrb[90].mxu1  ;;  %4939 = vrot.lane.b32.xlu0 %v14284_v62, %s10397_s6  ;;  %8169 = vmatprep.mubr.f32.mxu0 %v4089_v2 }
 0x9ff   : > { %14283 = vst [vmem:[#allocation38_spill] sm:$0xff] %v12865_v48  ;;  %v12869_v52 = vpop.f32.mrb[91].mxu1  ;;  %9023 = vmatpush3.bf16.xpose.msk.msra.mxu0 %vm10811_vm2, %v9018_v29  ;;  %v10187_v42 = vpop.eup %10186 }
 0xa00   : > { %14285 = vst [vmem:[#allocation90_spill] sm:$0xff] %v12869_v52  ;;  %v4091_v30 = vmul.f32 %v10187_v42, %v12725_v23 }
 0xa02   : > { %v12873_v13 = vpop.f32.mrb[92].mxu1  ;;  %4943 = vrot.lane.b32.xlu0 %v14287_v7, %s10397_s6  ;;  %s13704_s6 = scalar_lea.vmem [#allocation3], %s6532_s29 }
 0xa03   : > { %14286 = vst [vmem:[#allocation7_spill] sm:$0xff] %v12873_v13  ;;  %v12877_v36 = vpop.f32.mrb[93].mxu1 }
 0xa04   : > { %14288 = vst [vmem:[#allocation6_spill] sm:$0xff] %v12877_v36  ;;  %v4022_v3 = vpop.xlane.xlu0 %4021 }
 0xa05   : > { %10188 = vrcp.f32 %v4022_v3 }
 0xa08   : > { %v4026_v6 = vpop.xlane.xlu0 %4025 }
 0xa09   : > { %10190 = vrcp.f32 %v4026_v6 }
 0xa0c   : > { %v4643_v35 = vpop.permute.xlu0 %4642 }
 0xa0d   : > { %8210 = vmatprep.mubr.msk.f32.mxu1 %vm611_vm1, %v4643_v35 }
 0xa0f   : > { %v10189_v26 = vpop.eup %10188 }
 0xa10   : > { %v4645_v17 = vpop.permute.xlu0 %4644  ;;  %v4090_v47 = vmul.f32 %v10189_v26, %v12730_v4 }
 0xa11   : > { %8211 = vmatmul.mubr.msk.f32.vlgmr.msra.gmra.mrb[96].mxu1 %vm611_vm1, %v4645_v17 }
 0xa12   : > { %8170 = vmatmul.mubr.f32.gmra.mrb[122].mxu0 %v4090_v47 }
 0xa13   : > { %v10191_v46 = vpop.eup %10190  ;;  %8172 = vmatprep.mubr.f32.mxu0 %v4091_v30 }
 0xa14   : > { %v4092_v8 = vmul.f32 %v10191_v46, %v12735_v5 }
 0xa16   : > { %8173 = vmatmul.mubr.f32.gmra.mrb[124].mxu0 %v4092_v8 }
 0xa29   : > { %v4028_v50 = vpop.xlane.xlu1 %4027 }
 0xa2a   : > { %10192 = vrcp.f32 %v4028_v50 }
 0xa2d   : > { %v4647_v37 = vpop.permute.xlu1 %4646 }
 0xa2e   : > { %8213 = vmatprep.mubr.msk.f32.mxu1 %vm611_vm1, %v4647_v37 }
 0xa31   : > { %v9719_v18 = vpop.permute.xlu1 %9718 }
 0xa32   : > { %v9721_v33 = vunpack.i.h.bf16 %v9719_v18  ;;  %v9720_v45 = vunpack.i.l.bf16 %v9719_v18 }
 0xa34   : > { %v10193_v21 = vpop.eup %10192  ;;  %v9024_v4 = vpack.c.bf16 %v9721_v33, %v9720_v45 }
 0xa35   : > { %v4651_v32 = vpop.permute.xlu1 %4650  ;;  %v4093_v14 = vmul.f32 %v10193_v21, %v12755_v59 }
 0xa36   : > { %9026 = vmatprep.subr.msk.bf16.mxu0 %vm10811_vm2, %v9024_v4 }
 0xa37   : > { %v12888_v23 = vpop.f32.mrb[94].mxu1  ;;  %8175 = vmatprep.mubr.f32.mxu0 %v4093_v14  ;;  %9029 = vmatpush3.bf16.xpose.msk.msra.mxu0 %vm10811_vm2, %v9024_v4 }
 0xa38   : > { %14289 = vst [vmem:[#allocation92_spill] sm:$0xff] %v12888_v23  ;;  %v12892_v5 = vpop.f32.mrb[95].mxu1 }
 0xa39   : > { %14290 = vst [vmem:[#allocation10_spill] sm:$0xff] %v12892_v5  ;;  %v4653_v10 = vpop.permute.xlu1 %4652 }
 0xa3d   : > { %v4657_v61 = vpop.permute.xlu1 %4656 }
 0xa41   : > { %v4030_v39 = vpop.xlane.xlu0 %4029  ;;  %v4659_v24 = vpop.permute.xlu1 %4658 }
 0xa42   : > { %10194 = vrcp.f32 %v4030_v39 }
 0xa45   : > { %v4649_v16 = vpop.permute.xlu0 %4648  ;;  %v4663_v43 = vpop.permute.xlu1 %4662 }
 0xa46   : > { %8214 = vmatmul.mubr.msk.f32.gmra.mrb[98].mxu1 %vm611_vm1, %v4649_v16 }
 0xa47   : > { %8216 = vmatprep.mubr.msk.f32.mxu1 %vm611_vm1, %v4651_v32 }
 0xa49   : > { %v4655_v59 = vpop.permute.xlu0 %4654  ;;  %v9729_v12 = vpop.permute.xlu1 %9728 }
 0xa4a   : > { %8217 = vmatmul.mubr.msk.f32.gmra.mrb[100].mxu1 %vm611_vm1, %v4653_v10  ;;  %v9731_v7 = vunpack.i.h.bf16 %v9729_v12  ;;  %v9730_v3 = vunpack.i.l.bf16 %v9729_v12 }
 0xa4b   : > { %8219 = vmatprep.mubr.msk.f32.mxu1 %vm611_vm1, %v4655_v59 }
 0xa4c   : > { %v10195_v11 = vpop.eup %10194  ;;  %v9036_v47 = vpack.c.bf16 %v9731_v7, %v9730_v3 }
 0xa4d   : > { %v9724_v29 = vpop.permute.xlu0 %9723  ;;  %v4669_v2 = vpop.permute.xlu1 %4668  ;;  %v4094_v62 = vmul.f32 %v10195_v11, %v12777_v1 }
 0xa4e   : > { %v9726_v6 = vunpack.i.h.bf16 %v9724_v29  ;;  %v9725_v35 = vunpack.i.l.bf16 %v9724_v29  ;;  %8220 = vmatmul.mubr.msk.f32.gmra.mrb[102].mxu1 %vm611_vm1, %v4657_v61 }
 0xa4f   : > { %8176 = vmatmul.mubr.f32.gmra.mrb[126].mxu0 %v4094_v62  ;;  %8222 = vmatprep.mubr.msk.f32.mxu1 %vm611_vm1, %v4659_v24 }
 0xa50   : > { %v9030_v42 = vpack.c.bf16 %v9726_v6, %v9725_v35 }
 0xa51   : > { %v4661_v26 = vpop.permute.xlu0 %4660  ;;  %v4673_v17 = vpop.permute.xlu1 %4672 }
 0xa52   : > { %8223 = vmatmul.mubr.msk.f32.gmra.mrb[104].mxu1 %vm611_vm1, %v4661_v26  ;;  %9032 = vmatprep.subr.msk.bf16.mxu0 %vm10811_vm2, %v9030_v42 }
 0xa53   : > { %8225 = vmatprep.mubr.msk.f32.mxu1 %vm611_vm1, %v4663_v43  ;;  %9035 = vmatpush3.bf16.xpose.msk.msra.mxu0 %vm10811_vm2, %v9030_v42 }
 0xa54   : > { %9038 = vmatprep.subr.msk.bf16.mxu0 %vm10811_vm2, %v9036_v47 }
 0xa55   : > { %v4665_v1 = vpop.permute.xlu0 %4664  ;;  %v4918_v30 = vpop.permute.xlu1 %4917 }
 0xa56   : > { %8226 = vmatmul.mubr.msk.f32.gmra.mrb[106].mxu1 %vm611_vm1, %v4665_v1 }
 0xa59   : > { %v4667_v46 = vpop.permute.xlu0 %4666  ;;  %v4922_v8 = vpop.permute.xlu1 %4921 }
 0xa5a   : > { %8228 = vmatprep.mubr.msk.f32.mxu1 %vm611_vm1, %v4667_v46 }
 0xa5b   : > { %8229 = vmatmul.mubr.msk.f32.gmra.mrb[108].mxu1 %vm611_vm1, %v4669_v2  ;;  %9041 = vmatpush3.bf16.xpose.msk.msra.mxu0 %vm10811_vm2, %v9036_v47 }
 0xa5d   : > { %v4671_v50 = vpop.permute.xlu0 %4670  ;;  %v4926_v37 = vpop.permute.xlu1 %4925 }
 0xa5e   : > { %8231 = vmatprep.mubr.msk.f32.mxu1 %vm611_vm1, %v4671_v50 }
 0xa5f   : > { %8232 = vmatmul.mubr.msk.f32.gmra.mrb[110].mxu1 %vm611_vm1, %v4673_v17 }
 0xa61   : > { %v4916_v18 = vpop.permute.xlu0 %4915  ;;  %v4930_v45 = vpop.permute.xlu1 %4929 }
 0xa62   : > { %8266 = vmatprep.mubr.msk.f32.mxu0 %vm611_vm1, %v4916_v18 }
 0xa63   : > { %8267 = vmatmul.mubr.msk.f32.vlgmr.msra.gmra.mrb[128].mxu0 %vm611_vm1, %v4918_v30 }
 0xa65   : > { %v4920_v33 = vpop.permute.xlu0 %4919  ;;  %v4934_v25 = vpop.permute.xlu1 %4933 }
 0xa66   : > { %8269 = vmatprep.mubr.msk.f32.mxu0 %vm611_vm1, %v4920_v33 }
 0xa67   : > { %8270 = vmatmul.mubr.msk.f32.gmra.mrb[130].mxu0 %vm611_vm1, %v4922_v8 }
 0xa69   : > { %v4924_v21 = vpop.permute.xlu0 %4923  ;;  %v4938_v61 = vpop.permute.xlu1 %4937 }
 0xa6a   : > { %8272 = vmatprep.mubr.msk.f32.mxu0 %vm611_vm1, %v4924_v21 }
 0xa6b   : > { %8273 = vmatmul.mubr.msk.f32.gmra.mrb[132].mxu0 %vm611_vm1, %v4926_v37 }
 0xa6c   : > { %v12922_v4 = vpop.f32.mrb[114].mxu0 }
 0xa6d   : > { %14291 = vst [vmem:[#allocation47_spill] sm:$0xff] %v12922_v4  ;;  %v4928_v32 = vpop.permute.xlu0 %4927  ;;  %v12924_v14 = vpop.f32.mrb[115].mxu0 }
 0xa6e   : > { %14292 = vst [vmem:[#allocation13_spill] sm:$0xff] %v12924_v14  ;;  %8275 = vmatprep.mubr.msk.f32.mxu0 %vm611_vm1, %v4928_v32  ;;  %v4942_v43 = vpop.permute.xlu1 %4941 }
 0xa6f   : > { %8276 = vmatmul.mubr.msk.f32.gmra.mrb[134].mxu0 %vm611_vm1, %v4930_v45 }
 0xa71   : > { %v4932_v10 = vpop.permute.xlu0 %4931 }
 0xa72   : > { %8278 = vmatprep.mubr.msk.f32.mxu0 %vm611_vm1, %v4932_v10  ;;  %v4946_v11 = vpop.permute.xlu1 %4945 }
 0xa73   : > { %v12929_v39 = vpop.f32.mrb[116].mxu0  ;;  %8279 = vmatmul.mubr.msk.f32.gmra.mrb[136].mxu0 %vm611_vm1, %v4934_v25 }
 0xa74   : > { %14293 = vst [vmem:[#allocation12_spill] sm:$0xff] %v12929_v39  ;;  %v12932_v24 = vpop.f32.mrb[117].mxu0 }
 0xa75   : > { %14294 = vst [vmem:[#allocation15_spill] sm:$0xff] %v12932_v24  ;;  %v4936_v16 = vpop.permute.xlu0 %4935 }
 0xa76   : > { %8281 = vmatprep.mubr.msk.f32.mxu0 %vm611_vm1, %v4936_v16 }
 0xa77   : > { %8282 = vmatmul.mubr.msk.f32.gmra.mrb[138].mxu0 %vm611_vm1, %v4938_v61 }
 0xa79   : > { %v4940_v59 = vpop.permute.xlu0 %4939 }
 0xa7a   : > { %8284 = vmatprep.mubr.msk.f32.mxu0 %vm611_vm1, %v4940_v59 }
 0xa7b   : > { %8285 = vmatmul.mubr.msk.f32.gmra.mrb[140].mxu0 %vm611_vm1, %v4942_v43 }
 0xa7d   : > { %v4944_v12 = vpop.permute.xlu0 %4943 }
 0xa7e   : > { %8287 = vmatprep.mubr.msk.f32.mxu0 %vm611_vm1, %v4944_v12 }
 0xa7f   : > { %8288 = vmatmul.mubr.msk.f32.gmra.mrb[142].mxu0 %vm611_vm1, %v4946_v11 }
 0xaa9   : > { %v12940_v29 = vpop.f32.mrb[118].mxu0 }
 0xaaa   : > { %14295 = vst [vmem:[#allocation19_spill] sm:$0xff] %v12940_v29  ;;  %v12942_v2 = vpop.f32.mrb[119].mxu0 }
 0xaab   : > { %14296 = vst [vmem:[#allocation22_spill] sm:$0xff] %v12942_v2 }
 0xab0   : > { %v12944_v62 = vpop.f32.mrb[120].mxu0 }
 0xab1   : > { %14297 = vst [vmem:[#allocation9_spill] sm:$0xff] %v12944_v62  ;;  %v12946_v7 = vpop.f32.mrb[121].mxu0 }
 0xab2   : > { %14298 = vst [vmem:[#allocation24_spill] sm:$0xff] %v12946_v7 }
 0xae4   : > { %v8212_v3 = vpop.f32.mrb[96].mxu1 }
 0xae5   : > { %v12950_v35 = vsel %vm562_vm3, %v8212_v3, -1e+30  ;;  %v12952_v42 = vpop.f32.mrb[122].mxu0  ;;  %v4836_v26 = vpop.f32.mrb[97].mxu1 }
 0xae6   : > { %14300 = vst [vmem:[#allocation16_spill] sm:$0xff] %v12952_v42  ;;  %v12956_v17 = vsel %vm562_vm3, %v4836_v26, -1e+30  ;;  %5222 = vmax.xlane.f32.xlu1 %v12950_v35  ;;  %v12959_v47 = vpop.f32.mrb[123].mxu0 }
 0xae7   : > { %14301 = vst [vmem:[#allocation27_spill] sm:$0xff] %v12959_v47  ;;  %5220 = vmax.xlane.f32.xlu0 %v12956_v17 }
 0xae9   : > { %v12962_v1 = vpop.f32.mrb[124].mxu0 }
 0xaea   : > { %14302 = vst [vmem:[#allocation30_spill] sm:$0xff] %v12962_v1  ;;  %v12964_v30 = vpop.f32.mrb[125].mxu0 }
 0xaeb   : > { %14303 = vst [vmem:[#allocation18_spill] sm:$0xff] %v12964_v30 }
 0xb19   : > { %v8215_v46 = vpop.f32.mrb[98].mxu1 }
 0xb1a   : > { %v4846_v8 = vpop.f32.mrb[99].mxu1  ;;  %v12973_v33 = vsel %vm562_vm3, %v8215_v46, -1e+30 }
 0xb1b   : > { %v12968_v50 = vsel %vm562_vm3, %v4846_v8, -1e+30 }
 0xb1c   : > { %5224 = vmax.xlane.f32.xlu0 %v12968_v50 }
 0xb1d   : > { %v8218_v37 = vpop.f32.mrb[100].mxu1 }
 0xb1e   : > { %v4856_v18 = vpop.f32.mrb[101].mxu1  ;;  %v12985_v10 = vsel %vm562_vm3, %v8218_v37, -1e+30 }
 0xb1f   : > { %v12977_v45 = vsel %vm562_vm3, %v4856_v18, -1e+30 }
 0xb20   : > { %5226 = vmax.xlane.f32.xlu0 %v12973_v33  ;;  %5228 = vmax.xlane.f32.xlu1 %v12977_v45 }
 0xb21   : > { %v8221_v21 = vpop.f32.mrb[102].mxu1 }
 0xb22   : > { %v12981_v25 = vpop.f32.mrb[126].mxu0  ;;  %v4866_v32 = vpop.f32.mrb[103].mxu1  ;;  %v12997_v12 = vsel %vm562_vm3, %v8221_v21, -1e+30 }
 0xb23   : > { %14304 = vst [vmem:[#allocation33_spill] sm:$0xff] %v12981_v25  ;;  %v12989_v61 = vsel %vm562_vm3, %v4866_v32, -1e+30  ;;  %v12991_v16 = vpop.f32.mrb[127].mxu0 }
 0xb24   : > { %14305 = vst [vmem:[#allocation21_spill] sm:$0xff] %v12991_v16  ;;  %5230 = vmax.xlane.f32.xlu0 %v12985_v10  ;;  %5232 = vmax.xlane.f32.xlu1 %v12989_v61 }
 0xb25   : > { %v8224_v43 = vpop.f32.mrb[104].mxu1 }
 0xb26   : > { %v4876_v59 = vpop.f32.mrb[105].mxu1  ;;  %v13007_v46 = vsel %vm562_vm3, %v8224_v43, -1e+30 }
 0xb27   : > { %v13001_v11 = vsel %vm562_vm3, %v4876_v59, -1e+30 }
 0xb28   : > { %5234 = vmax.xlane.f32.xlu0 %v12997_v12  ;;  %5236 = vmax.xlane.f32.xlu1 %v13001_v11 }
 0xb29   : > { %v8227_v3 = vpop.f32.mrb[106].mxu1 }
 0xb2a   : > { %v4886_v26 = vpop.f32.mrb[107].mxu1  ;;  %v13017_v18 = vsel %vm562_vm3, %v8227_v3, -1e+30 }
 0xb2b   : > { %v13011_v8 = vsel %vm562_vm3, %v4886_v26, -1e+30 }
 0xb2c   : > { %5238 = vmax.xlane.f32.xlu0 %v13007_v46  ;;  %5240 = vmax.xlane.f32.xlu1 %v13011_v8 }
 0xb2e   : > { %v8230_v37 = vpop.f32.mrb[108].mxu1 }
 0xb2f   : > { %v4896_v21 = vpop.f32.mrb[109].mxu1  ;;  %v13027_v59 = vsel %vm562_vm3, %v8230_v37, -1e+30 }
 0xb30   : > { %v13021_v32 = vsel %vm562_vm3, %v4896_v21, -1e+30  ;;  %5242 = vmax.xlane.f32.xlu0 %v13017_v18 }
 0xb31   : > { %5244 = vmax.xlane.f32.xlu1 %v13021_v32 }
 0xb32   : > { %v8233_v43 = vpop.f32.mrb[110].mxu1 }
 0xb33   : > { %v4906_v26 = vpop.f32.mrb[111].mxu1  ;;  %v13037_v21 = vsel %vm562_vm3, %v8233_v43, -1e+30 }
 0xb34   : > { %v13031_v13 = vsel %vm562_vm3, %v4906_v26, -1e+30  ;;  %5246 = vmax.xlane.f32.xlu0 %v13027_v59 }
 0xb35   : > { %5248 = vmax.xlane.f32.xlu1 %v13031_v13 }
 0xb36   : > { %v8268_v3 = vpop.f32.mrb[128].mxu0 }
 0xb37   : > { %v5109_v25 = vpop.f32.mrb[129].mxu0  ;;  %v13047_v26 = vsel %vm562_vm3, %v8268_v3, -1e+30 }
 0xb38   : > { %v13041_v36 = vsel %vm562_vm3, %v5109_v25, -1e+30  ;;  %5250 = vmax.xlane.f32.xlu0 %v13037_v21 }
 0xb39   : > { %5252 = vmax.xlane.f32.xlu1 %v13041_v36 }
 0xb3a   : > { %v8271_v37 = vpop.f32.mrb[130].mxu0 }
 0xb3b   : > { %v5119_v16 = vpop.f32.mrb[131].mxu0  ;;  %v13057_v43 = vsel %vm562_vm3, %v8271_v37, -1e+30 }
 0xb3c   : > { %v13051_v48 = vsel %vm562_vm3, %v5119_v16, -1e+30  ;;  %5254 = vmax.xlane.f32.xlu0 %v13047_v26 }
 0xb3d   : > { %5256 = vmax.xlane.f32.xlu1 %v13051_v48 }
 0xb3e   : > { %v8274_v25 = vpop.f32.mrb[132].mxu0 }
 0xb3f   : > { %v5129_v1 = vpop.f32.mrb[133].mxu0  ;;  %v13067_v3 = vsel %vm562_vm3, %v8274_v25, -1e+30 }
 0xb40   : > { %v13061_v52 = vsel %vm562_vm3, %v5129_v1, -1e+30  ;;  %5258 = vmax.xlane.f32.xlu0 %v13057_v43 }
 0xb41   : > { %5260 = vmax.xlane.f32.xlu1 %v13061_v52 }
 0xb42   : > { %v8277_v16 = vpop.f32.mrb[134].mxu0 }
 0xb43   : > { %v5139_v30 = vpop.f32.mrb[135].mxu0  ;;  %v13077_v37 = vsel %vm562_vm3, %v8277_v16, -1e+30 }
 0xb44   : > { %v13071_v40 = vsel %vm562_vm3, %v5139_v30, -1e+30  ;;  %5262 = vmax.xlane.f32.xlu0 %v13067_v3 }
 0xb45   : > { %14306 = vst [vmem:[#allocation36_spill] sm:$0xff] %v13071_v40  ;;  %5264 = vmax.xlane.f32.xlu1 %v13071_v40 }
 0xb46   : > { %v8280_v1 = vpop.f32.mrb[136].mxu0 }
 0xb47   : > { %v5149_v42 = vpop.f32.mrb[137].mxu0  ;;  %v13087_v25 = vsel %vm562_vm3, %v8280_v1, -1e+30 }
 0xb48   : > { %v13081_v49 = vsel %vm562_vm3, %v5149_v42, -1e+30  ;;  %5266 = vmax.xlane.f32.xlu0 %v13077_v37 }
 0xb49   : > { %14307 = vst [vmem:[#allocation25_spill] sm:$0xff] %v13081_v49  ;;  %5268 = vmax.xlane.f32.xlu1 %v13081_v49 }
 0xb4a   : > { %v8283_v30 = vpop.f32.mrb[138].mxu0 }
 0xb4b   : > { %v5159_v47 = vpop.f32.mrb[139].mxu0  ;;  %v13097_v16 = vsel %vm562_vm3, %v8283_v30, -1e+30  ;;  %v14314_v30 = vld [vmem:[#allocation8_spill] sm:$0xff] }
 0xb4c   : > { %v13091_v54 = vsel %vm562_vm3, %v5159_v47, -1e+30  ;;  %5270 = vmax.xlane.f32.xlu0 %v13087_v25  ;;  %14309 = vst [vmem:[#allocation28_spill] sm:$0xff] %v13097_v16 }
 0xb4d   : > { %14308 = vst [vmem:[#allocation39_spill] sm:$0xff] %v13091_v54  ;;  %5272 = vmax.xlane.f32.xlu1 %v13091_v54 }
 0xb4e   : > { %v8286_v42 = vpop.f32.mrb[140].mxu0 }
 0xb4f   : > { %v5169_v62 = vpop.f32.mrb[141].mxu0  ;;  %v13107_v1 = vsel %vm562_vm3, %v8286_v42, -1e+30  ;;  %v14315_v42 = vld [vmem:[#allocation11_spill] sm:$0xff] }
 0xb50   : > { %v13101_v44 = vsel %vm562_vm3, %v5169_v62, -1e+30  ;;  %5274 = vmax.xlane.f32.xlu0 %v13097_v16  ;;  %14311 = vst [vmem:[#allocation31_spill] sm:$0xff] %v13107_v1 }
 0xb51   : > { %14310 = vst [vmem:[#allocation42_spill] sm:$0xff] %v13101_v44  ;;  %5276 = vmax.xlane.f32.xlu1 %v13101_v44 }
 0xb52   : > { %v8289_v47 = vpop.f32.mrb[142].mxu0 }
 0xb53   : > { %v5179_v7 = vpop.f32.mrb[143].mxu0  ;;  %v13117_v62 = vsel %vm562_vm3, %v8289_v47, -1e+30 }
 0xb54   : > { %v13111_v19 = vsel %vm562_vm3, %v5179_v7, -1e+30  ;;  %5278 = vmax.xlane.f32.xlu0 %v13107_v1  ;;  %14313 = vst [vmem:[#allocation34_spill] sm:$0xff] %v13117_v62 }
 0xb55   : > { %14312 = vst [vmem:[#allocation45_spill] sm:$0xff] %v13111_v19  ;;  %5280 = vmax.xlane.f32.xlu1 %v13111_v19 }
 0xb58   : > { %5282 = vmax.xlane.f32.xlu0 %v13117_v62 }
 0xb66   : > { %9733 = vrot.lane.b32.xlu1 %v14314_v30, %s10398_s7  ;;  %v14316_v30 = vld [vmem:[#allocation14_spill] sm:$0xff] }
 0xb6e   : > { %9738 = vrot.lane.b32.xlu0 %v14315_v42, %s10398_s7 }
 0xb73   : > { %v5223_v7 = vpop.xlane.xlu1 %5222 }
 0xb74   : > { %v5221_v29 = vpop.xlane.xlu0 %5220  ;;  %v5285_v2 = vsub.f32 %v12950_v35, %v5223_v7 }
 0xb75   : > { %v5284_v28 = vsub.f32 %v12956_v17, %v5221_v29 }
 0xb76   : > { %v5318_v39 = vmul.f32 1.442695, %v5285_v2 }
 0xb77   : > { %v5316_v55 = vmul.f32 1.442695, %v5284_v28 }
 0xb79   : > { %10196 = vpow2.f32 %v5316_v55 }
 0xb7a   : > { %10198 = vpow2.f32 %v5318_v39 }
 0xb83   : > { %v13126_v6 = vpop.eup %10196 }
 0xb84   : > { %v13129_v47 = vpop.eup %10198 }
 0xb8a   : > { %5380 = vadd.xlane.f32.xlu1 %v13126_v6 }
 0xb8d   : > { %5382 = vadd.xlane.f32.xlu0 %v13129_v47 }
 0xb9b   : > { %9743 = vrot.lane.b32.xlu1 %v14316_v30, %s10398_s7 }
 0xba9   : > { %v5225_v42 = vpop.xlane.xlu0 %5224 }
 0xbaa   : > { %v5286_v29 = vsub.f32 %v12968_v50, %v5225_v42 }
 0xbac   : > { %v5320_v17 = vmul.f32 1.442695, %v5286_v29 }
 0xbad   : > { %v5227_v35 = vpop.xlane.xlu0 %5226  ;;  %v5229_v28 = vpop.xlane.xlu1 %5228 }
 0xbae   : > { %10200 = vpow2.f32 %v5320_v17  ;;  %v5287_v55 = vsub.f32 %v12973_v33, %v5227_v35  ;;  %v5288_v39 = vsub.f32 %v12977_v45, %v5229_v28 }
 0xbb0   : > { %v5322_v2 = vmul.f32 1.442695, %v5287_v55  ;;  %v5324_v7 = vmul.f32 1.442695, %v5288_v39 }
 0xbb1   : > { %v5231_v31 = vpop.xlane.xlu0 %5230  ;;  %v5233_v24 = vpop.xlane.xlu1 %5232 }
 0xbb2   : > { %10202 = vpow2.f32 %v5322_v2  ;;  %v5289_v1 = vsub.f32 %v12985_v10, %v5231_v31 }
 0xbb3   : > { %10204 = vpow2.f32 %v5324_v7 }
 0xbb5   : > { %v5235_v38 = vpop.xlane.xlu0 %5234  ;;  %v5237_v4 = vpop.xlane.xlu1 %5236 }
 0xbb8   : > { %v13137_v30 = vpop.eup %10200 }
 0xbb9   : > { %v5239_v60 = vpop.xlane.xlu0 %5238  ;;  %v13139_v50 = vpop.xlane.xlu1 %5240  ;;  %5384 = vadd.xlane.f32.xlu0 %v13137_v30 }
 0xbba   : > { %v5293_v49 = vsub.f32 %v13007_v46, %v5239_v60  ;;  %v5292_v60 = vsub.f32 %v13001_v11, %v5237_v4 }
 0xbbc   : > { %v13142_v42 = vpop.eup %10202 }
 0xbbd   : > { %v5243_v33 = vpop.xlane.xlu0 %5242  ;;  %5386 = vadd.xlane.f32.xlu0 %v13142_v42  ;;  %v13145_v45 = vpop.eup %10204 }
 0xbbe   : > { %v13147_v29 = vpop.xlane.xlu1 %5244  ;;  %v5295_v31 = vsub.f32 %v13017_v18, %v5243_v33 }
 0xbbf   : > { %5388 = vadd.xlane.f32.xlu1 %v13145_v45 }
 0xbc1   : > { %v13150_v17 = vpop.xlane.xlu0 %5246 }
 0xbc2   : > { %v13152_v35 = vpop.xlane.xlu1 %5248 }
 0xbc5   : > { %v13154_v28 = vpop.xlane.xlu0 %5250 }
 0xbc6   : > { %v13156_v55 = vpop.xlane.xlu1 %5252 }
 0xbc9   : > { %v13158_v39 = vpop.xlane.xlu0 %5254 }
 0xbca   : > { %v13160_v2 = vpop.xlane.xlu1 %5256 }
 0xbcd   : > { %v13162_v7 = vpop.xlane.xlu0 %5258 }
 0xbce   : > { %v13164_v14 = vpop.xlane.xlu1 %5260 }
 0xbd0   : > { %9753 = vrot.lane.b32.xlu1 %v14183_v27, %s10398_s7 }
 0xbd1   : > { %v13168_v41 = vpop.xlane.xlu0 %5262 }
 0xbd2   : > { %v13170_v5 = vpop.xlane.xlu1 %5264 }
 0xbd3   : > { %14317 = vst [vmem:[#allocation48_spill] sm:$0xff] %v13170_v5  ;;  %9748 = vrot.lane.b32.xlu0 %v14318_v20, %s10398_s7  ;;  %v5290_v20 = vsub.f32 %v12989_v61, %v5233_v24  ;;  %v5334_v5 = vmul.f32 1.442695, %v5293_v49 }
 0xbd4   : > { %9758 = vrot.lane.b32.xlu1 %v14179_v34, %s10398_s7  ;;  %v5326_v34 = vmul.f32 1.442695, %v5289_v1 }
 0xbd5   : > { %v13176_v23 = vpop.xlane.xlu0 %5266  ;;  %v5328_v16 = vmul.f32 1.442695, %v5290_v20  ;;  %v5338_v20 = vmul.f32 1.442695, %v5295_v31 }
 0xbd6   : > { %v13178_v62 = vpop.xlane.xlu1 %5268  ;;  %10206 = vpow2.f32 %v5326_v34 }
 0xbd7   : > { %14319 = vst [vmem:[#allocation37_spill] sm:$0xff] %v13178_v62  ;;  %10208 = vpow2.f32 %v5328_v16  ;;  %v5297_v16 = vsub.f32 %v13027_v59, %v13150_v17 }
 0xbd8   : > { %10210 = vpow2.f32 %v5334_v5 }
 0xbd9   : > { %v13180_v19 = vpop.xlane.xlu0 %5270  ;;  %v5342_v31 = vmul.f32 1.442695, %v5297_v16 }
 0xbda   : > { %v13182_v44 = vpop.xlane.xlu1 %5272 }
 0xbdb   : > { %14320 = vst [vmem:[#allocation51_spill] sm:$0xff] %v13182_v44  ;;  %v5291_v44 = vsub.f32 %v12997_v12, %v5235_v38  ;;  %v5332_v38 = vmul.f32 1.442695, %v5292_v60 }
 0xbdd   : > { %v13184_v54 = vpop.xlane.xlu0 %5274  ;;  %v5330_v1 = vmul.f32 1.442695, %v5291_v44 }
 0xbde   : > { %14321 = vst [vmem:[#allocation40_spill] sm:$0xff] %v13184_v54  ;;  %v13186_v27 = vpop.xlane.xlu1 %5276 }
 0xbdf   : > { %14322 = vst [vmem:[#allocation43_spill] sm:$0xff] %v13186_v27  ;;  %10212 = vpow2.f32 %v5330_v1 }
 0xbe0   : > { %10214 = vpow2.f32 %v5338_v20 }
 0xbe1   : > { %v13189_v56 = vpop.xlane.xlu0 %5278  ;;  %10216 = vpow2.f32 %v5332_v38 }
 0xbe2   : > { %14323 = vst [vmem:[#allocation46_spill] sm:$0xff] %v13189_v56  ;;  %v13192_v53 = vpop.xlane.xlu1 %5280 }
 0xbe5   : > { %v13195_v62 = vpop.xlane.xlu0 %5282 }
 0xbe6   : > { %v9734_v40 = vpop.permute.xlu1 %9733 }
 0xbe7   : > { %v9736_v54 = vunpack.i.h.bf16 %v9734_v40  ;;  %v9735_v27 = vunpack.i.l.bf16 %v9734_v40  ;;  %v13200_v40 = vpop.eup %10206 }
 0xbe9   : > { %v9739_v10 = vpop.permute.xlu0 %9738  ;;  %v9042_v56 = vpack.c.bf16 %v9736_v54, %v9735_v27  ;;  %v13203_v54 = vpop.eup %10208  ;;  %v5294_v27 = vsub.f32 %v13011_v8, %v13139_v50 }
 0xbea   : > { %v9741_v24 = vunpack.i.h.bf16 %v9739_v10  ;;  %v9740_v61 = vunpack.i.l.bf16 %v9739_v10  ;;  %v13206_v44 = vpop.eup %10210 }
 0xbeb   : > { %9043 = vmatprep.subr.bf16.mxu1 %v9042_v56  ;;  %v5336_v10 = vmul.f32 1.442695, %v5294_v27 }
 0xbec   : > { %9045 = vmatpush3.bf16.msra.mxu1 %v9042_v56  ;;  %v9046_v46 = vpack.c.bf16 %v9741_v24, %v9740_v61  ;;  %v13209_v56 = vpop.eup %10212  ;;  %v5296_v24 = vsub.f32 %v13021_v32, %v13147_v29 }
 0xbed   : > { %v13212_v49 = vpop.eup %10214 }
 0xbee   : > { %9047 = vmatprep.subr.bf16.mxu1 %v9046_v46  ;;  %v13215_v5 = vpop.eup %10216  ;;  %v5340_v17 = vmul.f32 1.442695, %v5296_v24 }
 0xbf0   : > { %9049 = vmatpush3.bf16.msra.mxu1 %v9046_v46 }
 0xbf2   : > { %5390 = vadd.xlane.f32.xlu0 %v13200_v40 }
 0xbf6   : > { %5392 = vadd.xlane.f32.xlu0 %v13203_v54 }
 0xbf8   : > { %5398 = vadd.xlane.f32.xlu1 %v13206_v44 }
 0xbfa   : > { %5394 = vadd.xlane.f32.xlu0 %v13209_v56 }
 0xbfc   : > { %5402 = vadd.xlane.f32.xlu1 %v13212_v49 }
 0xbfe   : > { %5396 = vadd.xlane.f32.xlu0 %v13215_v5 }
 0xc0d   : > { %9768 = vrot.lane.b32.xlu1 %v14100_v51, %s10398_s7  ;;  %v5299_v51 = vsub.f32 %v13037_v21, %v13154_v28 }
 0xc0f   : > { %v5346_v59 = vmul.f32 1.442695, %v5299_v51 }
 0xc14   : > { %9763 = vrot.lane.b32.xlu0 %v14184_v15, %s10398_s7 }
 0xc17   : > { %v5381_v4 = vpop.xlane.xlu1 %5380 }
 0xc18   : > { %10218 = vrcp.f32 %v5381_v4 }
 0xc19   : > { %10220 = vpow2.f32 %v5342_v31  ;;  %v5303_v31 = vsub.f32 %v13057_v43, %v13162_v7 }
 0xc1a   : > { %10222 = vpow2.f32 %v5336_v10 }
 0xc1b   : > { %v9744_v12 = vpop.permute.xlu1 %9743  ;;  %10224 = vpow2.f32 %v5346_v59  ;;  %v5354_v10 = vmul.f32 1.442695, %v5303_v31 }
 0xc1c   : > { %v9746_v11 = vunpack.i.h.bf16 %v9744_v12  ;;  %v9745_v18 = vunpack.i.l.bf16 %v9744_v12  ;;  %10226 = vpow2.f32 %v5340_v17 }
 0xc1e   : > { %v9050_v33 = vpack.c.bf16 %v9746_v11, %v9745_v18 }
 0xc20   : > { %9051 = vmatprep.subr.bf16.mxu1 %v9050_v33 }
 0xc21   : > { %9053 = vmatpush3.bf16.msra.mxu1 %v9050_v33 }
 0xc22   : > { %v10219_v34 = vpop.eup %10218 }
 0xc23   : > { %v5476_v15 = vmul.f32 %v10219_v34, %v13126_v6  ;;  %v13231_v8 = vpop.eup %10220  ;;  %v5383_v6 = vpop.xlane.xlu0 %5382 }
 0xc24   : > { %v13234_v50 = vpop.eup %10222 }
 0xc25   : > { %8322 = vmatprep.mubr.f32.mxu1 %v5476_v15  ;;  %v13237_v21 = vpop.eup %10224  ;;  %v5300_v15 = vsub.f32 %v13041_v36, %v13156_v55 }
 0xc26   : > { %v13240_v32 = vpop.eup %10226 }
 0xc27   : > { %v5348_v24 = vmul.f32 1.442695, %v5300_v15 }
 0xc31   : > { %5406 = vadd.xlane.f32.xlu1 %v13231_v8 }
 0xc33   : > { %5400 = vadd.xlane.f32.xlu0 %v13234_v50 }
 0xc35   : > { %5410 = vadd.xlane.f32.xlu1 %v13237_v21 }
 0xc37   : > { %5404 = vadd.xlane.f32.xlu0 %v13240_v32 }
 0xc46   : > { %v5385_v29 = vpop.xlane.xlu0 %5384  ;;  %9778 = vrot.lane.b32.xlu1 %v14186_v9, %s10398_s7  ;;  %v5301_v9 = vsub.f32 %v13047_v26, %v13158_v39 }
 0xc48   : > { %v5350_v34 = vmul.f32 1.442695, %v5301_v9 }
 0xc4a   : > { %v5387_v28 = vpop.xlane.xlu0 %5386  ;;  %10228 = vpow2.f32 %v5350_v34 }
 0xc4c   : > { %v5389_v61 = vpop.xlane.xlu1 %5388 }
 0xc4d   : > { %9773 = vrot.lane.b32.xlu0 %v14185_v63, %s10398_s7  ;;  %v5298_v63 = vsub.f32 %v13031_v13, %v13152_v35 }
 0xc4e   : > { %v9749_v1 = vpop.permute.xlu0 %9748 }
 0xc4f   : > { %v9751_v60 = vunpack.i.h.bf16 %v9749_v1  ;;  %v9750_v46 = vunpack.i.l.bf16 %v9749_v1  ;;  %v5344_v51 = vmul.f32 1.442695, %v5298_v63 }
 0xc50   : > { %v9754_v20 = vpop.permute.xlu1 %9753 }
 0xc51   : > { %v9756_v38 = vunpack.i.h.bf16 %v9754_v20  ;;  %v9755_v4 = vunpack.i.l.bf16 %v9754_v20  ;;  %v9054_v12 = vpack.c.bf16 %v9751_v60, %v9750_v46  ;;  %10230 = vpow2.f32 %v5344_v51 }
 0xc52   : > { %10232 = vpow2.f32 %v5354_v10  ;;  %v5302_v60 = vsub.f32 %v13051_v48, %v13160_v2  ;;  %v5305_v46 = vsub.f32 %v13067_v3, %v13168_v41  ;;  %v5304_v41 = vsub.f32 %v13061_v52, %v13164_v14 }
 0xc53   : > { %9055 = vmatprep.subr.bf16.mxu1 %v9054_v12  ;;  %v9058_v11 = vpack.c.bf16 %v9756_v38, %v9755_v4  ;;  %10234 = vpow2.f32 %v5348_v24 }
 0xc54   : > { %v9759_v18 = vpop.permute.xlu1 %9758  ;;  %9057 = vmatpush3.bf16.msra.mxu1 %v9054_v12  ;;  %v13255_v26 = vpop.eup %10228  ;;  %10236 = vrcp.f32 %v5383_v6  ;;  %v5307_v6 = vsub.f32 %v13077_v37, %v13176_v23 }
 0xc55   : > { %v9761_v16 = vunpack.i.h.bf16 %v9759_v18  ;;  %v9760_v33 = vunpack.i.l.bf16 %v9759_v18  ;;  %9059 = vmatprep.subr.bf16.mxu1 %v9058_v11  ;;  %10238 = vrcp.f32 %v5385_v29  ;;  %v5358_v18 = vmul.f32 1.442695, %v5305_v46  ;;  %v14325_v46 = vld [vmem:[#allocation36_spill] sm:$0xff] }
 0xc56   : > { %10240 = vrcp.f32 %v5387_v28  ;;  %v5362_v2 = vmul.f32 1.442695, %v5307_v6  ;;  %v5356_v28 = vmul.f32 1.442695, %v5304_v41  ;;  %v14329_v41 = vld [vmem:[#allocation25_spill] sm:$0xff] }
 0xc57   : > { %v9062_v27 = vpack.c.bf16 %v9761_v16, %v9760_v33  ;;  %10242 = vrcp.f32 %v5389_v61 }
 0xc58   : > { %9061 = vmatpush3.bf16.msra.mxu1 %v9058_v11  ;;  %v5352_v11 = vmul.f32 1.442695, %v5302_v60 }
 0xc59   : > { %9063 = vmatprep.subr.bf16.mxu1 %v9062_v27 }
 0xc5b   : > { %v13258_v13 = vpop.eup %10230 }
 0xc5c   : > { %9065 = vmatpush3.bf16.msra.mxu1 %v9062_v27  ;;  %v13261_v43 = vpop.eup %10232 }
 0xc5d   : > { %v13264_v35 = vpop.eup %10234 }
 0xc5e   : > { %v10237_v48 = vpop.eup %10236 }
 0xc5f   : > { %v10239_v3 = vpop.eup %10238  ;;  %v5477_v23 = vmul.f32 %v10237_v48, %v13129_v47 }
 0xc60   : > { %v10241_v37 = vpop.eup %10240  ;;  %v5478_v61 = vmul.f32 %v10239_v3, %v13137_v30 }
 0xc61   : > { %v10243_v16 = vpop.eup %10242  ;;  %v5479_v52 = vmul.f32 %v10241_v37, %v13142_v42  ;;  %v14330_v37 = vld [vmem:[#allocation53_spill] sm:$0xff] }
 0xc62   : > { %v5480_v33 = vmul.f32 %v10243_v16, %v13145_v45  ;;  %v14331_v16 = vld [vmem:[#allocation50_spill] sm:$0xff] }
 0xc6a   : > { %5414 = vadd.xlane.f32.xlu1 %v13255_v26 }
 0xc6c   : > { %5408 = vadd.xlane.f32.xlu0 %v13258_v13 }
 0xc6e   : > { %5418 = vadd.xlane.f32.xlu1 %v13261_v43 }
 0xc70   : > { %5412 = vadd.xlane.f32.xlu0 %v13264_v35 }
 0xc7f   : > { %v5391_v36 = vpop.xlane.xlu0 %5390  ;;  %9788 = vrot.lane.b32.xlu1 %v14231_v0, %s10398_s7 }
 0xc80   : > { %10244 = vrcp.f32 %v5391_v36 }
 0xc83   : > { %v5393_v55 = vpop.xlane.xlu0 %5392 }
 0xc84   : > { %10246 = vrcp.f32 %v5393_v55 }
 0xc85   : > { %v5399_v39 = vpop.xlane.xlu1 %5398  ;;  %10248 = vpow2.f32 %v5352_v11 }
 0xc86   : > { %9783 = vrot.lane.b32.xlu0 %v14181_v57, %s10398_s7  ;;  %10250 = vpow2.f32 %v5358_v18 }
 0xc87   : > { %v5395_v7 = vpop.xlane.xlu0 %5394 }
 0xc88   : > { %10252 = vrcp.f32 %v5395_v7 }
 0xc89   : > { %v13271_v59 = vpop.xlane.xlu1 %5402 }
 0xc8a   : > { %v10245_v14 = vpop.eup %10244 }
 0xc8b   : > { %v5397_v17 = vpop.xlane.xlu0 %5396  ;;  %v5481_v30 = vmul.f32 %v10245_v14, %v13200_v40 }
 0xc8c   : > { %10254 = vrcp.f32 %v5397_v17 }
 0xc8d   : > { %v9769_v1 = vpop.permute.xlu1 %9768  ;;  %10256 = vpow2.f32 %v5362_v2 }
 0xc8e   : > { %v9771_v0 = vunpack.i.h.bf16 %v9769_v1  ;;  %v9770_v38 = vunpack.i.l.bf16 %v9769_v1  ;;  %10258 = vrcp.f32 %v5399_v39  ;;  %v10247_v9 = vpop.eup %10246 }
 0xc8f   : > { %v9764_v20 = vpop.permute.xlu0 %9763  ;;  %10260 = vpow2.f32 %v5356_v28  ;;  %v13285_v27 = vpop.eup %10248  ;;  %v5482_v34 = vmul.f32 %v10247_v9, %v13203_v54 }
 0xc90   : > { %v9766_v4 = vunpack.i.h.bf16 %v9764_v20  ;;  %v9765_v12 = vunpack.i.l.bf16 %v9764_v20  ;;  %v9070_v29 = vpack.c.bf16 %v9771_v0, %v9770_v38  ;;  %v13287_v47 = vpop.eup %10250  ;;  %10262 = vrcp.f32 %v13271_v59 }
 0xc92   : > { %v9066_v57 = vpack.c.bf16 %v9766_v4, %v9765_v12  ;;  %v10253_v63 = vpop.eup %10252  ;;  %v14326_v4 = vld [vmem:[#allocation40_spill] sm:$0xff] }
 0xc93   : > { %v5483_v45 = vmul.f32 %v10253_v63, %v13209_v56  ;;  %v14327_v12 = vld [vmem:[#allocation28_spill] sm:$0xff]  ;;  %v14333_v63 = vld [vmem:[#allocation31_spill] sm:$0xff] }
 0xc94   : > { %9067 = vmatprep.subr.bf16.mxu1 %v9066_v57 }
 0xc95   : > { %9069 = vmatpush3.bf16.msra.mxu1 %v9066_v57  ;;  %v5311_v57 = vsub.f32 %v14327_v12, %v14326_v4 }
 0xc96   : > { %9071 = vmatprep.subr.bf16.mxu1 %v9070_v29  ;;  %v10255_v31 = vpop.eup %10254 }
 0xc97   : > { %v13293_v42 = vpop.eup %10256  ;;  %v5484_v15 = vmul.f32 %v10255_v31, %v13215_v5  ;;  %v5370_v3 = vmul.f32 1.442695, %v5311_v57 }
 0xc98   : > { %v10259_v51 = vpop.eup %10258 }
 0xc99   : > { %9073 = vmatpush3.bf16.msra.mxu1 %v9070_v29  ;;  %v13298_v40 = vpop.eup %10260  ;;  %v5485_v54 = vmul.f32 %v10259_v51, %v13206_v44  ;;  %v5309_v44 = vsub.f32 %v13087_v25, %v13180_v19  ;;  %v14328_v29 = vld [vmem:[#allocation37_spill] sm:$0xff] }
 0xc9a   : > { %v10263_v1 = vpop.eup %10262  ;;  %v5308_v48 = vsub.f32 %v14329_v41, %v14328_v29 }
 0xc9b   : > { %v5366_v38 = vmul.f32 1.442695, %v5309_v44  ;;  %v5487_v19 = vmul.f32 %v10263_v1, %v13212_v49 }
 0xc9c   : > { %8323 = vmatmul.mubr.f32.vlgmr.msra.gmra.mrb[112].mxu1 %v5477_v23  ;;  %v5364_v49 = vmul.f32 1.442695, %v5308_v48 }
 0xc9d   : > { %8325 = vmatprep.mubr.f32.mxu1 %v5478_v61 }
 0xca0   : > { %8326 = vmatmul.mubr.f32.gmra.mrb[114].mxu1 %v5479_v52 }
 0xca1   : > { %8328 = vmatprep.mubr.f32.mxu1 %v5480_v33 }
 0xca3   : > { %5422 = vadd.xlane.f32.xlu1 %v13287_v47 }
 0xca4   : > { %8329 = vmatmul.mubr.f32.gmra.mrb[116].mxu1 %v5481_v30  ;;  %v14332_v30 = vld [vmem:[#allocation46_spill] sm:$0xff] }
 0xca5   : > { %5416 = vadd.xlane.f32.xlu0 %v13285_v27  ;;  %8331 = vmatprep.mubr.f32.mxu1 %v5482_v34  ;;  %v5313_v34 = vsub.f32 %v14333_v63, %v14332_v30  ;;  %v14344_v30 = vld [vmem:[#allocation10_spill] sm:$0xff] }
 0xca7   : > { %5426 = vadd.xlane.f32.xlu1 %v13293_v42 }
 0xca8   : > { %8332 = vmatmul.mubr.f32.gmra.mrb[118].mxu1 %v5483_v45 }
 0xca9   : > { %5420 = vadd.xlane.f32.xlu0 %v13298_v40  ;;  %8334 = vmatprep.mubr.f32.mxu1 %v5484_v15 }
 0xcac   : > { %8335 = vmatmul.mubr.f32.gmra.mrb[120].mxu1 %v5485_v54 }
 0xcb8   : > { %9798 = vrot.lane.b32.xlu1 %v14249_v58, %s10398_s7 }
 0xcbe   : > { %v5407_v10 = vpop.xlane.xlu1 %5406 }
 0xcbf   : > { %9793 = vrot.lane.b32.xlu0 %v14236_v22, %s10398_s7  ;;  %v14324_v22 = vld [vmem:[#allocation48_spill] sm:$0xff] }
 0xcc0   : > { %v5401_v56 = vpop.xlane.xlu0 %5400  ;;  %v5306_v59 = vsub.f32 %v14325_v46, %v14324_v22  ;;  %v14337_v22 = vld [vmem:[#allocation42_spill] sm:$0xff] }
 0xcc1   : > { %10264 = vrcp.f32 %v5401_v56 }
 0xcc2   : > { %v5411_v5 = vpop.xlane.xlu1 %5410  ;;  %10266 = vrcp.f32 %v5407_v10  ;;  %v5360_v6 = vmul.f32 1.442695, %v5306_v59 }
 0xcc4   : > { %v5405_v24 = vpop.xlane.xlu0 %5404 }
 0xcc5   : > { %10268 = vrcp.f32 %v5405_v24  ;;  %v14334_v24 = vld [vmem:[#allocation51_spill] sm:$0xff] }
 0xcc6   : > { %v9779_v36 = vpop.permute.xlu1 %9778  ;;  %10270 = vpow2.f32 %v5366_v38  ;;  %v14339_v38 = vld [vmem:[#allocation34_spill] sm:$0xff] }
 0xcc7   : > { %v9781_v39 = vunpack.i.h.bf16 %v9779_v36  ;;  %v9780_v7 = vunpack.i.l.bf16 %v9779_v36  ;;  %10272 = vpow2.f32 %v5360_v6  ;;  %v14335_v36 = vld [vmem:[#allocation39_spill] sm:$0xff]  ;;  %v5315_v4 = vsub.f32 %v14339_v38, %v13195_v62 }
 0xcc8   : > { %v9774_v55 = vpop.permute.xlu0 %9773  ;;  %10274 = vpow2.f32 %v5370_v3 }
 0xcc9   : > { %v9776_v58 = vunpack.i.h.bf16 %v9774_v55  ;;  %v9775_v17 = vunpack.i.l.bf16 %v9774_v55  ;;  %v9078_v25 = vpack.c.bf16 %v9781_v39, %v9780_v7  ;;  %10276 = vpow2.f32 %v5364_v49 }
 0xcca   : > { %10278 = vrcp.f32 %v5411_v5  ;;  %v5310_v5 = vsub.f32 %v14335_v36, %v14334_v24  ;;  %v5374_v39 = vmul.f32 1.442695, %v5313_v34  ;;  %v5378_v57 = vmul.f32 1.442695, %v5315_v4 }
 0xccb   : > { %v10265_v60 = vpop.eup %10264  ;;  %v9074_v20 = vpack.c.bf16 %v9776_v58, %v9775_v17 }
 0xccc   : > { %v5486_v0 = vmul.f32 %v10265_v60, %v13234_v50  ;;  %v10267_v11 = vpop.eup %10266  ;;  %v5368_v1 = vmul.f32 1.442695, %v5310_v5  ;;  %v14336_v60 = vld [vmem:[#allocation43_spill] sm:$0xff] }
 0xccd   : > { %9075 = vmatprep.subr.bf16.mxu0 %v9074_v20  ;;  %v5489_v2 = vmul.f32 %v10267_v11, %v13231_v8  ;;  %v5312_v46 = vsub.f32 %v14337_v22, %v14336_v60  ;;  %v14341_v11 = vld [vmem:[#allocation91_spill] sm:$0xff] }
 0xcce   : > { %8337 = vmatprep.mubr.f32.mxu1 %v5486_v0  ;;  %9077 = vmatpush3.bf16.msra.mxu0 %v9074_v20  ;;  %v14338_v20 = vld [vmem:[#allocation45_spill] sm:$0xff] }
 0xccf   : > { %v10269_v18 = vpop.eup %10268  ;;  %8338 = vmatmul.mubr.f32.gmra.mrb[122].mxu1 %v5487_v19  ;;  %9079 = vmatprep.subr.bf16.mxu0 %v9078_v25 }
 0xcd0   : > { %v5488_v50 = vmul.f32 %v10269_v18, %v13240_v32  ;;  %v13319_v28 = vpop.eup %10270 }
 0xcd1   : > { %v13322_v23 = vpop.eup %10272 }
 0xcd2   : > { %8340 = vmatprep.mubr.f32.mxu1 %v5488_v50  ;;  %9081 = vmatpush3.bf16.msra.mxu0 %v9078_v25  ;;  %v13325_v32 = vpop.eup %10274  ;;  %v14340_v25 = vld [vmem:[#allocation92_spill] sm:$0xff]  ;;  %v14342_v50 = vld [vmem:[#allocation69_spill] sm:$0xff] }
 0xcd3   : > { %8341 = vmatmul.mubr.f32.gmra.mrb[124].mxu1 %v5489_v2  ;;  %v13328_v8 = vpop.eup %10276 }
 0xcd4   : > { %v10279_v10 = vpop.eup %10278 }
 0xcd5   : > { %v5491_v7 = vmul.f32 %v10279_v10, %v13237_v21  ;;  %v5314_v21 = vsub.f32 %v14338_v20, %v13192_v53 }
 0xcd7   : > { %v5376_v0 = vmul.f32 1.442695, %v5314_v21 }
 0xcdc   : > { %5430 = vadd.xlane.f32.xlu1 %v13319_v28 }
 0xcde   : > { %5424 = vadd.xlane.f32.xlu0 %v13322_v23 }
 0xce0   : > { %5434 = vadd.xlane.f32.xlu1 %v13325_v32 }
 0xce2   : > { %5428 = vadd.xlane.f32.xlu0 %v13328_v8 }
 0xcf1   : > { %9808 = vrot.lane.b32.xlu1 %v14330_v37, %s10398_s7 }
 0xcf7   : > { %v13333_v61 = vpop.xlane.xlu1 %5414 }
 0xcf8   : > { %9803 = vrot.lane.b32.xlu0 %v14331_v16, %s10398_s7  ;;  %s6865_s7 = sshll.u32 %s10450_s19, 12  ;;  %s13823_s19 = scalar_lea.sflag [#allocation4], %s191_s28 }
 0xcf9   : > { %v5409_v52 = vpop.xlane.xlu0 %5408  ;;  %s13812_s12 = scalar_lea.hbm %s13869_s4, %s6865_s7 }
 0xcfa   : > { %10280 = vrcp.f32 %v5409_v52  ;;  %v14343_v52 = vld [vmem:[#allocation67_spill] sm:$0xff] }
 0xcfb   : > { %v13337_v14 = vpop.xlane.xlu1 %5418 }
 0xcfd   : > { %v5413_v33 = vpop.xlane.xlu0 %5412 }
 0xcfe   : > { %10282 = vrcp.f32 %v5413_v33 }
 0xcff   : > { %v9789_v9 = vpop.permute.xlu1 %9788  ;;  %10284 = vpow2.f32 %v5374_v39 }
 0xd00   : > { %v9791_v45 = vunpack.i.h.bf16 %v9789_v9  ;;  %v9790_v51 = vunpack.i.l.bf16 %v9789_v9  ;;  %10286 = vpow2.f32 %v5368_v1 }
 0xd01   : > { %v9784_v31 = vpop.permute.xlu0 %9783 }
 0xd02   : > { %v9786_v15 = vunpack.i.h.bf16 %v9784_v31  ;;  %v9785_v54 = vunpack.i.l.bf16 %v9784_v31  ;;  %v9086_v58 = vpack.c.bf16 %v9791_v45, %v9790_v51 }
 0xd04   : > { %v10281_v56 = vpop.eup %10280  ;;  %v9082_v44 = vpack.c.bf16 %v9786_v15, %v9785_v54 }
 0xd05   : > { %v5490_v55 = vmul.f32 %v10281_v56, %v13258_v13  ;;  %v5372_v13 = vmul.f32 1.442695, %v5312_v46 }
 0xd06   : > { %9083 = vmatprep.subr.bf16.mxu0 %v9082_v44 }
 0xd07   : > { %8343 = vmatprep.mubr.f32.mxu1 %v5490_v55  ;;  %9085 = vmatpush3.bf16.msra.mxu0 %v9082_v44  ;;  %10288 = vpow2.f32 %v5372_v13 }
 0xd08   : > { %v10283_v17 = vpop.eup %10282  ;;  %8344 = vmatmul.mubr.f32.gmra.mrb[126].mxu1 %v5491_v7  ;;  %9087 = vmatprep.subr.bf16.mxu0 %v9086_v58  ;;  %10290 = vpow2.f32 %v5376_v0 }
 0xd09   : > { %v5492_v59 = vmul.f32 %v10283_v17, %v13264_v35  ;;  %v13352_v12 = vpop.eup %10284  ;;  %10292 = vpow2.f32 %v5378_v57 }
 0xd0a   : > { %v13355_v35 = vpop.eup %10286  ;;  %10294 = vrcp.f32 %v13333_v61 }
 0xd0b   : > { %9089 = vmatpush3.bf16.msra.mxu0 %v9086_v58  ;;  %8378 = vmatprep.mubr.f32.mxu0 %v5492_v59 }
 0xd11   : > { %v13358_v19 = vpop.eup %10288 }
 0xd12   : > { %v13361_v53 = vpop.eup %10290 }
 0xd13   : > { %v13364_v62 = vpop.eup %10292 }
 0xd14   : > { %v10295_v61 = vpop.eup %10294 }
 0xd15   : > { %5438 = vadd.xlane.f32.xlu1 %v13352_v12 }
 0xd17   : > { %5432 = vadd.xlane.f32.xlu0 %v13355_v35 }
 0xd1b   : > { %5436 = vadd.xlane.f32.xlu0 %v13358_v19 }
 0xd1f   : > { %5440 = vadd.xlane.f32.xlu0 %v13361_v53 }
 0xd23   : > { %5442 = vadd.xlane.f32.xlu0 %v13364_v62 }
 0xd26   : > { %4543 = vrot.lane.b32.xlu1 %v14340_v25, %s10399_s8 }
 0xd2a   : > { %4545 = vrot.lane.b32.xlu1 %v14341_v11, %s10399_s8 }
 0xd30   : > { %v5423_v18 = vpop.xlane.xlu1 %5422 }
 0xd32   : > { %v5417_v6 = vpop.xlane.xlu0 %5416 }
 0xd33   : > { %10296 = vrcp.f32 %v5417_v6 }
 0xd34   : > { %v5427_v29 = vpop.xlane.xlu1 %5426  ;;  %10298 = vrcp.f32 %v13337_v14  ;;  %v5493_v14 = vmul.f32 %v10295_v61, %v13255_v26 }
 0xd36   : > { %v5421_v41 = vpop.xlane.xlu0 %5420 }
 0xd37   : > { %10300 = vrcp.f32 %v5421_v41 }
 0xd38   : > { %v9799_v48 = vpop.permute.xlu1 %9798  ;;  %10302 = vrcp.f32 %v5423_v18 }
 0xd39   : > { %3128 = vrot.lane.b32.xlu0 %v14342_v50, %s10400_s9  ;;  %v9801_v2 = vunpack.i.h.bf16 %v9799_v48  ;;  %v9800_v49 = vunpack.i.l.bf16 %v9799_v48 }
 0xd3a   : > { %v9794_v3 = vpop.permute.xlu0 %9793 }
 0xd3b   : > { %v9796_v37 = vunpack.i.h.bf16 %v9794_v3  ;;  %v9795_v16 = vunpack.i.l.bf16 %v9794_v3  ;;  %v9094_v9 = vpack.c.bf16 %v9801_v2, %v9800_v49 }
 0xd3d   : > { %3130 = vrot.lane.b32.xlu0 %v14343_v52, %s10400_s9  ;;  %v9090_v33 = vpack.c.bf16 %v9796_v37, %v9795_v16  ;;  %v10297_v60 = vpop.eup %10296 }
 0xd3e   : > { %v10299_v46 = vpop.eup %10298  ;;  %v5494_v13 = vmul.f32 %v10297_v60, %v13285_v27 }
 0xd3f   : > { %9091 = vmatprep.subr.bf16.mxu0 %v9090_v33  ;;  %v5495_v0 = vmul.f32 %v10299_v46, %v13261_v43 }
 0xd40   : > { %9093 = vmatpush3.bf16.msra.mxu0 %v9090_v33 }
 0xd41   : > { %4541 = vrot.lane.b32.xlu0 %v14344_v30, %s10399_s8  ;;  %9095 = vmatprep.subr.bf16.mxu0 %v9094_v9  ;;  %v10301_v20 = vpop.eup %10300 }
 0xd42   : > { %v10303_v38 = vpop.eup %10302  ;;  %v5496_v4 = vmul.f32 %v10301_v20, %v13298_v40 }
 0xd43   : > { %v5497_v26 = vmul.f32 %v10303_v38, %v13287_v47 }
 0xd44   : > { %9097 = vmatpush3.bf16.msra.mxu0 %v9094_v9 }
 0xd69   : > { %v5431_v63 = vpop.xlane.xlu1 %5430 }
 0xd6b   : > { %v5425_v34 = vpop.xlane.xlu0 %5424 }
 0xd6c   : > { %10304 = vrcp.f32 %v5425_v34 }
 0xd6d   : > { %v5435_v31 = vpop.xlane.xlu1 %5434  ;;  %10306 = vrcp.f32 %v5427_v29 }
 0xd6f   : > { %v5429_v45 = vpop.xlane.xlu0 %5428  ;;  %v13377_v51 = vpop.f32.mrb[112].mxu1 }
 0xd70   : > { %v13379_v15 = vpop.f32.mrb[113].mxu1  ;;  %10308 = vrcp.f32 %v5429_v45 }
 0xd71   : > { %v9809_v54 = vpop.permute.xlu1 %9808  ;;  %10310 = vrcp.f32 %v5431_v63 }
 0xd72   : > { %v9811_v24 = vunpack.i.h.bf16 %v9809_v54  ;;  %v9810_v36 = vunpack.i.l.bf16 %v9809_v54  ;;  %10312 = vrcp.f32 %v5435_v31 }
 0xd73   : > { %v9804_v10 = vpop.permute.xlu0 %9803  ;;  %v13382_v56 = vpop.f32.mrb[114].mxu1 }
 0xd74   : > { %v9806_v5 = vunpack.i.h.bf16 %v9804_v10  ;;  %v9805_v44 = vunpack.i.l.bf16 %v9804_v10  ;;  %v13384_v55 = vpop.f32.mrb[115].mxu1  ;;  %v9102_v58 = vpack.c.bf16 %v9811_v24, %v9810_v36  ;;  %v6089_v10 = vld [vmem:[%s13867_s2 + $0x10] sm:$0xff] }
 0xd76   : > { %v9098_v39 = vpack.c.bf16 %v9806_v5, %v9805_v44  ;;  %v10305_v57 = vpop.eup %10304  ;;  %v14345_v44 = vld [vmem:[#allocation79_spill] sm:$0xff] }
 0xd77   : > { %v13387_v7 = vpop.f32.mrb[116].mxu1  ;;  %v10307_v25 = vpop.eup %10306  ;;  %v5498_v11 = vmul.f32 %v10305_v57, %v13322_v23  ;;  %v14348_v57 = vld [vmem:[#allocation71_spill] sm:$0xff] }
 0xd78   : > { %v13389_v17 = vpop.f32.mrb[117].mxu1  ;;  %9099 = vmatprep.subr.bf16.mxu0 %v9098_v39  ;;  %v5499_v18 = vmul.f32 %v10307_v25, %v13293_v42 }
 0xd79   : > { %9101 = vmatpush3.bf16.msra.mxu0 %v9098_v39  ;;  %v14346_v39 = vld [vmem:[#allocation72_spill] sm:$0xff] }
 0xd7a   : > { %9103 = vmatprep.subr.bf16.mxu0 %v9102_v58  ;;  %v10309_v27 = vpop.eup %10308 }
 0xd7b   : > { %v13391_v1 = vpop.f32.mrb[118].mxu1  ;;  %v10311_v6 = vpop.eup %10310  ;;  %v5500_v29 = vmul.f32 %v10309_v27, %v13328_v8 }
 0xd7c   : > { %v13393_v22 = vpop.f32.mrb[119].mxu1  ;;  %v5501_v43 = vmul.f32 %v10311_v6, %v13319_v28  ;;  %v10313_v3 = vpop.eup %10312  ;;  %v14350_v6 = vld [vmem:[#allocation74_spill] sm:$0xff] }
 0xd7d   : > { %9105 = vmatpush3.bf16.msra.mxu0 %v9102_v58  ;;  %v5503_v37 = vmul.f32 %v10313_v3, %v13325_v32  ;;  %v14347_v58 = vld [vmem:[#allocation88_spill] sm:$0xff] }
 0xd7f   : > { %v13396_v59 = vpop.f32.mrb[120].mxu1 }
 0xd80   : > { %v13399_v21 = vpop.f32.mrb[121].mxu1  ;;  %8379 = vmatmul.mubr.f32.vlgmr.msra.gmra.mrb[144].mxu0 %v5493_v14 }
 0xd81   : > { %8381 = vmatprep.mubr.f32.mxu0 %v5494_v13 }
 0xd84   : > { %8382 = vmatmul.mubr.f32.gmra.mrb[146].mxu0 %v5495_v0 }
 0xd85   : > { %8384 = vmatprep.mubr.f32.mxu0 %v5496_v4 }
 0xd88   : > { %8385 = vmatmul.mubr.f32.gmra.mrb[148].mxu0 %v5497_v26  ;;  %v14349_v26 = vld [vmem:[#allocation55_spill] sm:$0xff] }
 0xd89   : > { %8387 = vmatprep.mubr.f32.mxu0 %v5498_v11 }
 0xd8c   : > { %8388 = vmatmul.mubr.f32.gmra.mrb[150].mxu0 %v5499_v18 }
 0xd8d   : > { %8390 = vmatprep.mubr.f32.mxu0 %v5500_v29  ;;  %v14351_v29 = vld [vmem:[#allocation29_spill] sm:$0xff] }
 0xd90   : > { %8391 = vmatmul.mubr.f32.gmra.mrb[152].mxu0 %v5501_v43 }
 0xda2   : > { %v13408_v40 = vpop.f32.mrb[122].mxu1  ;;  %v5439_v23 = vpop.xlane.xlu1 %5438 }
 0xda3   : > { %v13410_v41 = vpop.f32.mrb[123].mxu1 }
 0xda4   : > { %v5433_v47 = vpop.xlane.xlu0 %5432 }
 0xda5   : > { %10314 = vrcp.f32 %v5433_v47 }
 0xda6   : > { %v13412_v48 = vpop.f32.mrb[124].mxu1  ;;  %10316 = vrcp.f32 %v5439_v23  ;;  %v4544_v32 = vpop.permute.xlu1 %4543 }
 0xda7   : > { %v13414_v50 = vpop.f32.mrb[125].mxu1 }
 0xda8   : > { %v5437_v42 = vpop.xlane.xlu0 %5436 }
 0xda9   : > { %10318 = vrcp.f32 %v5437_v42  ;;  %v14352_v42 = vld [vmem:[#allocation13_spill] sm:$0xff] }
 0xdaa   : > { %v4546_v38 = vpop.permute.xlu1 %4545 }
 0xdac   : > { %v5441_v8 = vpop.xlane.xlu0 %5440 }
 0xdad   : > { %10320 = vrcp.f32 %v5441_v8  ;;  %v14353_v8 = vld [vmem:[#allocation26_spill] sm:$0xff] }
 0xdaf   : > { %v10315_v28 = vpop.eup %10314 }
 0xdb0   : > { %v5443_v2 = vpop.xlane.xlu0 %5442  ;;  %v5502_v49 = vmul.f32 %v10315_v28, %v13355_v35  ;;  %v10317_v16 = vpop.eup %10316 }
 0xdb1   : > { %10322 = vrcp.f32 %v5443_v2  ;;  %v5505_v30 = vmul.f32 %v10317_v16, %v13352_v12  ;;  %v6087_v12 = vld [vmem:[%s13867_s2] sm:$0xff]  ;;  %v14354_v2 = vld [vmem:[#allocation47_spill] sm:$0xff]  ;;  %v14357_v16 = vld [vmem:[#allocation56_spill] sm:$0xff] }
 0xdb2   : > { %8393 = vmatprep.mubr.f32.mxu0 %v5502_v49  ;;  %v14355_v49 = vld [vmem:[#allocation20_spill] sm:$0xff] }
 0xdb3   : > { %v10319_v52 = vpop.eup %10318  ;;  %8394 = vmatmul.mubr.f32.gmra.mrb[154].mxu0 %v5503_v37  ;;  %v14356_v37 = vld [vmem:[#allocation73_spill] sm:$0xff] }
 0xdb4   : > { %v3129_v33 = vpop.permute.xlu0 %3128  ;;  %v5504_v9 = vmul.f32 %v10319_v52, %v13358_v19  ;;  %v14358_v52 = vld [vmem:[#allocation76_spill] sm:$0xff] }
 0xdb5   : > { %3211 = vst.msk [vmem:[#allocation2 + $0x70] sm:$0xff] %vm3196_vm4, %v3129_v33  ;;  %v14359_v33 = vld [vmem:[#allocation54_spill] sm:$0xff] }
 0xdb6   : > { %8396 = vmatprep.mubr.f32.mxu0 %v5504_v9  ;;  %v14360_v9 = vld [vmem:[#allocation15_spill] sm:$0xff] }
 0xdb7   : > { %v10321_v63 = vpop.eup %10320  ;;  %8397 = vmatmul.mubr.f32.gmra.mrb[156].mxu0 %v5505_v30  ;;  %v14363_v30 = vld [vmem:[#allocation32_spill] sm:$0xff] }
 0xdb8   : > { %v3131_v35 = vpop.permute.xlu0 %3130  ;;  %v5506_v34 = vmul.f32 %v10321_v63, %v13361_v53  ;;  %v6088_v53 = vld [vmem:[%s13867_s2 + $0x8] sm:$0xff] }
 0xdb9   : > { %3212 = vst.msk [vmem:[#allocation2 + $0x78] sm:$0xff] %vm3196_vm4, %v3131_v35  ;;  %v9106_v54 = vpack.c.bf16 %v6088_v53, %v6087_v12  ;;  %v14369_v53 = vld [vmem:[#allocation89_spill] sm:$0xff] }
 0xdba   : > { %8399 = vmatprep.mubr.f32.mxu0 %v5506_v34  ;;  %4625 = vst.msk [vmem:[#allocation2 + $0x78] sm:$0xff] %vm4609_vm5, %v4544_v32  ;;  %v14364_v34 = vld [vmem:[#allocation75_spill] sm:$0xff]  ;;  %v14365_v32 = vld [vmem:[#allocation58_spill] sm:$0xff] }
 0xdbb   : > { %v10323_v31 = vpop.eup %10322  ;;  %9114 = vmatprep.subr.bf16.mxu1 %v9106_v54  ;;  %9107 = vmatprep.subr.bf16.mxu0 %v9106_v54 }
 0xdbc   : > { %v4542_v45 = vpop.permute.xlu0 %4541  ;;  %v5507_v19 = vmul.f32 %v10323_v31, %v13364_v62  ;;  %9116 = vmatpush3.bf16.msra.mxu1 %v9106_v54  ;;  %v6090_v62 = vld [vmem:[%s13867_s2 + $0x18] sm:$0xff]  ;;  %9109 = vmatpush3.bf16.msra.mxu0 %v9106_v54 }
 0xdbd   : > { %4624 = vst.msk [vmem:[#allocation2 + $0x70] sm:$0xff] %vm4609_vm5, %v4542_v45  ;;  %v9110_v24 = vpack.c.bf16 %v6090_v62, %v6089_v10  ;;  %v14370_v10 = vld [vmem:[#allocation19_spill] sm:$0xff] }
 0xdbe   : > { %8400 = vmatmul.mubr.f32.gmra.mrb[158].mxu0 %v5507_v19  ;;  %v14366_v19 = vld [vmem:[#allocation78_spill] sm:$0xff]  ;;  %v14371_v62 = vld [vmem:[#allocation87_spill] sm:$0xff] }
 0xdbf   : > { %9115 = vmatprep.subr.bf16.mxu1 %v9110_v24  ;;  %9111 = vmatprep.subr.bf16.mxu0 %v9110_v24 }
 0xdc0   : > { %9117 = vmatpush3.bf16.msra.mxu1 %v9110_v24  ;;  %9113 = vmatpush3.bf16.msra.mxu0 %v9110_v24  ;;  %v14372_v24 = vld [vmem:[#allocation80_spill] sm:$0xff] }
 0xddb   : > { %v8345_v36 = vpop.f32.mrb[126].mxu1 }
 0xddc   : > { %v5692_v5 = vpop.f32.mrb[127].mxu1 }
 0xddd   : > { %5954 = vrot.lane.b32.xlu0 %v5692_v5, %s10401_s27  ;;  %v14374_v5 = vld [vmem:[#allocation62_spill] sm:$0xff] }
 0xde1   : > { %5956 = vrot.lane.b32.xlu0 %v8345_v36, %s10401_s27  ;;  %v14373_v36 = vld [vmem:[#allocation66_spill] sm:$0xff] }
 0xde5   : > { %3132 = vrot.lane.b32.xlu0 %v14345_v44, %s10400_s9  ;;  %v14375_v44 = vld [vmem:[#allocation59_spill] sm:$0xff] }
 0xde9   : > { %3134 = vrot.lane.b32.xlu0 %v14346_v39, %s10400_s9  ;;  %v14376_v39 = vld [vmem:[#allocation24_spill] sm:$0xff] }
 0xded   : > { %4547 = vrot.lane.b32.xlu0 %v14347_v58, %s10399_s8  ;;  %v14379_v58 = vld [vmem:[#allocation41_spill] sm:$0xff] }
 0xe4f   : > { %v5955_v61 = vpop.permute.xlu0 %5954 }
 0xe50   : > { %6037 = vst.msk [vmem:[#allocation2 + $0x70] sm:$0xff] %vm6022_vm6, %v5955_v61  ;;  %v14380_v61 = vld [vmem:[#allocation82_spill] sm:$0xff] }
 0xe53   : > { %v8380_v60 = vpop.f32.mrb[144].mxu0  ;;  %v5957_v14 = vpop.permute.xlu0 %5956 }
 0xe54   : > { %6038 = vst.msk [vmem:[#allocation2 + $0x78] sm:$0xff] %vm6022_vm6, %v5957_v14  ;;  %v5815_v46 = vpop.f32.mrb[145].mxu0  ;;  %5960 = vrot.lane.b32.xlu0 %v8380_v60, %s10401_s27  ;;  %v14381_v60 = vld [vmem:[#allocation68_spill] sm:$0xff]  ;;  %v14382_v14 = vld [vmem:[#allocation77_spill] sm:$0xff] }
 0xe55   : > { %5958 = vrot.lane.b32.xlu1 %v5815_v46, %s10401_s27  ;;  %v14383_v46 = vld [vmem:[#allocation63_spill] sm:$0xff] }
 0xe57   : > { %v8383_v13 = vpop.f32.mrb[146].mxu0  ;;  %v3133_v20 = vpop.permute.xlu0 %3132  ;;  %v6069_v0 = vld [vmem:[#allocation2 + $0x70] sm:$0xff] }
 0xe58   : > { %3213 = vst.msk [vmem:[#allocation2 + $0x80] sm:$0xff] %vm3196_vm4, %v3133_v20  ;;  %v5825_v4 = vpop.f32.mrb[147].mxu0  ;;  %3136 = vrot.lane.b32.xlu0 %v14348_v57, %s10400_s9  ;;  %8431 = vmatprep.mubr.msk.f32.mxu1 %vm238_vm0, %v6069_v0  ;;  %v14387_v20 = vld [vmem:[#allocation85_spill] sm:$0xff] }
 0xe59   : > { %4626 = vst.msk [vmem:[#allocation2 + $0x80] sm:$0xff] %vm4609_vm5, %v4546_v38  ;;  %3100 = vrot.lane.b32.xlu1 %v14349_v26, %s10400_s9 }
 0xe5b   : > { %v8386_v25 = vpop.f32.mrb[148].mxu0  ;;  %v3135_v11 = vpop.permute.xlu0 %3134  ;;  %v6070_v27 = vld [vmem:[#allocation2 + $0x78] sm:$0xff] }
 0xe5c   : > { %3214 = vst.msk [vmem:[#allocation2 + $0x88] sm:$0xff] %vm3196_vm4, %v3135_v11  ;;  %v5835_v18 = vpop.f32.mrb[149].mxu0  ;;  %3138 = vrot.lane.b32.xlu0 %v14350_v6, %s10400_s9  ;;  %8432 = vmatmul.mubr.msk.f32.vlgmr.msra.gmra.mrb[128].mxu1 %vm238_vm0, %v6070_v27 }
 0xe5d   : > { %3102 = vrot.lane.b32.xlu1 %v14351_v29, %s10400_s9  ;;  %v14390_v29 = vld [vmem:[#allocation81_spill] sm:$0xff] }
 0xe5f   : > { %v8389_v43 = vpop.f32.mrb[150].mxu0  ;;  %v4548_v47 = vpop.permute.xlu0 %4547 }
 0xe60   : > { %4627 = vst.msk [vmem:[#allocation2 + $0x88] sm:$0xff] %vm4609_vm5, %v4548_v47  ;;  %v5845_v23 = vpop.f32.mrb[151].mxu0  ;;  %4549 = vrot.lane.b32.xlu0 %v14352_v42, %s10399_s8  ;;  %v14392_v42 = vld [vmem:[#allocation18_spill] sm:$0xff] }
 0xe61   : > { %4513 = vrot.lane.b32.xlu1 %v14353_v8, %s10399_s8  ;;  %v14393_v8 = vld [vmem:[#allocation90_spill] sm:$0xff] }
 0xe63   : > { %v8392_v3 = vpop.f32.mrb[152].mxu0 }
 0xe64   : > { %v5855_v28 = vpop.f32.mrb[153].mxu0  ;;  %4551 = vrot.lane.b32.xlu0 %v14354_v2, %s10399_s8  ;;  %v14394_v2 = vld [vmem:[#allocation30_spill] sm:$0xff] }
 0xe65   : > { %4515 = vrot.lane.b32.xlu1 %v14355_v49, %s10399_s8  ;;  %v14395_v49 = vld [vmem:[#allocation38_spill] sm:$0xff] }
 0xe68   : > { %5962 = vrot.lane.b32.xlu0 %v5825_v4, %s10401_s27 }
 0xe69   : > { %5926 = vrot.lane.b32.xlu1 %v13379_v15, %s10401_s27  ;;  %v14361_v15 = vld [vmem:[#allocation35_spill] sm:$0xff] }
 0xe6c   : > { %5964 = vrot.lane.b32.xlu0 %v8383_v13, %s10401_s27  ;;  %v14384_v13 = vld [vmem:[#allocation27_spill] sm:$0xff] }
 0xe6d   : > { %5928 = vrot.lane.b32.xlu1 %v13377_v51, %s10401_s27  ;;  %v14362_v51 = vld [vmem:[#allocation12_spill] sm:$0xff] }
 0xe70   : > { %3140 = vrot.lane.b32.xlu0 %v14356_v37, %s10400_s9 }
 0xe71   : > { %3104 = vrot.lane.b32.xlu1 %v14357_v16, %s10400_s9 }
 0xe74   : > { %3142 = vrot.lane.b32.xlu0 %v14358_v52, %s10400_s9 }
 0xe75   : > { %3106 = vrot.lane.b32.xlu1 %v14359_v33, %s10400_s9 }
 0xe78   : > { %4553 = vrot.lane.b32.xlu0 %v14360_v9, %s10399_s8 }
 0xe79   : > { %4517 = vrot.lane.b32.xlu1 %v14361_v15, %s10399_s8 }
 0xe7c   : > { %4555 = vrot.lane.b32.xlu0 %v14362_v51, %s10399_s8 }
 0xe7d   : > { %4519 = vrot.lane.b32.xlu1 %v14363_v30, %s10399_s8 }
 0xe80   : > { %5966 = vrot.lane.b32.xlu0 %v5835_v18, %s10401_s27  ;;  %v14389_v18 = vld [vmem:[#allocation64_spill] sm:$0xff] }
 0xe81   : > { %5930 = vrot.lane.b32.xlu1 %v13384_v55, %s10401_s27  ;;  %v14367_v55 = vld [vmem:[#allocation57_spill] sm:$0xff] }
 0xe84   : > { %5968 = vrot.lane.b32.xlu0 %v8386_v25, %s10401_s27 }
 0xe85   : > { %5932 = vrot.lane.b32.xlu1 %v13382_v56, %s10401_s27  ;;  %v14368_v56 = vld [vmem:[#allocation22_spill] sm:$0xff] }
 0xe86   : > { %v8395_v63 = vpop.f32.mrb[154].mxu0 }
 0xe87   : > { %v5865_v35 = vpop.f32.mrb[155].mxu0 }
 0xe88   : > { %3144 = vrot.lane.b32.xlu0 %v14364_v34, %s10400_s9  ;;  %v14397_v34 = vld [vmem:[#allocation61_spill] sm:$0xff] }
 0xe89   : > { %3108 = vrot.lane.b32.xlu1 %v14365_v32, %s10400_s9 }
 0xe8a   : > { %v13504_v31 = vpop.f32.mrb[156].mxu0 }
 0xe8b   : > { %v13506_v45 = vpop.f32.mrb[157].mxu0 }
 0xe8c   : > { %3146 = vrot.lane.b32.xlu0 %v14366_v19, %s10400_s9 }
 0xe8d   : > { %3110 = vrot.lane.b32.xlu1 %v14367_v55, %s10400_s9 }
 0xe90   : > { %4557 = vrot.lane.b32.xlu0 %v14368_v56, %s10399_s8  ;;  %v14400_v56 = vld [vmem:[#allocation21_spill] sm:$0xff] }
 0xe91   : > { %v13514_v12 = vpop.f32.mrb[158].mxu0  ;;  %4521 = vrot.lane.b32.xlu1 %v14369_v53, %s10399_s8  ;;  %v14401_v53 = vld [vmem:[#allocation6_spill] sm:$0xff] }
 0xe92   : > { %v13518_v54 = vpop.f32.mrb[159].mxu0 }
 0xe94   : > { %4559 = vrot.lane.b32.xlu0 %v14370_v10, %s10399_s8 }
 0xe95   : > { %4523 = vrot.lane.b32.xlu1 %v14371_v62, %s10399_s8 }
 0xe98   : > { %5970 = vrot.lane.b32.xlu0 %v5845_v23, %s10401_s27 }
 0xe99   : > { %5934 = vrot.lane.b32.xlu1 %v13389_v17, %s10401_s27  ;;  %v14377_v17 = vld [vmem:[#allocation23_spill] sm:$0xff] }
 0xe9c   : > { %5972 = vrot.lane.b32.xlu0 %v8389_v43, %s10401_s27  ;;  %v14391_v43 = vld [vmem:[#allocation65_spill] sm:$0xff] }
 0xe9d   : > { %5936 = vrot.lane.b32.xlu1 %v13387_v7, %s10401_s27  ;;  %v14378_v7 = vld [vmem:[#allocation9_spill] sm:$0xff] }
 0xea0   : > { %3148 = vrot.lane.b32.xlu0 %v14372_v24, %s10400_s9  ;;  %v14402_v24 = vld [vmem:[#allocation33_spill] sm:$0xff] }
 0xea1   : > { %3112 = vrot.lane.b32.xlu1 %v14373_v36, %s10400_s9  ;;  %v14403_v36 = vld [vmem:[#allocation7_spill] sm:$0xff] }
 0xea4   : > { %3150 = vrot.lane.b32.xlu0 %v14374_v5, %s10400_s9 }
 0xea5   : > { %3114 = vrot.lane.b32.xlu1 %v14375_v44, %s10400_s9 }
 0xea8   : > { %4561 = vrot.lane.b32.xlu0 %v14376_v39, %s10399_s8 }
 0xea9   : > { %4525 = vrot.lane.b32.xlu1 %v14377_v17, %s10399_s8 }
 0xeac   : > { %4563 = vrot.lane.b32.xlu0 %v14378_v7, %s10399_s8 }
 0xead   : > { %4527 = vrot.lane.b32.xlu1 %v14379_v58, %s10399_s8 }
 0xeb0   : > { %5974 = vrot.lane.b32.xlu0 %v5855_v28, %s10401_s27 }
 0xeb1   : > { %5938 = vrot.lane.b32.xlu1 %v13393_v22, %s10401_s27  ;;  %v14385_v22 = vld [vmem:[#allocation44_spill] sm:$0xff] }
 0xeb4   : > { %5976 = vrot.lane.b32.xlu0 %v8392_v3, %s10401_s27 }
 0xeb5   : > { %5940 = vrot.lane.b32.xlu1 %v13391_v1, %s10401_s27  ;;  %v14386_v1 = vld [vmem:[#allocation16_spill] sm:$0xff] }
 0xeb8   : > { %3152 = vrot.lane.b32.xlu0 %v14380_v61, %s10400_s9 }
 0xeb9   : > { %3116 = vrot.lane.b32.xlu1 %v14381_v60, %s10400_s9 }
 0xebc   : > { %3154 = vrot.lane.b32.xlu0 %v14382_v14, %s10400_s9 }
 0xebd   : > { %3118 = vrot.lane.b32.xlu1 %v14383_v46, %s10400_s9 }
 0xec0   : > { %4565 = vrot.lane.b32.xlu0 %v14384_v13, %s10399_s8 }
 0xec1   : > { %4529 = vrot.lane.b32.xlu1 %v14385_v22, %s10399_s8 }
 0xec4   : > { %4567 = vrot.lane.b32.xlu0 %v14386_v1, %s10399_s8 }
 0xec5   : > { %4531 = vrot.lane.b32.xlu1 %v14387_v20, %s10399_s8 }
 0xec6   : > { %v5961_v0 = vpop.permute.xlu0 %5960 }
 0xec7   : > { %6040 = vst.msk [vmem:[#allocation2 + $0x88] sm:$0xff] %vm6022_vm6, %v5961_v0  ;;  %v5959_v38 = vpop.permute.xlu1 %5958 }
 0xec8   : > { %6039 = vst.msk [vmem:[#allocation2 + $0x80] sm:$0xff] %vm6022_vm6, %v5959_v38  ;;  %5978 = vrot.lane.b32.xlu0 %v5865_v35, %s10401_s27  ;;  %v14396_v35 = vld [vmem:[#allocation86_spill] sm:$0xff] }
 0xec9   : > { %5942 = vrot.lane.b32.xlu1 %v13399_v21, %s10401_s27  ;;  %v14388_v21 = vld [vmem:[#allocation84_spill] sm:$0xff] }
 0xeca   : > { %v3137_v4 = vpop.permute.xlu0 %3136 }
 0xecb   : > { %3215 = vst.msk [vmem:[#allocation2 + $0x90] sm:$0xff] %vm3196_vm4, %v3137_v4  ;;  %v3101_v57 = vpop.permute.xlu1 %3100 }
 0xecc   : > { %3197 = vst.msk [vmem:[#allocation2] sm:$0xff] %vm3196_vm4, %v3101_v57  ;;  %5980 = vrot.lane.b32.xlu0 %v8395_v63, %s10401_s27 }
 0xecd   : > { %5944 = vrot.lane.b32.xlu1 %v13396_v59, %s10401_s27 }
 0xece   : > { %v3139_v26 = vpop.permute.xlu0 %3138  ;;  %v6072_v27 = vld [vmem:[#allocation2 + $0x88] sm:$0xff] }
 0xecf   : > { %3216 = vst.msk [vmem:[#allocation2 + $0x98] sm:$0xff] %vm3196_vm4, %v3139_v26  ;;  %v3103_v25 = vpop.permute.xlu1 %3102  ;;  %v6071_v11 = vld [vmem:[#allocation2 + $0x80] sm:$0xff] }
 0xed0   : > { %3198 = vst.msk [vmem:[#allocation2 + $0x8] sm:$0xff] %vm3196_vm4, %v3103_v25  ;;  %3156 = vrot.lane.b32.xlu0 %v14388_v21, %s10400_s9  ;;  %8434 = vmatprep.mubr.msk.f32.mxu1 %vm238_vm0, %v6071_v11 }
 0xed1   : > { %3120 = vrot.lane.b32.xlu1 %v14389_v18, %s10400_s9  ;;  %8435 = vmatmul.mubr.msk.f32.gmra.mrb[130].mxu1 %vm238_vm0, %v6072_v27 }
 0xed2   : > { %v4550_v6 = vpop.permute.xlu0 %4549 }
 0xed3   : > { %4628 = vst.msk [vmem:[#allocation2 + $0x90] sm:$0xff] %vm4609_vm5, %v4550_v6  ;;  %v4514_v59 = vpop.permute.xlu1 %4513 }
 0xed4   : > { %4610 = vst.msk [vmem:[#allocation2] sm:$0xff] %vm4609_vm5, %v4514_v59  ;;  %3158 = vrot.lane.b32.xlu0 %v14390_v29, %s10400_s9 }
 0xed5   : > { %3122 = vrot.lane.b32.xlu1 %v14391_v43, %s10400_s9 }
 0xed6   : > { %v4552_v47 = vpop.permute.xlu0 %4551 }
 0xed7   : > { %4629 = vst.msk [vmem:[#allocation2 + $0x98] sm:$0xff] %vm4609_vm5, %v4552_v47  ;;  %v4516_v23 = vpop.permute.xlu1 %4515 }
 0xed8   : > { %4611 = vst.msk [vmem:[#allocation2 + $0x8] sm:$0xff] %vm4609_vm5, %v4516_v23  ;;  %4569 = vrot.lane.b32.xlu0 %v14392_v42, %s10399_s8 }
 0xed9   : > { %4533 = vrot.lane.b32.xlu1 %v14393_v8, %s10399_s8 }
 0xeda   : > { %v5963_v3 = vpop.permute.xlu0 %5962 }
 0xedb   : > { %6041 = vst.msk [vmem:[#allocation2 + $0x90] sm:$0xff] %vm6022_vm6, %v5963_v3  ;;  %v5927_v28 = vpop.permute.xlu1 %5926 }
 0xedc   : > { %6023 = vst.msk [vmem:[#allocation2] sm:$0xff] %vm6022_vm6, %v5927_v28  ;;  %4571 = vrot.lane.b32.xlu0 %v14394_v2, %s10399_s8  ;;  %v13696_v2 = vld [vmem:[%s13868_s3] ss:$0 sm:$0xff] }
 0xedd   : > { %4535 = vrot.lane.b32.xlu1 %v14395_v49, %s10399_s8 }
 0xede   : > { %v5965_v37 = vpop.permute.xlu0 %5964 }
 0xedf   : > { %6042 = vst.msk [vmem:[#allocation2 + $0x98] sm:$0xff] %vm6022_vm6, %v5965_v37  ;;  %v5929_v16 = vpop.permute.xlu1 %5928 }
 0xee0   : > { %6024 = vst.msk [vmem:[#allocation2 + $0x8] sm:$0xff] %vm6022_vm6, %v5929_v16  ;;  %5982 = vrot.lane.b32.xlu0 %v13506_v45, %s10401_s27  ;;  %v14399_v45 = vld [vmem:[#allocation70_spill] sm:$0xff] }
 0xee1   : > { %5946 = vrot.lane.b32.xlu1 %v13410_v41, %s10401_s27 }
 0xee2   : > { %v3141_v52 = vpop.permute.xlu0 %3140  ;;  %v6073_v33 = vld [vmem:[#allocation2 + $0x90] sm:$0xff] }
 0xee3   : > { %3217 = vst.msk [vmem:[#allocation2 + $0xa0] sm:$0xff] %vm3196_vm4, %v3141_v52  ;;  %v3105_v9 = vpop.permute.xlu1 %3104  ;;  %8437 = vmatprep.mubr.msk.f32.mxu1 %vm238_vm0, %v6073_v33  ;;  %v6055_v15 = vld [vmem:[#allocation2] sm:$0xff] }
 0xee4   : > { %3199 = vst.msk [vmem:[#allocation2 + $0x10] sm:$0xff] %vm3196_vm4, %v3105_v9  ;;  %8410 = vmatprep.mubr.msk.f32.mxu0 %vm238_vm0, %v6055_v15  ;;  %5984 = vrot.lane.b32.xlu0 %v13504_v31, %s10401_s27  ;;  %v14398_v31 = vld [vmem:[#allocation83_spill] sm:$0xff] }
 0xee5   : > { %5948 = vrot.lane.b32.xlu1 %v13408_v40, %s10401_s27 }
 0xee6   : > { %v3143_v51 = vpop.permute.xlu0 %3142  ;;  %v6074_v41 = vld [vmem:[#allocation2 + $0x98] sm:$0xff] }
 0xee7   : > { %3218 = vst.msk [vmem:[#allocation2 + $0xa8] sm:$0xff] %vm3196_vm4, %v3143_v51  ;;  %v3107_v30 = vpop.permute.xlu1 %3106  ;;  %8438 = vmatmul.mubr.msk.f32.gmra.mrb[132].mxu1 %vm238_vm0, %v6074_v41  ;;  %v6056_v63 = vld [vmem:[#allocation2 + $0x8] sm:$0xff] }
 0xee8   : > { %3200 = vst.msk [vmem:[#allocation2 + $0x18] sm:$0xff] %vm3196_vm4, %v3107_v30  ;;  %8411 = vmatmul.mubr.msk.f32.vlgmr.msra.gmra.mrb[160].mxu0 %vm238_vm0, %v6056_v63  ;;  %3160 = vrot.lane.b32.xlu0 %v14396_v35, %s10400_s9 }
 0xee9   : > { %3124 = vrot.lane.b32.xlu1 %v14397_v34, %s10400_s9 }
 0xeea   : > { %v4554_v32 = vpop.permute.xlu0 %4553 }
 0xeeb   : > { %4630 = vst.msk [vmem:[#allocation2 + $0xa0] sm:$0xff] %vm4609_vm5, %v4554_v32  ;;  %v4518_v40 = vpop.permute.xlu1 %4517 }
 0xeec   : > { %4612 = vst.msk [vmem:[#allocation2 + $0x10] sm:$0xff] %vm4609_vm5, %v4518_v40  ;;  %3162 = vrot.lane.b32.xlu0 %v14398_v31, %s10400_s9 }
 0xeed   : > { %3126 = vrot.lane.b32.xlu1 %v14399_v45, %s10400_s9 }
 0xeee   : > { %v4556_v19 = vpop.permute.xlu0 %4555 }
 0xeef   : > { %4631 = vst.msk [vmem:[#allocation2 + $0xa8] sm:$0xff] %vm4609_vm5, %v4556_v19  ;;  %v4520_v55 = vpop.permute.xlu1 %4519 }
 0xef0   : > { %4613 = vst.msk [vmem:[#allocation2 + $0x18] sm:$0xff] %vm4609_vm5, %v4520_v55  ;;  %4573 = vrot.lane.b32.xlu0 %v14400_v56, %s10399_s8 }
 0xef1   : > { %4537 = vrot.lane.b32.xlu1 %v14401_v53, %s10399_s8 }
 0xef2   : > { %v5967_v10 = vpop.permute.xlu0 %5966 }
 0xef3   : > { %6043 = vst.msk [vmem:[#allocation2 + $0xa0] sm:$0xff] %vm6022_vm6, %v5967_v10  ;;  %v5931_v62 = vpop.permute.xlu1 %5930 }
 0xef4   : > { %6025 = vst.msk [vmem:[#allocation2 + $0x10] sm:$0xff] %vm6022_vm6, %v5931_v62  ;;  %4575 = vrot.lane.b32.xlu0 %v14402_v24, %s10399_s8 }
 0xef5   : > { %4539 = vrot.lane.b32.xlu1 %v14403_v36, %s10399_s8  ;;  %s6466_s8 = sshll.u32 %s13704_s6, 4  ;;  %s13816_s8 = int_to_ptr.vmem [resolvable:$true] %s6466_s8 }
 0xef6   : > { %v5969_v5 = vpop.permute.xlu0 %5968  ;;  %s10324_s13 = scalar_lea.vmem %s13816_s8, 4096  ;;  %p10331_p0 = scmp.lt.s32.totalorder %s13816_s8, %s10329_s20 }
 0xef7   : > { %6044 = vst.msk [vmem:[#allocation2 + $0xa8] sm:$0xff] %vm6022_vm6, %v5969_v5  ;;  %v5933_v44 = vpop.permute.xlu1 %5932  ;;  %p10325_p11 = scmp.ne.s32.totalorder %s13816_s8, %s10324_s13  ;;  %p10332_p1 = scmp.lt.s32.totalorder %s10330_s22, %s10324_s13 }
 0xef8   : > { %6026 = vst.msk [vmem:[#allocation2 + $0x18] sm:$0xff] %vm6022_vm6, %v5933_v44  ;;  %5986 = vrot.lane.b32.xlu0 %v13518_v54, %s10401_s27 }
 0xef9   : > { %5950 = vrot.lane.b32.xlu1 %v13414_v50, %s10401_s27  ;;  %p10326_p12 = pnand %p10325_p11, %p10467_p5  ;;  %p10333_p2 = por %p10332_p1, %p10331_p0 }
 0xefa   : > { %v3145_v39 = vpop.permute.xlu0 %3144  ;;  %v6075_v17 = vld [vmem:[#allocation2 + $0xa0] sm:$0xff] }
 0xefb   : > { %3219 = vst.msk [vmem:[#allocation2 + $0xb0] sm:$0xff] %vm3196_vm4, %v3145_v39  ;;  %v3109_v7 = vpop.permute.xlu1 %3108  ;;  %8440 = vmatprep.mubr.msk.f32.mxu1 %vm238_vm0, %v6075_v17  ;;  %v6057_v58 = vld [vmem:[#allocation2 + $0x10] sm:$0xff]  ;;  %p10327_p13 = pneg %p10326_p12 }
 0xefc   : > { %3201 = vst.msk [vmem:[#allocation2 + $0x20] sm:$0xff] %vm3196_vm4, %v3109_v7  ;;  %8413 = vmatprep.mubr.msk.f32.mxu0 %vm238_vm0, %v6057_v58  ;;  %5988 = vrot.lane.b32.xlu0 %v13514_v12, %s10401_s27 }
 0xefd   : > { %5952 = vrot.lane.b32.xlu1 %v13412_v48, %s10401_s27  ;;  %p10334_p3 = pnand %p10333_p2, %p10327_p13 }
 0xefe   : > { %v3147_v54 = vpop.permute.xlu0 %3146  ;;  %v6076_v50 = vld [vmem:[#allocation2 + $0xa8] sm:$0xff] }
 0xeff   : > { %3220 = vst.msk [vmem:[#allocation2 + $0xb8] sm:$0xff] %vm3196_vm4, %v3147_v54  ;;  %v3111_v61 = vpop.permute.xlu1 %3110  ;;  %8441 = vmatmul.mubr.msk.f32.gmra.mrb[134].mxu1 %vm238_vm0, %v6076_v50  ;;  %v6058_v60 = vld [vmem:[#allocation2 + $0x18] sm:$0xff] }
 0xf00   : > { %3202 = vst.msk [vmem:[#allocation2 + $0x28] sm:$0xff] %vm3196_vm4, %v3111_v61  ;;  %8414 = vmatmul.mubr.msk.f32.gmra.mrb[162].mxu0 %vm238_vm0, %v6058_v60 }
 0xf02   : > { %v4558_v14 = vpop.permute.xlu0 %4557 }
 0xf03   : > { %4632 = vst.msk [vmem:[#allocation2 + $0xb0] sm:$0xff] %vm4609_vm5, %v4558_v14  ;;  %v4522_v46 = vpop.permute.xlu1 %4521 }
 0xf04   : > { %4614 = vst.msk [vmem:[#allocation2 + $0x20] sm:$0xff] %vm4609_vm5, %v4522_v46 }
 0xf06   : > { %v4560_v12 = vpop.permute.xlu0 %4559 }
 0xf07   : > { %4633 = vst.msk [vmem:[#allocation2 + $0xb8] sm:$0xff] %vm4609_vm5, %v4560_v12  ;;  %v4524_v48 = vpop.permute.xlu1 %4523 }
 0xf08   : > { %4615 = vst.msk [vmem:[#allocation2 + $0x28] sm:$0xff] %vm4609_vm5, %v4524_v48 }
 0xf0a   : > { %v5971_v13 = vpop.permute.xlu0 %5970 }
 0xf0b   : > { %6045 = vst.msk [vmem:[#allocation2 + $0xb0] sm:$0xff] %vm6022_vm6, %v5971_v13  ;;  %v5935_v22 = vpop.permute.xlu1 %5934 }
 0xf0c   : > { %6027 = vst.msk [vmem:[#allocation2 + $0x20] sm:$0xff] %vm6022_vm6, %v5935_v22 }
 0xf0e   : > { %v5973_v1 = vpop.permute.xlu0 %5972 }
 0xf0f   : > { %6046 = vst.msk [vmem:[#allocation2 + $0xb8] sm:$0xff] %vm6022_vm6, %v5973_v1  ;;  %v5937_v20 = vpop.permute.xlu1 %5936 }
 0xf10   : > { %6028 = vst.msk [vmem:[#allocation2 + $0x28] sm:$0xff] %vm6022_vm6, %v5937_v20 }
 0xf12   : > { %v3149_v0 = vpop.permute.xlu0 %3148  ;;  %v6077_v38 = vld [vmem:[#allocation2 + $0xb0] sm:$0xff] }
 0xf13   : > { %3221 = vst.msk [vmem:[#allocation2 + $0xc0] sm:$0xff] %vm3196_vm4, %v3149_v0  ;;  %v3113_v4 = vpop.permute.xlu1 %3112  ;;  %8443 = vmatprep.mubr.msk.f32.mxu1 %vm238_vm0, %v6077_v38  ;;  %v6059_v57 = vld [vmem:[#allocation2 + $0x20] sm:$0xff] }
 0xf14   : > { %3203 = vst.msk [vmem:[#allocation2 + $0x30] sm:$0xff] %vm3196_vm4, %v3113_v4  ;;  %8416 = vmatprep.mubr.msk.f32.mxu0 %vm238_vm0, %v6059_v57 }
 0xf16   : > { %v3151_v26 = vpop.permute.xlu0 %3150  ;;  %v6078_v25 = vld [vmem:[#allocation2 + $0xb8] sm:$0xff] }
 0xf17   : > { %3222 = vst.msk [vmem:[#allocation2 + $0xc8] sm:$0xff] %vm3196_vm4, %v3151_v26  ;;  %v3115_v11 = vpop.permute.xlu1 %3114  ;;  %8444 = vmatmul.mubr.msk.f32.gmra.mrb[136].mxu1 %vm238_vm0, %v6078_v25  ;;  %v6060_v21 = vld [vmem:[#allocation2 + $0x28] sm:$0xff] }
 0xf18   : > { %3204 = vst.msk [vmem:[#allocation2 + $0x38] sm:$0xff] %vm3196_vm4, %v3115_v11  ;;  %8417 = vmatmul.mubr.msk.f32.gmra.mrb[164].mxu0 %vm238_vm0, %v6060_v21 }
 0xf1a   : > { %v4562_v27 = vpop.permute.xlu0 %4561 }
 0xf1b   : > { %4634 = vst.msk [vmem:[#allocation2 + $0xc0] sm:$0xff] %vm4609_vm5, %v4562_v27  ;;  %v4526_v18 = vpop.permute.xlu1 %4525 }
 0xf1c   : > { %4616 = vst.msk [vmem:[#allocation2 + $0x30] sm:$0xff] %vm4609_vm5, %v4526_v18 }
 0xf1e   : > { %v4564_v6 = vpop.permute.xlu0 %4563 }
 0xf1f   : > { %4635 = vst.msk [vmem:[#allocation2 + $0xc8] sm:$0xff] %vm4609_vm5, %v4564_v6  ;;  %v4528_v59 = vpop.permute.xlu1 %4527 }
 0xf20   : > { %4617 = vst.msk [vmem:[#allocation2 + $0x38] sm:$0xff] %vm4609_vm5, %v4528_v59 }
 0xf22   : > { %v5975_v29 = vpop.permute.xlu0 %5974 }
 0xf23   : > { %6047 = vst.msk [vmem:[#allocation2 + $0xc0] sm:$0xff] %vm6022_vm6, %v5975_v29  ;;  %v5939_v43 = vpop.permute.xlu1 %5938 }
 0xf24   : > { %6029 = vst.msk [vmem:[#allocation2 + $0x30] sm:$0xff] %vm6022_vm6, %v5939_v43 }
 0xf26   : > { %v5977_v47 = vpop.permute.xlu0 %5976 }
 0xf27   : > { %6048 = vst.msk [vmem:[#allocation2 + $0xc8] sm:$0xff] %vm6022_vm6, %v5977_v47  ;;  %v5941_v23 = vpop.permute.xlu1 %5940 }
 0xf28   : > { %6030 = vst.msk [vmem:[#allocation2 + $0x38] sm:$0xff] %vm6022_vm6, %v5941_v23 }
 0xf2a   : > { %v3153_v42 = vpop.permute.xlu0 %3152  ;;  %v6079_v8 = vld [vmem:[#allocation2 + $0xc0] sm:$0xff] }
 0xf2b   : > { %3223 = vst.msk [vmem:[#allocation2 + $0xd0] sm:$0xff] %vm3196_vm4, %v3153_v42  ;;  %v3117_v3 = vpop.permute.xlu1 %3116  ;;  %8446 = vmatprep.mubr.msk.f32.mxu1 %vm238_vm0, %v6079_v8  ;;  %v6061_v28 = vld [vmem:[#allocation2 + $0x30] sm:$0xff] }
 0xf2c   : > { %3205 = vst.msk [vmem:[#allocation2 + $0x40] sm:$0xff] %vm3196_vm4, %v3117_v3  ;;  %8419 = vmatprep.mubr.msk.f32.mxu0 %vm238_vm0, %v6061_v28 }
 0xf2e   : > { %v3155_v49 = vpop.permute.xlu0 %3154  ;;  %v6080_v37 = vld [vmem:[#allocation2 + $0xc8] sm:$0xff] }
 0xf2f   : > { %3224 = vst.msk [vmem:[#allocation2 + $0xd8] sm:$0xff] %vm3196_vm4, %v3155_v49  ;;  %v3119_v16 = vpop.permute.xlu1 %3118  ;;  %v8433_v52 = vpop.f32.mrb[128].mxu1  ;;  %8447 = vmatmul.mubr.msk.f32.gmra.mrb[138].mxu1 %vm238_vm0, %v6080_v37  ;;  %v6062_v33 = vld [vmem:[#allocation2 + $0x38] sm:$0xff] }
 0xf30   : > { %3206 = vst.msk [vmem:[#allocation2 + $0x48] sm:$0xff] %vm3196_vm4, %v3119_v16  ;;  %v6336_v9 = vadd.f32 %v8433_v52, %v13696_v2  ;;  %8420 = vmatmul.mubr.msk.f32.gmra.mrb[166].mxu0 %vm238_vm0, %v6062_v33  ;;  %v6330_v15 = vpop.f32.mrb[129].mxu1 }
 0xf31   : > { %v6331_v51 = vadd.f32 %v13696_v2, %v6330_v15 }
 0xf32   : > { %6434 = vst [vmem:[%s13704_s6 + $0x78] sm:$0xff] %v6336_v9  ;;  %v4566_v41 = vpop.permute.xlu0 %4565 }
 0xf33   : > { %6433 = vst [vmem:[%s13704_s6 + $0x70] sm:$0xff] %v6331_v51  ;;  %4636 = vst.msk [vmem:[#allocation2 + $0xd0] sm:$0xff] %vm4609_vm5, %v4566_v41  ;;  %v4530_v30 = vpop.permute.xlu1 %4529 }
 0xf34   : > { %4618 = vst.msk [vmem:[#allocation2 + $0x40] sm:$0xff] %vm4609_vm5, %v4530_v30 }
 0xf36   : > { %v4568_v63 = vpop.permute.xlu0 %4567 }
 0xf37   : > { %4637 = vst.msk [vmem:[#allocation2 + $0xd8] sm:$0xff] %vm4609_vm5, %v4568_v63  ;;  %v4532_v35 = vpop.permute.xlu1 %4531 }
 0xf38   : > { %4619 = vst.msk [vmem:[#allocation2 + $0x48] sm:$0xff] %vm4609_vm5, %v4532_v35 }
 0xf3a   : > { %v5979_v34 = vpop.permute.xlu0 %5978 }
 0xf3b   : > { %6049 = vst.msk [vmem:[#allocation2 + $0xd0] sm:$0xff] %vm6022_vm6, %v5979_v34  ;;  %v5943_v32 = vpop.permute.xlu1 %5942 }
 0xf3c   : > { %6031 = vst.msk [vmem:[#allocation2 + $0x40] sm:$0xff] %vm6022_vm6, %v5943_v32 }
 0xf3e   : > { %v5981_v40 = vpop.permute.xlu0 %5980 }
 0xf3f   : > { %6050 = vst.msk [vmem:[#allocation2 + $0xd8] sm:$0xff] %vm6022_vm6, %v5981_v40  ;;  %v5945_v31 = vpop.permute.xlu1 %5944 }
 0xf40   : > { %6032 = vst.msk [vmem:[#allocation2 + $0x48] sm:$0xff] %vm6022_vm6, %v5945_v31 }
 0xf42   : > { %v3157_v45 = vpop.permute.xlu0 %3156  ;;  %v6081_v19 = vld [vmem:[#allocation2 + $0xd0] sm:$0xff] }
 0xf43   : > { %3225 = vst.msk [vmem:[#allocation2 + $0xe0] sm:$0xff] %vm3196_vm4, %v3157_v45  ;;  %v3121_v55 = vpop.permute.xlu1 %3120  ;;  %8449 = vmatprep.mubr.msk.f32.mxu1 %vm238_vm0, %v6081_v19  ;;  %v6063_v56 = vld [vmem:[#allocation2 + $0x40] sm:$0xff] }
 0xf44   : > { %3207 = vst.msk [vmem:[#allocation2 + $0x50] sm:$0xff] %vm3196_vm4, %v3121_v55  ;;  %8422 = vmatprep.mubr.msk.f32.mxu0 %vm238_vm0, %v6063_v56 }
 0xf46   : > { %v3159_v53 = vpop.permute.xlu0 %3158  ;;  %v6082_v10 = vld [vmem:[#allocation2 + $0xd8] sm:$0xff] }
 0xf47   : > { %3226 = vst.msk [vmem:[#allocation2 + $0xe8] sm:$0xff] %vm3196_vm4, %v3159_v53  ;;  %v3123_v62 = vpop.permute.xlu1 %3122  ;;  %8450 = vmatmul.mubr.msk.f32.gmra.mrb[140].mxu1 %vm238_vm0, %v6082_v10  ;;  %v6064_v24 = vld [vmem:[#allocation2 + $0x48] sm:$0xff] }
 0xf48   : > { %3208 = vst.msk [vmem:[#allocation2 + $0x58] sm:$0xff] %vm3196_vm4, %v3123_v62  ;;  %8423 = vmatmul.mubr.msk.f32.gmra.mrb[168].mxu0 %vm238_vm0, %v6064_v24 }
 0xf4a   : > { %v4570_v36 = vpop.permute.xlu0 %4569 }
 0xf4b   : > { %4638 = vst.msk [vmem:[#allocation2 + $0xe0] sm:$0xff] %vm4609_vm5, %v4570_v36  ;;  %v4534_v5 = vpop.permute.xlu1 %4533 }
 0xf4c   : > { %4620 = vst.msk [vmem:[#allocation2 + $0x50] sm:$0xff] %vm4609_vm5, %v4534_v5 }
 0xf4e   : > { %v4572_v44 = vpop.permute.xlu0 %4571 }
 0xf4f   : > { %4639 = vst.msk [vmem:[#allocation2 + $0xe8] sm:$0xff] %vm4609_vm5, %v4572_v44  ;;  %v4536_v39 = vpop.permute.xlu1 %4535 }
 0xf50   : > { %4621 = vst.msk [vmem:[#allocation2 + $0x58] sm:$0xff] %vm4609_vm5, %v4536_v39 }
 0xf52   : > { %v5983_v17 = vpop.permute.xlu0 %5982 }
 0xf53   : > { %6051 = vst.msk [vmem:[#allocation2 + $0xe0] sm:$0xff] %vm6022_vm6, %v5983_v17  ;;  %v5947_v7 = vpop.permute.xlu1 %5946 }
 0xf54   : > { %6033 = vst.msk [vmem:[#allocation2 + $0x50] sm:$0xff] %vm6022_vm6, %v5947_v7 }
 0xf56   : > { %v5985_v58 = vpop.permute.xlu0 %5984 }
 0xf57   : > { %6052 = vst.msk [vmem:[#allocation2 + $0xe8] sm:$0xff] %vm6022_vm6, %v5985_v58  ;;  %v5949_v54 = vpop.permute.xlu1 %5948 }
 0xf58   : > { %6034 = vst.msk [vmem:[#allocation2 + $0x58] sm:$0xff] %vm6022_vm6, %v5949_v54 }
 0xf5a   : > { %v3161_v50 = vpop.permute.xlu0 %3160  ;;  %v6083_v61 = vld [vmem:[#allocation2 + $0xe0] sm:$0xff] }
 0xf5b   : > { %3227 = vst.msk [vmem:[#allocation2 + $0xf0] sm:$0xff] %vm3196_vm4, %v3161_v50  ;;  %v3125_v60 = vpop.permute.xlu1 %3124  ;;  %8452 = vmatprep.mubr.msk.f32.mxu1 %vm238_vm0, %v6083_v61  ;;  %v6065_v14 = vld [vmem:[#allocation2 + $0x50] sm:$0xff] }
 0xf5c   : > { %3209 = vst.msk [vmem:[#allocation2 + $0x60] sm:$0xff] %vm3196_vm4, %v3125_v60  ;;  %8425 = vmatprep.mubr.msk.f32.mxu0 %vm238_vm0, %v6065_v14 }
 0xf5e   : > { %v3163_v46 = vpop.permute.xlu0 %3162  ;;  %v6084_v12 = vld [vmem:[#allocation2 + $0xe8] sm:$0xff] }
 0xf5f   : > { %3228 = vst.msk [vmem:[#allocation2 + $0xf8] sm:$0xff] %vm3196_vm4, %v3163_v46  ;;  %v3127_v48 = vpop.permute.xlu1 %3126  ;;  %8453 = vmatmul.mubr.msk.f32.gmra.mrb[142].mxu1 %vm238_vm0, %v6084_v12  ;;  %v6066_v13 = vld [vmem:[#allocation2 + $0x58] sm:$0xff] }
 0xf60   : > { %3210 = vst.msk [vmem:[#allocation2 + $0x68] sm:$0xff] %vm3196_vm4, %v3127_v48  ;;  %8426 = vmatmul.mubr.msk.f32.gmra.mrb[170].mxu0 %vm238_vm0, %v6066_v13 }
 0xf62   : > { %v4574_v22 = vpop.permute.xlu0 %4573 }
 0xf63   : > { %4640 = vst.msk [vmem:[#allocation2 + $0xf0] sm:$0xff] %vm4609_vm5, %v4574_v22  ;;  %v4538_v1 = vpop.permute.xlu1 %4537 }
 0xf64   : > { %4622 = vst.msk [vmem:[#allocation2 + $0x60] sm:$0xff] %vm4609_vm5, %v4538_v1 }
 0xf66   : > { %v4576_v20 = vpop.permute.xlu0 %4575 }
 0xf67   : > { %4641 = vst.msk [vmem:[#allocation2 + $0xf8] sm:$0xff] %vm4609_vm5, %v4576_v20  ;;  %v4540_v0 = vpop.permute.xlu1 %4539 }
 0xf68   : > { %4623 = vst.msk [vmem:[#allocation2 + $0x68] sm:$0xff] %vm4609_vm5, %v4540_v0 }
 0xf6a   : > { %v5987_v38 = vpop.permute.xlu0 %5986 }
 0xf6b   : > { %6053 = vst.msk [vmem:[#allocation2 + $0xf0] sm:$0xff] %vm6022_vm6, %v5987_v38  ;;  %v5951_v4 = vpop.permute.xlu1 %5950 }
 0xf6c   : > { %6035 = vst.msk [vmem:[#allocation2 + $0x60] sm:$0xff] %vm6022_vm6, %v5951_v4 }
 0xf6e   : > { %v5989_v57 = vpop.permute.xlu0 %5988 }
 0xf6f   : > { %6054 = vst.msk [vmem:[#allocation2 + $0xf8] sm:$0xff] %vm6022_vm6, %v5989_v57  ;;  %v5953_v26 = vpop.permute.xlu1 %5952 }
 0xf70   : > { %6036 = vst.msk [vmem:[#allocation2 + $0x68] sm:$0xff] %vm6022_vm6, %v5953_v26 }
 0xf72   : > { %v6085_v25 = vld [vmem:[#allocation2 + $0xf0] sm:$0xff] }
 0xf73   : > { %8455 = vmatprep.mubr.msk.f32.mxu1 %vm238_vm0, %v6085_v25  ;;  %v6067_v11 = vld [vmem:[#allocation2 + $0x60] sm:$0xff] }
 0xf74   : > { %8428 = vmatprep.mubr.msk.f32.mxu0 %vm238_vm0, %v6067_v11 }
 0xf76   : > { %v6086_v21 = vld [vmem:[#allocation2 + $0xf8] sm:$0xff] }
 0xf77   : > { %8456 = vmatmul.mubr.msk.f32.gmra.mrb[144].mxu1 %vm238_vm0, %v6086_v21  ;;  %v6068_v27 = vld [vmem:[#allocation2 + $0x68] sm:$0xff] }
 0xf78   : > { %8429 = vmatmul.mubr.msk.f32.gmra.mrb[172].mxu0 %vm238_vm0, %v6068_v27 }
 0xfa4   : > { %v8436_v18 = vpop.f32.mrb[130].mxu1 }
 0xfa5   : > { %v6346_v6 = vadd.f32 %v8436_v18, %v13696_v2  ;;  %v6340_v59 = vpop.f32.mrb[131].mxu1 }
 0xfa6   : > { %v6341_v29 = vadd.f32 %v13696_v2, %v6340_v59 }
 0xfa7   : > { %6436 = vst [vmem:[%s13704_s6 + $0x88] sm:$0xff] %v6346_v6 }
 0xfa8   : > { %6435 = vst [vmem:[%s13704_s6 + $0x80] sm:$0xff] %v6341_v29 }
 0xfba   : > { %v8439_v43 = vpop.f32.mrb[132].mxu1 }
 0xfbb   : > { %v6356_v47 = vadd.f32 %v8439_v43, %v13696_v2  ;;  %v8412_v23 = vpop.f32.mrb[160].mxu0  ;;  %v6350_v42 = vpop.f32.mrb[133].mxu1 }
 0xfbc   : > { %v6266_v8 = vadd.f32 %v8412_v23, %v13696_v2  ;;  %v6351_v3 = vadd.f32 %v13696_v2, %v6350_v42  ;;  %v6260_v28 = vpop.f32.mrb[161].mxu0 }
 0xfbd   : > { %6438 = vst [vmem:[%s13704_s6 + $0x98] sm:$0xff] %v6356_v47  ;;  %v6261_v49 = vadd.f32 %v13696_v2, %v6260_v28 }
 0xfbe   : > { %6420 = vst [vmem:[%s13704_s6 + $0x8] sm:$0xff] %v6266_v8  ;;  %6437 = vst [vmem:[%s13704_s6 + $0x90] sm:$0xff] %v6351_v3 }
 0xfbf   : > { %6419 = vst [vmem:[%s13704_s6] sm:$0xff] %v6261_v49 }
 0xfd2   : > { %v8442_v37 = vpop.f32.mrb[134].mxu1 }
 0xfd3   : > { %v6366_v16 = vadd.f32 %v8442_v37, %v13696_v2  ;;  %v8415_v52 = vpop.f32.mrb[162].mxu0  ;;  %v6360_v33 = vpop.f32.mrb[135].mxu1 }
 0xfd4   : > { %v6276_v9 = vadd.f32 %v8415_v52, %v13696_v2  ;;  %v6361_v15 = vadd.f32 %v13696_v2, %v6360_v33  ;;  %v6270_v51 = vpop.f32.mrb[163].mxu0 }
 0xfd5   : > { %6440 = vst [vmem:[%s13704_s6 + $0xa8] sm:$0xff] %v6366_v16  ;;  %v6271_v41 = vadd.f32 %v13696_v2, %v6270_v51 }
 0xfd6   : > { %6422 = vst [vmem:[%s13704_s6 + $0x18] sm:$0xff] %v6276_v9  ;;  %6439 = vst [vmem:[%s13704_s6 + $0xa0] sm:$0xff] %v6361_v15 }
 0xfd7   : > { %6421 = vst [vmem:[%s13704_s6 + $0x10] sm:$0xff] %v6271_v41 }
 0xfea   : > { %v8445_v30 = vpop.f32.mrb[136].mxu1 }
 0xfeb   : > { %v6376_v63 = vadd.f32 %v8445_v30, %v13696_v2  ;;  %v8418_v35 = vpop.f32.mrb[164].mxu0  ;;  %v6370_v34 = vpop.f32.mrb[137].mxu1 }
 0xfec   : > { %v6286_v32 = vadd.f32 %v8418_v35, %v13696_v2  ;;  %v6371_v40 = vadd.f32 %v13696_v2, %v6370_v34  ;;  %v6280_v31 = vpop.f32.mrb[165].mxu0 }
 0xfed   : > { %6442 = vst [vmem:[%s13704_s6 + $0xb8] sm:$0xff] %v6376_v63  ;;  %v6281_v45 = vadd.f32 %v13696_v2, %v6280_v31 }
 0xfee   : > { %6424 = vst [vmem:[%s13704_s6 + $0x28] sm:$0xff] %v6286_v32  ;;  %6441 = vst [vmem:[%s13704_s6 + $0xb0] sm:$0xff] %v6371_v40 }
 0xfef   : > { %6423 = vst [vmem:[%s13704_s6 + $0x20] sm:$0xff] %v6281_v45 }
0x1002   : > { %v8448_v19 = vpop.f32.mrb[138].mxu1 }
0x1003   : > { %v6386_v55 = vadd.f32 %v8448_v19, %v13696_v2  ;;  %v8421_v56 = vpop.f32.mrb[166].mxu0  ;;  %v6380_v53 = vpop.f32.mrb[139].mxu1 }
0x1004   : > { %v6296_v10 = vadd.f32 %v8421_v56, %v13696_v2  ;;  %v6381_v62 = vadd.f32 %v13696_v2, %v6380_v53  ;;  %v6290_v24 = vpop.f32.mrb[167].mxu0 }
0x1005   : > { %6444 = vst [vmem:[%s13704_s6 + $0xc8] sm:$0xff] %v6386_v55  ;;  %v6291_v36 = vadd.f32 %v13696_v2, %v6290_v24 }
0x1006   : > { %6426 = vst [vmem:[%s13704_s6 + $0x38] sm:$0xff] %v6296_v10  ;;  %6443 = vst [vmem:[%s13704_s6 + $0xc0] sm:$0xff] %v6381_v62 }
0x1007   : > { %6425 = vst [vmem:[%s13704_s6 + $0x30] sm:$0xff] %v6291_v36 }
0x101a   : > { %v8451_v5 = vpop.f32.mrb[140].mxu1 }
0x101b   : > { %v6396_v44 = vadd.f32 %v8451_v5, %v13696_v2  ;;  %v8424_v39 = vpop.f32.mrb[168].mxu0  ;;  %v6390_v17 = vpop.f32.mrb[141].mxu1 }
0x101c   : > { %v6306_v7 = vadd.f32 %v8424_v39, %v13696_v2  ;;  %v6391_v58 = vadd.f32 %v13696_v2, %v6390_v17  ;;  %v6300_v54 = vpop.f32.mrb[169].mxu0 }
0x101d   : > { %6446 = vst [vmem:[%s13704_s6 + $0xd8] sm:$0xff] %v6396_v44  ;;  %v6301_v50 = vadd.f32 %v13696_v2, %v6300_v54 }
0x101e   : > { %6428 = vst [vmem:[%s13704_s6 + $0x48] sm:$0xff] %v6306_v7  ;;  %6445 = vst [vmem:[%s13704_s6 + $0xd0] sm:$0xff] %v6391_v58 }
0x101f   : > { %6427 = vst [vmem:[%s13704_s6 + $0x40] sm:$0xff] %v6301_v50 }
0x1032   : > { %v8454_v61 = vpop.f32.mrb[142].mxu1 }
0x1033   : > { %v6406_v60 = vadd.f32 %v8454_v61, %v13696_v2  ;;  %v8427_v14 = vpop.f32.mrb[170].mxu0  ;;  %v6400_v46 = vpop.f32.mrb[143].mxu1 }
0x1034   : > { %v6316_v12 = vadd.f32 %v8427_v14, %v13696_v2  ;;  %v6401_v48 = vadd.f32 %v13696_v2, %v6400_v46  ;;  %v6310_v13 = vpop.f32.mrb[171].mxu0 }
0x1035   : > { %6448 = vst [vmem:[%s13704_s6 + $0xe8] sm:$0xff] %v6406_v60  ;;  %v6311_v22 = vadd.f32 %v13696_v2, %v6310_v13 }
0x1036   : > { %6430 = vst [vmem:[%s13704_s6 + $0x58] sm:$0xff] %v6316_v12  ;;  %6447 = vst [vmem:[%s13704_s6 + $0xe0] sm:$0xff] %v6401_v48 }
0x1037   : > { %6429 = vst [vmem:[%s13704_s6 + $0x50] sm:$0xff] %v6311_v22 }
0x104a   : > { %v8457_v1 = vpop.f32.mrb[144].mxu1 }
0x104b   : > { %v6416_v20 = vadd.f32 %v8457_v1, %v13696_v2  ;;  %v8430_v0 = vpop.f32.mrb[172].mxu0  ;;  %v6410_v38 = vpop.f32.mrb[145].mxu1 }
0x104c   : > { %v6326_v4 = vadd.f32 %v8430_v0, %v13696_v2  ;;  %v6411_v57 = vadd.f32 %v13696_v2, %v6410_v38  ;;  %v6320_v26 = vpop.f32.mrb[173].mxu0 }
0x104d   : > { %6450 = vst [vmem:[%s13704_s6 + $0xf8] sm:$0xff] %v6416_v20  ;;  %v6321_v25 = vadd.f32 %v13696_v2, %v6320_v26 }
0x104e   : > { %6432 = vst [vmem:[%s13704_s6 + $0x68] sm:$0xff] %v6326_v4  ;;  %6449 = vst [vmem:[%s13704_s6 + $0xf0] sm:$0xff] %v6411_v57 }
0x104f   : > { %6431 = vst [vmem:[%s13704_s6 + $0x60] sm:$0xff] %v6321_v25 }
0x1050   : > { %10337 = shalt.err (!%p10334_p3)
}
0x1051   : > { %s10338_s23 = scalar_lea.hbm %s13812_s12, 4096  ;;  %s10342_s29 = scalar_lea.hbm %s13869_s4, 8192 }
0x1052   : > { %p10339_p4 = scmp.ne.s32.totalorder %s13812_s12, %s10338_s23  ;;  %p10343_p9 = scmp.lt.u32.totalorder %s13812_s12, %s13869_s4 }
0x1053   : > { %p10344_p10 = scmp.lt.u32.totalorder %s10342_s29, %s10338_s23  ;;  %p10346_p12 = scmp.lt.u32.totalorder %s10338_s23, %s13812_s12 }
0x1054   : > { %p10340_p7 = pnand %p10339_p4, %p10467_p5 }
0x1055   : > { %p10345_p11 = por %p10344_p10, %p10343_p9 }
0x1056   : > { %p10341_p8 = pneg %p10340_p7 }
0x1057   : > { %p10347_p13 = por %p10346_p12, %p10345_p11 }
0x1059   : > { %p10348_p0 = pnand %p10347_p13, %p10341_p8 }
0x105b   : > { %10351 = shalt.err (!%p10348_p0)
}
0x105c   : > { %s10403_s6 = smov 128  }
0x105d   : > { %9118 = dma.vmem_to_hbm [thread:$0]  (%p10467_p5), %s13816_s8, 4096, %s13812_s12, %s13823_s19, %s10403_s6, %s10403_s6, %s10400_s9  }
0x105e PF: > { %p9124_p1 = scmp.ge.s32.totalorder %s10386_s18, 2  ;;  %s6481_s7 = sand.u32 1, %s10374_s15  }
0x105f   : > { %s6482_s10 = scalar_lea.sflag [#allocation4], %s6481_s7 }
0x1060   : > { %p9121_p2 = pnand %p9124_p1, %p10471_p6 }
0x1062   : > { %10369 = dma.done.wait (!%p9121_p2), %s6482_s10, 4096  }
0x1063   : > { %10371 = vsyncadd (!%p9121_p2), %s6482_s10, 4294963200  ;;  %p14_p3 = scmp.ge.s32.totalorder %s10454_s21, 4   ;;  %s14404_s15 = smov %s10378_s16 }
0x1064   : > { %s14405_s16 = smov %s10382_s17  ;;  %s14406_s17 = smov %s10465_s24 }
0x1065   : > { %s14407_s18 = smov %s10454_s21  ;;  %16 = sbr.rel (!%p14_p3) target bundleno = 3 (0x3), region = 71 }
0x106c   :  { %6487 = vsyncpa [#allocation4], 1 }
0x106d   :  { %6489 = vsyncpa [#allocation4 + $0x1], 1 }

</bundles_post_ra>
